<compile_context>
chip_gen: v5e
topology: v5e:2x2
jax: 0.10.0
libtpu: 0.0.40
codegen_flags: <defaults>
</compile_context>

<pallas_src>
import functools
import math

import numpy as np
import jax
import jax.numpy as jnp
from jax import lax
from jax.experimental import pallas as pl
from jax.experimental.pallas import tpu as pltpu


# ----------------------------------------------------------------------------
# small helpers (usable both in kernels and in glue)
# ----------------------------------------------------------------------------

def _round_up(x, m):
    return ((x + m - 1) // m) * m


_INV_SQRT2 = np.float32(1.0 / math.sqrt(2.0))


def _gelu(x):
    # exact (erf) GELU, matches torch.nn.GELU()
    return 0.5 * x * (1.0 + lax.erf(x * _INV_SQRT2))


def _ln(x, g, b, eps):
    mu = jnp.mean(x, axis=-1, keepdims=True)
    xc = x - mu
    var = jnp.mean(xc * xc, axis=-1, keepdims=True)
    return xc * lax.rsqrt(var + eps) * g + b


# ----------------------------------------------------------------------------
# Pallas kernels
# ----------------------------------------------------------------------------

def _mm_bias_act_kernel(x_ref, w_ref, b_ref, o_ref, *, act):
    """o = act(x @ w + b) on one (tm, Kp) x (Kp, N) tile.  bf16 in, f32 acc/out."""
    y = jnp.dot(x_ref[...], w_ref[...], preferred_element_type=jnp.float32)
    y = y + b_ref[...]
    if act == "relu":
        y = jnp.maximum(y, 0.0)
    elif act == "gelu":
        y = _gelu(y)
    o_ref[...] = y


def matmul_bias_act(x, w, b, act="none", tm=256):
    """act(x @ w + b); x:(M,K) w:(K,N) b:(N,).  M tiled, K padded to 128-multiple."""
    M, K = x.shape
    _, N = w.shape
    tm = min(tm, _round_up(M, 8))
    Mp = _round_up(M, tm)
    Kp = _round_up(K, 128)
    xb = jnp.pad(x.astype(jnp.bfloat16), ((0, Mp - M), (0, Kp - K)))
    wb = jnp.pad(w.astype(jnp.bfloat16), ((0, Kp - K), (0, 0)))
    b2 = b.astype(jnp.float32).reshape(1, N)
    out = pl.pallas_call(
        functools.partial(_mm_bias_act_kernel, act=act),
        grid=(Mp // tm,),
        out_shape=jax.ShapeDtypeStruct((Mp, N), jnp.float32),
        in_specs=[pl.BlockSpec((tm, Kp), lambda i: (i, 0)),
                  pl.BlockSpec((Kp, N), lambda i: (0, 0)),
                  pl.BlockSpec((1, N), lambda i: (0, 0))],
        out_specs=pl.BlockSpec((tm, N), lambda i: (i, 0)),
        compiler_params=pltpu.CompilerParams(dimension_semantics=("parallel",)),
    )(xb, wb, b2)
    return out[:M]


def _tokenize_kernel(x_ref, wa_ref, wv_ref, o_ref):
    """Per-batch fused tokenizer: A^T = wA @ x^T; T = softmax(A^T, -1) @ (x @ wV)."""
    x = x_ref[...][0]                                                    # (P, D)
    at = lax.dot_general(wa_ref[...], x, (((1,), (1,)), ((), ())),
                         preferred_element_type=jnp.float32)             # (T, P)
    at = at - jnp.max(at, axis=-1, keepdims=True)
    e = jnp.exp(at)
    p = e * pl.reciprocal(jnp.sum(e, axis=-1, keepdims=True), approx=True)
    vv = jnp.dot(x, wv_ref[...], preferred_element_type=jnp.float32)     # (P, D)
    o_ref[...] = jnp.dot(p, vv, preferred_element_type=jnp.float32)[None]


def tokenize(x_tok, wA, wV):
    """x_tok:(B,P,D), wA:(T,D), wV:(D,D) -> tokens (B,T,D)."""
    B, P, D = x_tok.shape
    T = wA.shape[0]
    return pl.pallas_call(
        _tokenize_kernel,
        grid=(B,),
        out_shape=jax.ShapeDtypeStruct((B, T, D), jnp.float32),
        in_specs=[pl.BlockSpec((1, P, D), lambda b: (b, 0, 0)),
                  pl.BlockSpec((T, D), lambda b: (0, 0)),
                  pl.BlockSpec((D, D), lambda b: (0, 0))],
        out_specs=pl.BlockSpec((1, T, D), lambda b: (b, 0, 0)),
        compiler_params=pltpu.CompilerParams(dimension_semantics=("parallel",)),
    )(x_tok, wA, wV)


def _block_kernel(x_ref, ln1g_ref, ln1b_ref, wq_ref, wkv_ref, pw_ref, pb_ref,
                  ln2g_ref, ln2b_ref, f1w_ref, f1b_ref, f2w_ref, f2b_ref,
                  o_ref, *, num_heads, scale, eps):
    """Whole transformer Block fused (per batch element)."""
    x = x_ref[...][0]                                                    # (N, D)
    D = x.shape[-1]
    H = num_heads
    HD = H * D

    # --- MCrossAttention (q from token 0 only) ---
    xn = _ln(x, ln1g_ref[...], ln1b_ref[...], eps)
    q = jnp.dot(xn[0:1, :], wq_ref[...], preferred_element_type=jnp.float32)   # (1, H*D)
    kv = jnp.dot(xn, wkv_ref[...], preferred_element_type=jnp.float32)         # (N, 2*H*D)
    pw = pw_ref[...]                                                           # (H*D, D)
    attn_out = pb_ref[...]                                                     # (1, D) - proj bias
    for h in range(H):
        q_h = q[:, h * D:(h + 1) * D]                                          # (1, D)
        k_h = kv[:, h * D:(h + 1) * D]                                         # (N, D)
        v_h = kv[:, HD + h * D:HD + (h + 1) * D]                               # (N, D)
        s = lax.dot_general(q_h, k_h, (((1,), (1,)), ((), ())),
                            preferred_element_type=jnp.float32) * scale        # (1, N)
        s = s - jnp.max(s, axis=-1, keepdims=True)
        e = jnp.exp(s)
        p = e * pl.reciprocal(jnp.sum(e, axis=-1, keepdims=True), approx=True)
        o_h = jnp.dot(p, v_h, preferred_element_type=jnp.float32)              # (1, D)
        attn_out = attn_out + jnp.dot(o_h, pw[h * D:(h + 1) * D, :],
                                      preferred_element_type=jnp.float32)
    x = x + attn_out                                       # (B,1,D)+(B,N,D) broadcast residual

    # --- MLP (GELU) ---
    xn2 = _ln(x, ln2g_ref[...], ln2b_ref[...], eps)
    y = jnp.dot(xn2, f1w_ref[...], preferred_element_type=jnp.float32) + f1b_ref[...]
    y = _gelu(y)
    y = jnp.dot(y, f2w_ref[...], preferred_element_type=jnp.float32) + f2b_ref[...]
    o_ref[...] = (x + y)[None]


def block_forward(bp, x, *, num_heads):
    B, N, D = x.shape
    hd = D // num_heads
    scale = float(hd) ** -0.5

    def w2(a):
        return pl.BlockSpec(a.shape, lambda b: (0, 0))

    args = (x, bp["ln1_g"], bp["ln1_b"], bp["wq"], bp["wkv"], bp["proj_w"],
            bp["proj_b"], bp["ln2_g"], bp["ln2_b"], bp["fc1_w"], bp["fc1_b"],
            bp["fc2_w"], bp["fc2_b"])
    in_specs = [pl.BlockSpec((1, N, D), lambda b: (b, 0, 0))] + [w2(a) for a in args[1:]]
    return pl.pallas_call(
        functools.partial(_block_kernel, num_heads=num_heads, scale=scale, eps=1e-6),
        grid=(B,),
        out_shape=jax.ShapeDtypeStruct((B, N, D), jnp.float32),
        in_specs=in_specs,
        out_specs=pl.BlockSpec((1, N, D), lambda b: (b, 0, 0)),
        compiler_params=pltpu.CompilerParams(dimension_semantics=("parallel",)),
    )(*args)


def _head_kernel(x_ref, g_ref, b_ref, w_ref, ob_ref, o_ref, *, eps):
    """Fused encoder LayerNorm (token 0 only) + classifier Linear."""
    x0 = x_ref[...][:, 0, :]                                             # (B, D)
    xn = _ln(x0, g_ref[...], b_ref[...], eps)
    o_ref[...] = jnp.dot(xn, w_ref[...], preferred_element_type=jnp.float32) + ob_ref[...]


def final_head(x, enc_g, enc_b, out_w, out_b):
    B, N, D = x.shape
    C = out_w.shape[1]
    return pl.pallas_call(
        functools.partial(_head_kernel, eps=1e-6),
        grid=(1,),
        out_shape=jax.ShapeDtypeStruct((B, C), jnp.float32),
        in_specs=[pl.BlockSpec((B, N, D), lambda i: (0, 0, 0)),
                  pl.BlockSpec((1, D), lambda i: (0, 0)),
                  pl.BlockSpec((1, D), lambda i: (0, 0)),
                  pl.BlockSpec((D, C), lambda i: (0, 0)),
                  pl.BlockSpec((1, C), lambda i: (0, 0))],
        out_specs=pl.BlockSpec((B, C), lambda i: (0, 0)),
        compiler_params=pltpu.CompilerParams(dimension_semantics=("arbitrary",)),
    )(x, enc_g, enc_b, out_w, out_b)


# ----------------------------------------------------------------------------
# Plain-JAX glue: im2col, BN folding, weight preparation
# ----------------------------------------------------------------------------

def fold_bn(w2d, b, gamma, beta, mean, var, eps=1e-5):
    """Fold eval-mode BatchNorm into conv weights (w2d: (Cout, fan_in))."""
    scale = gamma / jnp.sqrt(var + eps)
    return w2d * scale[:, None], (b - mean) * scale + beta


def im2col_3x3(x):
    """x: (B,C,H,W) -> (B*H*W, C*9); patch order (c, kh, kw), pad=1 (XLA glue)."""
    # TODO(synk): build the 3x3 patches in-kernel from a VMEM-resident padded input
    # to avoid materialising the 9x slab in HBM at large batch sizes.
    B, C, H, W = x.shape
    xp = jnp.pad(x, ((0, 0), (0, 0), (1, 1), (1, 1)))
    cols = jnp.stack([xp[:, :, kh:kh + H, kw:kw + W]
                      for kh in range(3) for kw in range(3)], axis=2)    # (B,C,9,H,W)
    cols = cols.transpose(0, 3, 4, 1, 2)                                 # (B,H,W,C,9)
    return cols.reshape(B * H * W, C * 9)


def head_blockdiag(w, H):
    """torch Linear(head_dim, dim) weight w:(D,hd) -> block-diag (D, H*D) such that
    (x @ W_blk)[:, h*D:(h+1)*D] == x[:, h*hd:(h+1)*hd] @ w.T (per-head Linear)."""
    D, hd = w.shape
    eye = jnp.eye(H, dtype=w.dtype)
    blk = eye[:, None, :, None] * w.T[None, :, None, :]                  # (H, hd, H, D)
    return blk.reshape(H * hd, H * D)


def init_mft_params(key, FM, NC, NCLidar, Classes, ntokens, num_heads, mlp_dim,
                    depth, token_type="channel"):
    """Random params in the PyTorch layouts of the reference module."""
    D = FM * 4
    hd = D // num_heads
    Cin6 = 8 * (NC - 8)
    g6 = (FM * 4 // 4) if (Cin6 % FM == 0) else (FM * 4 // 8)
    kit = iter(jax.random.split(key, 64 + 8 * depth))

    def dense_w(shape, fan_in):
        return jax.random.normal(next(kit), shape, jnp.float32) / np.sqrt(float(fan_in))

    def bn(n):
        return (jnp.ones((n,), jnp.float32), jnp.zeros((n,), jnp.float32),
                jnp.zeros((n,), jnp.float32), jnp.ones((n,), jnp.float32))

    p = {
        "conv5_w": dense_w((8, 1, 9, 3, 3), 81),
        "conv5_b": jnp.zeros((8,), jnp.float32),
        "bn5": bn(8),
        "conv6_groups": g6,
        "gwc_w": dense_w((D, Cin6 // g6, 3, 3), (Cin6 // g6) * 9),
        "gwc_b": jnp.zeros((D,), jnp.float32),
        "pwc_w": dense_w((D, Cin6, 1, 1), Cin6),
        "pwc_b": jnp.zeros((D,), jnp.float32),
        "bn6": bn(D),
        "lidar_w": dense_w((D, NCLidar, 3, 3), NCLidar * 9),
        "lidar_b": jnp.zeros((D,), jnp.float32),
        "bnl": bn(D),
        "token_wA": dense_w((1, ntokens, D), D),
        "token_wV": dense_w((1, D, D), D),
        "pos_emb": 0.02 * jax.random.normal(next(kit), (1, ntokens + 1, D), jnp.float32),
        "enc_g": jnp.ones((D,), jnp.float32),
        "enc_b": jnp.zeros((D,), jnp.float32),
        "out3_w": dense_w((Classes, D), D),
        "out3_b": jnp.zeros((Classes,), jnp.float32),
    }
    if token_type == "channel":
        p["token_wA_L"] = dense_w((1, 1, D), D)
        p["token_wV_L"] = dense_w((1, D, D), D)
    else:
        # TODO(synk): 'pixel' token_type shapes (1,1,1)/(1,1,D) are inconsistent with
        # the reference forward's einsum; only 'channel' is implemented.
        raise NotImplementedError("only token_type='channel' is supported")

    blocks = []
    for _ in range(depth):
        blocks.append({
            "an_g": jnp.ones((D,), jnp.float32), "an_b": jnp.zeros((D,), jnp.float32),
            "fn_g": jnp.ones((D,), jnp.float32), "fn_b": jnp.zeros((D,), jnp.float32),
            "wq": dense_w((D, hd), hd),     # torch Linear(head_dim, dim, bias=False)
            "wk": dense_w((D, hd), hd),
            "wv": dense_w((D, hd), hd),
            "proj_w": dense_w((D, D * num_heads), D * num_heads),
            "proj_b": jnp.zeros((D,), jnp.float32),
            "fc1_w": dense_w((mlp_dim, D), D), "fc1_b": jnp.zeros((mlp_dim,), jnp.float32),
            "fc2_w": dense_w((D, mlp_dim), mlp_dim), "fc2_b": jnp.zeros((D,), jnp.float32),
        })
    p["blocks"] = blocks
    return p


def prepare_params(p, num_heads):
    """One-time inference prep: BN folding, dense grouped conv, block-diag head weights."""
    D = p["token_wV"].shape[-1]
    ip = {}

    # conv5 (Conv3d 1->8, (9,3,3)) + BN3d folded; weight as (81, 8)
    wf, bf = fold_bn(p["conv5_w"].reshape(8, 81), p["conv5_b"], *p["bn5"])
    ip["conv5_w"], ip["conv5_b"] = wf.T, bf

    # HetConv: densify grouped 3x3 and add pointwise at the centre tap; fold BN2d
    g = p["conv6_groups"]
    Cout, cin_g = p["gwc_w"].shape[0], p["gwc_w"].shape[1]
    Cin = p["pwc_w"].shape[1]
    cout_g = Cout // g
    gw = p["gwc_w"].reshape(g, cout_g, cin_g, 3, 3)
    eye = jnp.eye(g, dtype=jnp.float32)
    dense = (eye[:, None, :, None, None, None] *
             gw[:, :, None, :, :, :]).reshape(Cout, Cin, 3, 3)
    dense = dense.at[:, :, 1, 1].add(p["pwc_w"][:, :, 0, 0])   # 1x1 conv == centre tap
    wf, bf = fold_bn(dense.reshape(Cout, Cin * 9), p["gwc_b"] + p["pwc_b"], *p["bn6"])
    ip["conv6_w"], ip["conv6_b"] = wf.T, bf

    # LiDAR Conv2d + BN2d folded
    Cl = p["lidar_w"].shape[1]
    wf, bf = fold_bn(p["lidar_w"].reshape(D, Cl * 9), p["lidar_b"], *p["bnl"])
    ip["lidar_w"], ip["lidar_b"] = wf.T, bf

    # tokenizer weights
    ip["token_wA"] = p["token_wA"][0]            # (T, D)
    ip["token_wV"] = p["token_wV"][0]            # (D, D)
    ip["token_wA_L"] = p["token_wA_L"][0]        # (1, D)
    ip["token_wV_L"] = p["token_wV_L"][0]        # (D, D)
    ip["pos_emb"] = p["pos_emb"]
    ip["enc_g"] = p["enc_g"].reshape(1, D)
    ip["enc_b"] = p["enc_b"].reshape(1, D)
    ip["out_w"] = p["out3_w"].T                  # (D, Classes)
    ip["out_b"] = p["out3_b"].reshape(1, -1)

    blocks = []
    for bp in p["blocks"]:
        wk_blk = head_blockdiag(bp["wk"], num_heads)
        wv_blk = head_blockdiag(bp["wv"], num_heads)
        blocks.append({
            "ln1_g": bp["an_g"].reshape(1, D), "ln1_b": bp["an_b"].reshape(1, D),
            "wq": head_blockdiag(bp["wq"], num_heads),             # (D, H*D)
            "wkv": jnp.concatenate([wk_blk, wv_blk], axis=1),      # (D, 2*H*D)
            "proj_w": bp["proj_w"].T,                              # (H*D, D)
            "proj_b": bp["proj_b"].reshape(1, D),
            "ln2_g": bp["fn_g"].reshape(1, D), "ln2_b": bp["fn_b"].reshape(1, D),
            "fc1_w": bp["fc1_w"].T, "fc1_b": bp["fc1_b"].reshape(1, -1),
            "fc2_w": bp["fc2_w"].T, "fc2_b": bp["fc2_b"].reshape(1, D),
        })
    ip["blocks"] = blocks
    return ip


# ----------------------------------------------------------------------------
# Forward pass (mirrors MFT.forward, eval mode) — whole thing runs under one jit
# ----------------------------------------------------------------------------

@functools.partial(jax.jit, static_argnames=("num_heads",))
def mft_forward(ip, x1, x2, *, num_heads):
    B = x1.shape[0]
    x1 = x1.reshape(B, -1, 11, 11)
    x2 = x2.reshape(B, -1, 11, 11)
    NC = x1.shape[1]
    H = W = 11
    Dout = NC - 8

    # conv5: Conv3d(1,8,(9,3,3),pad=(0,1,1)) + BN3d + ReLU  (im2col + fused matmul)
    xp = jnp.pad(x1, ((0, 0), (0, 0), (1, 1), (1, 1)))
    patches = jnp.stack([xp[:, kd:kd + Dout, kh:kh + H, kw:kw + W]
                         for kd in range(9) for kh in range(3) for kw in range(3)],
                        axis=-1).reshape(B * Dout * H * W, 81)
    y = matmul_bias_act(patches, ip["conv5_w"], ip["conv5_b"], act="relu")
    y = y.reshape(B, Dout, H, W, 8).transpose(0, 4, 1, 2, 3).reshape(B, 8 * Dout, H, W)

    # HetConv (grouped 3x3 + pointwise, folded dense) + BN2d + ReLU
    z = matmul_bias_act(im2col_3x3(y), ip["conv6_w"], ip["conv6_b"], act="relu")
    x1_tok = z.reshape(B, H * W, -1)                       # == flatten(2).transpose(-1,-2)
    T_tok = tokenize(x1_tok, ip["token_wA"], ip["token_wV"])

    # LiDAR branch: Conv2d + BN2d + GELU (token_type='channel')
    zl = matmul_bias_act(im2col_3x3(x2), ip["lidar_w"], ip["lidar_b"], act="gelu")
    x2_tok = zl.reshape(B, H * W, -1)
    L_tok = tokenize(x2_tok, ip["token_wA_L"], ip["token_wV_L"])

    x = jnp.concatenate([L_tok, T_tok], axis=1) + ip["pos_emb"]   # dropout = id (eval)

    for bp in ip["blocks"]:
        x = block_forward(bp, x, num_heads=num_heads)

    return final_head(x, ip["enc_g"], ip["enc_b"], ip["out_w"], ip["out_b"])


# ----------------------------------------------------------------------------

if __name__ == "__main__":
    FM, NC, NCLidar, Classes = 16, 16, 2, 8
    ntokens, num_heads, mlp_dim, depth = 4, 8, 32, 2

    key = jax.random.PRNGKey(0)
    kp, k1, k2 = jax.random.split(key, 3)
    params = init_mft_params(kp, FM, NC, NCLidar, Classes, ntokens, num_heads,
                             mlp_dim, depth, token_type="channel")
    ip = prepare_params(params, num_heads)

    x1 = jax.random.normal(k1, (2, NC, 11, 11), jnp.float32)       # HSI patch cube
    x2 = jax.random.normal(k2, (2, NCLidar, 11, 11), jnp.float32)  # LiDAR patch

    out = mft_forward(ip, x1, x2, num_heads=num_heads)
    out = jax.block_until_ready(out)
    assert out.shape == (2, Classes) and bool(jnp.all(jnp.isfinite(out)))
    print("KERNEL_OK")
</pallas_src>

<mosaic_0001>
module attributes {stable_mosaic.version = 11 : i64} {
  func.func @_mm_bias_act_kernel(%arg0: i32, %arg1: memref<256x128xbf16, #tpu.memory_space<vmem>>, %arg2: memref<128x8xbf16, #tpu.memory_space<vmem>>, %arg3: memref<1x8xf32, #tpu.memory_space<vmem>>, %arg4: memref<256x8xf32, #tpu.memory_space<vmem>>) attributes {dimension_semantics = [#tpu.dimension_semantics<parallel>], iteration_bounds = array<i64: 8>, scalar_prefetch = 0 : i64, scratch_operands = 0 : i64, tpu.core_type = #tpu.core_type<tc>, window_params = [{transform_indices = @transform_0, window_bounds = array<i64: 256, 128>}, {pipeline_mode = #tpu.pipeline_mode<synchronous>, transform_indices = @transform_1, window_bounds = array<i64: 128, 8>}, {pipeline_mode = #tpu.pipeline_mode<synchronous>, transform_indices = @transform_2, window_bounds = array<i64: 1, 8>}, {transform_indices = @transform_3, window_bounds = array<i64: 256, 8>}]} {
    %c0 = arith.constant 0 : index
    %c0_0 = arith.constant 0 : index
    %0 = vector.load %arg1[%c0, %c0_0] : memref<256x128xbf16, #tpu.memory_space<vmem>>, vector<256x128xbf16>
    %c0_1 = arith.constant 0 : index
    %c0_2 = arith.constant 0 : index
    %1 = vector.load %arg2[%c0_1, %c0_2] : memref<128x8xbf16, #tpu.memory_space<vmem>>, vector<128x8xbf16>
    %cst = arith.constant dense<0.000000e+00> : vector<256x8xf32>
    %2 = tpu.matmul %0, %1, %cst {dimension_numbers = #tpu.dot_dimension_numbers<[1], [0], [0], [1], [0, 0, 1, 1], [], []>} : vector<256x128xbf16>, vector<128x8xbf16>, vector<256x8xf32> -> vector<256x8xf32>
    %c0_3 = arith.constant 0 : index
    %c0_4 = arith.constant 0 : index
    %3 = vector.load %arg3[%c0_3, %c0_4] : memref<1x8xf32, #tpu.memory_space<vmem>>, vector<1x8xf32>
    %4 = vector.broadcast %3 : vector<1x8xf32> to vector<256x8xf32>
    %5 = arith.addf %2, %4 : vector<256x8xf32>
    %cst_5 = arith.constant 0.000000e+00 : f32
    %6 = vector.broadcast %cst_5 : f32 to vector<256x8xf32>
    %7 = arith.maximumf %5, %6 : vector<256x8xf32>
    %c0_6 = arith.constant 0 : index
    %c0_7 = arith.constant 0 : index
    %8 = vector.load %arg4[%c0_6, %c0_7] : memref<256x8xf32, #tpu.memory_space<vmem>>, vector<256x8xf32>
    tpu.vector_store %arg4[%c0_6, %c0_7], %7 {strides = array<i32>} : memref<256x8xf32, #tpu.memory_space<vmem>>, vector<256x8xf32>,
    return
  }
  func.func @transform_0(%arg0: i32) -> (i32, i32) {
    %c0_i32 = arith.constant 0 : i32
    %c0_i32_0 = arith.constant 0 : i32
    return %arg0, %c0_i32 : i32, i32
  }
  func.func @transform_1(%arg0: i32) -> (i32, i32) {
    %c0_i32 = arith.constant 0 : i32
    %c0_i32_0 = arith.constant 0 : i32
    %c0_i32_1 = arith.constant 0 : i32
    return %c0_i32, %c0_i32_0 : i32, i32
  }
  func.func @transform_2(%arg0: i32) -> (i32, i32) {
    %c0_i32 = arith.constant 0 : i32
    %c0_i32_0 = arith.constant 0 : i32
    %c0_i32_1 = arith.constant 0 : i32
    return %c0_i32, %c0_i32_0 : i32, i32
  }
  func.func @transform_3(%arg0: i32) -> (i32, i32) {
    %c0_i32 = arith.constant 0 : i32
    %c0_i32_0 = arith.constant 0 : i32
    return %arg0, %c0_i32 : i32, i32
  }
}

module attributes {stable_mosaic.version = 11 : i64} {
  func.func @_mm_bias_act_kernel(%arg0: i32, %arg1: memref<248x640xbf16, #tpu.memory_space<vmem>>, %arg2: memref<640x64xbf16, #tpu.memory_space<vmem>>, %arg3: memref<1x64xf32, #tpu.memory_space<vmem>>, %arg4: memref<248x64xf32, #tpu.memory_space<vmem>>) attributes {dimension_semantics = [#tpu.dimension_semantics<parallel>], iteration_bounds = array<i64: 1>, scalar_prefetch = 0 : i64, scratch_operands = 0 : i64, tpu.core_type = #tpu.core_type<tc>, window_params = [{transform_indices = @transform_0, window_bounds = array<i64: 248, 640>}, {pipeline_mode = #tpu.pipeline_mode<synchronous>, transform_indices = @transform_1, window_bounds = array<i64: 640, 64>}, {pipeline_mode = #tpu.pipeline_mode<synchronous>, transform_indices = @transform_2, window_bounds = array<i64: 1, 64>}, {transform_indices = @transform_3, window_bounds = array<i64: 248, 64>}]} {
    %c0 = arith.constant 0 : index
    %c0_0 = arith.constant 0 : index
    %0 = vector.load %arg1[%c0, %c0_0] : memref<248x640xbf16, #tpu.memory_space<vmem>>, vector<248x640xbf16>
    %c0_1 = arith.constant 0 : index
    %c0_2 = arith.constant 0 : index
    %1 = vector.load %arg2[%c0_1, %c0_2] : memref<640x64xbf16, #tpu.memory_space<vmem>>, vector<640x64xbf16>
    %cst = arith.constant dense<0.000000e+00> : vector<248x64xf32>
    %2 = tpu.matmul %0, %1, %cst {dimension_numbers = #tpu.dot_dimension_numbers<[1], [0], [0], [1], [0, 0, 1, 1], [], []>} : vector<248x640xbf16>, vector<640x64xbf16>, vector<248x64xf32> -> vector<248x64xf32>
    %c0_3 = arith.constant 0 : index
    %c0_4 = arith.constant 0 : index
    %3 = vector.load %arg3[%c0_3, %c0_4] : memref<1x64xf32, #tpu.memory_space<vmem>>, vector<1x64xf32>
    %4 = vector.broadcast %3 : vector<1x64xf32> to vector<248x64xf32>
    %5 = arith.addf %2, %4 : vector<248x64xf32>
    %cst_5 = arith.constant 0.000000e+00 : f32
    %6 = vector.broadcast %cst_5 : f32 to vector<248x64xf32>
    %7 = arith.maximumf %5, %6 : vector<248x64xf32>
    %c0_6 = arith.constant 0 : index
    %c0_7 = arith.constant 0 : index
    %8 = vector.load %arg4[%c0_6, %c0_7] : memref<248x64xf32, #tpu.memory_space<vmem>>, vector<248x64xf32>
    tpu.vector_store %arg4[%c0_6, %c0_7], %7 {strides = array<i32>} : memref<248x64xf32, #tpu.memory_space<vmem>>, vector<248x64xf32>,
    return
  }
  func.func @transform_0(%arg0: i32) -> (i32, i32) {
    %c0_i32 = arith.constant 0 : i32
    %c0_i32_0 = arith.constant 0 : i32
    return %arg0, %c0_i32 : i32, i32
  }
  func.func @transform_1(%arg0: i32) -> (i32, i32) {
    %c0_i32 = arith.constant 0 : i32
    %c0_i32_0 = arith.constant 0 : i32
    %c0_i32_1 = arith.constant 0 : i32
    return %c0_i32, %c0_i32_0 : i32, i32
  }
  func.func @transform_2(%arg0: i32) -> (i32, i32) {
    %c0_i32 = arith.constant 0 : i32
    %c0_i32_0 = arith.constant 0 : i32
    %c0_i32_1 = arith.constant 0 : i32
    return %c0_i32, %c0_i32_0 : i32, i32
  }
  func.func @transform_3(%arg0: i32) -> (i32, i32) {
    %c0_i32 = arith.constant 0 : i32
    %c0_i32_0 = arith.constant 0 : i32
    return %arg0, %c0_i32 : i32, i32
  }
}

module attributes {stable_mosaic.version = 11 : i64} {
  func.func @_tokenize_kernel(%arg0: i32, %arg1: memref<1x121x64xf32, #tpu.memory_space<vmem>>, %arg2: memref<4x64xf32, #tpu.memory_space<vmem>>, %arg3: memref<64x64xf32, #tpu.memory_space<vmem>>, %arg4: memref<1x4x64xf32, #tpu.memory_space<vmem>>) attributes {dimension_semantics = [#tpu.dimension_semantics<parallel>], iteration_bounds = array<i64: 2>, scalar_prefetch = 0 : i64, scratch_operands = 0 : i64, tpu.core_type = #tpu.core_type<tc>, window_params = [{transform_indices = @transform_0, window_bounds = array<i64: 1, 121, 64>}, {pipeline_mode = #tpu.pipeline_mode<synchronous>, transform_indices = @transform_1, window_bounds = array<i64: 4, 64>}, {pipeline_mode = #tpu.pipeline_mode<synchronous>, transform_indices = @transform_2, window_bounds = array<i64: 64, 64>}, {transform_indices = @transform_3, window_bounds = array<i64: 1, 4, 64>}]} {
    %c0 = arith.constant 0 : index
    %c0_0 = arith.constant 0 : index
    %c0_1 = arith.constant 0 : index
    %0 = vector.load %arg1[%c0, %c0_0, %c0_1] : memref<1x121x64xf32, #tpu.memory_space<vmem>>, vector<1x121x64xf32>
    %1 = vector.shape_cast %0 : vector<1x121x64xf32> to vector<121x64xf32>
    %c0_2 = arith.constant 0 : index
    %c0_3 = arith.constant 0 : index
    %2 = vector.load %arg2[%c0_2, %c0_3] : memref<4x64xf32, #tpu.memory_space<vmem>>, vector<4x64xf32>
    %cst = arith.constant dense<0.000000e+00> : vector<4x121xf32>
    %3 = tpu.matmul %2, %1, %cst {dimension_numbers = #tpu.dot_dimension_numbers<[1], [1], [0], [0], [0, 0, 1, 0], [], []>} : vector<4x64xf32>, vector<121x64xf32>, vector<4x121xf32> -> vector<4x121xf32>
    %cst_4 = arith.constant dense<0xFF800000> : vector<4xf32>
    %4 = vector.multi_reduction <maximumf>, %3, %cst_4 [1] : vector<4x121xf32> to vector<4xf32>
    %5 = vector.shape_cast %4 : vector<4xf32> to vector<4x1xf32>
    %6 = vector.broadcast %5 : vector<4x1xf32> to vector<4x121xf32>
    %7 = arith.subf %3, %6 : vector<4x121xf32>
    %8 = math.exp %7 : vector<4x121xf32>
    %cst_5 = arith.constant dense<0.000000e+00> : vector<4xf32>
    %9 = vector.multi_reduction <add>, %8, %cst_5 [1] : vector<4x121xf32> to vector<4xf32>
    %10 = vector.shape_cast %9 : vector<4xf32> to vector<4x1xf32>
    %11 = tpu.reciprocal %10 {approx = true} : vector<4x1xf32> -> vector<4x1xf32>
    %12 = vector.broadcast %11 : vector<4x1xf32> to vector<4x121xf32>
    %13 = arith.mulf %8, %12 : vector<4x121xf32>
    %c0_6 = arith.constant 0 : index
    %c0_7 = arith.constant 0 : index
    %14 = vector.load %arg3[%c0_6, %c0_7] : memref<64x64xf32, #tpu.memory_space<vmem>>, vector<64x64xf32>
    %cst_8 = arith.constant dense<0.000000e+00> : vector<121x64xf32>
    %15 = tpu.matmul %1, %14, %cst_8 {dimension_numbers = #tpu.dot_dimension_numbers<[1], [0], [0], [1], [0, 0, 1, 1], [], []>} : vector<121x64xf32>, vector<64x64xf32>, vector<121x64xf32> -> vector<121x64xf32>
    %cst_9 = arith.constant dense<0.000000e+00> : vector<4x64xf32>
    %16 = tpu.matmul %13, %15, %cst_9 {dimension_numbers = #tpu.dot_dimension_numbers<[1], [0], [0], [1], [0, 0, 1, 1], [], []>} : vector<4x121xf32>, vector<121x64xf32>, vector<4x64xf32> -> vector<4x64xf32>
    %17 = vector.shape_cast %16 : vector<4x64xf32> to vector<1x4x64xf32>
    %c0_10 = arith.constant 0 : index
    %c0_11 = arith.constant 0 : index
    %c0_12 = arith.constant 0 : index
    %18 = vector.load %arg4[%c0_10, %c0_11, %c0_12] : memref<1x4x64xf32, #tpu.memory_space<vmem>>, vector<1x4x64xf32>
    tpu.vector_store %arg4[%c0_10, %c0_11, %c0_12], %17 {strides = array<i32>} : memref<1x4x64xf32, #tpu.memory_space<vmem>>, vector<1x4x64xf32>,
    return
  }
  func.func @transform_0(%arg0: i32) -> (i32, i32, i32) {
    %c0_i32 = arith.constant 0 : i32
    %c0_i32_0 = arith.constant 0 : i32
    %c0_i32_1 = arith.constant 0 : i32
    return %arg0, %c0_i32, %c0_i32_0 : i32, i32, i32
  }
  func.func @transform_1(%arg0: i32) -> (i32, i32) {
    %c0_i32 = arith.constant 0 : i32
    %c0_i32_0 = arith.constant 0 : i32
    %c0_i32_1 = arith.constant 0 : i32
    return %c0_i32, %c0_i32_0 : i32, i32
  }
  func.func @transform_2(%arg0: i32) -> (i32, i32) {
    %c0_i32 = arith.constant 0 : i32
    %c0_i32_0 = arith.constant 0 : i32
    %c0_i32_1 = arith.constant 0 : i32
    return %c0_i32, %c0_i32_0 : i32, i32
  }
  func.func @transform_3(%arg0: i32) -> (i32, i32, i32) {
    %c0_i32 = arith.constant 0 : i32
    %c0_i32_0 = arith.constant 0 : i32
    %c0_i32_1 = arith.constant 0 : i32
    return %arg0, %c0_i32, %c0_i32_0 : i32, i32, i32
  }
}

module attributes {stable_mosaic.version = 11 : i64} {
  func.func @_mm_bias_act_kernel(%arg0: i32, %arg1: memref<248x128xbf16, #tpu.memory_space<vmem>>, %arg2: memref<128x64xbf16, #tpu.memory_space<vmem>>, %arg3: memref<1x64xf32, #tpu.memory_space<vmem>>, %arg4: memref<248x64xf32, #tpu.memory_space<vmem>>) attributes {dimension_semantics = [#tpu.dimension_semantics<parallel>], iteration_bounds = array<i64: 1>, scalar_prefetch = 0 : i64, scratch_operands = 0 : i64, tpu.core_type = #tpu.core_type<tc>, window_params = [{transform_indices = @transform_0, window_bounds = array<i64: 248, 128>}, {pipeline_mode = #tpu.pipeline_mode<synchronous>, transform_indices = @transform_1, window_bounds = array<i64: 128, 64>}, {pipeline_mode = #tpu.pipeline_mode<synchronous>, transform_indices = @transform_2, window_bounds = array<i64: 1, 64>}, {transform_indices = @transform_3, window_bounds = array<i64: 248, 64>}]} {
    %c0 = arith.constant 0 : index
    %c0_0 = arith.constant 0 : index
    %0 = vector.load %arg1[%c0, %c0_0] : memref<248x128xbf16, #tpu.memory_space<vmem>>, vector<248x128xbf16>
    %c0_1 = arith.constant 0 : index
    %c0_2 = arith.constant 0 : index
    %1 = vector.load %arg2[%c0_1, %c0_2] : memref<128x64xbf16, #tpu.memory_space<vmem>>, vector<128x64xbf16>
    %cst = arith.constant dense<0.000000e+00> : vector<248x64xf32>
    %2 = tpu.matmul %0, %1, %cst {dimension_numbers = #tpu.dot_dimension_numbers<[1], [0], [0], [1], [0, 0, 1, 1], [], []>} : vector<248x128xbf16>, vector<128x64xbf16>, vector<248x64xf32> -> vector<248x64xf32>
    %c0_3 = arith.constant 0 : index
    %c0_4 = arith.constant 0 : index
    %3 = vector.load %arg3[%c0_3, %c0_4] : memref<1x64xf32, #tpu.memory_space<vmem>>, vector<1x64xf32>
    %4 = vector.broadcast %3 : vector<1x64xf32> to vector<248x64xf32>
    %5 = arith.addf %2, %4 : vector<248x64xf32>
    %cst_5 = arith.constant 5.000000e-01 : f32
    %6 = vector.broadcast %cst_5 : f32 to vector<248x64xf32>
    %7 = arith.mulf %6, %5 : vector<248x64xf32>
    %cst_6 = arith.constant 0.707106769 : f32
    %8 = vector.broadcast %cst_6 : f32 to vector<248x64xf32>
    %9 = arith.mulf %5, %8 : vector<248x64xf32>
    %10 = math.erf %9 : vector<248x64xf32>
    %cst_7 = arith.constant 1.000000e+00 : f32
    %11 = vector.broadcast %cst_7 : f32 to vector<248x64xf32>
    %12 = arith.addf %11, %10 : vector<248x64xf32>
    %13 = arith.mulf %7, %12 : vector<248x64xf32>
    %c0_8 = arith.constant 0 : index
    %c0_9 = arith.constant 0 : index
    %14 = vector.load %arg4[%c0_8, %c0_9] : memref<248x64xf32, #tpu.memory_space<vmem>>, vector<248x64xf32>
    tpu.vector_store %arg4[%c0_8, %c0_9], %13 {strides = array<i32>} : memref<248x64xf32, #tpu.memory_space<vmem>>, vector<248x64xf32>,
    return
  }
  func.func @transform_0(%arg0: i32) -> (i32, i32) {
    %c0_i32 = arith.constant 0 : i32
    %c0_i32_0 = arith.constant 0 : i32
    return %arg0, %c0_i32 : i32, i32
  }
  func.func @transform_1(%arg0: i32) -> (i32, i32) {
    %c0_i32 = arith.constant 0 : i32
    %c0_i32_0 = arith.constant 0 : i32
    %c0_i32_1 = arith.constant 0 : i32
    return %c0_i32, %c0_i32_0 : i32, i32
  }
  func.func @transform_2(%arg0: i32) -> (i32, i32) {
    %c0_i32 = arith.constant 0 : i32
    %c0_i32_0 = arith.constant 0 : i32
    %c0_i32_1 = arith.constant 0 : i32
    return %c0_i32, %c0_i32_0 : i32, i32
  }
  func.func @transform_3(%arg0: i32) -> (i32, i32) {
    %c0_i32 = arith.constant 0 : i32
    %c0_i32_0 = arith.constant 0 : i32
    return %arg0, %c0_i32 : i32, i32
  }
}

module attributes {stable_mosaic.version = 11 : i64} {
  func.func @_tokenize_kernel(%arg0: i32, %arg1: memref<1x121x64xf32, #tpu.memory_space<vmem>>, %arg2: memref<1x64xf32, #tpu.memory_space<vmem>>, %arg3: memref<64x64xf32, #tpu.memory_space<vmem>>, %arg4: memref<1x1x64xf32, #tpu.memory_space<vmem>>) attributes {dimension_semantics = [#tpu.dimension_semantics<parallel>], iteration_bounds = array<i64: 2>, scalar_prefetch = 0 : i64, scratch_operands = 0 : i64, tpu.core_type = #tpu.core_type<tc>, window_params = [{transform_indices = @transform_0, window_bounds = array<i64: 1, 121, 64>}, {pipeline_mode = #tpu.pipeline_mode<synchronous>, transform_indices = @transform_1, window_bounds = array<i64: 1, 64>}, {pipeline_mode = #tpu.pipeline_mode<synchronous>, transform_indices = @transform_2, window_bounds = array<i64: 64, 64>}, {transform_indices = @transform_3, window_bounds = array<i64: 1, 1, 64>}]} {
    %c0 = arith.constant 0 : index
    %c0_0 = arith.constant 0 : index
    %c0_1 = arith.constant 0 : index
    %0 = vector.load %arg1[%c0, %c0_0, %c0_1] : memref<1x121x64xf32, #tpu.memory_space<vmem>>, vector<1x121x64xf32>
    %1 = vector.shape_cast %0 : vector<1x121x64xf32> to vector<121x64xf32>
    %c0_2 = arith.constant 0 : index
    %c0_3 = arith.constant 0 : index
    %2 = vector.load %arg2[%c0_2, %c0_3] : memref<1x64xf32, #tpu.memory_space<vmem>>, vector<1x64xf32>
    %cst = arith.constant dense<0.000000e+00> : vector<1x121xf32>
    %3 = tpu.matmul %2, %1, %cst {dimension_numbers = #tpu.dot_dimension_numbers<[1], [1], [0], [0], [0, 0, 1, 0], [], []>} : vector<1x64xf32>, vector<121x64xf32>, vector<1x121xf32> -> vector<1x121xf32>
    %cst_4 = arith.constant dense<0xFF800000> : vector<1xf32>
    %4 = vector.multi_reduction <maximumf>, %3, %cst_4 [1] : vector<1x121xf32> to vector<1xf32>
    %5 = vector.shape_cast %4 : vector<1xf32> to vector<1x1xf32>
    %6 = vector.broadcast %5 : vector<1x1xf32> to vector<1x121xf32>
    %7 = arith.subf %3, %6 : vector<1x121xf32>
    %8 = math.exp %7 : vector<1x121xf32>
    %cst_5 = arith.constant dense<0.000000e+00> : vector<1xf32>
    %9 = vector.multi_reduction <add>, %8, %cst_5 [1] : vector<1x121xf32> to vector<1xf32>
    %10 = vector.shape_cast %9 : vector<1xf32> to vector<1x1xf32>
    %11 = tpu.reciprocal %10 {approx = true} : vector<1x1xf32> -> vector<1x1xf32>
    %12 = vector.broadcast %11 : vector<1x1xf32> to vector<1x121xf32>
    %13 = arith.mulf %8, %12 : vector<1x121xf32>
    %c0_6 = arith.constant 0 : index
    %c0_7 = arith.constant 0 : index
    %14 = vector.load %arg3[%c0_6, %c0_7] : memref<64x64xf32, #tpu.memory_space<vmem>>, vector<64x64xf32>
    %cst_8 = arith.constant dense<0.000000e+00> : vector<121x64xf32>
    %15 = tpu.matmul %1, %14, %cst_8 {dimension_numbers = #tpu.dot_dimension_numbers<[1], [0], [0], [1], [0, 0, 1, 1], [], []>} : vector<121x64xf32>, vector<64x64xf32>, vector<121x64xf32> -> vector<121x64xf32>
    %cst_9 = arith.constant dense<0.000000e+00> : vector<1x64xf32>
    %16 = tpu.matmul %13, %15, %cst_9 {dimension_numbers = #tpu.dot_dimension_numbers<[1], [0], [0], [1], [0, 0, 1, 1], [], []>} : vector<1x121xf32>, vector<121x64xf32>, vector<1x64xf32> -> vector<1x64xf32>
    %17 = vector.shape_cast %16 : vector<1x64xf32> to vector<1x1x64xf32>
    %c0_10 = arith.constant 0 : index
    %c0_11 = arith.constant 0 : index
    %c0_12 = arith.constant 0 : index
    %18 = vector.load %arg4[%c0_10, %c0_11, %c0_12] : memref<1x1x64xf32, #tpu.memory_space<vmem>>, vector<1x1x64xf32>
    tpu.vector_store %arg4[%c0_10, %c0_11, %c0_12], %17 {strides = array<i32>} : memref<1x1x64xf32, #tpu.memory_space<vmem>>, vector<1x1x64xf32>,
    return
  }
  func.func @transform_0(%arg0: i32) -> (i32, i32, i32) {
    %c0_i32 = arith.constant 0 : i32
    %c0_i32_0 = arith.constant 0 : i32
    %c0_i32_1 = arith.constant 0 : i32
    return %arg0, %c0_i32, %c0_i32_0 : i32, i32, i32
  }
  func.func @transform_1(%arg0: i32) -> (i32, i32) {
    %c0_i32 = arith.constant 0 : i32
    %c0_i32_0 = arith.constant 0 : i32
    %c0_i32_1 = arith.constant 0 : i32
    return %c0_i32, %c0_i32_0 : i32, i32
  }
  func.func @transform_2(%arg0: i32) -> (i32, i32) {
    %c0_i32 = arith.constant 0 : i32
    %c0_i32_0 = arith.constant 0 : i32
    %c0_i32_1 = arith.constant 0 : i32
    return %c0_i32, %c0_i32_0 : i32, i32
  }
  func.func @transform_3(%arg0: i32) -> (i32, i32, i32) {
    %c0_i32 = arith.constant 0 : i32
    %c0_i32_0 = arith.constant 0 : i32
    %c0_i32_1 = arith.constant 0 : i32
    return %arg0, %c0_i32, %c0_i32_0 : i32, i32, i32
  }
}

module attributes {stable_mosaic.version = 11 : i64} {
  func.func @_block_kernel(%arg0: i32, %arg1: memref<1x5x64xf32, #tpu.memory_space<vmem>>, %arg2: memref<1x64xf32, #tpu.memory_space<vmem>>, %arg3: memref<1x64xf32, #tpu.memory_space<vmem>>, %arg4: memref<64x512xf32, #tpu.memory_space<vmem>>, %arg5: memref<64x1024xf32, #tpu.memory_space<vmem>>, %arg6: memref<512x64xf32, #tpu.memory_space<vmem>>, %arg7: memref<1x64xf32, #tpu.memory_space<vmem>>, %arg8: memref<1x64xf32, #tpu.memory_space<vmem>>, %arg9: memref<1x64xf32, #tpu.memory_space<vmem>>, %arg10: memref<64x32xf32, #tpu.memory_space<vmem>>, %arg11: memref<1x32xf32, #tpu.memory_space<vmem>>, %arg12: memref<32x64xf32, #tpu.memory_space<vmem>>, %arg13: memref<1x64xf32, #tpu.memory_space<vmem>>, %arg14: memref<1x5x64xf32, #tpu.memory_space<vmem>>) attributes {dimension_semantics = [#tpu.dimension_semantics<parallel>], iteration_bounds = array<i64: 2>, scalar_prefetch = 0 : i64, scratch_operands = 0 : i64, tpu.core_type = #tpu.core_type<tc>, window_params = [{transform_indices = @transform_0, window_bounds = array<i64: 1, 5, 64>}, {pipeline_mode = #tpu.pipeline_mode<synchronous>, transform_indices = @transform_1, window_bounds = array<i64: 1, 64>}, {pipeline_mode = #tpu.pipeline_mode<synchronous>, transform_indices = @transform_2, window_bounds = array<i64: 1, 64>}, {pipeline_mode = #tpu.pipeline_mode<synchronous>, transform_indices = @transform_3, window_bounds = array<i64: 64, 512>}, {pipeline_mode = #tpu.pipeline_mode<synchronous>, transform_indices = @transform_4, window_bounds = array<i64: 64, 1024>}, {pipeline_mode = #tpu.pipeline_mode<synchronous>, transform_indices = @transform_5, window_bounds = array<i64: 512, 64>}, {pipeline_mode = #tpu.pipeline_mode<synchronous>, transform_indices = @transform_6, window_bounds = array<i64: 1, 64>}, {pipeline_mode = #tpu.pipeline_mode<synchronous>, transform_indices = @transform_7, window_bounds = array<i64: 1, 64>}, {pipeline_mode = #tpu.pipeline_mode<synchronous>, transform_indices = @transform_8, window_bounds = array<i64: 1, 64>}, {pipeline_mode = #tpu.pipeline_mode<synchronous>, transform_indices = @transform_9, window_bounds = array<i64: 64, 32>}, {pipeline_mode = #tpu.pipeline_mode<synchronous>, transform_indices = @transform_10, window_bounds = array<i64: 1, 32>}, {pipeline_mode = #tpu.pipeline_mode<synchronous>, transform_indices = @transform_11, window_bounds = array<i64: 32, 64>}, {pipeline_mode = #tpu.pipeline_mode<synchronous>, transform_indices = @transform_12, window_bounds = array<i64: 1, 64>}, {transform_indices = @transform_13, window_bounds = array<i64: 1, 5, 64>}]} {
    %c0 = arith.constant 0 : index
    %c0_0 = arith.constant 0 : index
    %c0_1 = arith.constant 0 : index
    %0 = vector.load %arg1[%c0, %c0_0, %c0_1] : memref<1x5x64xf32, #tpu.memory_space<vmem>>, vector<1x5x64xf32>
    %1 = vector.shape_cast %0 : vector<1x5x64xf32> to vector<5x64xf32>
    %c0_2 = arith.constant 0 : index
    %c0_3 = arith.constant 0 : index
    %2 = vector.load %arg2[%c0_2, %c0_3] : memref<1x64xf32, #tpu.memory_space<vmem>>, vector<1x64xf32>
    %c0_4 = arith.constant 0 : index
    %c0_5 = arith.constant 0 : index
    %3 = vector.load %arg3[%c0_4, %c0_5] : memref<1x64xf32, #tpu.memory_space<vmem>>, vector<1x64xf32>
    %cst = arith.constant dense<0.000000e+00> : vector<5xf32>
    %4 = vector.multi_reduction <add>, %1, %cst [1] : vector<5x64xf32> to vector<5xf32>
    %5 = vector.shape_cast %4 : vector<5xf32> to vector<5x1xf32>
    %cst_6 = arith.constant 6.400000e+01 : f32
    %6 = vector.broadcast %cst_6 : f32 to vector<5x1xf32>
    %7 = arith.divf %5, %6 : vector<5x1xf32>
    %8 = vector.broadcast %7 : vector<5x1xf32> to vector<5x64xf32>
    %9 = arith.subf %1, %8 : vector<5x64xf32>
    %10 = arith.mulf %9, %9 : vector<5x64xf32>
    %cst_7 = arith.constant dense<0.000000e+00> : vector<5xf32>
    %11 = vector.multi_reduction <add>, %10, %cst_7 [1] : vector<5x64xf32> to vector<5xf32>
    %12 = vector.shape_cast %11 : vector<5xf32> to vector<5x1xf32>
    %cst_8 = arith.constant 6.400000e+01 : f32
    %13 = vector.broadcast %cst_8 : f32 to vector<5x1xf32>
    %14 = arith.divf %12, %13 : vector<5x1xf32>
    %cst_9 = arith.constant 9.99999997E-7 : f32
    %15 = vector.broadcast %cst_9 : f32 to vector<5x1xf32>
    %16 = arith.addf %14, %15 : vector<5x1xf32>
    %17 = math.rsqrt %16 : vector<5x1xf32>
    %18 = vector.broadcast %17 : vector<5x1xf32> to vector<5x64xf32>
    %19 = arith.mulf %9, %18 : vector<5x64xf32>
    %20 = vector.broadcast %2 : vector<1x64xf32> to vector<5x64xf32>
    %21 = arith.mulf %19, %20 : vector<5x64xf32>
    %22 = vector.broadcast %3 : vector<1x64xf32> to vector<5x64xf32>
    %23 = arith.addf %21, %22 : vector<5x64xf32>
    %24 = vector.extract_strided_slice %23 {offsets = [0, 0], sizes = [1, 64], strides = [1, 1]} : vector<5x64xf32> to vector<1x64xf32>
    %c0_10 = arith.constant 0 : index
    %c0_11 = arith.constant 0 : index
    %25 = vector.load %arg4[%c0_10, %c0_11] : memref<64x512xf32, #tpu.memory_space<vmem>>, vector<64x512xf32>
    %cst_12 = arith.constant dense<0.000000e+00> : vector<1x512xf32>
    %26 = tpu.matmul %24, %25, %cst_12 {dimension_numbers = #tpu.dot_dimension_numbers<[1], [0], [0], [1], [0, 0, 1, 1], [], []>} : vector<1x64xf32>, vector<64x512xf32>, vector<1x512xf32> -> vector<1x512xf32>
    %c0_13 = arith.constant 0 : index
    %c0_14 = arith.constant 0 : index
    %27 = vector.load %arg5[%c0_13, %c0_14] : memref<64x1024xf32, #tpu.memory_space<vmem>>, vector<64x1024xf32>
    %cst_15 = arith.constant dense<0.000000e+00> : vector<5x1024xf32>
    %28 = tpu.matmul %23, %27, %cst_15 {dimension_numbers = #tpu.dot_dimension_numbers<[1], [0], [0], [1], [0, 0, 1, 1], [], []>} : vector<5x64xf32>, vector<64x1024xf32>, vector<5x1024xf32> -> vector<5x1024xf32>
    %c0_16 = arith.constant 0 : index
    %c0_17 = arith.constant 0 : index
    %29 = vector.load %arg6[%c0_16, %c0_17] : memref<512x64xf32, #tpu.memory_space<vmem>>, vector<512x64xf32>
    %c0_18 = arith.constant 0 : index
    %c0_19 = arith.constant 0 : index
    %30 = vector.load %arg7[%c0_18, %c0_19] : memref<1x64xf32, #tpu.memory_space<vmem>>, vector<1x64xf32>
    %31 = vector.extract_strided_slice %26 {offsets = [0, 0], sizes = [1, 64], strides = [1, 1]} : vector<1x512xf32> to vector<1x64xf32>
    %32 = vector.extract_strided_slice %28 {offsets = [0, 0], sizes = [5, 64], strides = [1, 1]} : vector<5x1024xf32> to vector<5x64xf32>
    %33 = vector.extract_strided_slice %28 {offsets = [0, 512], sizes = [5, 64], strides = [1, 1]} : vector<5x1024xf32> to vector<5x64xf32>
    %cst_20 = arith.constant dense<0.000000e+00> : vector<1x5xf32>
    %34 = tpu.matmul %31, %32, %cst_20 {dimension_numbers = #tpu.dot_dimension_numbers<[1], [1], [0], [0], [0, 0, 1, 0], [], []>} : vector<1x64xf32>, vector<5x64xf32>, vector<1x5xf32> -> vector<1x5xf32>
    %cst_21 = arith.constant 0.353553385 : f32
    %35 = vector.broadcast %cst_21 : f32 to vector<1x5xf32>
    %36 = arith.mulf %34, %35 : vector<1x5xf32>
    %cst_22 = arith.constant dense<0xFF800000> : vector<1xf32>
    %37 = vector.multi_reduction <maximumf>, %36, %cst_22 [1] : vector<1x5xf32> to vector<1xf32>
    %38 = vector.shape_cast %37 : vector<1xf32> to vector<1x1xf32>
    %39 = vector.broadcast %38 : vector<1x1xf32> to vector<1x5xf32>
    %40 = arith.subf %36, %39 : vector<1x5xf32>
    %41 = math.exp %40 : vector<1x5xf32>
    %cst_23 = arith.constant dense<0.000000e+00> : vector<1xf32>
    %42 = vector.multi_reduction <add>, %41, %cst_23 [1] : vector<1x5xf32> to vector<1xf32>
    %43 = vector.shape_cast %42 : vector<1xf32> to vector<1x1xf32>
    %44 = tpu.reciprocal %43 {approx = true} : vector<1x1xf32> -> vector<1x1xf32>
    %45 = vector.broadcast %44 : vector<1x1xf32> to vector<1x5xf32>
    %46 = arith.mulf %41, %45 : vector<1x5xf32>
    %cst_24 = arith.constant dense<0.000000e+00> : vector<1x64xf32>
    %47 = tpu.matmul %46, %33, %cst_24 {dimension_numbers = #tpu.dot_dimension_numbers<[1], [0], [0], [1], [0, 0, 1, 1], [], []>} : vector<1x5xf32>, vector<5x64xf32>, vector<1x64xf32> -> vector<1x64xf32>
    %48 = vector.extract_strided_slice %29 {offsets = [0, 0], sizes = [64, 64], strides = [1, 1]} : vector<512x64xf32> to vector<64x64xf32>
    %cst_25 = arith.constant dense<0.000000e+00> : vector<1x64xf32>
    %49 = tpu.matmul %47, %48, %cst_25 {dimension_numbers = #tpu.dot_dimension_numbers<[1], [0], [0], [1], [0, 0, 1, 1], [], []>} : vector<1x64xf32>, vector<64x64xf32>, vector<1x64xf32> -> vector<1x64xf32>
    %50 = arith.addf %30, %49 : vector<1x64xf32>
    %51 = vector.extract_strided_slice %26 {offsets = [0, 64], sizes = [1, 64], strides = [1, 1]} : vector<1x512xf32> to vector<1x64xf32>
    %52 = vector.extract_strided_slice %28 {offsets = [0, 64], sizes = [5, 64], strides = [1, 1]} : vector<5x1024xf32> to vector<5x64xf32>
    %53 = vector.extract_strided_slice %28 {offsets = [0, 576], sizes = [5, 64], strides = [1, 1]} : vector<5x1024xf32> to vector<5x64xf32>
    %cst_26 = arith.constant dense<0.000000e+00> : vector<1x5xf32>
    %54 = tpu.matmul %51, %52, %cst_26 {dimension_numbers = #tpu.dot_dimension_numbers<[1], [1], [0], [0], [0, 0, 1, 0], [], []>} : vector<1x64xf32>, vector<5x64xf32>, vector<1x5xf32> -> vector<1x5xf32>
    %cst_27 = arith.constant 0.353553385 : f32
    %55 = vector.broadcast %cst_27 : f32 to vector<1x5xf32>
    %56 = arith.mulf %54, %55 : vector<1x5xf32>
    %cst_28 = arith.constant dense<0xFF800000> : vector<1xf32>
    %57 = vector.multi_reduction <maximumf>, %56, %cst_28 [1] : vector<1x5xf32> to vector<1xf32>
    %58 = vector.shape_cast %57 : vector<1xf32> to vector<1x1xf32>
    %59 = vector.broadcast %58 : vector<1x1xf32> to vector<1x5xf32>
    %60 = arith.subf %56, %59 : vector<1x5xf32>
    %61 = math.exp %60 : vector<1x5xf32>
    %cst_29 = arith.constant dense<0.000000e+00> : vector<1xf32>
    %62 = vector.multi_reduction <add>, %61, %cst_29 [1] : vector<1x5xf32> to vector<1xf32>
    %63 = vector.shape_cast %62 : vector<1xf32> to vector<1x1xf32>
    %64 = tpu.reciprocal %63 {approx = true} : vector<1x1xf32> -> vector<1x1xf32>
    %65 = vector.broadcast %64 : vector<1x1xf32> to vector<1x5xf32>
    %66 = arith.mulf %61, %65 : vector<1x5xf32>
    %cst_30 = arith.constant dense<0.000000e+00> : vector<1x64xf32>
    %67 = tpu.matmul %66, %53, %cst_30 {dimension_numbers = #tpu.dot_dimension_numbers<[1], [0], [0], [1], [0, 0, 1, 1], [], []>} : vector<1x5xf32>, vector<5x64xf32>, vector<1x64xf32> -> vector<1x64xf32>
    %68 = vector.extract_strided_slice %29 {offsets = [64, 0], sizes = [64, 64], strides = [1, 1]} : vector<512x64xf32> to vector<64x64xf32>
    %cst_31 = arith.constant dense<0.000000e+00> : vector<1x64xf32>
    %69 = tpu.matmul %67, %68, %cst_31 {dimension_numbers = #tpu.dot_dimension_numbers<[1], [0], [0], [1], [0, 0, 1, 1], [], []>} : vector<1x64xf32>, vector<64x64xf32>, vector<1x64xf32> -> vector<1x64xf32>
    %70 = arith.addf %50, %69 : vector<1x64xf32>
    %71 = vector.extract_strided_slice %26 {offsets = [0, 128], sizes = [1, 64], strides = [1, 1]} : vector<1x512xf32> to vector<1x64xf32>
    %72 = vector.extract_strided_slice %28 {offsets = [0, 128], sizes = [5, 64], strides = [1, 1]} : vector<5x1024xf32> to vector<5x64xf32>
    %73 = vector.extract_strided_slice %28 {offsets = [0, 640], sizes = [5, 64], strides = [1, 1]} : vector<5x1024xf32> to vector<5x64xf32>
    %cst_32 = arith.constant dense<0.000000e+00> : vector<1x5xf32>
    %74 = tpu.matmul %71, %72, %cst_32 {dimension_numbers = #tpu.dot_dimension_numbers<[1], [1], [0], [0], [0, 0, 1, 0], [], []>} : vector<1x64xf32>, vector<5x64xf32>, vector<1x5xf32> -> vector<1x5xf32>
    %cst_33 = arith.constant 0.353553385 : f32
    %75 = vector.broadcast %cst_33 : f32 to vector<1x5xf32>
    %76 = arith.mulf %74, %75 : vector<1x5xf32>
    %cst_34 = arith.constant dense<0xFF800000> : vector<1xf32>
    %77 = vector.multi_reduction <maximumf>, %76, %cst_34 [1] : vector<1x5xf32> to vector<1xf32>
    %78 = vector.shape_cast %77 : vector<1xf32> to vector<1x1xf32>
    %79 = vector.broadcast %78 : vector<1x1xf32> to vector<1x5xf32>
    %80 = arith.subf %76, %79 : vector<1x5xf32>
    %81 = math.exp %80 : vector<1x5xf32>
    %cst_35 = arith.constant dense<0.000000e+00> : vector<1xf32>
    %82 = vector.multi_reduction <add>, %81, %cst_35 [1] : vector<1x5xf32> to vector<1xf32>
    %83 = vector.shape_cast %82 : vector<1xf32> to vector<1x1xf32>
    %84 = tpu.reciprocal %83 {approx = true} : vector<1x1xf32> -> vector<1x1xf32>
    %85 = vector.broadcast %84 : vector<1x1xf32> to vector<1x5xf32>
    %86 = arith.mulf %81, %85 : vector<1x5xf32>
    %cst_36 = arith.constant dense<0.000000e+00> : vector<1x64xf32>
    %87 = tpu.matmul %86, %73, %cst_36 {dimension_numbers = #tpu.dot_dimension_numbers<[1], [0], [0], [1], [0, 0, 1, 1], [], []>} : vector<1x5xf32>, vector<5x64xf32>, vector<1x64xf32> -> vector<1x64xf32>
    %88 = vector.extract_strided_slice %29 {offsets = [128, 0], sizes = [64, 64], strides = [1, 1]} : vector<512x64xf32> to vector<64x64xf32>
    %cst_37 = arith.constant dense<0.000000e+00> : vector<1x64xf32>
    %89 = tpu.matmul %87, %88, %cst_37 {dimension_numbers = #tpu.dot_dimension_numbers<[1], [0], [0], [1], [0, 0, 1, 1], [], []>} : vector<1x64xf32>, vector<64x64xf32>, vector<1x64xf32> -> vector<1x64xf32>
    %90 = arith.addf %70, %89 : vector<1x64xf32>
    %91 = vector.extract_strided_slice %26 {offsets = [0, 192], sizes = [1, 64], strides = [1, 1]} : vector<1x512xf32> to vector<1x64xf32>
    %92 = vector.extract_strided_slice %28 {offsets = [0, 192], sizes = [5, 64], strides = [1, 1]} : vector<5x1024xf32> to vector<5x64xf32>
    %93 = vector.extract_strided_slice %28 {offsets = [0, 704], sizes = [5, 64], strides = [1, 1]} : vector<5x1024xf32> to vector<5x64xf32>
    %cst_38 = arith.constant dense<0.000000e+00> : vector<1x5xf32>
    %94 = tpu.matmul %91, %92, %cst_38 {dimension_numbers = #tpu.dot_dimension_numbers<[1], [1], [0], [0], [0, 0, 1, 0], [], []>} : vector<1x64xf32>, vector<5x64xf32>, vector<1x5xf32> -> vector<1x5xf32>
    %cst_39 = arith.constant 0.353553385 : f32
    %95 = vector.broadcast %cst_39 : f32 to vector<1x5xf32>
    %96 = arith.mulf %94, %95 : vector<1x5xf32>
    %cst_40 = arith.constant dense<0xFF800000> : vector<1xf32>
    %97 = vector.multi_reduction <maximumf>, %96, %cst_40 [1] : vector<1x5xf32> to vector<1xf32>
    %98 = vector.shape_cast %97 : vector<1xf32> to vector<1x1xf32>
    %99 = vector.broadcast %98 : vector<1x1xf32> to vector<1x5xf32>
    %100 = arith.subf %96, %99 : vector<1x5xf32>
    %101 = math.exp %100 : vector<1x5xf32>
    %cst_41 = arith.constant dense<0.000000e+00> : vector<1xf32>
    %102 = vector.multi_reduction <add>, %101, %cst_41 [1] : vector<1x5xf32> to vector<1xf32>
    %103 = vector.shape_cast %102 : vector<1xf32> to vector<1x1xf32>
    %104 = tpu.reciprocal %103 {approx = true} : vector<1x1xf32> -> vector<1x1xf32>
    %105 = vector.broadcast %104 : vector<1x1xf32> to vector<1x5xf32>
    %106 = arith.mulf %101, %105 : vector<1x5xf32>
    %cst_42 = arith.constant dense<0.000000e+00> : vector<1x64xf32>
    %107 = tpu.matmul %106, %93, %cst_42 {dimension_numbers = #tpu.dot_dimension_numbers<[1], [0], [0], [1], [0, 0, 1, 1], [], []>} : vector<1x5xf32>, vector<5x64xf32>, vector<1x64xf32> -> vector<1x64xf32>
    %108 = vector.extract_strided_slice %29 {offsets = [192, 0], sizes = [64, 64], strides = [1, 1]} : vector<512x64xf32> to vector<64x64xf32>
    %cst_43 = arith.constant dense<0.000000e+00> : vector<1x64xf32>
    %109 = tpu.matmul %107, %108, %cst_43 {dimension_numbers = #tpu.dot_dimension_numbers<[1], [0], [0], [1], [0, 0, 1, 1], [], []>} : vector<1x64xf32>, vector<64x64xf32>, vector<1x64xf32> -> vector<1x64xf32>
    %110 = arith.addf %90, %109 : vector<1x64xf32>
    %111 = vector.extract_strided_slice %26 {offsets = [0, 256], sizes = [1, 64], strides = [1, 1]} : vector<1x512xf32> to vector<1x64xf32>
    %112 = vector.extract_strided_slice %28 {offsets = [0, 256], sizes = [5, 64], strides = [1, 1]} : vector<5x1024xf32> to vector<5x64xf32>
    %113 = vector.extract_strided_slice %28 {offsets = [0, 768], sizes = [5, 64], strides = [1, 1]} : vector<5x1024xf32> to vector<5x64xf32>
    %cst_44 = arith.constant dense<0.000000e+00> : vector<1x5xf32>
    %114 = tpu.matmul %111, %112, %cst_44 {dimension_numbers = #tpu.dot_dimension_numbers<[1], [1], [0], [0], [0, 0, 1, 0], [], []>} : vector<1x64xf32>, vector<5x64xf32>, vector<1x5xf32> -> vector<1x5xf32>
    %cst_45 = arith.constant 0.353553385 : f32
    %115 = vector.broadcast %cst_45 : f32 to vector<1x5xf32>
    %116 = arith.mulf %114, %115 : vector<1x5xf32>
    %cst_46 = arith.constant dense<0xFF800000> : vector<1xf32>
    %117 = vector.multi_reduction <maximumf>, %116, %cst_46 [1] : vector<1x5xf32> to vector<1xf32>
    %118 = vector.shape_cast %117 : vector<1xf32> to vector<1x1xf32>
    %119 = vector.broadcast %118 : vector<1x1xf32> to vector<1x5xf32>
    %120 = arith.subf %116, %119 : vector<1x5xf32>
    %121 = math.exp %120 : vector<1x5xf32>
    %cst_47 = arith.constant dense<0.000000e+00> : vector<1xf32>
    %122 = vector.multi_reduction <add>, %121, %cst_47 [1] : vector<1x5xf32> to vector<1xf32>
    %123 = vector.shape_cast %122 : vector<1xf32> to vector<1x1xf32>
    %124 = tpu.reciprocal %123 {approx = true} : vector<1x1xf32> -> vector<1x1xf32>
    %125 = vector.broadcast %124 : vector<1x1xf32> to vector<1x5xf32>
    %126 = arith.mulf %121, %125 : vector<1x5xf32>
    %cst_48 = arith.constant dense<0.000000e+00> : vector<1x64xf32>
    %127 = tpu.matmul %126, %113, %cst_48 {dimension_numbers = #tpu.dot_dimension_numbers<[1], [0], [0], [1], [0, 0, 1, 1], [], []>} : vector<1x5xf32>, vector<5x64xf32>, vector<1x64xf32> -> vector<1x64xf32>
    %128 = vector.extract_strided_slice %29 {offsets = [256, 0], sizes = [64, 64], strides = [1, 1]} : vector<512x64xf32> to vector<64x64xf32>
    %cst_49 = arith.constant dense<0.000000e+00> : vector<1x64xf32>
    %129 = tpu.matmul %127, %128, %cst_49 {dimension_numbers = #tpu.dot_dimension_numbers<[1], [0], [0], [1], [0, 0, 1, 1], [], []>} : vector<1x64xf32>, vector<64x64xf32>, vector<1x64xf32> -> vector<1x64xf32>
    %130 = arith.addf %110, %129 : vector<1x64xf32>
    %131 = vector.extract_strided_slice %26 {offsets = [0, 320], sizes = [1, 64], strides = [1, 1]} : vector<1x512xf32> to vector<1x64xf32>
    %132 = vector.extract_strided_slice %28 {offsets = [0, 320], sizes = [5, 64], strides = [1, 1]} : vector<5x1024xf32> to vector<5x64xf32>
    %133 = vector.extract_strided_slice %28 {offsets = [0, 832], sizes = [5, 64], strides = [1, 1]} : vector<5x1024xf32> to vector<5x64xf32>
    %cst_50 = arith.constant dense<0.000000e+00> : vector<1x5xf32>
    %134 = tpu.matmul %131, %132, %cst_50 {dimension_numbers = #tpu.dot_dimension_numbers<[1], [1], [0], [0], [0, 0, 1, 0], [], []>} : vector<1x64xf32>, vector<5x64xf32>, vector<1x5xf32> -> vector<1x5xf32>
    %cst_51 = arith.constant 0.353553385 : f32
    %135 = vector.broadcast %cst_51 : f32 to vector<1x5xf32>
    %136 = arith.mulf %134, %135 : vector<1x5xf32>
    %cst_52 = arith.constant dense<0xFF800000> : vector<1xf32>
    %137 = vector.multi_reduction <maximumf>, %136, %cst_52 [1] : vector<1x5xf32> to vector<1xf32>
    %138 = vector.shape_cast %137 : vector<1xf32> to vector<1x1xf32>
    %139 = vector.broadcast %138 : vector<1x1xf32> to vector<1x5xf32>
    %140 = arith.subf %136, %139 : vector<1x5xf32>
    %141 = math.exp %140 : vector<1x5xf32>
    %cst_53 = arith.constant dense<0.000000e+00> : vector<1xf32>
    %142 = vector.multi_reduction <add>, %141, %cst_53 [1] : vector<1x5xf32> to vector<1xf32>
    %143 = vector.shape_cast %142 : vector<1xf32> to vector<1x1xf32>
    %144 = tpu.reciprocal %143 {approx = true} : vector<1x1xf32> -> vector<1x1xf32>
    %145 = vector.broadcast %144 : vector<1x1xf32> to vector<1x5xf32>
    %146 = arith.mulf %141, %145 : vector<1x5xf32>
    %cst_54 = arith.constant dense<0.000000e+00> : vector<1x64xf32>
    %147 = tpu.matmul %146, %133, %cst_54 {dimension_numbers = #tpu.dot_dimension_numbers<[1], [0], [0], [1], [0, 0, 1, 1], [], []>} : vector<1x5xf32>, vector<5x64xf32>, vector<1x64xf32> -> vector<1x64xf32>
    %148 = vector.extract_strided_slice %29 {offsets = [320, 0], sizes = [64, 64], strides = [1, 1]} : vector<512x64xf32> to vector<64x64xf32>
    %cst_55 = arith.constant dense<0.000000e+00> : vector<1x64xf32>
    %149 = tpu.matmul %147, %148, %cst_55 {dimension_numbers = #tpu.dot_dimension_numbers<[1], [0], [0], [1], [0, 0, 1, 1], [], []>} : vector<1x64xf32>, vector<64x64xf32>, vector<1x64xf32> -> vector<1x64xf32>
    %150 = arith.addf %130, %149 : vector<1x64xf32>
    %151 = vector.extract_strided_slice %26 {offsets = [0, 384], sizes = [1, 64], strides = [1, 1]} : vector<1x512xf32> to vector<1x64xf32>
    %152 = vector.extract_strided_slice %28 {offsets = [0, 384], sizes = [5, 64], strides = [1, 1]} : vector<5x1024xf32> to vector<5x64xf32>
    %153 = vector.extract_strided_slice %28 {offsets = [0, 896], sizes = [5, 64], strides = [1, 1]} : vector<5x1024xf32> to vector<5x64xf32>
    %cst_56 = arith.constant dense<0.000000e+00> : vector<1x5xf32>
    %154 = tpu.matmul %151, %152, %cst_56 {dimension_numbers = #tpu.dot_dimension_numbers<[1], [1], [0], [0], [0, 0, 1, 0], [], []>} : vector<1x64xf32>, vector<5x64xf32>, vector<1x5xf32> -> vector<1x5xf32>
    %cst_57 = arith.constant 0.353553385 : f32
    %155 = vector.broadcast %cst_57 : f32 to vector<1x5xf32>
    %156 = arith.mulf %154, %155 : vector<1x5xf32>
    %cst_58 = arith.constant dense<0xFF800000> : vector<1xf32>
    %157 = vector.multi_reduction <maximumf>, %156, %cst_58 [1] : vector<1x5xf32> to vector<1xf32>
    %158 = vector.shape_cast %157 : vector<1xf32> to vector<1x1xf32>
    %159 = vector.broadcast %158 : vector<1x1xf32> to vector<1x5xf32>
    %160 = arith.subf %156, %159 : vector<1x5xf32>
    %161 = math.exp %160 : vector<1x5xf32>
    %cst_59 = arith.constant dense<0.000000e+00> : vector<1xf32>
    %162 = vector.multi_reduction <add>, %161, %cst_59 [1] : vector<1x5xf32> to vector<1xf32>
    %163 = vector.shape_cast %162 : vector<1xf32> to vector<1x1xf32>
    %164 = tpu.reciprocal %163 {approx = true} : vector<1x1xf32> -> vector<1x1xf32>
    %165 = vector.broadcast %164 : vector<1x1xf32> to vector<1x5xf32>
    %166 = arith.mulf %161, %165 : vector<1x5xf32>
    %cst_60 = arith.constant dense<0.000000e+00> : vector<1x64xf32>
    %167 = tpu.matmul %166, %153, %cst_60 {dimension_numbers = #tpu.dot_dimension_numbers<[1], [0], [0], [1], [0, 0, 1, 1], [], []>} : vector<1x5xf32>, vector<5x64xf32>, vector<1x64xf32> -> vector<1x64xf32>
    %168 = vector.extract_strided_slice %29 {offsets = [384, 0], sizes = [64, 64], strides = [1, 1]} : vector<512x64xf32> to vector<64x64xf32>
    %cst_61 = arith.constant dense<0.000000e+00> : vector<1x64xf32>
    %169 = tpu.matmul %167, %168, %cst_61 {dimension_numbers = #tpu.dot_dimension_numbers<[1], [0], [0], [1], [0, 0, 1, 1], [], []>} : vector<1x64xf32>, vector<64x64xf32>, vector<1x64xf32> -> vector<1x64xf32>
    %170 = arith.addf %150, %169 : vector<1x64xf32>
    %171 = vector.extract_strided_slice %26 {offsets = [0, 448], sizes = [1, 64], strides = [1, 1]} : vector<1x512xf32> to vector<1x64xf32>
    %172 = vector.extract_strided_slice %28 {offsets = [0, 448], sizes = [5, 64], strides = [1, 1]} : vector<5x1024xf32> to vector<5x64xf32>
    %173 = vector.extract_strided_slice %28 {offsets = [0, 960], sizes = [5, 64], strides = [1, 1]} : vector<5x1024xf32> to vector<5x64xf32>
    %cst_62 = arith.constant dense<0.000000e+00> : vector<1x5xf32>
    %174 = tpu.matmul %171, %172, %cst_62 {dimension_numbers = #tpu.dot_dimension_numbers<[1], [1], [0], [0], [0, 0, 1, 0], [], []>} : vector<1x64xf32>, vector<5x64xf32>, vector<1x5xf32> -> vector<1x5xf32>
    %cst_63 = arith.constant 0.353553385 : f32
    %175 = vector.broadcast %cst_63 : f32 to vector<1x5xf32>
    %176 = arith.mulf %174, %175 : vector<1x5xf32>
    %cst_64 = arith.constant dense<0xFF800000> : vector<1xf32>
    %177 = vector.multi_reduction <maximumf>, %176, %cst_64 [1] : vector<1x5xf32> to vector<1xf32>
    %178 = vector.shape_cast %177 : vector<1xf32> to vector<1x1xf32>
    %179 = vector.broadcast %178 : vector<1x1xf32> to vector<1x5xf32>
    %180 = arith.subf %176, %179 : vector<1x5xf32>
    %181 = math.exp %180 : vector<1x5xf32>
    %cst_65 = arith.constant dense<0.000000e+00> : vector<1xf32>
    %182 = vector.multi_reduction <add>, %181, %cst_65 [1] : vector<1x5xf32> to vector<1xf32>
    %183 = vector.shape_cast %182 : vector<1xf32> to vector<1x1xf32>
    %184 = tpu.reciprocal %183 {approx = true} : vector<1x1xf32> -> vector<1x1xf32>
    %185 = vector.broadcast %184 : vector<1x1xf32> to vector<1x5xf32>
    %186 = arith.mulf %181, %185 : vector<1x5xf32>
    %cst_66 = arith.constant dense<0.000000e+00> : vector<1x64xf32>
    %187 = tpu.matmul %186, %173, %cst_66 {dimension_numbers = #tpu.dot_dimension_numbers<[1], [0], [0], [1], [0, 0, 1, 1], [], []>} : vector<1x5xf32>, vector<5x64xf32>, vector<1x64xf32> -> vector<1x64xf32>
    %188 = vector.extract_strided_slice %29 {offsets = [448, 0], sizes = [64, 64], strides = [1, 1]} : vector<512x64xf32> to vector<64x64xf32>
    %cst_67 = arith.constant dense<0.000000e+00> : vector<1x64xf32>
    %189 = tpu.matmul %187, %188, %cst_67 {dimension_numbers = #tpu.dot_dimension_numbers<[1], [0], [0], [1], [0, 0, 1, 1], [], []>} : vector<1x64xf32>, vector<64x64xf32>, vector<1x64xf32> -> vector<1x64xf32>
    %190 = arith.addf %170, %189 : vector<1x64xf32>
    %191 = vector.broadcast %190 : vector<1x64xf32> to vector<5x64xf32>
    %192 = arith.addf %1, %191 : vector<5x64xf32>
    %c0_68 = arith.constant 0 : index
    %c0_69 = arith.constant 0 : index
    %193 = vector.load %arg8[%c0_68, %c0_69] : memref<1x64xf32, #tpu.memory_space<vmem>>, vector<1x64xf32>
    %c0_70 = arith.constant 0 : index
    %c0_71 = arith.constant 0 : index
    %194 = vector.load %arg9[%c0_70, %c0_71] : memref<1x64xf32, #tpu.memory_space<vmem>>, vector<1x64xf32>
    %cst_72 = arith.constant dense<0.000000e+00> : vector<5xf32>
    %195 = vector.multi_reduction <add>, %192, %cst_72 [1] : vector<5x64xf32> to vector<5xf32>
    %196 = vector.shape_cast %195 : vector<5xf32> to vector<5x1xf32>
    %cst_73 = arith.constant 6.400000e+01 : f32
    %197 = vector.broadcast %cst_73 : f32 to vector<5x1xf32>
    %198 = arith.divf %196, %197 : vector<5x1xf32>
    %199 = vector.broadcast %198 : vector<5x1xf32> to vector<5x64xf32>
    %200 = arith.subf %192, %199 : vector<5x64xf32>
    %201 = arith.mulf %200, %200 : vector<5x64xf32>
    %cst_74 = arith.constant dense<0.000000e+00> : vector<5xf32>
    %202 = vector.multi_reduction <add>, %201, %cst_74 [1] : vector<5x64xf32> to vector<5xf32>
    %203 = vector.shape_cast %202 : vector<5xf32> to vector<5x1xf32>
    %cst_75 = arith.constant 6.400000e+01 : f32
    %204 = vector.broadcast %cst_75 : f32 to vector<5x1xf32>
    %205 = arith.divf %203, %204 : vector<5x1xf32>
    %cst_76 = arith.constant 9.99999997E-7 : f32
    %206 = vector.broadcast %cst_76 : f32 to vector<5x1xf32>
    %207 = arith.addf %205, %206 : vector<5x1xf32>
    %208 = math.rsqrt %207 : vector<5x1xf32>
    %209 = vector.broadcast %208 : vector<5x1xf32> to vector<5x64xf32>
    %210 = arith.mulf %200, %209 : vector<5x64xf32>
    %211 = vector.broadcast %193 : vector<1x64xf32> to vector<5x64xf32>
    %212 = arith.mulf %210, %211 : vector<5x64xf32>
    %213 = vector.broadcast %194 : vector<1x64xf32> to vector<5x64xf32>
    %214 = arith.addf %212, %213 : vector<5x64xf32>
    %c0_77 = arith.constant 0 : index
    %c0_78 = arith.constant 0 : index
    %215 = vector.load %arg10[%c0_77, %c0_78] : memref<64x32xf32, #tpu.memory_space<vmem>>, vector<64x32xf32>
    %cst_79 = arith.constant dense<0.000000e+00> : vector<5x32xf32>
    %216 = tpu.matmul %214, %215, %cst_79 {dimension_numbers = #tpu.dot_dimension_numbers<[1], [0], [0], [1], [0, 0, 1, 1], [], []>} : vector<5x64xf32>, vector<64x32xf32>, vector<5x32xf32> -> vector<5x32xf32>
    %c0_80 = arith.constant 0 : index
    %c0_81 = arith.constant 0 : index
    %217 = vector.load %arg11[%c0_80, %c0_81] : memref<1x32xf32, #tpu.memory_space<vmem>>, vector<1x32xf32>
    %218 = vector.broadcast %217 : vector<1x32xf32> to vector<5x32xf32>
    %219 = arith.addf %216, %218 : vector<5x32xf32>
    %cst_82 = arith.constant 5.000000e-01 : f32
    %220 = vector.broadcast %cst_82 : f32 to vector<5x32xf32>
    %221 = arith.mulf %220, %219 : vector<5x32xf32>
    %cst_83 = arith.constant 0.707106769 : f32
    %222 = vector.broadcast %cst_83 : f32 to vector<5x32xf32>
    %223 = arith.mulf %219, %222 : vector<5x32xf32>
    %224 = math.erf %223 : vector<5x32xf32>
    %cst_84 = arith.constant 1.000000e+00 : f32
    %225 = vector.broadcast %cst_84 : f32 to vector<5x32xf32>
    %226 = arith.addf %225, %224 : vector<5x32xf32>
    %227 = arith.mulf %221, %226 : vector<5x32xf32>
    %c0_85 = arith.constant 0 : index
    %c0_86 = arith.constant 0 : index
    %228 = vector.load %arg12[%c0_85, %c0_86] : memref<32x64xf32, #tpu.memory_space<vmem>>, vector<32x64xf32>
    %cst_87 = arith.constant dense<0.000000e+00> : vector<5x64xf32>
    %229 = tpu.matmul %227, %228, %cst_87 {dimension_numbers = #tpu.dot_dimension_numbers<[1], [0], [0], [1], [0, 0, 1, 1], [], []>} : vector<5x32xf32>, vector<32x64xf32>, vector<5x64xf32> -> vector<5x64xf32>
    %c0_88 = arith.constant 0 : index
    %c0_89 = arith.constant 0 : index
    %230 = vector.load %arg13[%c0_88, %c0_89] : memref<1x64xf32, #tpu.memory_space<vmem>>, vector<1x64xf32>
    %231 = vector.broadcast %230 : vector<1x64xf32> to vector<5x64xf32>
    %232 = arith.addf %229, %231 : vector<5x64xf32>
    %233 = arith.addf %192, %232 : vector<5x64xf32>
    %234 = vector.shape_cast %233 : vector<5x64xf32> to vector<1x5x64xf32>
    %c0_90 = arith.constant 0 : index
    %c0_91 = arith.constant 0 : index
    %c0_92 = arith.constant 0 : index
    %235 = vector.load %arg14[%c0_90, %c0_91, %c0_92] : memref<1x5x64xf32, #tpu.memory_space<vmem>>, vector<1x5x64xf32>
    tpu.vector_store %arg14[%c0_90, %c0_91, %c0_92], %234 {strides = array<i32>} : memref<1x5x64xf32, #tpu.memory_space<vmem>>, vector<1x5x64xf32>,
    return
  }
  func.func @transform_0(%arg0: i32) -> (i32, i32, i32) {
    %c0_i32 = arith.constant 0 : i32
    %c0_i32_0 = arith.constant 0 : i32
    %c0_i32_1 = arith.constant 0 : i32
    return %arg0, %c0_i32, %c0_i32_0 : i32, i32, i32
  }
  func.func @transform_1(%arg0: i32) -> (i32, i32) {
    %c0_i32 = arith.constant 0 : i32
    %c0_i32_0 = arith.constant 0 : i32
    %c0_i32_1 = arith.constant 0 : i32
    return %c0_i32, %c0_i32_0 : i32, i32
  }
  func.func @transform_2(%arg0: i32) -> (i32, i32) {
    %c0_i32 = arith.constant 0 : i32
    %c0_i32_0 = arith.constant 0 : i32
    %c0_i32_1 = arith.constant 0 : i32
    return %c0_i32, %c0_i32_0 : i32, i32
  }
  func.func @transform_3(%arg0: i32) -> (i32, i32) {
    %c0_i32 = arith.constant 0 : i32
    %c0_i32_0 = arith.constant 0 : i32
    %c0_i32_1 = arith.constant 0 : i32
    return %c0_i32, %c0_i32_0 : i32, i32
  }
  func.func @transform_4(%arg0: i32) -> (i32, i32) {
    %c0_i32 = arith.constant 0 : i32
    %c0_i32_0 = arith.constant 0 : i32
    %c0_i32_1 = arith.constant 0 : i32
    return %c0_i32, %c0_i32_0 : i32, i32
  }
  func.func @transform_5(%arg0: i32) -> (i32, i32) {
    %c0_i32 = arith.constant 0 : i32
    %c0_i32_0 = arith.constant 0 : i32
    %c0_i32_1 = arith.constant 0 : i32
    return %c0_i32, %c0_i32_0 : i32, i32
  }
  func.func @transform_6(%arg0: i32) -> (i32, i32) {
    %c0_i32 = arith.constant 0 : i32
    %c0_i32_0 = arith.constant 0 : i32
    %c0_i32_1 = arith.constant 0 : i32
    return %c0_i32, %c0_i32_0 : i32, i32
  }
  func.func @transform_7(%arg0: i32) -> (i32, i32) {
    %c0_i32 = arith.constant 0 : i32
    %c0_i32_0 = arith.constant 0 : i32
    %c0_i32_1 = arith.constant 0 : i32
    return %c0_i32, %c0_i32_0 : i32, i32
  }
  func.func @transform_8(%arg0: i32) -> (i32, i32) {
    %c0_i32 = arith.constant 0 : i32
    %c0_i32_0 = arith.constant 0 : i32
    %c0_i32_1 = arith.constant 0 : i32
    return %c0_i32, %c0_i32_0 : i32, i32
  }
  func.func @transform_9(%arg0: i32) -> (i32, i32) {
    %c0_i32 = arith.constant 0 : i32
    %c0_i32_0 = arith.constant 0 : i32
    %c0_i32_1 = arith.constant 0 : i32
    return %c0_i32, %c0_i32_0 : i32, i32
  }
  func.func @transform_10(%arg0: i32) -> (i32, i32) {
    %c0_i32 = arith.constant 0 : i32
    %c0_i32_0 = arith.constant 0 : i32
    %c0_i32_1 = arith.constant 0 : i32
    return %c0_i32, %c0_i32_0 : i32, i32
  }
  func.func @transform_11(%arg0: i32) -> (i32, i32) {
    %c0_i32 = arith.constant 0 : i32
    %c0_i32_0 = arith.constant 0 : i32
    %c0_i32_1 = arith.constant 0 : i32
    return %c0_i32, %c0_i32_0 : i32, i32
  }
  func.func @transform_12(%arg0: i32) -> (i32, i32) {
    %c0_i32 = arith.constant 0 : i32
    %c0_i32_0 = arith.constant 0 : i32
    %c0_i32_1 = arith.constant 0 : i32
    return %c0_i32, %c0_i32_0 : i32, i32
  }
  func.func @transform_13(%arg0: i32) -> (i32, i32, i32) {
    %c0_i32 = arith.constant 0 : i32
    %c0_i32_0 = arith.constant 0 : i32
    %c0_i32_1 = arith.constant 0 : i32
    return %arg0, %c0_i32, %c0_i32_0 : i32, i32, i32
  }
}

module attributes {stable_mosaic.version = 11 : i64} {
  func.func @_head_kernel(%arg0: i32, %arg1: memref<2x5x64xf32, #tpu.memory_space<vmem>>, %arg2: memref<1x64xf32, #tpu.memory_space<vmem>>, %arg3: memref<1x64xf32, #tpu.memory_space<vmem>>, %arg4: memref<64x8xf32, #tpu.memory_space<vmem>>, %arg5: memref<1x8xf32, #tpu.memory_space<vmem>>, %arg6: memref<2x8xf32, #tpu.memory_space<vmem>>) attributes {dimension_semantics = [#tpu.dimension_semantics<arbitrary>], iteration_bounds = array<i64: 1>, scalar_prefetch = 0 : i64, scratch_operands = 0 : i64, tpu.core_type = #tpu.core_type<tc>, window_params = [{pipeline_mode = #tpu.pipeline_mode<synchronous>, transform_indices = @transform_0, window_bounds = array<i64: 2, 5, 64>}, {pipeline_mode = #tpu.pipeline_mode<synchronous>, transform_indices = @transform_1, window_bounds = array<i64: 1, 64>}, {pipeline_mode = #tpu.pipeline_mode<synchronous>, transform_indices = @transform_2, window_bounds = array<i64: 1, 64>}, {pipeline_mode = #tpu.pipeline_mode<synchronous>, transform_indices = @transform_3, window_bounds = array<i64: 64, 8>}, {pipeline_mode = #tpu.pipeline_mode<synchronous>, transform_indices = @transform_4, window_bounds = array<i64: 1, 8>}, {pipeline_mode = #tpu.pipeline_mode<synchronous>, transform_indices = @transform_5, window_bounds = array<i64: 2, 8>}]} {
    %c0 = arith.constant 0 : index
    %c0_0 = arith.constant 0 : index
    %c0_1 = arith.constant 0 : index
    %0 = vector.load %arg1[%c0, %c0_0, %c0_1] : memref<2x5x64xf32, #tpu.memory_space<vmem>>, vector<2x5x64xf32>
    %1 = vector.extract_strided_slice %0 {offsets = [0, 0, 0], sizes = [2, 1, 64], strides = [1, 1, 1]} : vector<2x5x64xf32> to vector<2x1x64xf32>
    %2 = vector.shape_cast %1 : vector<2x1x64xf32> to vector<2x64xf32>
    %c0_2 = arith.constant 0 : index
    %c0_3 = arith.constant 0 : index
    %3 = vector.load %arg2[%c0_2, %c0_3] : memref<1x64xf32, #tpu.memory_space<vmem>>, vector<1x64xf32>
    %c0_4 = arith.constant 0 : index
    %c0_5 = arith.constant 0 : index
    %4 = vector.load %arg3[%c0_4, %c0_5] : memref<1x64xf32, #tpu.memory_space<vmem>>, vector<1x64xf32>
    %cst = arith.constant dense<0.000000e+00> : vector<2xf32>
    %5 = vector.multi_reduction <add>, %2, %cst [1] : vector<2x64xf32> to vector<2xf32>
    %6 = vector.shape_cast %5 : vector<2xf32> to vector<2x1xf32>
    %cst_6 = arith.constant 6.400000e+01 : f32
    %7 = vector.broadcast %cst_6 : f32 to vector<2x1xf32>
    %8 = arith.divf %6, %7 : vector<2x1xf32>
    %9 = vector.broadcast %8 : vector<2x1xf32> to vector<2x64xf32>
    %10 = arith.subf %2, %9 : vector<2x64xf32>
    %11 = arith.mulf %10, %10 : vector<2x64xf32>
    %cst_7 = arith.constant dense<0.000000e+00> : vector<2xf32>
    %12 = vector.multi_reduction <add>, %11, %cst_7 [1] : vector<2x64xf32> to vector<2xf32>
    %13 = vector.shape_cast %12 : vector<2xf32> to vector<2x1xf32>
    %cst_8 = arith.constant 6.400000e+01 : f32
    %14 = vector.broadcast %cst_8 : f32 to vector<2x1xf32>
    %15 = arith.divf %13, %14 : vector<2x1xf32>
    %cst_9 = arith.constant 9.99999997E-7 : f32
    %16 = vector.broadcast %cst_9 : f32 to vector<2x1xf32>
    %17 = arith.addf %15, %16 : vector<2x1xf32>
    %18 = math.rsqrt %17 : vector<2x1xf32>
    %19 = vector.broadcast %18 : vector<2x1xf32> to vector<2x64xf32>
    %20 = arith.mulf %10, %19 : vector<2x64xf32>
    %21 = vector.broadcast %3 : vector<1x64xf32> to vector<2x64xf32>
    %22 = arith.mulf %20, %21 : vector<2x64xf32>
    %23 = vector.broadcast %4 : vector<1x64xf32> to vector<2x64xf32>
    %24 = arith.addf %22, %23 : vector<2x64xf32>
    %c0_10 = arith.constant 0 : index
    %c0_11 = arith.constant 0 : index
    %25 = vector.load %arg4[%c0_10, %c0_11] : memref<64x8xf32, #tpu.memory_space<vmem>>, vector<64x8xf32>
    %cst_12 = arith.constant dense<0.000000e+00> : vector<2x8xf32>
    %26 = tpu.matmul %24, %25, %cst_12 {dimension_numbers = #tpu.dot_dimension_numbers<[1], [0], [0], [1], [0, 0, 1, 1], [], []>} : vector<2x64xf32>, vector<64x8xf32>, vector<2x8xf32> -> vector<2x8xf32>
    %c0_13 = arith.constant 0 : index
    %c0_14 = arith.constant 0 : index
    %27 = vector.load %arg5[%c0_13, %c0_14] : memref<1x8xf32, #tpu.memory_space<vmem>>, vector<1x8xf32>
    %28 = vector.broadcast %27 : vector<1x8xf32> to vector<2x8xf32>
    %29 = arith.addf %26, %28 : vector<2x8xf32>
    %c0_15 = arith.constant 0 : index
    %c0_16 = arith.constant 0 : index
    %30 = vector.load %arg6[%c0_15, %c0_16] : memref<2x8xf32, #tpu.memory_space<vmem>>, vector<2x8xf32>
    tpu.vector_store %arg6[%c0_15, %c0_16], %29 {strides = array<i32>} : memref<2x8xf32, #tpu.memory_space<vmem>>, vector<2x8xf32>,
    return
  }
  func.func @transform_0(%arg0: i32) -> (i32, i32, i32) {
    %c0_i32 = arith.constant 0 : i32
    %c0_i32_0 = arith.constant 0 : i32
    %c0_i32_1 = arith.constant 0 : i32
    %c0_i32_2 = arith.constant 0 : i32
    return %c0_i32, %c0_i32_0, %c0_i32_1 : i32, i32, i32
  }
  func.func @transform_1(%arg0: i32) -> (i32, i32) {
    %c0_i32 = arith.constant 0 : i32
    %c0_i32_0 = arith.constant 0 : i32
    %c0_i32_1 = arith.constant 0 : i32
    return %c0_i32, %c0_i32_0 : i32, i32
  }
  func.func @transform_2(%arg0: i32) -> (i32, i32) {
    %c0_i32 = arith.constant 0 : i32
    %c0_i32_0 = arith.constant 0 : i32
    %c0_i32_1 = arith.constant 0 : i32
    return %c0_i32, %c0_i32_0 : i32, i32
  }
  func.func @transform_3(%arg0: i32) -> (i32, i32) {
    %c0_i32 = arith.constant 0 : i32
    %c0_i32_0 = arith.constant 0 : i32
    %c0_i32_1 = arith.constant 0 : i32
    return %c0_i32, %c0_i32_0 : i32, i32
  }
  func.func @transform_4(%arg0: i32) -> (i32, i32) {
    %c0_i32 = arith.constant 0 : i32
    %c0_i32_0 = arith.constant 0 : i32
    %c0_i32_1 = arith.constant 0 : i32
    return %c0_i32, %c0_i32_0 : i32, i32
  }
  func.func @transform_5(%arg0: i32) -> (i32, i32) {
    %c0_i32 = arith.constant 0 : i32
    %c0_i32_0 = arith.constant 0 : i32
    %c0_i32_1 = arith.constant 0 : i32
    return %c0_i32, %c0_i32_0 : i32, i32
  }
}

</mosaic_0001>

<bundles_post_ra>
// kernel: mft_forward.8
= control target key start
LH: loop header
LB: loop body
LE: loop exit
PB: predicated region body
PF: predicated region fallthrough
CT: control target
= control target key end

     0   :  { %s772_s12 = smov 0   ;;  %s938_s0 = inlined_call_operand.vmem [shape: bf16[2048,128], index: 0, kind: input, shape index: {}]   ;;  %s939_s1 = inlined_call_operand.vmem [shape: bf16[128,8], index: 1, kind: input, shape index: {}]   ;;  %s940_s2 = inlined_call_operand.vmem [shape: f32[1,8], index: 2, kind: input, shape index: {}]   ;;  %s941_s3 = inlined_call_operand.vmem [shape: f32[2048,8], index: 3, kind: output, shape index: {}]  }
   0x1 LB: > { %s580_s13 = sadd.s32 4294967295, %s750_s12   ;;  %p584_p0 = scmp.ge.s32.totalorder %s750_s12, 1  ;;  %s750_s12 = sphi %s772_s12, %s13_s12  }
   0x2   : > { %p138_p1 = scmp.lt.s32.totalorder %s750_s12, 9 }
   0x4   : > { %p139_p2 = pnand %p584_p0, %p138_p1 }
   0x5   : > { %s585_s22 = sshll.u32 (!%p139_p2), %s580_s13, 5 }
   0x6   : > { %142 = sbr.rel (%p139_p2) target bundleno = 238 (0xee), region = 32  ;;  %p163_p3 = scmp.lt.s32.totalorder (!%p139_p2), %s585_s22, 255 }
   0xb   : > { %v710_v0 = vld [vmem:[%s939_s1 + $0x38] sm:$0xff]  ;;  %v709_v1 = vld [vmem:[%s939_s1 + $0x30] sm:$0xff]  ;;  %v708_v2 = vld [vmem:[%s939_s1 + $0x28] sm:$0xff]  ;;  %s943_s22 = smov (!%p163_p3, %s585_s22), 255  ;;  %vm491_vm0 = vcmask 64512  }
   0xc   : > { %370 = vmatpush.bf16.msra.mxu0 %v710_v0  ;;  %711 = vmatpush.bf16.msra.mxu1 %v710_v0  ;;  %v707_v3 = vld [vmem:[%s939_s1 + $0x20] sm:$0xff]  ;;  %v706_v4 = vld [vmem:[%s939_s1 + $0x18] sm:$0xff]  ;;  %v705_v5 = vld [vmem:[%s939_s1 + $0x10] sm:$0xff]  ;;  %s586_s29 = sshll.u32 %s943_s22, 2  ;;  %s588_s10 = sshll.u32 %s943_s22, 3 }
   0xd   : > { %712 = vmatpush.bf16.msra.mxu2 %v710_v0  ;;  %713 = vmatpush.bf16.msra.mxu3 %v710_v0  ;;  %v704_v6 = vld [vmem:[%s939_s1 + $0x8] sm:$0xff]  ;;  %v703_v7 = vld [vmem:[%s939_s1] sm:$0xff]  ;;  %s810_s7 = scalar_lea.vmem %s938_s0, %s586_s29  ;;  %s839_s14 = scalar_lea.vmem %s941_s3, %s588_s10 }
   0xe   : > { %v687_v8 = vld [vmem:[%s810_s7] sm:$0xff]  ;;  %v688_v12 = vld [vmem:[%s810_s7 + $0x8] sm:$0xff]  ;;  %v689_v16 = vld [vmem:[%s810_s7 + $0x10] sm:$0xff] }
   0xf   : > { %v691_v9 = vld [vmem:[%s810_s7 + $0x20] sm:$0xff]  ;;  %v692_v13 = vld [vmem:[%s810_s7 + $0x28] sm:$0xff]  ;;  %v693_v17 = vld [vmem:[%s810_s7 + $0x30] sm:$0xff] }
  0x10   : > { %371 = vmatpush.bf16.msra.mxu0 %v709_v1  ;;  %714 = vmatpush.bf16.msra.mxu1 %v709_v1  ;;  %v695_v10 = vld [vmem:[%s810_s7 + $0x40] sm:$0xff]  ;;  %v696_v14 = vld [vmem:[%s810_s7 + $0x48] sm:$0xff]  ;;  %v697_v18 = vld [vmem:[%s810_s7 + $0x50] sm:$0xff] }
  0x11   : > { %715 = vmatpush.bf16.msra.mxu2 %v709_v1  ;;  %716 = vmatpush.bf16.msra.mxu3 %v709_v1  ;;  %v699_v11 = vld [vmem:[%s810_s7 + $0x60] sm:$0xff]  ;;  %v700_v15 = vld [vmem:[%s810_s7 + $0x68] sm:$0xff]  ;;  %v701_v19 = vld [vmem:[%s810_s7 + $0x70] sm:$0xff] }
  0x12   : > { %v690_v20 = vld [vmem:[%s810_s7 + $0x18] sm:$0xff]  ;;  %v831_v24 = vld [vmem:[%s940_s2] ss:$0 sm:$0xff] }
  0x13   : > { %v694_v21 = vld [vmem:[%s810_s7 + $0x38] sm:$0xff] }
  0x14   : > { %372 = vmatpush.bf16.msra.mxu0 %v708_v2  ;;  %717 = vmatpush.bf16.msra.mxu1 %v708_v2  ;;  %v698_v22 = vld [vmem:[%s810_s7 + $0x58] sm:$0xff] }
  0x15   : > { %718 = vmatpush.bf16.msra.mxu2 %v708_v2  ;;  %719 = vmatpush.bf16.msra.mxu3 %v708_v2  ;;  %v702_v23 = vld [vmem:[%s810_s7 + $0x78] sm:$0xff] }
  0x18   : > { %373 = vmatpush.bf16.msra.mxu0 %v707_v3  ;;  %720 = vmatpush.bf16.msra.mxu1 %v707_v3 }
  0x19   : > { %721 = vmatpush.bf16.msra.mxu2 %v707_v3  ;;  %722 = vmatpush.bf16.msra.mxu3 %v707_v3 }
  0x1c   : > { %374 = vmatpush.bf16.msra.mxu0 %v706_v4  ;;  %723 = vmatpush.bf16.msra.mxu1 %v706_v4 }
  0x1d   : > { %724 = vmatpush.bf16.msra.mxu2 %v706_v4  ;;  %725 = vmatpush.bf16.msra.mxu3 %v706_v4 }
  0x20   : > { %375 = vmatpush.bf16.msra.mxu0 %v705_v5  ;;  %726 = vmatpush.bf16.msra.mxu1 %v705_v5 }
  0x21   : > { %727 = vmatpush.bf16.msra.mxu2 %v705_v5  ;;  %728 = vmatpush.bf16.msra.mxu3 %v705_v5 }
  0x24   : > { %376 = vmatpush.bf16.msra.mxu0 %v704_v6  ;;  %729 = vmatpush.bf16.msra.mxu1 %v704_v6 }
  0x25   : > { %730 = vmatpush.bf16.msra.mxu2 %v704_v6  ;;  %731 = vmatpush.bf16.msra.mxu3 %v704_v6 }
  0x28   : > { %377 = vmatpush.bf16.msra.mxu0 %v703_v7  ;;  %732 = vmatpush.bf16.msra.mxu1 %v703_v7 }
  0x29   : > { %733 = vmatpush.bf16.msra.mxu2 %v703_v7  ;;  %734 = vmatpush.bf16.msra.mxu3 %v703_v7 }
  0x2b   : > { %378 = vmatmul.bf16.vlgmr.msra.gmra.mxu0 %v687_v8  ;;  %398 = vmatmul.bf16.vlgmr.msra.gmra.mxu1 %v691_v9 }
  0x2c   : > { %418 = vmatmul.bf16.vlgmr.msra.gmra.mxu2 %v695_v10  ;;  %438 = vmatmul.bf16.vlgmr.msra.gmra.mxu3 %v699_v11 }
  0x3b   : > { %383 = vmatmul.bf16.gmra.mxu0 %v688_v12  ;;  %403 = vmatmul.bf16.gmra.mxu1 %v692_v13 }
  0x3c   : > { %423 = vmatmul.bf16.gmra.mxu2 %v696_v14  ;;  %443 = vmatmul.bf16.gmra.mxu3 %v700_v15 }
  0x4b   : > { %388 = vmatmul.bf16.gmra.mxu0 %v689_v16  ;;  %408 = vmatmul.bf16.gmra.mxu1 %v693_v17 }
  0x4c   : > { %428 = vmatmul.bf16.gmra.mxu2 %v697_v18  ;;  %448 = vmatmul.bf16.gmra.mxu3 %v701_v19 }
  0x5b   : > { %393 = vmatmul.bf16.gmra.mxu0 %v690_v20  ;;  %413 = vmatmul.bf16.gmra.mxu1 %v694_v21 }
  0x5c   : > { %433 = vmatmul.bf16.gmra.mxu2 %v698_v22  ;;  %453 = vmatmul.bf16.gmra.mxu3 %v702_v23 }
  0xa8   : > { %v379_v25 = vpop.f32.mrf.mxu0  ;;  %v399_v26 = vpop.f32.mrf.mxu1 }
  0xa9   : > { %v380_v27 = vadd.f32 %v831_v24, %v379_v25  ;;  %v400_v28 = vadd.f32 %v831_v24, %v399_v26 }
  0xab   : > { %v459_v29 = vmax.f32 %v380_v27, 0.0  ;;  %v467_v30 = vmax.f32 %v400_v28, 0.0 }
  0xad   : > { %492 = vst.msk [vmem:[%s839_s14] sm:$0xff] %vm491_vm0, %v459_v29 }
  0xae   : > { %500 = vst.msk [vmem:[%s839_s14 + $0x40] sm:$0xff] %vm491_vm0, %v467_v30 }
  0xaf   : > { %v419_v31 = vpop.f32.mrf.mxu2  ;;  %v439_v32 = vpop.f32.mrf.mxu3 }
  0xb0   : > { %v420_v33 = vadd.f32 %v831_v24, %v419_v31  ;;  %v440_v34 = vadd.f32 %v831_v24, %v439_v32  ;;  %v381_v35 = vpop.f32.mrf.mxu0  ;;  %v401_v36 = vpop.f32.mrf.mxu1 }
  0xb1   : > { %v382_v37 = vadd.f32 %v831_v24, %v381_v35  ;;  %v402_v38 = vadd.f32 %v831_v24, %v401_v36 }
  0xb2   : > { %v475_v39 = vmax.f32 %v420_v33, 0.0  ;;  %v483_v40 = vmax.f32 %v440_v34, 0.0 }
  0xb3   : > { %v460_v41 = vmax.f32 %v382_v37, 0.0  ;;  %v468_v42 = vmax.f32 %v402_v38, 0.0 }
  0xb4   : > { %508 = vst.msk [vmem:[%s839_s14 + $0x80] sm:$0xff] %vm491_vm0, %v475_v39 }
  0xb5   : > { %516 = vst.msk [vmem:[%s839_s14 + $0xc0] sm:$0xff] %vm491_vm0, %v483_v40 }
  0xb6   : > { %493 = vst.msk [vmem:[%s839_s14 + $0x8] sm:$0xff] %vm491_vm0, %v460_v41 }
  0xb7   : > { %501 = vst.msk [vmem:[%s839_s14 + $0x48] sm:$0xff] %vm491_vm0, %v468_v42  ;;  %v421_v43 = vpop.f32.mrf.mxu2  ;;  %v441_v44 = vpop.f32.mrf.mxu3 }
  0xb8   : > { %v422_v45 = vadd.f32 %v831_v24, %v421_v43  ;;  %v442_v46 = vadd.f32 %v831_v24, %v441_v44  ;;  %v384_v47 = vpop.f32.mrf.mxu0  ;;  %v404_v48 = vpop.f32.mrf.mxu1 }
  0xb9   : > { %v385_v49 = vadd.f32 %v831_v24, %v384_v47  ;;  %v405_v50 = vadd.f32 %v831_v24, %v404_v48 }
  0xba   : > { %v476_v51 = vmax.f32 %v422_v45, 0.0  ;;  %v484_v52 = vmax.f32 %v442_v46, 0.0 }
  0xbb   : > { %v461_v53 = vmax.f32 %v385_v49, 0.0  ;;  %v469_v54 = vmax.f32 %v405_v50, 0.0 }
  0xbc   : > { %509 = vst.msk [vmem:[%s839_s14 + $0x88] sm:$0xff] %vm491_vm0, %v476_v51 }
  0xbd   : > { %517 = vst.msk [vmem:[%s839_s14 + $0xc8] sm:$0xff] %vm491_vm0, %v484_v52 }
  0xbe   : > { %494 = vst.msk [vmem:[%s839_s14 + $0x10] sm:$0xff] %vm491_vm0, %v461_v53 }
  0xbf   : > { %502 = vst.msk [vmem:[%s839_s14 + $0x50] sm:$0xff] %vm491_vm0, %v469_v54  ;;  %v424_v55 = vpop.f32.mrf.mxu2  ;;  %v444_v56 = vpop.f32.mrf.mxu3 }
  0xc0   : > { %v425_v57 = vadd.f32 %v831_v24, %v424_v55  ;;  %v445_v58 = vadd.f32 %v831_v24, %v444_v56  ;;  %v386_v59 = vpop.f32.mrf.mxu0  ;;  %v406_v60 = vpop.f32.mrf.mxu1 }
  0xc1   : > { %v387_v61 = vadd.f32 %v831_v24, %v386_v59  ;;  %v407_v62 = vadd.f32 %v831_v24, %v406_v60 }
  0xc2   : > { %v477_v63 = vmax.f32 %v425_v57, 0.0  ;;  %v485_v0 = vmax.f32 %v445_v58, 0.0 }
  0xc3   : > { %v462_v1 = vmax.f32 %v387_v61, 0.0  ;;  %v470_v2 = vmax.f32 %v407_v62, 0.0 }
  0xc4   : > { %510 = vst.msk [vmem:[%s839_s14 + $0x90] sm:$0xff] %vm491_vm0, %v477_v63 }
  0xc5   : > { %518 = vst.msk [vmem:[%s839_s14 + $0xd0] sm:$0xff] %vm491_vm0, %v485_v0 }
  0xc6   : > { %495 = vst.msk [vmem:[%s839_s14 + $0x18] sm:$0xff] %vm491_vm0, %v462_v1 }
  0xc7   : > { %503 = vst.msk [vmem:[%s839_s14 + $0x58] sm:$0xff] %vm491_vm0, %v470_v2  ;;  %v426_v3 = vpop.f32.mrf.mxu2  ;;  %v446_v4 = vpop.f32.mrf.mxu3 }
  0xc8   : > { %v427_v5 = vadd.f32 %v831_v24, %v426_v3  ;;  %v447_v6 = vadd.f32 %v831_v24, %v446_v4  ;;  %v389_v7 = vpop.f32.mrf.mxu0  ;;  %v409_v8 = vpop.f32.mrf.mxu1 }
  0xc9   : > { %v390_v9 = vadd.f32 %v831_v24, %v389_v7  ;;  %v410_v10 = vadd.f32 %v831_v24, %v409_v8 }
  0xca   : > { %v478_v11 = vmax.f32 %v427_v5, 0.0  ;;  %v486_v12 = vmax.f32 %v447_v6, 0.0 }
  0xcb   : > { %v463_v13 = vmax.f32 %v390_v9, 0.0  ;;  %v471_v14 = vmax.f32 %v410_v10, 0.0 }
  0xcc   : > { %511 = vst.msk [vmem:[%s839_s14 + $0x98] sm:$0xff] %vm491_vm0, %v478_v11 }
  0xcd   : > { %519 = vst.msk [vmem:[%s839_s14 + $0xd8] sm:$0xff] %vm491_vm0, %v486_v12 }
  0xce   : > { %496 = vst.msk [vmem:[%s839_s14 + $0x20] sm:$0xff] %vm491_vm0, %v463_v13 }
  0xcf   : > { %504 = vst.msk [vmem:[%s839_s14 + $0x60] sm:$0xff] %vm491_vm0, %v471_v14  ;;  %v429_v15 = vpop.f32.mrf.mxu2  ;;  %v449_v16 = vpop.f32.mrf.mxu3 }
  0xd0   : > { %v430_v17 = vadd.f32 %v831_v24, %v429_v15  ;;  %v450_v18 = vadd.f32 %v831_v24, %v449_v16  ;;  %v391_v19 = vpop.f32.mrf.mxu0  ;;  %v411_v20 = vpop.f32.mrf.mxu1 }
  0xd1   : > { %v392_v21 = vadd.f32 %v831_v24, %v391_v19  ;;  %v412_v22 = vadd.f32 %v831_v24, %v411_v20 }
  0xd2   : > { %v479_v23 = vmax.f32 %v430_v17, 0.0  ;;  %v487_v25 = vmax.f32 %v450_v18, 0.0 }
  0xd3   : > { %v464_v26 = vmax.f32 %v392_v21, 0.0  ;;  %v472_v27 = vmax.f32 %v412_v22, 0.0 }
  0xd4   : > { %512 = vst.msk [vmem:[%s839_s14 + $0xa0] sm:$0xff] %vm491_vm0, %v479_v23 }
  0xd5   : > { %520 = vst.msk [vmem:[%s839_s14 + $0xe0] sm:$0xff] %vm491_vm0, %v487_v25 }
  0xd6   : > { %497 = vst.msk [vmem:[%s839_s14 + $0x28] sm:$0xff] %vm491_vm0, %v464_v26 }
  0xd7   : > { %505 = vst.msk [vmem:[%s839_s14 + $0x68] sm:$0xff] %vm491_vm0, %v472_v27  ;;  %v431_v28 = vpop.f32.mrf.mxu2  ;;  %v451_v29 = vpop.f32.mrf.mxu3 }
  0xd8   : > { %v432_v30 = vadd.f32 %v831_v24, %v431_v28  ;;  %v452_v31 = vadd.f32 %v831_v24, %v451_v29  ;;  %v394_v32 = vpop.f32.mrf.mxu0  ;;  %v414_v33 = vpop.f32.mrf.mxu1 }
  0xd9   : > { %v395_v34 = vadd.f32 %v831_v24, %v394_v32  ;;  %v415_v35 = vadd.f32 %v831_v24, %v414_v33 }
  0xda   : > { %v480_v36 = vmax.f32 %v432_v30, 0.0  ;;  %v488_v37 = vmax.f32 %v452_v31, 0.0 }
  0xdb   : > { %v465_v38 = vmax.f32 %v395_v34, 0.0  ;;  %v473_v39 = vmax.f32 %v415_v35, 0.0 }
  0xdc   : > { %513 = vst.msk [vmem:[%s839_s14 + $0xa8] sm:$0xff] %vm491_vm0, %v480_v36 }
  0xdd   : > { %521 = vst.msk [vmem:[%s839_s14 + $0xe8] sm:$0xff] %vm491_vm0, %v488_v37 }
  0xde   : > { %498 = vst.msk [vmem:[%s839_s14 + $0x30] sm:$0xff] %vm491_vm0, %v465_v38 }
  0xdf   : > { %506 = vst.msk [vmem:[%s839_s14 + $0x70] sm:$0xff] %vm491_vm0, %v473_v39  ;;  %v434_v40 = vpop.f32.mrf.mxu2  ;;  %v454_v41 = vpop.f32.mrf.mxu3 }
  0xe0   : > { %v435_v42 = vadd.f32 %v831_v24, %v434_v40  ;;  %v455_v43 = vadd.f32 %v831_v24, %v454_v41  ;;  %v396_v44 = vpop.f32.mrf.mxu0  ;;  %v416_v45 = vpop.f32.mrf.mxu1 }
  0xe1   : > { %v397_v46 = vadd.f32 %v831_v24, %v396_v44  ;;  %v417_v47 = vadd.f32 %v831_v24, %v416_v45 }
  0xe2   : > { %v481_v48 = vmax.f32 %v435_v42, 0.0  ;;  %v489_v49 = vmax.f32 %v455_v43, 0.0 }
  0xe3   : > { %v466_v50 = vmax.f32 %v397_v46, 0.0  ;;  %v474_v51 = vmax.f32 %v417_v47, 0.0 }
  0xe4   : > { %514 = vst.msk [vmem:[%s839_s14 + $0xb0] sm:$0xff] %vm491_vm0, %v481_v48 }
  0xe5   : > { %522 = vst.msk [vmem:[%s839_s14 + $0xf0] sm:$0xff] %vm491_vm0, %v489_v49 }
  0xe6   : > { %499 = vst.msk [vmem:[%s839_s14 + $0x38] sm:$0xff] %vm491_vm0, %v466_v50 }
  0xe7   : > { %507 = vst.msk [vmem:[%s839_s14 + $0x78] sm:$0xff] %vm491_vm0, %v474_v51  ;;  %v436_v52 = vpop.f32.mrf.mxu2  ;;  %v456_v53 = vpop.f32.mrf.mxu3 }
  0xe8   : > { %v437_v54 = vadd.f32 %v831_v24, %v436_v52  ;;  %v457_v55 = vadd.f32 %v831_v24, %v456_v53 }
  0xea   : > { %v482_v56 = vmax.f32 %v437_v54, 0.0  ;;  %v490_v57 = vmax.f32 %v457_v55, 0.0 }
  0xec   : > { %515 = vst.msk [vmem:[%s839_s14 + $0xb8] sm:$0xff] %vm491_vm0, %v482_v56 }
  0xed   : > { %523 = vst.msk [vmem:[%s839_s14 + $0xf8] sm:$0xff] %vm491_vm0, %v490_v57 }
  0xee PF: > { %s13_s12 = sadd.s32 1, %s750_s12  }
  0xef   : > { %p10_p4 = scmp.ge.s32.totalorder %s13_s12, 10  }
  0xf1   :  { %12 = sbr.rel (!%p10_p4) target bundleno = 1 (0x1), region = 62 }

// kernel: mft_forward.10
= control target key start
LH: loop header
LB: loop body
LE: loop exit
PB: predicated region body
PF: predicated region fallthrough
CT: control target
= control target key end

     0   :  { %s520_s12 = smov 0   ;;  %s633_s0 = inlined_call_operand.vmem [shape: f32[2,121,64], index: 0, kind: input, shape index: {}]   ;;  %s634_s1 = inlined_call_operand.vmem [shape: f32[4,64], index: 1, kind: input, shape index: {}]   ;;  %s635_s2 = inlined_call_operand.vmem [shape: f32[64,64], index: 2, kind: input, shape index: {}]   ;;  %s636_s3 = inlined_call_operand.vmem [shape: f32[2,4,64], index: 3, kind: output, shape index: {}]  }
   0x1 LB: > { %s426_s13 = sadd.s32 4294967295, %s498_s12   ;;  %p430_p0 = scmp.ge.s32.totalorder %s498_s12, 1  ;;  %s498_s12 = sphi %s520_s12, %s13_s12  }
   0x2   : > { %p137_p1 = scmp.lt.s32.totalorder %s498_s12, 3 }
   0x4   : > { %p138_p2 = pnand %p430_p0, %p137_p1 }
   0x5   : > { %p160_p3 = scmp.lt.s32.totalorder (!%p138_p2), %s426_s13, 1 }
   0x6   : > { %141 = sbr.rel (%p138_p2) target bundleno = 591 (0x24f), region = 32 }
   0xb   : > { %s638_s13 = smov (!%p160_p3, %s426_s13), 1  ;;  %vm186_vm0 = vcmask 523264   ;;  %v277_v9 = vld [vmem:[%s635_s2 + $0x38] sm:$0xff]  ;;  %v276_v10 = vld [vmem:[%s635_s2 + $0x30] sm:$0xff]  ;;  %v275_v12 = vld [vmem:[%s635_s2 + $0x28] sm:$0xff]  ;;  %vm258_vm1 = vcmask 986112  }
   0xc   : > { %s471_s14 = sshll.u32 %s638_s13, 7  ;;  %472 = vmatpush.msra.mxu3 %v277_v9  ;;  %286 = vmatpush.msra.mxu1 %v277_v9  ;;  %v274_v13 = vld [vmem:[%s635_s2 + $0x20] sm:$0xff]  ;;  %v273_v15 = vld [vmem:[%s635_s2 + $0x18] sm:$0xff]  ;;  %v272_v16 = vld [vmem:[%s635_s2 + $0x10] sm:$0xff]  ;;  %vm347_vm2 = vcmask 1040384   ;;  %vm343_vm3 = vcmask 990208  }
   0xd   : > { %s534_s17 = scalar_lea.vmem %s633_s0, %s471_s14  ;;  %v271_v18 = vld [vmem:[%s635_s2 + $0x8] sm:$0xff]  ;;  %v270_v19 = vld [vmem:[%s635_s2] sm:$0xff]  ;;  %s433_s9 = sshll.u32 %s638_s13, 2  ;;  %vm371_vm4 = vcmask 519168  }
   0xe   : > { %v537_v0 = vld [vmem:[%s534_s17 + $0x78] sm:$0x1]  ;;  %v542_v1 = vld [vmem:[%s534_s17 + $0x70] sm:$0xff]  ;;  %v547_v2 = vld [vmem:[%s534_s17 + $0x68] sm:$0xff]  ;;  %473 = vmatpush.msra.mxu3 %v276_v10  ;;  %287 = vmatpush.msra.mxu1 %v276_v10  ;;  %s168_s14 = scalar_lea.vmem %s636_s3, %s433_s9 }
   0xf   : > { %434 = vmatpush.xpose.msk.msra.mxu0 %vm186_vm0, %v537_v0  ;;  %v181_v3 = vld [vmem:[%s534_s17 + $0x60] sm:$0xff]  ;;  %v180_v4 = vld [vmem:[%s534_s17 + $0x58] sm:$0xff]  ;;  %v179_v5 = vld [vmem:[%s534_s17 + $0x50] sm:$0xff] }
  0x10   : > { %v178_v6 = vld [vmem:[%s534_s17 + $0x48] sm:$0xff]  ;;  %v177_v7 = vld [vmem:[%s534_s17 + $0x40] sm:$0xff]  ;;  %v176_v8 = vld [vmem:[%s534_s17 + $0x38] sm:$0xff]  ;;  %474 = vmatpush.msra.mxu3 %v275_v12  ;;  %288 = vmatpush.msra.mxu1 %v275_v12 }
  0x11   : > { %v175_v11 = vld [vmem:[%s534_s17 + $0x30] sm:$0xff]  ;;  %v174_v14 = vld [vmem:[%s534_s17 + $0x28] sm:$0xff]  ;;  %v173_v17 = vld [vmem:[%s534_s17 + $0x20] sm:$0xff] }
  0x12   : > { %475 = vmatpush.msra.mxu3 %v274_v13  ;;  %289 = vmatpush.msra.mxu1 %v274_v13  ;;  %v172_v20 = vld [vmem:[%s534_s17 + $0x18] sm:$0xff]  ;;  %v169_v21 = vld [vmem:[%s534_s17] sm:$0xff]  ;;  %v171_v22 = vld [vmem:[%s534_s17 + $0x10] sm:$0xff] }
  0x13   : > { %435 = vmatpush.xpose.msk.msra.mxu0 %vm186_vm0, %v542_v1  ;;  %v170_v23 = vld [vmem:[%s534_s17 + $0x8] sm:$0xff]  ;;  %v185_v24 = vld [vmem:[%s634_s1] sm:$0xf] }
  0x14   : > { %476 = vmatpush.msra.mxu3 %v273_v15  ;;  %290 = vmatpush.msra.mxu1 %v273_v15 }
  0x16   : > { %477 = vmatpush.msra.mxu3 %v272_v16  ;;  %291 = vmatpush.msra.mxu1 %v272_v16 }
  0x17   : > { %436 = vmatpush.xpose.msk.msra.mxu0 %vm186_vm0, %v547_v2 }
  0x18   : > { %478 = vmatpush.msra.mxu3 %v271_v18  ;;  %292 = vmatpush.msra.mxu1 %v271_v18 }
  0x1a   : > { %479 = vmatpush.msra.mxu3 %v270_v19  ;;  %293 = vmatpush.msra.mxu1 %v270_v19 }
  0x1b   : > { %437 = vmatpush.xpose.msk.msra.mxu0 %vm186_vm0, %v181_v3  ;;  %458 = vmatmul.msk.f32.vlgmr.msra.gmra.mxu3 %vm186_vm0, %v176_v8 }
  0x1c   : > { %451 = vmatmul.msk.f32.vlgmr.msra.gmra.mxu1 %vm186_vm0, %v169_v21 }
  0x1f   : > { %438 = vmatpush.xpose.msk.msra.mxu0 %vm186_vm0, %v180_v4 }
  0x23   : > { %439 = vmatpush.xpose.msk.msra.mxu0 %vm186_vm0, %v179_v5  ;;  %459 = vmatmul.msk.f32.gmra.mxu3 %vm186_vm0, %v177_v7 }
  0x24   : > { %452 = vmatmul.msk.f32.gmra.mxu1 %vm186_vm0, %v170_v23 }
  0x27   : > { %440 = vmatpush.xpose.msk.msra.mxu0 %vm186_vm0, %v178_v6 }
  0x2b   : > { %441 = vmatpush.xpose.msk.msra.mxu0 %vm186_vm0, %v177_v7  ;;  %460 = vmatmul.msk.f32.gmra.mxu3 %vm186_vm0, %v178_v6 }
  0x2c   : > { %453 = vmatmul.msk.f32.gmra.mxu1 %vm186_vm0, %v171_v22 }
  0x2f   : > { %442 = vmatpush.xpose.msk.msra.mxu0 %vm186_vm0, %v176_v8 }
  0x33   : > { %443 = vmatpush.xpose.msk.msra.mxu0 %vm186_vm0, %v175_v11  ;;  %461 = vmatmul.msk.f32.gmra.mxu3 %vm186_vm0, %v179_v5 }
  0x34   : > { %454 = vmatmul.msk.f32.gmra.mxu1 %vm186_vm0, %v172_v20 }
  0x37   : > { %444 = vmatpush.xpose.msk.msra.mxu0 %vm186_vm0, %v174_v14 }
  0x3b   : > { %445 = vmatpush.xpose.msk.msra.mxu0 %vm186_vm0, %v173_v17  ;;  %462 = vmatmul.msk.f32.gmra.mxu3 %vm186_vm0, %v180_v4 }
  0x3c   : > { %455 = vmatmul.msk.f32.gmra.mxu1 %vm186_vm0, %v173_v17 }
  0x3f   : > { %446 = vmatpush.xpose.msk.msra.mxu0 %vm186_vm0, %v172_v20 }
  0x43   : > { %447 = vmatpush.xpose.msk.msra.mxu0 %vm186_vm0, %v171_v22  ;;  %463 = vmatmul.msk.f32.gmra.mxu3 %vm186_vm0, %v181_v3 }
  0x44   : > { %456 = vmatmul.msk.f32.gmra.mxu1 %vm186_vm0, %v174_v14 }
  0x47   : > { %448 = vmatpush.xpose.msk.msra.mxu0 %vm186_vm0, %v170_v23 }
  0x4b   : > { %449 = vmatpush.xpose.msk.msra.mxu0 %vm186_vm0, %v169_v21  ;;  %464 = vmatmul.msk.f32.gmra.mxu3 %vm186_vm0, %v547_v2 }
  0x4c   : > { %457 = vmatmul.msk.f32.gmra.mxu1 %vm186_vm0, %v175_v11 }
  0x4e   : > { %450 = vmatmul.msk.f32.vlgmr.msra.gmra.mxu0 %vm186_vm0, %v185_v24 }
  0x53   : > { %465 = vmatmul.msk.f32.gmra.mxu3 %vm186_vm0, %v542_v1 }
  0x5b   : > { %466 = vmatmul.msk.f32.gmra.mxu3 %vm186_vm0, %v537_v0 }
  0x99   : > { %v295_v34 = vpop.f32.mrf.mxu1 }
  0x9e   : > { %v316_v27 = vpop.f32.mrf.mxu3 }
  0xa1   : > { %v298_v36 = vpop.f32.mrf.mxu1 }
  0xa6   : > { %v319_v28 = vpop.f32.mrf.mxu3 }
  0xa9   : > { %v301_v38 = vpop.f32.mrf.mxu1 }
  0xae   : > { %v322_v29 = vpop.f32.mrf.mxu3 }
  0xb1   : > { %v304_v42 = vpop.f32.mrf.mxu1 }
  0xb6   : > { %v325_v30 = vpop.f32.mrf.mxu3 }
  0xb9   : > { %v307_v45 = vpop.f32.mrf.mxu1 }
  0xbe   : > { %v328_v31 = vpop.f32.mrf.mxu3 }
  0xc1   : > { %v310_v46 = vpop.f32.mrf.mxu1 }
  0xc6   : > { %v331_v32 = vpop.f32.mrf.mxu3 }
  0xc9   : > { %v313_v47 = vpop.f32.mrf.mxu1 }
  0xcb   : > { %v255_v25 = vpop.f32.mrf.mxu0 }
  0xcc   : > { %v259_v26 = vsel %vm258_vm1, %v255_v25, -inf }
  0xcd   : > { %260 = vmax.xlane.f32.xlu0 %v259_v26 }
  0xce   : > { %v334_v33 = vpop.f32.mrf.mxu3 }
  0xd6   : > { %v337_v35 = vpop.f32.mrf.mxu3 }
  0xde   : > { %v340_v37 = vpop.f32.mrf.mxu3 }
  0xdf   : > { %467 = vmatpush.msk.msra.mxu2 %vm347_vm2, %v340_v37 }
  0xe1   : > { %352 = vmatpush.msra.mxu2 %v337_v35 }
  0xe3   : > { %353 = vmatpush.msra.mxu2 %v334_v33 }
  0xe5   : > { %354 = vmatpush.msra.mxu2 %v331_v32 }
  0xe7   : > { %355 = vmatpush.msra.mxu2 %v328_v31 }
  0xe9   : > { %356 = vmatpush.msra.mxu2 %v325_v30 }
  0xeb   : > { %357 = vmatpush.msra.mxu2 %v322_v29 }
  0xed   : > { %358 = vmatpush.msra.mxu2 %v319_v28 }
  0xef   : > { %359 = vmatpush.msra.mxu2 %v316_v27 }
  0xf1   : > { %360 = vmatpush.msra.mxu2 %v313_v47 }
  0xf3   : > { %361 = vmatpush.msra.mxu2 %v310_v46 }
  0xf5   : > { %362 = vmatpush.msra.mxu2 %v307_v45 }
  0xf7   : > { %363 = vmatpush.msra.mxu2 %v304_v42 }
  0xf9   : > { %364 = vmatpush.msra.mxu2 %v301_v38 }
  0xfb   : > { %365 = vmatpush.msra.mxu2 %v298_v36 }
  0xfd   : > { %366 = vmatpush.msra.mxu2 %v295_v34 }
 0x140   : > { %v261_v39 = vpop.xlane.xlu0 %260 }
 0x141   : > { %v262_v40 = vsub.f32 %v255_v25, %v261_v39 }
 0x143   : > { %v263_v41 = vmul.f32 1.442695, %v262_v40 }
 0x145   : > { %488 = vpow2.f32 %v263_v41 }
 0x14b   : > { %v489_v43 = vpop.eup %488 }
 0x14c   : > { %v265_v44 = vsel %vm258_vm1, %v489_v43, 0.0 }
 0x14d   : > { %266 = vadd.xlane.f32.xlu0 %v265_v44 }
 0x1c0   : > { %v267_v48 = vpop.xlane.xlu0 %266 }
 0x1c1   : > { %490 = vrcp.f32 %v267_v48 }
 0x1c7   : > { %v491_v49 = vpop.eup %490 }
 0x1c8   : > { %v269_v50 = vmul.f32 %v491_v49, %v489_v43 }
 0x1ca   : > { %468 = vmatmul.msk.f32.vlgmr.msra.gmra.mxu2 %vm343_vm3, %v269_v50 }
 0x24d   : > { %v368_v51 = vpop.f32.mrf.mxu2 }
 0x24e   : > { %372 = vst.msk [vmem:[%s168_s14] sm:$0xf] %vm371_vm4, %v368_v51 }
 0x24f PF: > { %s13_s12 = sadd.s32 1, %s498_s12  }
 0x250   : > { %p10_p4 = scmp.ge.s32.totalorder %s13_s12, 4  }
 0x252   :  { %12 = sbr.rel (!%p10_p4) target bundleno = 1 (0x1), region = 62 }

// kernel: mft_forward.9
= control target key start
LH: loop header
LB: loop body
LE: loop exit
PB: predicated region body
PF: predicated region fallthrough
CT: control target
= control target key end

     0   :  { %vm1310_vm0 = vcmask 523264   ;;  %s2802_s1 = inlined_call_operand.vmem [shape: bf16[640,64], index: 1, kind: input, shape index: {}]   ;;  %s2803_s2 = inlined_call_operand.vmem [shape: f32[1,64], index: 2, kind: input, shape index: {}]   ;;  %s2804_s0 = inlined_call_operand.vmem [shape: bf16[248,640], index: 0, kind: input, shape index: {}]   ;;  %s2805_s3 = inlined_call_operand.vmem [shape: f32[248,64], index: 3, kind: output, shape index: {}]  }
   0x1   :  { %v1888_v0 = vld [vmem:[%s2802_s1 + $0x38] sm:$0xff]  ;;  %v1887_v1 = vld [vmem:[%s2802_s1 + $0x30] sm:$0xff]  ;;  %v1886_v2 = vld [vmem:[%s2802_s1 + $0x28] sm:$0xff] }
   0x2   :  { %839 = vmatpush.bf16.msra.mxu0 %v1888_v0  ;;  %1921 = vmatpush.bf16.msra.mxu1 %v1888_v0  ;;  %v1885_v3 = vld [vmem:[%s2802_s1 + $0x20] sm:$0xff]  ;;  %v1884_v4 = vld [vmem:[%s2802_s1 + $0x18] sm:$0xff]  ;;  %v1883_v5 = vld [vmem:[%s2802_s1 + $0x10] sm:$0xff] }
   0x3   :  { %1922 = vmatpush.bf16.msra.mxu2 %v1888_v0  ;;  %1923 = vmatpush.bf16.msra.mxu3 %v1888_v0  ;;  %v1882_v6 = vld [vmem:[%s2802_s1 + $0x8] sm:$0xff]  ;;  %v1881_v7 = vld [vmem:[%s2802_s1] sm:$0xff]  ;;  %v1808_v9 = vld [vmem:[%s2804_s0 + $0x10] sm:$0xf0] }
   0x4   :  { %v1348_v8 = vld [vmem:[%s2804_s0] sm:$0xf]  ;;  %v1828_v11 = vld [vmem:[%s2804_s0 + $0xb0] sm:$0xf0]  ;;  %v1904_v16 = vld [vmem:[%s2802_s1 + $0xb8] sm:$0xff] }
   0x5   :  { %v1428_v10 = vld [vmem:[%s2804_s0 + $0xa0] sm:$0xf]  ;;  %v1848_v13 = vld [vmem:[%s2804_s0 + $0x150] sm:$0xf0]  ;;  %v1912_v17 = vld [vmem:[%s2802_s1 + $0xf8] sm:$0xff]  ;;  %v1349_v18 = vor.u32 %v1808_v9, %v1348_v8 }
   0x6   :  { %840 = vmatpush.bf16.msra.mxu0 %v1887_v1  ;;  %1924 = vmatpush.bf16.msra.mxu1 %v1887_v1  ;;  %v1508_v12 = vld [vmem:[%s2804_s0 + $0x140] sm:$0xf]  ;;  %v1868_v15 = vld [vmem:[%s2804_s0 + $0x1f0] sm:$0xf0]  ;;  %v1429_v19 = vor.u32 %v1828_v11, %v1428_v10  ;;  %v1896_v22 = vld [vmem:[%s2802_s1 + $0x78] sm:$0xff] }
   0x7   :  { %1925 = vmatpush.bf16.msra.mxu2 %v1887_v1  ;;  %1926 = vmatpush.bf16.msra.mxu3 %v1887_v1  ;;  %v1588_v14 = vld [vmem:[%s2804_s0 + $0x1e0] sm:$0xf]  ;;  %v1509_v20 = vor.u32 %v1848_v13, %v1508_v12  ;;  %v1920_v23 = vld [vmem:[%s2802_s1 + $0x138] sm:$0xff]  ;;  %v1903_v24 = vld [vmem:[%s2802_s1 + $0xb0] sm:$0xff] }
   0x8   :  { %v1589_v21 = vor.u32 %v1868_v15, %v1588_v14  ;;  %v1911_v25 = vld [vmem:[%s2802_s1 + $0xf0] sm:$0xff]  ;;  %v1902_v28 = vld [vmem:[%s2802_s1 + $0xa8] sm:$0xff]  ;;  %v1901_v33 = vld [vmem:[%s2802_s1 + $0xa0] sm:$0xff] }
   0x9   :  { %v1895_v26 = vld [vmem:[%s2802_s1 + $0x70] sm:$0xff]  ;;  %v1910_v29 = vld [vmem:[%s2802_s1 + $0xe8] sm:$0xff]  ;;  %v1909_v34 = vld [vmem:[%s2802_s1 + $0xe0] sm:$0xff] }
   0xa   :  { %841 = vmatpush.bf16.msra.mxu0 %v1886_v2  ;;  %1927 = vmatpush.bf16.msra.mxu1 %v1886_v2  ;;  %v1919_v27 = vld [vmem:[%s2802_s1 + $0x130] sm:$0xff]  ;;  %v1894_v30 = vld [vmem:[%s2802_s1 + $0x68] sm:$0xff]  ;;  %v1813_v35 = vld [vmem:[%s2804_s0 + $0x38] sm:$0xf0] }
   0xb   :  { %1928 = vmatpush.bf16.msra.mxu2 %v1886_v2  ;;  %1929 = vmatpush.bf16.msra.mxu3 %v1886_v2  ;;  %v1918_v31 = vld [vmem:[%s2802_s1 + $0x128] sm:$0xff]  ;;  %v1833_v37 = vld [vmem:[%s2804_s0 + $0xd8] sm:$0xf0]  ;;  %v1893_v42 = vld [vmem:[%s2802_s1 + $0x60] sm:$0xff] }
   0xc   :  { %v1368_v32 = vld [vmem:[%s2804_s0 + $0x28] sm:$0xf]  ;;  %v1853_v39 = vld [vmem:[%s2804_s0 + $0x178] sm:$0xf0]  ;;  %v1917_v43 = vld [vmem:[%s2802_s1 + $0x120] sm:$0xff] }
   0xd   :  { %v1448_v36 = vld [vmem:[%s2804_s0 + $0xc8] sm:$0xf]  ;;  %v1873_v41 = vld [vmem:[%s2804_s0 + $0x218] sm:$0xf0]  ;;  %v1369_v46 = vor.u32 %v1813_v35, %v1368_v32  ;;  %v1899_v52 = vld [vmem:[%s2802_s1 + $0x90] sm:$0xff] }
   0xe   :  { %842 = vmatpush.bf16.msra.mxu0 %v1885_v3  ;;  %1930 = vmatpush.bf16.msra.mxu1 %v1885_v3  ;;  %v1528_v38 = vld [vmem:[%s2804_s0 + $0x168] sm:$0xf]  ;;  %v1900_v44 = vld [vmem:[%s2802_s1 + $0x98] sm:$0xff]  ;;  %v1449_v47 = vor.u32 %v1833_v37, %v1448_v36  ;;  %v1907_v53 = vld [vmem:[%s2802_s1 + $0xd0] sm:$0xff] }
   0xf   :  { %1931 = vmatpush.bf16.msra.mxu2 %v1885_v3  ;;  %1932 = vmatpush.bf16.msra.mxu3 %v1885_v3  ;;  %v1608_v40 = vld [vmem:[%s2804_s0 + $0x208] sm:$0xf]  ;;  %v1908_v45 = vld [vmem:[%s2802_s1 + $0xd8] sm:$0xff]  ;;  %v1529_v48 = vor.u32 %v1853_v39, %v1528_v38  ;;  %v1891_v54 = vld [vmem:[%s2802_s1 + $0x50] sm:$0xff] }
  0x10   :  { %v1609_v49 = vor.u32 %v1873_v41, %v1608_v40  ;;  %v1892_v50 = vld [vmem:[%s2802_s1 + $0x58] sm:$0xff]  ;;  %v1915_v55 = vld [vmem:[%s2802_s1 + $0x110] sm:$0xff]  ;;  %v1898_v56 = vld [vmem:[%s2802_s1 + $0x88] sm:$0xff] }
  0x11   :  { %v1916_v51 = vld [vmem:[%s2802_s1 + $0x118] sm:$0xff]  ;;  %v1906_v57 = vld [vmem:[%s2802_s1 + $0xc8] sm:$0xff]  ;;  %v1388_v60 = vld [vmem:[%s2804_s0 + $0x50] sm:$0xf] }
  0x12   :  { %843 = vmatpush.bf16.msra.mxu0 %v1884_v4  ;;  %1933 = vmatpush.bf16.msra.mxu1 %v1884_v4  ;;  %v1890_v58 = vld [vmem:[%s2802_s1 + $0x48] sm:$0xff]  ;;  %v1897_v61 = vld [vmem:[%s2802_s1 + $0x80] sm:$0xff]  ;;  %v1468_v0 = vld [vmem:[%s2804_s0 + $0xf0] sm:$0xf] }
  0x13   :  { %1934 = vmatpush.bf16.msra.mxu2 %v1884_v4  ;;  %1935 = vmatpush.bf16.msra.mxu3 %v1884_v4  ;;  %v1914_v59 = vld [vmem:[%s2802_s1 + $0x108] sm:$0xff]  ;;  %v1905_v62 = vld [vmem:[%s2802_s1 + $0xc0] sm:$0xff]  ;;  %v1548_v2 = vld [vmem:[%s2804_s0 + $0x190] sm:$0xf] }
  0x14   :  { %v1818_v63 = vld [vmem:[%s2804_s0 + $0x60] sm:$0xf0]  ;;  %v1628_v4 = vld [vmem:[%s2804_s0 + $0x230] sm:$0xf]  ;;  %v2161_v12 = vld [vmem:[%s2804_s0 + $0x258] sm:$0xff] }
  0x15   :  { %v1838_v1 = vld [vmem:[%s2804_s0 + $0x100] sm:$0xf0]  ;;  %v1389_v8 = vor.u32 %v1818_v63, %v1388_v60  ;;  %v1408_v13 = vld [vmem:[%s2804_s0 + $0x78] sm:$0xf]  ;;  %v1823_v14 = vld [vmem:[%s2804_s0 + $0x88] sm:$0xf0] }
  0x16   :  { %844 = vmatpush.bf16.msra.mxu0 %v1883_v5  ;;  %1936 = vmatpush.bf16.msra.mxu1 %v1883_v5  ;;  %v1858_v3 = vld [vmem:[%s2804_s0 + $0x1a0] sm:$0xf0]  ;;  %v1469_v9 = vor.u32 %v1838_v1, %v1468_v0  ;;  %v1488_v15 = vld [vmem:[%s2804_s0 + $0x118] sm:$0xf]  ;;  %v1811_v36 = vld [vmem:[%s2804_s0 + $0x2c] sm:$0xf] }
  0x17   :  { %1937 = vmatpush.bf16.msra.mxu2 %v1883_v5  ;;  %1938 = vmatpush.bf16.msra.mxu3 %v1883_v5  ;;  %v1878_v5 = vld [vmem:[%s2804_s0 + $0x240] sm:$0xf0]  ;;  %v1549_v10 = vor.u32 %v1858_v3, %v1548_v2  ;;  %v1370_v37 = vld [vmem:[%s2804_s0 + $0x3c] sm:$0xf0]  ;;  %v1376_v38 = vld [vmem:[%s2804_s0 + $0x30] sm:$0xf] }
  0x18   :  { %v1629_v11 = vor.u32 %v1878_v5, %v1628_v4  ;;  %v1384_v39 = vld [vmem:[%s2804_s0 + $0x38] sm:$0xf]  ;;  %v1815_v40 = vld [vmem:[%s2804_s0 + $0x48] sm:$0xf0]  ;;  %v1814_v41 = vld [vmem:[%s2804_s0 + $0x40] sm:$0xf0] }
  0x19   :  { %v1821_v60 = vld [vmem:[%s2804_s0 + $0x7c] sm:$0xf]  ;;  %v1424_v63 = vld [vmem:[%s2804_s0 + $0x88] sm:$0xf]  ;;  %v1824_v1 = vld [vmem:[%s2804_s0 + $0x90] sm:$0xf0] }
  0x1a   :  { %845 = vmatpush.bf16.msra.mxu0 %v1882_v6  ;;  %1939 = vmatpush.bf16.msra.mxu1 %v1882_v6  ;;  %v1825_v0 = vld [vmem:[%s2804_s0 + $0x98] sm:$0xf0]  ;;  %v1822_v2 = vld [vmem:[%s2804_s0 + $0x84] sm:$0xf]  ;;  %v1418_v3 = vld [vmem:[%s2804_s0 + $0x94] sm:$0xf0] }
  0x1b   :  { %1940 = vmatpush.bf16.msra.mxu2 %v1882_v6  ;;  %1941 = vmatpush.bf16.msra.mxu3 %v1882_v6  ;;  %v1889_v6 = vld [vmem:[%s2802_s1 + $0x40] sm:$0xff]  ;;  %v1425_v5 = vor.u32 %v1825_v0, %v1424_v63  ;;  %v1839_v63 = vld [vmem:[%s2804_s0 + $0x108] sm:$0xf0]  ;;  %v1837_v0 = vld [vmem:[%s2804_s0 + $0xfc] sm:$0xf] }
  0x1e   :  { %846 = vmatpush.bf16.msra.mxu0 %v1881_v7  ;;  %1942 = vmatpush.bf16.msra.mxu1 %v1881_v7 }
  0x1f   :  { %1943 = vmatpush.bf16.msra.mxu2 %v1881_v7  ;;  %1944 = vmatpush.bf16.msra.mxu3 %v1881_v7  ;;  %v1913_v7 = vld [vmem:[%s2802_s1 + $0x100] sm:$0xff] }
  0x21   :  { %847 = vmatmul.bf16.vlgmr.msra.gmra.mxu0 %v1349_v18  ;;  %867 = vmatmul.bf16.vlgmr.msra.gmra.mxu1 %v1429_v19  ;;  %v1568_v18 = vld [vmem:[%s2804_s0 + $0x1b8] sm:$0xf]  ;;  %v1863_v19 = vld [vmem:[%s2804_s0 + $0x1c8] sm:$0xf0] }
  0x22   :  { %887 = vmatmul.bf16.vlgmr.msra.gmra.mxu2 %v1509_v20  ;;  %907 = vmatmul.bf16.vlgmr.msra.gmra.mxu3 %v1589_v21  ;;  %v1409_v20 = vor.u32 %v1823_v14, %v1408_v13  ;;  %v1444_v13 = vld [vmem:[%s2804_s0 + $0xb0] sm:$0xf]  ;;  %v1830_v14 = vld [vmem:[%s2804_s0 + $0xc0] sm:$0xf0] }
  0x23   :  { %1015 = vmatpush.bf16.msrb.mxu2 %v1904_v16  ;;  %1103 = vmatpush.bf16.msrb.mxu3 %v1912_v17  ;;  %v1843_v16 = vld [vmem:[%s2804_s0 + $0x128] sm:$0xf0]  ;;  %v434_v17 = vunpack.c.l.b16 %v2161_v12 }
  0x24   :  { %927 = vmatpush.bf16.msrb.mxu1 %v1896_v22  ;;  %1191 = vmatpush.bf16.msrb.mxu0 %v1920_v23  ;;  %v1489_v21 = vor.u32 %v1843_v16, %v1488_v15  ;;  %v1569_v22 = vor.u32 %v1863_v19, %v1568_v18  ;;  %v1829_v15 = vld [vmem:[%s2804_s0 + $0xb8] sm:$0xf0]  ;;  %v1827_v16 = vld [vmem:[%s2804_s0 + $0xac] sm:$0xf]  ;;  %v1445_v19 = vor.u32 %v1830_v14, %v1444_v13 }
  0x25   :  { %v514_v23 = vpack.c.b16 %v434_v17, %v434_v17  ;;  %v1438_v17 = vld [vmem:[%s2804_s0 + $0xbc] sm:$0xf0] }
  0x27   :  { %1016 = vmatpush.bf16.msrb.mxu2 %v1903_v24  ;;  %1104 = vmatpush.bf16.msrb.mxu3 %v1911_v25  ;;  %v1806_v24 = vld [vmem:[%s2804_s0 + $0x4] sm:$0xf]  ;;  %v1350_v25 = vld [vmem:[%s2804_s0 + $0x14] sm:$0xf0] }
  0x28   :  { %928 = vmatpush.bf16.msrb.mxu1 %v1895_v26  ;;  %1192 = vmatpush.bf16.msrb.mxu0 %v1919_v27  ;;  %v1356_v26 = vld [vmem:[%s2804_s0 + $0x8] sm:$0xf]  ;;  %v1364_v27 = vld [vmem:[%s2804_s0 + $0x10] sm:$0xf]  ;;  %v1353_v32 = vor.u32 %v1806_v24, %v1350_v25 }
  0x2b   :  { %1017 = vmatpush.bf16.msrb.mxu2 %v1902_v28  ;;  %1105 = vmatpush.bf16.msrb.mxu3 %v1910_v29  ;;  %v1810_v28 = vld [vmem:[%s2804_s0 + $0x20] sm:$0xf0]  ;;  %v1809_v29 = vld [vmem:[%s2804_s0 + $0x18] sm:$0xf0] }
  0x2c   :  { %929 = vmatpush.bf16.msrb.mxu1 %v1894_v30  ;;  %1193 = vmatpush.bf16.msrb.mxu0 %v1918_v31  ;;  %v1807_v30 = vld [vmem:[%s2804_s0 + $0xc] sm:$0xf]  ;;  %v1358_v31 = vld [vmem:[%s2804_s0 + $0x1c] sm:$0xf0] }
  0x2d   :  { %v1361_v35 = vor.u32 %v1807_v30, %v1358_v31 }
  0x2f   :  { %1018 = vmatpush.bf16.msrb.mxu2 %v1901_v33  ;;  %1106 = vmatpush.bf16.msrb.mxu3 %v1909_v34  ;;  %v1365_v33 = vor.u32 %v1810_v28, %v1364_v27  ;;  %v1357_v34 = vor.u32 %v1809_v29, %v1356_v26 }
  0x30   :  { %930 = vmatpush.bf16.msrb.mxu1 %v1893_v42  ;;  %1194 = vmatpush.bf16.msrb.mxu0 %v1917_v43  ;;  %v1812_v42 = vld [vmem:[%s2804_s0 + $0x34] sm:$0xf]  ;;  %v1378_v43 = vld [vmem:[%s2804_s0 + $0x44] sm:$0xf0] }
  0x31   :  { %852 = vmatmul.bf16.gmra.mxu0 %v1369_v46  ;;  %872 = vmatmul.bf16.gmra.mxu1 %v1449_v47  ;;  %v1377_v46 = vor.u32 %v1814_v41, %v1376_v38  ;;  %v1381_v47 = vor.u32 %v1812_v42, %v1378_v43  ;;  %v1832_v38 = vld [vmem:[%s2804_s0 + $0xd4] sm:$0xf] }
  0x32   :  { %892 = vmatmul.bf16.gmra.mxu2 %v1529_v48  ;;  %912 = vmatmul.bf16.gmra.mxu3 %v1609_v49  ;;  %v1816_v48 = vld [vmem:[%s2804_s0 + $0x54] sm:$0xf]  ;;  %v1390_v49 = vld [vmem:[%s2804_s0 + $0x64] sm:$0xf0] }
  0x33   :  { %1019 = vmatpush.bf16.msrb.mxu2 %v1900_v44  ;;  %1107 = vmatpush.bf16.msrb.mxu3 %v1908_v45  ;;  %v1373_v44 = vor.u32 %v1811_v36, %v1370_v37  ;;  %v1385_v45 = vor.u32 %v1815_v40, %v1384_v39  ;;  %v1835_v36 = vld [vmem:[%s2804_s0 + $0xe8] sm:$0xf0]  ;;  %v1834_v37 = vld [vmem:[%s2804_s0 + $0xe0] sm:$0xf0]  ;;  %v1458_v39 = vld [vmem:[%s2804_s0 + $0xe4] sm:$0xf0] }
  0x34   :  { %931 = vmatpush.bf16.msrb.mxu1 %v1892_v50  ;;  %1195 = vmatpush.bf16.msrb.mxu0 %v1916_v51  ;;  %v1396_v50 = vld [vmem:[%s2804_s0 + $0x58] sm:$0xf]  ;;  %v1404_v51 = vld [vmem:[%s2804_s0 + $0x60] sm:$0xf] }
  0x37   :  { %1020 = vmatpush.bf16.msrb.mxu2 %v1899_v52  ;;  %1108 = vmatpush.bf16.msrb.mxu3 %v1907_v53  ;;  %v1820_v52 = vld [vmem:[%s2804_s0 + $0x70] sm:$0xf0]  ;;  %v1819_v53 = vld [vmem:[%s2804_s0 + $0x68] sm:$0xf0] }
  0x38   :  { %932 = vmatpush.bf16.msrb.mxu1 %v1891_v54  ;;  %1196 = vmatpush.bf16.msrb.mxu0 %v1915_v55  ;;  %v1817_v54 = vld [vmem:[%s2804_s0 + $0x5c] sm:$0xf]  ;;  %v1398_v55 = vld [vmem:[%s2804_s0 + $0x6c] sm:$0xf0] }
  0x3b   :  { %1021 = vmatpush.bf16.msrb.mxu2 %v1898_v56  ;;  %1109 = vmatpush.bf16.msrb.mxu3 %v1906_v57  ;;  %v1393_v56 = vor.u32 %v1816_v48, %v1390_v49  ;;  %v1405_v57 = vor.u32 %v1820_v52, %v1404_v51  ;;  %v1461_v49 = vor.u32 %v1832_v38, %v1458_v39 }
  0x3c   :  { %933 = vmatpush.bf16.msrb.mxu1 %v1890_v58  ;;  %1197 = vmatpush.bf16.msrb.mxu0 %v1914_v59  ;;  %v1397_v58 = vor.u32 %v1819_v53, %v1396_v50  ;;  %v1401_v59 = vor.u32 %v1817_v54, %v1398_v55 }
  0x3f   :  { %1022 = vmatpush.bf16.msrb.mxu2 %v1897_v61  ;;  %1110 = vmatpush.bf16.msrb.mxu3 %v1905_v62  ;;  %v1410_v61 = vld [vmem:[%s2804_s0 + $0x8c] sm:$0xf0]  ;;  %v1416_v62 = vld [vmem:[%s2804_s0 + $0x80] sm:$0xf] }
  0x40   :  { %934 = vmatpush.bf16.msrb.mxu1 %v1889_v6  ;;  %1198 = vmatpush.bf16.msrb.mxu0 %v1913_v7  ;;  %v1413_v4 = vor.u32 %v1821_v60, %v1410_v61  ;;  %v1417_v6 = vor.u32 %v1824_v1, %v1416_v62  ;;  %v1421_v7 = vor.u32 %v1822_v2, %v1418_v3  ;;  %v1476_v60 = vld [vmem:[%s2804_s0 + $0xf8] sm:$0xf]  ;;  %v1484_v61 = vld [vmem:[%s2804_s0 + $0x100] sm:$0xf]  ;;  %v1840_v62 = vld [vmem:[%s2804_s0 + $0x110] sm:$0xf0] }
  0x41   :  { %857 = vmatmul.bf16.gmra.mxu0 %v1389_v8  ;;  %877 = vmatmul.bf16.gmra.mxu1 %v1469_v9  ;;  %v2281_v8 = vld [vmem:[%s2803_s2] ss:$0 sm:$0xff]  ;;  %v1826_v9 = vld [vmem:[%s2804_s0 + $0xa4] sm:$0xf]  ;;  %v1478_v1 = vld [vmem:[%s2804_s0 + $0x10c] sm:$0xf0] }
  0x42   :  { %897 = vmatmul.bf16.gmra.mxu2 %v1549_v10  ;;  %917 = vmatmul.bf16.gmra.mxu3 %v1629_v11  ;;  %v1430_v10 = vld [vmem:[%s2804_s0 + $0xb4] sm:$0xf0]  ;;  %v1436_v11 = vld [vmem:[%s2804_s0 + $0xa8] sm:$0xf]  ;;  %v1481_v13 = vor.u32 %v1837_v0, %v1478_v1  ;;  %v1524_v1 = vld [vmem:[%s2804_s0 + $0x150] sm:$0xf] }
  0x43   :  { %v1433_v18 = vor.u32 %v1826_v9, %v1430_v10  ;;  %v1516_v0 = vld [vmem:[%s2804_s0 + $0x148] sm:$0xf] }
  0x51   :  { %862 = vmatmul.bf16.gmra.mxu0 %v1409_v20  ;;  %882 = vmatmul.bf16.gmra.mxu1 %v1489_v21 }
  0x52   :  { %902 = vmatmul.bf16.gmra.mxu2 %v1569_v22  ;;  %922 = vmatmul.bf16.gmra.mxu3 %v514_v23  ;;  %v1437_v22 = vor.u32 %v1829_v15, %v1436_v11  ;;  %v1441_v23 = vor.u32 %v1827_v16, %v1438_v17  ;;  %v1477_v11 = vor.u32 %v1839_v63, %v1476_v60  ;;  %v1510_v63 = vld [vmem:[%s2804_s0 + $0x154] sm:$0xf0] }
  0x61   :  { %935 = vmatmul.bf16.vlgmr.msrb.gmra.mxu1 %v1353_v32  ;;  %1199 = vmatmul.bf16.vlgmr.msrb.gmra.mxu0 %v1365_v33  ;;  %v1831_v32 = vld [vmem:[%s2804_s0 + $0xcc] sm:$0xf]  ;;  %v1450_v33 = vld [vmem:[%s2804_s0 + $0xdc] sm:$0xf0] }
  0x62   :  { %1023 = vmatmul.bf16.vlgmr.msrb.gmra.mxu2 %v1357_v34  ;;  %1111 = vmatmul.bf16.vlgmr.msrb.gmra.mxu3 %v1361_v35  ;;  %v1456_v34 = vld [vmem:[%s2804_s0 + $0xd0] sm:$0xf]  ;;  %v1464_v35 = vld [vmem:[%s2804_s0 + $0xd8] sm:$0xf]  ;;  %v1453_v42 = vor.u32 %v1831_v32, %v1450_v33  ;;  %v1845_v32 = vld [vmem:[%s2804_s0 + $0x138] sm:$0xf0] }
  0x63   :  { %v1465_v43 = vor.u32 %v1835_v36, %v1464_v35  ;;  %v1457_v48 = vor.u32 %v1834_v37, %v1456_v34  ;;  %v1844_v33 = vld [vmem:[%s2804_s0 + $0x130] sm:$0xf0]  ;;  %v1842_v34 = vld [vmem:[%s2804_s0 + $0x124] sm:$0xf]  ;;  %v1498_v35 = vld [vmem:[%s2804_s0 + $0x134] sm:$0xf0] }
  0x71   :  { %940 = vmatmul.bf16.gmra.mxu1 %v1373_v44  ;;  %1204 = vmatmul.bf16.gmra.mxu0 %v1385_v45 }
  0x72   :  { %1028 = vmatmul.bf16.gmra.mxu2 %v1377_v46  ;;  %1116 = vmatmul.bf16.gmra.mxu3 %v1381_v47 }
  0x81   :  { %945 = vmatmul.bf16.gmra.mxu1 %v1393_v56  ;;  %1209 = vmatmul.bf16.gmra.mxu0 %v1405_v57 }
  0x82   :  { %1033 = vmatmul.bf16.gmra.mxu2 %v1397_v58  ;;  %1121 = vmatmul.bf16.gmra.mxu3 %v1401_v59  ;;  %v1836_v58 = vld [vmem:[%s2804_s0 + $0xf4] sm:$0xf]  ;;  %v1470_v59 = vld [vmem:[%s2804_s0 + $0x104] sm:$0xf0] }
  0x91   :  { %950 = vmatmul.bf16.gmra.mxu1 %v1413_v4  ;;  %1214 = vmatmul.bf16.gmra.mxu0 %v1425_v5  ;;  %v1473_v4 = vor.u32 %v1836_v58, %v1470_v59  ;;  %v1485_v5 = vor.u32 %v1840_v62, %v1484_v61  ;;  %v1846_v62 = vld [vmem:[%s2804_s0 + $0x144] sm:$0xf] }
  0x92   :  { %1038 = vmatmul.bf16.gmra.mxu2 %v1417_v6  ;;  %1126 = vmatmul.bf16.gmra.mxu3 %v1421_v7 }
  0x9e   :  { %v2307_v20 = vpop.f32.mrf.mxu0  ;;  %v868_v21 = vpop.f32.mrf.mxu1 }
  0x9f   :  { %v2310_v24 = vadd.f32 %v2281_v8, %v868_v21 }
  0xa1   :  { %955 = vmatmul.bf16.gmra.mxu1 %v1433_v18  ;;  %1219 = vmatmul.bf16.gmra.mxu0 %v1445_v19 }
  0xa2   :  { %1043 = vmatmul.bf16.gmra.mxu2 %v1437_v22  ;;  %1131 = vmatmul.bf16.gmra.mxu3 %v1441_v23  ;;  %v1841_v23 = vld [vmem:[%s2804_s0 + $0x11c] sm:$0xf] }
  0xa5   :  { %v888_v25 = vpop.f32.mrf.mxu2  ;;  %v908_v26 = vpop.f32.mrf.mxu3 }
  0xa6   :  { %v2313_v27 = vadd.f32 %v2281_v8, %v888_v25  ;;  %v2316_v28 = vadd.f32 %v2281_v8, %v908_v26  ;;  %v2318_v29 = vpop.f32.mrf.mxu0  ;;  %v870_v30 = vpop.f32.mrf.mxu1  ;;  %v1490_v25 = vld [vmem:[%s2804_s0 + $0x12c] sm:$0xf0]  ;;  %v1496_v26 = vld [vmem:[%s2804_s0 + $0x120] sm:$0xf] }
  0xa7   :  { %v2321_v31 = vadd.f32 %v2281_v8, %v870_v30  ;;  %v1504_v30 = vld [vmem:[%s2804_s0 + $0x128] sm:$0xf]  ;;  %v1493_v38 = vor.u32 %v1841_v23, %v1490_v25 }
  0xa8   :  { %v1505_v39 = vor.u32 %v1845_v32, %v1504_v30  ;;  %v849_v30 = vadd.f32 %v2281_v8, %v2307_v20  ;;  %v851_v20 = vadd.f32 %v2281_v8, %v2318_v29  ;;  %v1852_v29 = vld [vmem:[%s2804_s0 + $0x174] sm:$0xf] }
  0xad   :  { %v890_v40 = vpop.f32.mrf.mxu2  ;;  %v910_v41 = vpop.f32.mrf.mxu3 }
  0xae   :  { %v2348_v44 = vadd.f32 %v2281_v8, %v890_v40  ;;  %v2351_v45 = vadd.f32 %v2281_v8, %v910_v41  ;;  %v2353_v46 = vpop.f32.mrf.mxu0  ;;  %v873_v47 = vpop.f32.mrf.mxu1 }
  0xaf   :  { %v2356_v50 = vadd.f32 %v2281_v8, %v873_v47  ;;  %v1497_v47 = vor.u32 %v1844_v33, %v1496_v26 }
  0xb1   :  { %960 = vmatmul.bf16.gmra.mxu1 %v1453_v42  ;;  %1224 = vmatmul.bf16.gmra.mxu0 %v1465_v43 }
  0xb2   :  { %1048 = vmatmul.bf16.gmra.mxu2 %v1457_v48  ;;  %1136 = vmatmul.bf16.gmra.mxu3 %v1461_v49  ;;  %v1501_v48 = vor.u32 %v1842_v34, %v1498_v35 }
  0xb5   :  { %v893_v51 = vpop.f32.mrf.mxu2  ;;  %v913_v52 = vpop.f32.mrf.mxu3 }
  0xb6   :  { %v2359_v53 = vadd.f32 %v2281_v8, %v893_v51  ;;  %v2362_v54 = vadd.f32 %v2281_v8, %v913_v52  ;;  %v2364_v55 = vpop.f32.mrf.mxu0  ;;  %v875_v56 = vpop.f32.mrf.mxu1 }
  0xb7   :  { %v2367_v57 = vadd.f32 %v2281_v8, %v875_v56 }
  0xbd   :  { %v895_v2 = vpop.f32.mrf.mxu2  ;;  %v915_v3 = vpop.f32.mrf.mxu3 }
  0xbe   :  { %v2394_v6 = vadd.f32 %v2281_v8, %v895_v2  ;;  %v2397_v7 = vadd.f32 %v2281_v8, %v915_v3  ;;  %v2399_v9 = vpop.f32.mrf.mxu0  ;;  %v878_v10 = vpop.f32.mrf.mxu1  ;;  %v1850_v2 = vld [vmem:[%s2804_s0 + $0x160] sm:$0xf0]  ;;  %v1849_v3 = vld [vmem:[%s2804_s0 + $0x158] sm:$0xf0] }
  0xbf   :  { %v2402_v14 = vadd.f32 %v2281_v8, %v878_v10  ;;  %v1517_v25 = vor.u32 %v1849_v3, %v1516_v0 }
  0xc1   :  { %965 = vmatmul.bf16.gmra.mxu1 %v1473_v4  ;;  %1229 = vmatmul.bf16.gmra.mxu0 %v1485_v5  ;;  %v1847_v4 = vld [vmem:[%s2804_s0 + $0x14c] sm:$0xf]  ;;  %v1518_v5 = vld [vmem:[%s2804_s0 + $0x15c] sm:$0xf0] }
  0xc2   :  { %1053 = vmatmul.bf16.gmra.mxu2 %v1477_v11  ;;  %1141 = vmatmul.bf16.gmra.mxu3 %v1481_v13  ;;  %v1513_v13 = vor.u32 %v1846_v62, %v1510_v63  ;;  %v1521_v26 = vor.u32 %v1847_v4, %v1518_v5  ;;  %v1538_v62 = vld [vmem:[%s2804_s0 + $0x184] sm:$0xf0] }
  0xc5   :  { %v898_v15 = vpop.f32.mrf.mxu2  ;;  %v918_v16 = vpop.f32.mrf.mxu3 }
  0xc6   :  { %v2405_v17 = vadd.f32 %v2281_v8, %v898_v15  ;;  %v2408_v18 = vadd.f32 %v2281_v8, %v918_v16  ;;  %v2410_v19 = vpop.f32.mrf.mxu0  ;;  %v880_v21 = vpop.f32.mrf.mxu1  ;;  %v1525_v15 = vor.u32 %v1850_v2, %v1524_v1 }
  0xc7   :  { %v2413_v22 = vadd.f32 %v2281_v8, %v880_v21 }
  0xcd   :  { %v900_v36 = vpop.f32.mrf.mxu2  ;;  %v920_v37 = vpop.f32.mrf.mxu3 }
  0xce   :  { %v2440_v40 = vadd.f32 %v2281_v8, %v900_v36  ;;  %v2443_v41 = vadd.f32 %v2281_v8, %v920_v37  ;;  %v2445_v42 = vpop.f32.mrf.mxu0  ;;  %v883_v43 = vpop.f32.mrf.mxu1 }
  0xcf   :  { %v2448_v49 = vadd.f32 %v2281_v8, %v883_v43  ;;  %v1530_v43 = vld [vmem:[%s2804_s0 + $0x17c] sm:$0xf0] }
  0xd1   :  { %970 = vmatmul.bf16.gmra.mxu1 %v1493_v38  ;;  %1234 = vmatmul.bf16.gmra.mxu0 %v1505_v39  ;;  %v1851_v39 = vld [vmem:[%s2804_s0 + $0x16c] sm:$0xf] }
  0xd2   :  { %1058 = vmatmul.bf16.gmra.mxu2 %v1497_v47  ;;  %1146 = vmatmul.bf16.gmra.mxu3 %v1501_v48  ;;  %v1536_v48 = vld [vmem:[%s2804_s0 + $0x170] sm:$0xf]  ;;  %v1533_v3 = vor.u32 %v1851_v39, %v1530_v43  ;;  %v856_v39 = vadd.f32 %v2281_v8, %v2364_v55  ;;  %v1857_v55 = vld [vmem:[%s2804_s0 + $0x19c] sm:$0xf] }
  0xd5   :  { %v903_v51 = vpop.f32.mrf.mxu2  ;;  %v923_v52 = vpop.f32.mrf.mxu3 }
  0xd6   :  { %v2451_v56 = vadd.f32 %v2281_v8, %v903_v51  ;;  %v2454_v58 = vadd.f32 %v2281_v8, %v923_v52  ;;  %v2456_v59 = vpop.f32.mrf.mxu0  ;;  %v885_v60 = vpop.f32.mrf.mxu1  ;;  %v1544_v51 = vld [vmem:[%s2804_s0 + $0x178] sm:$0xf]  ;;  %v1855_v52 = vld [vmem:[%s2804_s0 + $0x188] sm:$0xf0] }
  0xd7   :  { %v2459_v61 = vadd.f32 %v2281_v8, %v885_v60  ;;  %v1854_v60 = vld [vmem:[%s2804_s0 + $0x180] sm:$0xf0]  ;;  %v1545_v4 = vor.u32 %v1855_v52, %v1544_v51  ;;  %v1859_v51 = vld [vmem:[%s2804_s0 + $0x1a8] sm:$0xf0]  ;;  %v1558_v52 = vld [vmem:[%s2804_s0 + $0x1ac] sm:$0xf0] }
  0xdd   :  { %v905_v10 = vpop.f32.mrf.mxu2  ;;  %v925_v11 = vpop.f32.mrf.mxu3 }
  0xde   :  { %v2486_v16 = vadd.f32 %v2281_v8, %v905_v10  ;;  %v936_v21 = vpop.f32.mrf.mxu1  ;;  %v1200_v23 = vpop.f32.mrf.mxu0 }
  0xdf   :  { %v937_v32 = vadd.f32 %v936_v21, %v849_v30 }
  0xe1   :  { %975 = vmatmul.bf16.gmra.mxu1 %v1513_v13  ;;  %1239 = vmatmul.bf16.gmra.mxu0 %v1525_v15  ;;  %v1537_v13 = vor.u32 %v1854_v60, %v1536_v48  ;;  %v1541_v15 = vor.u32 %v1852_v29, %v1538_v62  ;;  %v1860_v48 = vld [vmem:[%s2804_s0 + $0x1b0] sm:$0xf0] }
  0xe2   :  { %1063 = vmatmul.bf16.gmra.mxu2 %v1517_v25  ;;  %1151 = vmatmul.bf16.gmra.mxu3 %v1521_v26 }
  0xe5   :  { %v1024_v33 = vpop.f32.mrf.mxu2  ;;  %v1112_v34 = vpop.f32.mrf.mxu3 }
  0xe6   :  { %v1025_v35 = vadd.f32 %v1024_v33, %v937_v32  ;;  %v938_v36 = vpop.f32.mrf.mxu1  ;;  %v1202_v37 = vpop.f32.mrf.mxu0 }
  0xe7   :  { %v939_v0 = vadd.f32 %v938_v36, %v851_v20  ;;  %v1556_v20 = vld [vmem:[%s2804_s0 + $0x198] sm:$0xf] }
  0xe8   :  { %v1113_v38 = vadd.f32 %v1112_v34, %v1025_v35 }
  0xea   :  { %v1201_v47 = vadd.f32 %v1200_v23, %v1113_v38  ;;  %v854_v23 = vadd.f32 %v2281_v8, %v2353_v46  ;;  %v1856_v46 = vld [vmem:[%s2804_s0 + $0x194] sm:$0xf] }
  0xec   :  { %v1279_v63 = vmax.f32 %v1201_v47, 0.0  ;;  %v1564_v47 = vld [vmem:[%s2804_s0 + $0x1a0] sm:$0xf] }
  0xed   :  { %v1026_v1 = vpop.f32.mrf.mxu2  ;;  %v1114_v2 = vpop.f32.mrf.mxu3 }
  0xee   :  { %1311 = vst.msk [vmem:[%s2805_s3] sm:$0xff] %vm1310_vm0, %v1279_v63  ;;  %v1027_v5 = vadd.f32 %v1026_v1, %v939_v0  ;;  %v941_v10 = vpop.f32.mrf.mxu1  ;;  %v1205_v11 = vpop.f32.mrf.mxu0  ;;  %v1565_v1 = vor.u32 %v1860_v48, %v1564_v47 }
  0xef   :  { %v942_v30 = vadd.f32 %v941_v10, %v854_v23  ;;  %v1561_v10 = vor.u32 %v1857_v55, %v1558_v52 }
  0xf0   :  { %v1115_v21 = vadd.f32 %v1114_v2, %v1027_v5  ;;  %v1557_v5 = vor.u32 %v1859_v51, %v1556_v20  ;;  %v1578_v20 = vld [vmem:[%s2804_s0 + $0x1d4] sm:$0xf0] }
  0xf1   :  { %980 = vmatmul.bf16.gmra.mxu1 %v1533_v3  ;;  %1244 = vmatmul.bf16.gmra.mxu0 %v1545_v4 }
  0xf2   :  { %v1203_v25 = vadd.f32 %v1202_v37, %v1115_v21  ;;  %1068 = vmatmul.bf16.gmra.mxu2 %v1537_v13  ;;  %1156 = vmatmul.bf16.gmra.mxu3 %v1541_v15  ;;  %v1550_v37 = vld [vmem:[%s2804_s0 + $0x1a4] sm:$0xf0]  ;;  %v859_v13 = vadd.f32 %v2281_v8, %v2399_v9  ;;  %v1861_v9 = vld [vmem:[%s2804_s0 + $0x1bc] sm:$0xf] }
  0xf3   :  { %v1553_v0 = vor.u32 %v1856_v46, %v1550_v37  ;;  %v1576_v46 = vld [vmem:[%s2804_s0 + $0x1c0] sm:$0xf]  ;;  %v1584_v37 = vld [vmem:[%s2804_s0 + $0x1c8] sm:$0xf] }
  0xf4   :  { %v1280_v26 = vmax.f32 %v1203_v25, 0.0 }
  0xf5   :  { %v1029_v32 = vpop.f32.mrf.mxu2  ;;  %v1117_v33 = vpop.f32.mrf.mxu3 }
  0xf6   :  { %1312 = vst.msk [vmem:[%s2805_s3 + $0x8] sm:$0xff] %vm1310_vm0, %v1280_v26  ;;  %v1030_v34 = vadd.f32 %v1029_v32, %v942_v30  ;;  %v943_v35 = vpop.f32.mrf.mxu1  ;;  %v1207_v36 = vpop.f32.mrf.mxu0 }
  0xf7   :  { %v944_v29 = vadd.f32 %v943_v35, %v856_v39  ;;  %v1570_v35 = vld [vmem:[%s2804_s0 + $0x1cc] sm:$0xf0]  ;;  %v1865_v39 = vld [vmem:[%s2804_s0 + $0x1d8] sm:$0xf0] }
  0xf8   :  { %v1118_v38 = vadd.f32 %v1117_v33, %v1030_v34  ;;  %v1573_v52 = vor.u32 %v1861_v9, %v1570_v35  ;;  %v1870_v9 = vld [vmem:[%s2804_s0 + $0x200] sm:$0xf0]  ;;  %v1869_v35 = vld [vmem:[%s2804_s0 + $0x1f8] sm:$0xf0] }
  0xfa   :  { %v1206_v43 = vadd.f32 %v1205_v11, %v1118_v38 }
  0xfc   :  { %v1281_v60 = vmax.f32 %v1206_v43, 0.0  ;;  %v1864_v43 = vld [vmem:[%s2804_s0 + $0x1d0] sm:$0xf0] }
  0xfd   :  { %v1031_v62 = vpop.f32.mrf.mxu2  ;;  %v1119_v63 = vpop.f32.mrf.mxu3 }
  0xfe   :  { %1313 = vst.msk [vmem:[%s2805_s3 + $0x10] sm:$0xff] %vm1310_vm0, %v1281_v60  ;;  %v1032_v2 = vadd.f32 %v1031_v62, %v944_v29  ;;  %v946_v3 = vpop.f32.mrf.mxu1  ;;  %v1210_v4 = vpop.f32.mrf.mxu0  ;;  %v1585_v60 = vor.u32 %v1865_v39, %v1584_v37 }
  0xff   :  { %v947_v23 = vadd.f32 %v946_v3, %v859_v13  ;;  %v864_v3 = vadd.f32 %v2281_v8, %v2445_v42  ;;  %v1866_v42 = vld [vmem:[%s2804_s0 + $0x1e4] sm:$0xf] }
 0x100   :  { %v1120_v11 = vadd.f32 %v1119_v63, %v1032_v2 }
 0x101   :  { %985 = vmatmul.bf16.gmra.mxu1 %v1553_v0  ;;  %1249 = vmatmul.bf16.gmra.mxu0 %v1565_v1  ;;  %v1577_v0 = vor.u32 %v1864_v43, %v1576_v46 }
 0x102   :  { %v1208_v15 = vadd.f32 %v1207_v36, %v1120_v11  ;;  %1073 = vmatmul.bf16.gmra.mxu2 %v1557_v5  ;;  %1161 = vmatmul.bf16.gmra.mxu3 %v1561_v10  ;;  %v861_v36 = vadd.f32 %v2281_v8, %v2410_v19  ;;  %v1862_v19 = vld [vmem:[%s2804_s0 + $0x1c4] sm:$0xf] }
 0x103   :  { %v1581_v1 = vor.u32 %v1862_v19, %v1578_v20 }
 0x104   :  { %v1282_v21 = vmax.f32 %v1208_v15, 0.0 }
 0x105   :  { %v1034_v25 = vpop.f32.mrf.mxu2  ;;  %v1122_v26 = vpop.f32.mrf.mxu3 }
 0x106   :  { %1314 = vst.msk [vmem:[%s2805_s3 + $0x18] sm:$0xff] %vm1310_vm0, %v1282_v21  ;;  %v1035_v30 = vadd.f32 %v1034_v25, %v947_v23  ;;  %v948_v32 = vpop.f32.mrf.mxu1  ;;  %v1212_v33 = vpop.f32.mrf.mxu0 }
 0x107   :  { %v949_v48 = vadd.f32 %v948_v32, %v861_v36 }
 0x108   :  { %v1123_v34 = vadd.f32 %v1122_v26, %v1035_v30  ;;  %v1590_v26 = vld [vmem:[%s2804_s0 + $0x1f4] sm:$0xf0]  ;;  %v866_v30 = vadd.f32 %v2281_v8, %v2456_v59  ;;  %v1867_v8 = vld [vmem:[%s2804_s0 + $0x1ec] sm:$0xf]  ;;  %v1598_v59 = vld [vmem:[%s2804_s0 + $0x1fc] sm:$0xf0] }
 0x109   :  { %v1593_v39 = vor.u32 %v1866_v42, %v1590_v26 }
 0x10a   :  { %v1211_v38 = vadd.f32 %v1210_v4, %v1123_v34  ;;  %v1604_v34 = vld [vmem:[%s2804_s0 + $0x1f0] sm:$0xf] }
 0x10b   :  { %v1605_v43 = vor.u32 %v1870_v9, %v1604_v34 }
 0x10c   :  { %v1283_v47 = vmax.f32 %v1211_v38, 0.0 }
 0x10d   :  { %v1036_v51 = vpop.f32.mrf.mxu2  ;;  %v1124_v55 = vpop.f32.mrf.mxu3 }
 0x10e   :  { %1315 = vst.msk [vmem:[%s2805_s3 + $0x20] sm:$0xff] %vm1310_vm0, %v1283_v47  ;;  %v1037_v29 = vadd.f32 %v1036_v51, %v949_v48  ;;  %v951_v62 = vpop.f32.mrf.mxu1  ;;  %v1215_v63 = vpop.f32.mrf.mxu0  ;;  %v1601_v51 = vor.u32 %v1867_v8, %v1598_v59 }
 0x10f   :  { %v952_v10 = vadd.f32 %v951_v62, %v864_v3 }
 0x110   :  { %v1125_v2 = vadd.f32 %v1124_v55, %v1037_v29 }
 0x111   :  { %990 = vmatmul.bf16.gmra.mxu1 %v1573_v52  ;;  %1254 = vmatmul.bf16.gmra.mxu0 %v1585_v60 }
 0x112   :  { %v1213_v4 = vadd.f32 %v1212_v33, %v1125_v2  ;;  %1078 = vmatmul.bf16.gmra.mxu2 %v1577_v0  ;;  %1166 = vmatmul.bf16.gmra.mxu3 %v1581_v1  ;;  %v1596_v33 = vld [vmem:[%s2804_s0 + $0x1e8] sm:$0xf] }
 0x113   :  { %v1597_v48 = vor.u32 %v1869_v35, %v1596_v33 }
 0x114   :  { %v1284_v5 = vmax.f32 %v1213_v4, 0.0  ;;  %v1871_v4 = vld [vmem:[%s2804_s0 + $0x20c] sm:$0xf] }
 0x115   :  { %v1039_v11 = vpop.f32.mrf.mxu2  ;;  %v1127_v13 = vpop.f32.mrf.mxu3 }
 0x116   :  { %1316 = vst.msk [vmem:[%s2805_s3 + $0x28] sm:$0xff] %vm1310_vm0, %v1284_v5  ;;  %v1040_v15 = vadd.f32 %v1039_v11, %v952_v10  ;;  %v953_v21 = vpop.f32.mrf.mxu1  ;;  %v1217_v23 = vpop.f32.mrf.mxu0  ;;  %v1610_v5 = vld [vmem:[%s2804_s0 + $0x21c] sm:$0xf0]  ;;  %v1616_v10 = vld [vmem:[%s2804_s0 + $0x210] sm:$0xf] }
 0x117   :  { %v954_v38 = vadd.f32 %v953_v21, %v866_v30  ;;  %v1624_v11 = vld [vmem:[%s2804_s0 + $0x218] sm:$0xf]  ;;  %v1872_v21 = vld [vmem:[%s2804_s0 + $0x214] sm:$0xf] }
 0x118   :  { %v1128_v25 = vadd.f32 %v1127_v13, %v1040_v15  ;;  %v1875_v13 = vld [vmem:[%s2804_s0 + $0x228] sm:$0xf0]  ;;  %v1874_v15 = vld [vmem:[%s2804_s0 + $0x220] sm:$0xf0] }
 0x119   :  { %v1625_v33 = vor.u32 %v1875_v13, %v1624_v11  ;;  %v1617_v8 = vor.u32 %v1874_v15, %v1616_v10 }
 0x11a   :  { %v1216_v32 = vadd.f32 %v1215_v63, %v1128_v25 }
 0x11c   :  { %v1285_v36 = vmax.f32 %v1216_v32, 0.0  ;;  %v1613_v32 = vor.u32 %v1871_v4, %v1610_v5 }
 0x11d   :  { %v1041_v46 = vpop.f32.mrf.mxu2  ;;  %v1129_v37 = vpop.f32.mrf.mxu3 }
 0x11e   :  { %1317 = vst.msk [vmem:[%s2805_s3 + $0x30] sm:$0xff] %vm1310_vm0, %v1285_v36  ;;  %v1042_v19 = vadd.f32 %v1041_v46, %v954_v38  ;;  %v956_v20 = vpop.f32.mrf.mxu1  ;;  %v1220_v47 = vpop.f32.mrf.mxu0 }
 0x11f   :  { %v957_v29 = vadd.f32 %v956_v20, %v2310_v24 }
 0x120   :  { %v1130_v55 = vadd.f32 %v1129_v37, %v1042_v19 }
 0x121   :  { %995 = vmatmul.bf16.gmra.mxu1 %v1593_v39  ;;  %1259 = vmatmul.bf16.gmra.mxu0 %v1605_v43 }
 0x122   :  { %v1218_v52 = vadd.f32 %v1217_v23, %v1130_v55  ;;  %1083 = vmatmul.bf16.gmra.mxu2 %v1597_v48  ;;  %1171 = vmatmul.bf16.gmra.mxu3 %v1601_v51  ;;  %v1618_v23 = vld [vmem:[%s2804_s0 + $0x224] sm:$0xf0]  ;;  %v1876_v48 = vld [vmem:[%s2804_s0 + $0x234] sm:$0xf]  ;;  %v1636_v55 = vld [vmem:[%s2804_s0 + $0x238] sm:$0xf] }
 0x123   :  { %v1621_v59 = vor.u32 %v1872_v21, %v1618_v23  ;;  %v1630_v51 = vld [vmem:[%s2804_s0 + $0x244] sm:$0xf0] }
 0x124   :  { %v1286_v60 = vmax.f32 %v1218_v52, 0.0  ;;  %v1644_v52 = vld [vmem:[%s2804_s0 + $0x240] sm:$0xf]  ;;  %v1633_v4 = vor.u32 %v1876_v48, %v1630_v51 }
 0x125   :  { %v1044_v62 = vpop.f32.mrf.mxu2  ;;  %v1132_v63 = vpop.f32.mrf.mxu3 }
 0x126   :  { %1318 = vst.msk [vmem:[%s2805_s3 + $0x38] sm:$0xff] %vm1310_vm0, %v1286_v60  ;;  %v1045_v0 = vadd.f32 %v1044_v62, %v957_v29  ;;  %v958_v1 = vpop.f32.mrf.mxu1  ;;  %v1222_v2 = vpop.f32.mrf.mxu0  ;;  %v1880_v60 = vld [vmem:[%s2804_s0 + $0x250] sm:$0xf0]  ;;  %v1879_v29 = vld [vmem:[%s2804_s0 + $0x248] sm:$0xf0] }
 0x127   :  { %v959_v42 = vadd.f32 %v958_v1, %v2321_v31  ;;  %v1877_v62 = vld [vmem:[%s2804_s0 + $0x23c] sm:$0xf]  ;;  %v1645_v5 = vor.u32 %v1880_v60, %v1644_v52  ;;  %v1637_v13 = vor.u32 %v1879_v29, %v1636_v55 }
 0x128   :  { %v1133_v3 = vadd.f32 %v1132_v63, %v1045_v0  ;;  %v1638_v63 = vld [vmem:[%s2804_s0 + $0x24c] sm:$0xf0] }
 0x129   :  { %v1641_v15 = vor.u32 %v1877_v62, %v1638_v63 }
 0x12a   :  { %v1221_v24 = vadd.f32 %v1220_v47, %v1133_v3 }
 0x12c   :  { %v1287_v25 = vmax.f32 %v1221_v24, 0.0 }
 0x12d   :  { %v1046_v26 = vpop.f32.mrf.mxu2  ;;  %v1134_v30 = vpop.f32.mrf.mxu3 }
 0x12e   :  { %1319 = vst.msk [vmem:[%s2805_s3 + $0x40] sm:$0xff] %vm1310_vm0, %v1287_v25  ;;  %v1047_v34 = vadd.f32 %v1046_v26, %v959_v42  ;;  %v961_v9 = vpop.f32.mrf.mxu1  ;;  %v1225_v35 = vpop.f32.mrf.mxu0 }
 0x12f   :  { %v962_v46 = vadd.f32 %v961_v9, %v2356_v50  ;;  %v105_v9 = vld [vmem:[%s2804_s0 + $0x260] sm:$0xff] }
 0x130   :  { %v1135_v36 = vadd.f32 %v1134_v30, %v1047_v34  ;;  %v106_v34 = vld [vmem:[%s2804_s0 + $0x268] sm:$0xf] }
 0x131   :  { %1000 = vmatmul.bf16.gmra.mxu1 %v1613_v32  ;;  %1264 = vmatmul.bf16.gmra.mxu0 %v1625_v33 }
 0x132   :  { %v1223_v38 = vadd.f32 %v1222_v2, %v1135_v36  ;;  %1088 = vmatmul.bf16.gmra.mxu2 %v1617_v8  ;;  %1176 = vmatmul.bf16.gmra.mxu3 %v1621_v59  ;;  %v438_v8 = vunpack.c.l.b16 %v106_v34  ;;  %v436_v36 = vunpack.c.l.b16 %v105_v9 }
 0x134   :  { %v1288_v31 = vmax.f32 %v1223_v38, 0.0  ;;  %v437_v38 = vunpack.c.h.b16 %v105_v9 }
 0x135   :  { %v1049_v37 = vpop.f32.mrf.mxu2  ;;  %v1137_v39 = vpop.f32.mrf.mxu3 }
 0x136   :  { %1320 = vst.msk [vmem:[%s2805_s3 + $0x48] sm:$0xff] %vm1310_vm0, %v1288_v31  ;;  %v1050_v43 = vadd.f32 %v1049_v37, %v962_v46  ;;  %v963_v19 = vpop.f32.mrf.mxu1  ;;  %v1227_v20 = vpop.f32.mrf.mxu0  ;;  %v517_v51 = vpack.c.b16 %v437_v38, %v437_v38 }
 0x137   :  { %v964_v1 = vadd.f32 %v963_v19, %v2367_v57  ;;  %v518_v19 = vpack.c.b16 %v438_v8, %v438_v8 }
 0x138   :  { %v1138_v47 = vadd.f32 %v1137_v39, %v1050_v43 }
 0x13a   :  { %v1226_v50 = vadd.f32 %v1225_v35, %v1138_v47 }
 0x13c   :  { %v1289_v0 = vmax.f32 %v1226_v50, 0.0 }
 0x13d   :  { %v1051_v2 = vpop.f32.mrf.mxu2  ;;  %v1139_v3 = vpop.f32.mrf.mxu3 }
 0x13e   :  { %1321 = vst.msk [vmem:[%s2805_s3 + $0x50] sm:$0xff] %vm1310_vm0, %v1289_v0  ;;  %v1052_v24 = vadd.f32 %v1051_v2, %v964_v1  ;;  %v966_v10 = vpop.f32.mrf.mxu1  ;;  %v1230_v11 = vpop.f32.mrf.mxu0 }
 0x13f   :  { %v967_v25 = vadd.f32 %v966_v10, %v2402_v14  ;;  %v435_v14 = vunpack.c.h.b16 %v2161_v12  ;;  %v516_v12 = vpack.c.b16 %v436_v36, %v436_v36 }
 0x140   :  { %v1140_v21 = vadd.f32 %v1139_v3, %v1052_v24 }
 0x141   :  { %1005 = vmatmul.bf16.gmra.mxu1 %v1633_v4  ;;  %1269 = vmatmul.bf16.gmra.mxu0 %v1645_v5  ;;  %v515_v43 = vpack.c.b16 %v435_v14, %v435_v14 }
 0x142   :  { %v1228_v23 = vadd.f32 %v1227_v20, %v1140_v21  ;;  %1093 = vmatmul.bf16.gmra.mxu2 %v1637_v13  ;;  %1181 = vmatmul.bf16.gmra.mxu3 %v1641_v15 }
 0x144   :  { %v1290_v57 = vmax.f32 %v1228_v23, 0.0 }
 0x145   :  { %v1054_v42 = vpop.f32.mrf.mxu2  ;;  %v1142_v26 = vpop.f32.mrf.mxu3 }
 0x146   :  { %1322 = vst.msk [vmem:[%s2805_s3 + $0x58] sm:$0xff] %vm1310_vm0, %v1290_v57  ;;  %v1055_v30 = vadd.f32 %v1054_v42, %v967_v25  ;;  %v968_v32 = vpop.f32.mrf.mxu1  ;;  %v1232_v33 = vpop.f32.mrf.mxu0 }
 0x147   :  { %v969_v46 = vadd.f32 %v968_v32, %v2413_v22 }
 0x148   :  { %v1143_v35 = vadd.f32 %v1142_v26, %v1055_v30 }
 0x14a   :  { %v1231_v59 = vadd.f32 %v1230_v11, %v1143_v35 }
 0x14c   :  { %v1291_v31 = vmax.f32 %v1231_v59, 0.0 }
 0x14d   :  { %v1056_v37 = vpop.f32.mrf.mxu2  ;;  %v1144_v39 = vpop.f32.mrf.mxu3 }
 0x14e   :  { %1323 = vst.msk [vmem:[%s2805_s3 + $0x60] sm:$0xff] %vm1310_vm0, %v1291_v31  ;;  %v1057_v20 = vadd.f32 %v1056_v37, %v969_v46  ;;  %v971_v47 = vpop.f32.mrf.mxu1  ;;  %v1235_v48 = vpop.f32.mrf.mxu0 }
 0x14f   :  { %v972_v52 = vadd.f32 %v971_v47, %v2448_v49 }
 0x150   :  { %v1145_v50 = vadd.f32 %v1144_v39, %v1057_v20 }
 0x151   :  { %1010 = vmatmul.bf16.gmra.mxu1 %v515_v43  ;;  %1274 = vmatmul.bf16.gmra.mxu0 %v518_v19 }
 0x152   :  { %v1233_v55 = vadd.f32 %v1232_v33, %v1145_v50  ;;  %1098 = vmatmul.bf16.gmra.mxu2 %v516_v12  ;;  %1186 = vmatmul.bf16.gmra.mxu3 %v517_v51 }
 0x154   :  { %v1292_v22 = vmax.f32 %v1233_v55, 0.0 }
 0x155   :  { %v1059_v60 = vpop.f32.mrf.mxu2  ;;  %v1147_v29 = vpop.f32.mrf.mxu3 }
 0x156   :  { %1324 = vst.msk [vmem:[%s2805_s3 + $0x68] sm:$0xff] %vm1310_vm0, %v1292_v22  ;;  %v1060_v62 = vadd.f32 %v1059_v60, %v972_v52  ;;  %v973_v63 = vpop.f32.mrf.mxu1  ;;  %v1237_v0 = vpop.f32.mrf.mxu0 }
 0x157   :  { %v974_v4 = vadd.f32 %v973_v63, %v2459_v61 }
 0x158   :  { %v1148_v1 = vadd.f32 %v1147_v29, %v1060_v62 }
 0x15a   :  { %v1236_v2 = vadd.f32 %v1235_v48, %v1148_v1 }
 0x15c   :  { %v1293_v3 = vmax.f32 %v1236_v2, 0.0 }
 0x15d   :  { %v1061_v5 = vpop.f32.mrf.mxu2  ;;  %v1149_v24 = vpop.f32.mrf.mxu3 }
 0x15e   :  { %1325 = vst.msk [vmem:[%s2805_s3 + $0x70] sm:$0xff] %vm1310_vm0, %v1293_v3  ;;  %v1062_v49 = vadd.f32 %v1061_v5, %v974_v4  ;;  %v976_v10 = vpop.f32.mrf.mxu1  ;;  %v1240_v11 = vpop.f32.mrf.mxu0 }
 0x15f   :  { %v977_v23 = vadd.f32 %v976_v10, %v2313_v27 }
 0x160   :  { %v1150_v13 = vadd.f32 %v1149_v24, %v1062_v49 }
 0x162   :  { %v1238_v15 = vadd.f32 %v1237_v0, %v1150_v13 }
 0x164   :  { %v1294_v21 = vmax.f32 %v1238_v15, 0.0 }
 0x165   :  { %v1064_v57 = vpop.f32.mrf.mxu2  ;;  %v1152_v25 = vpop.f32.mrf.mxu3 }
 0x166   :  { %1326 = vst.msk [vmem:[%s2805_s3 + $0x78] sm:$0xff] %vm1310_vm0, %v1294_v21  ;;  %v1065_v61 = vadd.f32 %v1064_v57, %v977_v23  ;;  %v978_v42 = vpop.f32.mrf.mxu1  ;;  %v1242_v26 = vpop.f32.mrf.mxu0 }
 0x167   :  { %v979_v34 = vadd.f32 %v978_v42, %v2348_v44 }
 0x168   :  { %v1153_v30 = vadd.f32 %v1152_v25, %v1065_v61 }
 0x16a   :  { %v1241_v32 = vadd.f32 %v1240_v11, %v1153_v30 }
 0x16c   :  { %v1295_v33 = vmax.f32 %v1241_v32, 0.0 }
 0x16d   :  { %v1066_v9 = vpop.f32.mrf.mxu2  ;;  %v1154_v35 = vpop.f32.mrf.mxu3 }
 0x16e   :  { %1327 = vst.msk [vmem:[%s2805_s3 + $0x80] sm:$0xff] %vm1310_vm0, %v1295_v33  ;;  %v1067_v27 = vadd.f32 %v1066_v9, %v979_v34  ;;  %v981_v14 = vpop.f32.mrf.mxu1  ;;  %v1245_v8 = vpop.f32.mrf.mxu0 }
 0x16f   :  { %v982_v31 = vadd.f32 %v981_v14, %v2359_v53 }
 0x170   :  { %v1155_v59 = vadd.f32 %v1154_v35, %v1067_v27 }
 0x172   :  { %v1243_v36 = vadd.f32 %v1242_v26, %v1155_v59 }
 0x174   :  { %v1296_v38 = vmax.f32 %v1243_v36, 0.0 }
 0x175   :  { %v1069_v46 = vpop.f32.mrf.mxu2  ;;  %v1157_v37 = vpop.f32.mrf.mxu3 }
 0x176   :  { %1328 = vst.msk [vmem:[%s2805_s3 + $0x88] sm:$0xff] %vm1310_vm0, %v1296_v38  ;;  %v1070_v44 = vadd.f32 %v1069_v46, %v982_v31  ;;  %v983_v39 = vpop.f32.mrf.mxu1  ;;  %v1247_v43 = vpop.f32.mrf.mxu0 }
 0x177   :  { %v984_v48 = vadd.f32 %v983_v39, %v2394_v6 }
 0x178   :  { %v1158_v19 = vadd.f32 %v1157_v37, %v1070_v44 }
 0x17a   :  { %v1246_v20 = vadd.f32 %v1245_v8, %v1158_v19 }
 0x17c   :  { %v1297_v47 = vmax.f32 %v1246_v20, 0.0 }
 0x17d   :  { %v1071_v12 = vpop.f32.mrf.mxu2  ;;  %v1159_v51 = vpop.f32.mrf.mxu3 }
 0x17e   :  { %1329 = vst.msk [vmem:[%s2805_s3 + $0x90] sm:$0xff] %vm1310_vm0, %v1297_v47  ;;  %v1072_v53 = vadd.f32 %v1071_v12, %v984_v48  ;;  %v986_v50 = vpop.f32.mrf.mxu1  ;;  %v1250_v55 = vpop.f32.mrf.mxu0 }
 0x17f   :  { %v987_v29 = vadd.f32 %v986_v50, %v2405_v17 }
 0x180   :  { %v1160_v22 = vadd.f32 %v1159_v51, %v1072_v53 }
 0x182   :  { %v1248_v52 = vadd.f32 %v1247_v43, %v1160_v22 }
 0x184   :  { %v1298_v60 = vmax.f32 %v1248_v52, 0.0 }
 0x185   :  { %v1074_v62 = vpop.f32.mrf.mxu2  ;;  %v1162_v63 = vpop.f32.mrf.mxu3 }
 0x186   :  { %1330 = vst.msk [vmem:[%s2805_s3 + $0x98] sm:$0xff] %vm1310_vm0, %v1298_v60  ;;  %v1075_v6 = vadd.f32 %v1074_v62, %v987_v29  ;;  %v988_v0 = vpop.f32.mrf.mxu1  ;;  %v1252_v1 = vpop.f32.mrf.mxu0 }
 0x187   :  { %v989_v5 = vadd.f32 %v988_v0, %v2440_v40 }
 0x188   :  { %v1163_v2 = vadd.f32 %v1162_v63, %v1075_v6 }
 0x18a   :  { %v1251_v3 = vadd.f32 %v1250_v55, %v1163_v2 }
 0x18c   :  { %v1299_v4 = vmax.f32 %v1251_v3, 0.0 }
 0x18d   :  { %v1076_v24 = vpop.f32.mrf.mxu2  ;;  %v1164_v49 = vpop.f32.mrf.mxu3 }
 0x18e   :  { %1331 = vst.msk [vmem:[%s2805_s3 + $0xa0] sm:$0xff] %vm1310_vm0, %v1299_v4  ;;  %v1077_v17 = vadd.f32 %v1076_v24, %v989_v5  ;;  %v991_v10 = vpop.f32.mrf.mxu1  ;;  %v1255_v11 = vpop.f32.mrf.mxu0 }
 0x18f   :  { %v992_v23 = vadd.f32 %v991_v10, %v2451_v56 }
 0x190   :  { %v1165_v13 = vadd.f32 %v1164_v49, %v1077_v17 }
 0x192   :  { %v1253_v15 = vadd.f32 %v1252_v1, %v1165_v13 }
 0x194   :  { %v1300_v21 = vmax.f32 %v1253_v15, 0.0 }
 0x195   :  { %v1079_v57 = vpop.f32.mrf.mxu2  ;;  %v1167_v25 = vpop.f32.mrf.mxu3 }
 0x196   :  { %1332 = vst.msk [vmem:[%s2805_s3 + $0xa8] sm:$0xff] %vm1310_vm0, %v1300_v21  ;;  %v1080_v40 = vadd.f32 %v1079_v57, %v992_v23  ;;  %v993_v61 = vpop.f32.mrf.mxu1  ;;  %v1257_v42 = vpop.f32.mrf.mxu0 }
 0x197   :  { %v994_v33 = vadd.f32 %v993_v61, %v2486_v16 }
 0x198   :  { %v1168_v26 = vadd.f32 %v1167_v25, %v1080_v40 }
 0x19a   :  { %v1256_v30 = vadd.f32 %v1255_v11, %v1168_v26 }
 0x19c   :  { %v1301_v32 = vmax.f32 %v1256_v30, 0.0 }
 0x19d   :  { %v1081_v34 = vpop.f32.mrf.mxu2  ;;  %v1169_v9 = vpop.f32.mrf.mxu3 }
 0x19e   :  { %1333 = vst.msk [vmem:[%s2805_s3 + $0xb0] sm:$0xff] %vm1310_vm0, %v1301_v32  ;;  %v1082_v56 = vadd.f32 %v1081_v34, %v994_v33  ;;  %v996_v35 = vpop.f32.mrf.mxu1  ;;  %v1260_v27 = vpop.f32.mrf.mxu0 }
 0x19f   :  { %v997_v36 = vadd.f32 %v996_v35, %v2316_v28 }
 0x1a0   :  { %v1170_v14 = vadd.f32 %v1169_v9, %v1082_v56 }
 0x1a2   :  { %v1258_v8 = vadd.f32 %v1257_v42, %v1170_v14 }
 0x1a4   :  { %v1302_v59 = vmax.f32 %v1258_v8, 0.0 }
 0x1a5   :  { %v1084_v38 = vpop.f32.mrf.mxu2  ;;  %v1172_v31 = vpop.f32.mrf.mxu3 }
 0x1a6   :  { %1334 = vst.msk [vmem:[%s2805_s3 + $0xb8] sm:$0xff] %vm1310_vm0, %v1302_v59  ;;  %v1085_v16 = vadd.f32 %v1084_v38, %v997_v36  ;;  %v998_v46 = vpop.f32.mrf.mxu1  ;;  %v1262_v37 = vpop.f32.mrf.mxu0 }
 0x1a7   :  { %v999_v19 = vadd.f32 %v998_v46, %v2351_v45 }
 0x1a8   :  { %v1173_v44 = vadd.f32 %v1172_v31, %v1085_v16 }
 0x1aa   :  { %v1261_v39 = vadd.f32 %v1260_v27, %v1173_v44 }
 0x1ac   :  { %v1303_v43 = vmax.f32 %v1261_v39, 0.0 }
 0x1ad   :  { %v1086_v20 = vpop.f32.mrf.mxu2  ;;  %v1174_v47 = vpop.f32.mrf.mxu3 }
 0x1ae   :  { %1335 = vst.msk [vmem:[%s2805_s3 + $0xc0] sm:$0xff] %vm1310_vm0, %v1303_v43  ;;  %v1087_v28 = vadd.f32 %v1086_v20, %v999_v19  ;;  %v1001_v48 = vpop.f32.mrf.mxu1  ;;  %v1265_v12 = vpop.f32.mrf.mxu0 }
 0x1af   :  { %v1002_v55 = vadd.f32 %v1001_v48, %v2362_v54 }
 0x1b0   :  { %v1175_v51 = vadd.f32 %v1174_v47, %v1087_v28 }
 0x1b2   :  { %v1263_v53 = vadd.f32 %v1262_v37, %v1175_v51 }
 0x1b4   :  { %v1304_v50 = vmax.f32 %v1263_v53, 0.0 }
 0x1b5   :  { %v1089_v22 = vpop.f32.mrf.mxu2  ;;  %v1177_v52 = vpop.f32.mrf.mxu3 }
 0x1b6   :  { %1336 = vst.msk [vmem:[%s2805_s3 + $0xc8] sm:$0xff] %vm1310_vm0, %v1304_v50  ;;  %v1090_v45 = vadd.f32 %v1089_v22, %v1002_v55  ;;  %v1003_v60 = vpop.f32.mrf.mxu1  ;;  %v1267_v29 = vpop.f32.mrf.mxu0 }
 0x1b7   :  { %v1004_v0 = vadd.f32 %v1003_v60, %v2397_v7 }
 0x1b8   :  { %v1178_v62 = vadd.f32 %v1177_v52, %v1090_v45 }
 0x1ba   :  { %v1266_v63 = vadd.f32 %v1265_v12, %v1178_v62 }
 0x1bc   :  { %v1305_v6 = vmax.f32 %v1266_v63, 0.0 }
 0x1bd   :  { %v1091_v1 = vpop.f32.mrf.mxu2  ;;  %v1179_v2 = vpop.f32.mrf.mxu3 }
 0x1be   :  { %1337 = vst.msk [vmem:[%s2805_s3 + $0xd0] sm:$0xff] %vm1310_vm0, %v1305_v6  ;;  %v1092_v54 = vadd.f32 %v1091_v1, %v1004_v0  ;;  %v1006_v3 = vpop.f32.mrf.mxu1  ;;  %v1270_v4 = vpop.f32.mrf.mxu0 }
 0x1bf   :  { %v1007_v17 = vadd.f32 %v1006_v3, %v2408_v18 }
 0x1c0   :  { %v1180_v5 = vadd.f32 %v1179_v2, %v1092_v54 }
 0x1c2   :  { %v1268_v24 = vadd.f32 %v1267_v29, %v1180_v5 }
 0x1c4   :  { %v1306_v49 = vmax.f32 %v1268_v24, 0.0 }
 0x1c5   :  { %v1094_v10 = vpop.f32.mrf.mxu2  ;;  %v1182_v11 = vpop.f32.mrf.mxu3 }
 0x1c6   :  { %1338 = vst.msk [vmem:[%s2805_s3 + $0xd8] sm:$0xff] %vm1310_vm0, %v1306_v49  ;;  %v1095_v7 = vadd.f32 %v1094_v10, %v1007_v17  ;;  %v1008_v13 = vpop.f32.mrf.mxu1  ;;  %v1272_v15 = vpop.f32.mrf.mxu0 }
 0x1c7   :  { %v1009_v25 = vadd.f32 %v1008_v13, %v2443_v41 }
 0x1c8   :  { %v1183_v21 = vadd.f32 %v1182_v11, %v1095_v7 }
 0x1ca   :  { %v1271_v23 = vadd.f32 %v1270_v4, %v1183_v21 }
 0x1cc   :  { %v1307_v57 = vmax.f32 %v1271_v23, 0.0 }
 0x1cd   :  { %v1096_v40 = vpop.f32.mrf.mxu2  ;;  %v1184_v61 = vpop.f32.mrf.mxu3 }
 0x1ce   :  { %1339 = vst.msk [vmem:[%s2805_s3 + $0xe0] sm:$0xff] %vm1310_vm0, %v1307_v57  ;;  %v1097_v18 = vadd.f32 %v1096_v40, %v1009_v25  ;;  %v1011_v42 = vpop.f32.mrf.mxu1  ;;  %v1275_v26 = vpop.f32.mrf.mxu0 }
 0x1cf   :  { %v1012_v34 = vadd.f32 %v1011_v42, %v2454_v58 }
 0x1d0   :  { %v1185_v30 = vadd.f32 %v1184_v61, %v1097_v18 }
 0x1d2   :  { %v1273_v32 = vadd.f32 %v1272_v15, %v1185_v30 }
 0x1d4   :  { %v1308_v33 = vmax.f32 %v1273_v32, 0.0 }
 0x1d5   :  { %v1099_v9 = vpop.f32.mrf.mxu2  ;;  %v1187_v56 = vpop.f32.mrf.mxu3 }
 0x1d6   :  { %1340 = vst.msk [vmem:[%s2805_s3 + $0xe8] sm:$0xff] %vm1310_vm0, %v1308_v33  ;;  %v1100_v41 = vadd.f32 %v1099_v9, %v1012_v34  ;;  %v1013_v35 = vpop.f32.mrf.mxu1  ;;  %v1277_v27 = vpop.f32.mrf.mxu0 }
 0x1d8   :  { %v1188_v14 = vadd.f32 %v1187_v56, %v1100_v41 }
 0x1da   :  { %v1276_v8 = vadd.f32 %v1275_v26, %v1188_v14 }
 0x1dc   :  { %v1309_v59 = vmax.f32 %v1276_v8, 0.0 }
 0x1dd   :  { %v1101_v36 = vpop.f32.mrf.mxu2  ;;  %v1189_v38 = vpop.f32.mrf.mxu3 }
 0x1de   :  { %1341 = vst.msk [vmem:[%s2805_s3 + $0xf0] sm:$0xff] %vm1310_vm0, %v1309_v59 }

// kernel: mft_forward.11
= control target key start
LH: loop header
LB: loop body
LE: loop exit
PB: predicated region body
PF: predicated region fallthrough
CT: control target
= control target key end

     0   :  { %vm1659_vm7 = vcmask 523264   ;;  %s3253_s1 = inlined_call_operand.vmem [shape: bf16[128,64], index: 1, kind: input, shape index: {}]   ;;  %s3254_s2 = inlined_call_operand.vmem [shape: f32[1,64], index: 2, kind: input, shape index: {}]   ;;  %s3255_s0 = inlined_call_operand.vmem [shape: bf16[248,128], index: 0, kind: input, shape index: {}]   ;;  %s3256_s3 = inlined_call_operand.vmem [shape: f32[248,64], index: 3, kind: output, shape index: {}]  }
   0x1   :  { %v1840_v0 = vld [vmem:[%s3253_s1 + $0x38] sm:$0xff]  ;;  %v1839_v1 = vld [vmem:[%s3253_s1 + $0x30] sm:$0xff]  ;;  %v1838_v2 = vld [vmem:[%s3253_s1 + $0x28] sm:$0xff] }
   0x2   :  { %207 = vmatpush.bf16.msra.mxu0 %v1840_v0  ;;  %1841 = vmatpush.bf16.msra.mxu1 %v1840_v0  ;;  %v1837_v3 = vld [vmem:[%s3253_s1 + $0x20] sm:$0xff]  ;;  %v1836_v4 = vld [vmem:[%s3253_s1 + $0x18] sm:$0xff]  ;;  %v1835_v5 = vld [vmem:[%s3253_s1 + $0x10] sm:$0xff] }
   0x3   :  { %1842 = vmatpush.bf16.msra.mxu2 %v1840_v0  ;;  %1843 = vmatpush.bf16.msra.mxu3 %v1840_v0  ;;  %v1834_v6 = vld [vmem:[%s3253_s1 + $0x8] sm:$0xff]  ;;  %v1833_v7 = vld [vmem:[%s3253_s1] sm:$0xff]  ;;  %v1820_v16 = vld [vmem:[%s3255_s0 + $0x10] sm:$0xff] }
   0x4   :  { %v1818_v8 = vld [vmem:[%s3255_s0] sm:$0xff]  ;;  %v1819_v12 = vld [vmem:[%s3255_s0 + $0x8] sm:$0xff]  ;;  %v1824_v17 = vld [vmem:[%s3255_s0 + $0x30] sm:$0xff] }
   0x5   :  { %v1822_v9 = vld [vmem:[%s3255_s0 + $0x20] sm:$0xff]  ;;  %v1823_v13 = vld [vmem:[%s3255_s0 + $0x28] sm:$0xff]  ;;  %v1828_v18 = vld [vmem:[%s3255_s0 + $0x50] sm:$0xff] }
   0x6   :  { %208 = vmatpush.bf16.msra.mxu0 %v1839_v1  ;;  %1844 = vmatpush.bf16.msra.mxu1 %v1839_v1  ;;  %v1826_v10 = vld [vmem:[%s3255_s0 + $0x40] sm:$0xff]  ;;  %v1827_v14 = vld [vmem:[%s3255_s0 + $0x48] sm:$0xff]  ;;  %v1832_v19 = vld [vmem:[%s3255_s0 + $0x70] sm:$0xff] }
   0x7   :  { %1845 = vmatpush.bf16.msra.mxu2 %v1839_v1  ;;  %1846 = vmatpush.bf16.msra.mxu3 %v1839_v1  ;;  %v1830_v11 = vld [vmem:[%s3255_s0 + $0x60] sm:$0xff]  ;;  %v1831_v15 = vld [vmem:[%s3255_s0 + $0x68] sm:$0xff]  ;;  %v44_v20 = vld [vmem:[%s3255_s0 + $0x78] sm:$0xf] }
   0x8   :  { %v126_v21 = vunpack.c.l.b16 %v44_v20  ;;  %v1821_v22 = vld [vmem:[%s3255_s0 + $0x18] sm:$0xff]  ;;  %v2025_v26 = vld [vmem:[%s3254_s2] ss:$0 sm:$0xff] }
   0x9   :  { %v1825_v23 = vld [vmem:[%s3255_s0 + $0x38] sm:$0xff] }
   0xa   :  { %209 = vmatpush.bf16.msra.mxu0 %v1838_v2  ;;  %1847 = vmatpush.bf16.msra.mxu1 %v1838_v2  ;;  %v1829_v24 = vld [vmem:[%s3255_s0 + $0x58] sm:$0xff]  ;;  %v142_v25 = vpack.c.b16 %v126_v21, %v126_v21 }
   0xb   :  { %1848 = vmatpush.bf16.msra.mxu2 %v1838_v2  ;;  %1849 = vmatpush.bf16.msra.mxu3 %v1838_v2 }
   0xe   :  { %210 = vmatpush.bf16.msra.mxu0 %v1837_v3  ;;  %1850 = vmatpush.bf16.msra.mxu1 %v1837_v3 }
   0xf   :  { %1851 = vmatpush.bf16.msra.mxu2 %v1837_v3  ;;  %1852 = vmatpush.bf16.msra.mxu3 %v1837_v3 }
  0x12   :  { %211 = vmatpush.bf16.msra.mxu0 %v1836_v4  ;;  %1853 = vmatpush.bf16.msra.mxu1 %v1836_v4 }
  0x13   :  { %1854 = vmatpush.bf16.msra.mxu2 %v1836_v4  ;;  %1855 = vmatpush.bf16.msra.mxu3 %v1836_v4 }
  0x16   :  { %212 = vmatpush.bf16.msra.mxu0 %v1835_v5  ;;  %1856 = vmatpush.bf16.msra.mxu1 %v1835_v5 }
  0x17   :  { %1857 = vmatpush.bf16.msra.mxu2 %v1835_v5  ;;  %1858 = vmatpush.bf16.msra.mxu3 %v1835_v5 }
  0x1a   :  { %213 = vmatpush.bf16.msra.mxu0 %v1834_v6  ;;  %1859 = vmatpush.bf16.msra.mxu1 %v1834_v6 }
  0x1b   :  { %1860 = vmatpush.bf16.msra.mxu2 %v1834_v6  ;;  %1861 = vmatpush.bf16.msra.mxu3 %v1834_v6 }
  0x1e   :  { %214 = vmatpush.bf16.msra.mxu0 %v1833_v7  ;;  %1862 = vmatpush.bf16.msra.mxu1 %v1833_v7 }
  0x1f   :  { %1863 = vmatpush.bf16.msra.mxu2 %v1833_v7  ;;  %1864 = vmatpush.bf16.msra.mxu3 %v1833_v7 }
  0x21   :  { %215 = vmatmul.bf16.vlgmr.msra.gmra.mxu0 %v1818_v8  ;;  %235 = vmatmul.bf16.vlgmr.msra.gmra.mxu1 %v1822_v9 }
  0x22   :  { %255 = vmatmul.bf16.vlgmr.msra.gmra.mxu2 %v1826_v10  ;;  %275 = vmatmul.bf16.vlgmr.msra.gmra.mxu3 %v1830_v11 }
  0x31   :  { %220 = vmatmul.bf16.gmra.mxu0 %v1819_v12  ;;  %240 = vmatmul.bf16.gmra.mxu1 %v1823_v13 }
  0x32   :  { %260 = vmatmul.bf16.gmra.mxu2 %v1827_v14  ;;  %280 = vmatmul.bf16.gmra.mxu3 %v1831_v15 }
  0x41   :  { %225 = vmatmul.bf16.gmra.mxu0 %v1820_v16  ;;  %245 = vmatmul.bf16.gmra.mxu1 %v1824_v17 }
  0x42   :  { %265 = vmatmul.bf16.gmra.mxu2 %v1828_v18  ;;  %285 = vmatmul.bf16.gmra.mxu3 %v1832_v19 }
  0x51   :  { %230 = vmatmul.bf16.gmra.mxu0 %v1821_v22  ;;  %250 = vmatmul.bf16.gmra.mxu1 %v1825_v23 }
  0x52   :  { %270 = vmatmul.bf16.gmra.mxu2 %v1829_v24  ;;  %290 = vmatmul.bf16.gmra.mxu3 %v142_v25 }
  0x9e   :  { %v216_v27 = vpop.f32.mrf.mxu0  ;;  %v236_v28 = vpop.f32.mrf.mxu1 }
  0x9f   :  { %v2028_v29 = vadd.f32 %v2025_v26, %v216_v27  ;;  %v2031_v30 = vadd.f32 %v2025_v26, %v236_v28 }
  0xa1   :  { %v2034_v31 = vmul.f32 0.70710677, %v2028_v29  ;;  %v2037_v32 = vmul.f32 0.70710677, %v2031_v30 }
  0xa3   :  { %v357_v33 = vmul.f32 %v2034_v31, %v2034_v31  ;;  %v677_v34 = vmul.f32 %v2037_v32, %v2037_v32 }
  0xa5   :  { %v358_v35 = vmin.f32 %v357_v33, 16.0  ;;  %v2043_v36 = vmin.f32 %v677_v34, 16.0  ;;  %v256_v37 = vpop.f32.mrf.mxu2  ;;  %v276_v38 = vpop.f32.mrf.mxu3 }
  0xa6   :  { %v2046_v39 = vadd.f32 %v2025_v26, %v256_v37  ;;  %v2049_v40 = vadd.f32 %v2025_v26, %v276_v38  ;;  %v218_v55 = vpop.f32.mrf.mxu0 }
  0xa7   :  { %v359_v41 = vmul.f32 2.1237322e-06, %v358_v35  ;;  %v370_v42 = vmul.f32 3.8918573e-05, %v358_v35  ;;  %v679_v43 = vmul.f32 2.1237322e-06, %v2043_v36  ;;  %v219_v1 = vadd.f32 %v2025_v26, %v218_v55 }
  0xa8   :  { %v690_v44 = vmul.f32 3.8918573e-05, %v2043_v36  ;;  %v2054_v45 = vmul.f32 0.70710677, %v2046_v39  ;;  %v2059_v51 = vmul.f32 0.70710677, %v2049_v40 }
  0xa9   :  { %v360_v46 = vadd.f32 0.00028619796, %v359_v41  ;;  %v371_v47 = vadd.f32 0.001143296, %v370_v42  ;;  %v680_v48 = vadd.f32 0.00028619796, %v679_v43 }
  0xaa   :  { %v691_v49 = vadd.f32 0.001143296, %v690_v44  ;;  %v997_v50 = vmul.f32 %v2054_v45, %v2054_v45  ;;  %v1317_v58 = vmul.f32 %v2059_v51, %v2059_v51  ;;  %v2076_v15 = vmul.f32 0.70710677, %v219_v1 }
  0xab   :  { %v361_v52 = vmul.f32 %v360_v46, %v358_v35  ;;  %v372_v53 = vmul.f32 %v371_v47, %v358_v35  ;;  %v681_v54 = vmul.f32 %v680_v48, %v2043_v36 }
  0xac   :  { %v692_v56 = vmul.f32 %v691_v49, %v2043_v36  ;;  %v2063_v57 = vmin.f32 %v997_v50, 16.0  ;;  %v2071_v5 = vmin.f32 %v1317_v58, 16.0  ;;  %v397_v43 = vmul.f32 %v2076_v15, %v2076_v15 }
  0xad   :  { %v362_v59 = vadd.f32 0.0036580483, %v361_v52  ;;  %v373_v60 = vadd.f32 0.014752088, %v372_v53  ;;  %v682_v61 = vadd.f32 0.0036580483, %v681_v54 }
  0xae   :  { %v693_v62 = vadd.f32 0.014752088, %v692_v56  ;;  %v999_v63 = vmul.f32 2.1237322e-06, %v2063_v57  ;;  %v1010_v0 = vmul.f32 3.8918573e-05, %v2063_v57  ;;  %v238_v56 = vpop.f32.mrf.mxu1 }
  0xaf   :  { %v363_v2 = vmul.f32 %v362_v59, %v358_v35  ;;  %v374_v3 = vmul.f32 %v373_v60, %v358_v35  ;;  %v683_v4 = vmul.f32 %v682_v61, %v2043_v36  ;;  %v1319_v19 = vmul.f32 2.1237322e-06, %v2071_v5 }
  0xb0   :  { %v694_v6 = vmul.f32 %v693_v62, %v2043_v36  ;;  %v1000_v7 = vadd.f32 0.00028619796, %v999_v63  ;;  %v1011_v8 = vadd.f32 0.001143296, %v1010_v0  ;;  %v1330_v23 = vmul.f32 3.8918573e-05, %v2071_v5 }
  0xb1   :  { %v364_v9 = vadd.f32 0.05243302, %v363_v2  ;;  %v375_v10 = vadd.f32 0.112945676, %v374_v3  ;;  %v684_v11 = vadd.f32 0.05243302, %v683_v4  ;;  %v2115_v3 = vadd.f32 %v2025_v26, %v238_v56 }
  0xb2   :  { %v695_v12 = vadd.f32 0.112945676, %v694_v6  ;;  %v1001_v13 = vmul.f32 %v1000_v7, %v2063_v57  ;;  %v1012_v14 = vmul.f32 %v1011_v8, %v2063_v57  ;;  %v1320_v37 = vadd.f32 0.00028619796, %v1319_v19 }
  0xb3   :  { %v365_v16 = vmul.f32 %v364_v9, %v358_v35  ;;  %v376_v17 = vmul.f32 %v375_v10, %v358_v35  ;;  %v685_v18 = vmul.f32 %v684_v11, %v2043_v36  ;;  %v1331_v42 = vadd.f32 0.001143296, %v1330_v23 }
  0xb4   :  { %v696_v20 = vmul.f32 %v695_v12, %v2043_v36  ;;  %v1002_v21 = vadd.f32 0.0036580483, %v1001_v13  ;;  %v1013_v22 = vadd.f32 0.014752088, %v1012_v14  ;;  %v1321_v48 = vmul.f32 %v1320_v37, %v2071_v5 }
  0xb5   :  { %v366_v24 = vadd.f32 0.18741608, %v365_v16  ;;  %v377_v25 = vadd.f32 0.4994258, %v376_v17  ;;  %v686_v27 = vadd.f32 0.18741608, %v685_v18  ;;  %v1332_v55 = vmul.f32 %v1331_v42, %v2071_v5 }
  0xb6   :  { %v697_v28 = vadd.f32 0.4994258, %v696_v20  ;;  %v1003_v33 = vmul.f32 %v1002_v21, %v2063_v57  ;;  %v1014_v34 = vmul.f32 %v1013_v22, %v2063_v57  ;;  %v2089_v49 = vmul.f32 0.5, %v2028_v29  ;;  %v258_v29 = vpop.f32.mrf.mxu2 }
  0xb7   :  { %v367_v38 = vmul.f32 %v366_v24, %v358_v35  ;;  %v378_v41 = vmul.f32 %v377_v25, %v358_v35  ;;  %v687_v52 = vmul.f32 %v686_v27, %v2043_v36  ;;  %v1322_v59 = vadd.f32 0.0036580483, %v1321_v48 }
  0xb8   :  { %v698_v44 = vmul.f32 %v697_v28, %v2043_v36  ;;  %v1004_v46 = vadd.f32 0.05243302, %v1003_v33  ;;  %v1015_v47 = vadd.f32 0.112945676, %v1014_v34  ;;  %v2100_v60 = vmin.f32 %v397_v43, 16.0  ;;  %v278_v43 = vpop.f32.mrf.mxu3 }
  0xb9   :  { %v2091_v50 = vadd.f32 1.0, %v378_v41  ;;  %v368_v58 = vadd.f32 1.1283791, %v367_v38  ;;  %v2103_v61 = vmul.f32 0.5, %v2031_v30  ;;  %v2107_v36 = vmul.f32 0.5, %v2046_v39 }
  0xba   :  { %v2094_v53 = vadd.f32 1.0, %v698_v44  ;;  %v1005_v35 = vmul.f32 %v1004_v46, %v2063_v57  ;;  %v1016_v54 = vmul.f32 %v1015_v47, %v2063_v57  ;;  %v2110_v62 = vmul.f32 0.5, %v2049_v40 }
  0xbb   :  { %1866 = vrcp.f32 %v2091_v50  ;;  %v688_v63 = vadd.f32 1.1283791, %v687_v52  ;;  %v2112_v2 = vmul.f32 0.5, %v219_v1  ;;  %v389_v4 = vand.u32 2147483647, %v2091_v50 }
  0xbc   :  { %1868 = vrcp.f32 %v2094_v53  ;;  %v1006_v0 = vadd.f32 0.18741608, %v1005_v35  ;;  %v1017_v6 = vadd.f32 0.4994258, %v1016_v54  ;;  %v1333_v30 = vadd.f32 0.014752088, %v1332_v55 }
  0xbd   :  { %v2119_v7 = vadd.f32 %v2025_v26, %v258_v29  ;;  %v369_v39 = vmul.f32 %v368_v58, %v2034_v31  ;;  %v391_v8 = vand.u32 2147483648, %v2091_v50  ;;  %v1323_v40 = vmul.f32 %v1322_v59, %v2071_v5 }
  0xbe   :  { %v399_v9 = vmul.f32 2.1237322e-06, %v2100_v60  ;;  %vm385_vm0 = vweird.f32 %v2091_v50  ;;  %v709_v1 = vand.u32 2147483647, %v2094_v53  ;;  %v1018_v10 = vmul.f32 %v1017_v6, %v2063_v57 }
  0xbf   :  { %v1334_v11 = vmul.f32 %v1333_v30, %v2071_v5  ;;  %v689_v13 = vmul.f32 %v688_v63, %v2037_v32  ;;  %vm705_vm1 = vweird.f32 %v2094_v53  ;;  %v711_v31 = vand.u32 2147483648, %v2094_v53 }
  0xc0   :  { %v1007_v14 = vmul.f32 %v1006_v0, %v2063_v57  ;;  %vm2134_vm2 = vcmp.eq.f32.partialorder %v389_v4, 8.507059e+37  ;;  %v2138_v19 = vadd.f32 1.0, %v1018_v10  ;;  %v400_v20 = vadd.f32 0.00028619796, %v399_v9 }
  0xc1   :  { %v1867_v12 = vpop.eup %1866  ;;  %v410_v21 = vmul.f32 3.8918573e-05, %v2100_v60  ;;  %v392_v22 = vor.u32 1.1754944e-38, %v391_v8  ;;  %v1324_v23 = vadd.f32 0.05243302, %v1323_v40  ;;  %vm2142_vm3 = vcmp.eq.f32.partialorder %v709_v1, 8.507059e+37 }
  0xc2   :  { %v1869_v16 = vpop.eup %1868  ;;  %v381_v17 = vmul.f32 %v1867_v12, %v2091_v50  ;;  %v1335_v24 = vadd.f32 0.112945676, %v1334_v11  ;;  %1870 = vrcp.f32 %v2138_v19  ;;  %v2148_v27 = vmul.f32 0.70710677, %v2115_v3 }
  0xc3   :  { %v701_v32 = vmul.f32 %v1869_v16, %v2094_v53  ;;  %v712_v33 = vor.u32 1.1754944e-38, %v711_v31  ;;  %v1008_v34 = vadd.f32 1.1283791, %v1007_v14  ;;  %vm386_vm4 = vweird.f32 %v1867_v12 }
  0xc4   :  { %v382_v25 = vsub.f32 1.0, %v381_v17  ;;  %v1336_v37 = vmul.f32 %v1335_v24, %v2071_v5  ;;  %v401_v41 = vmul.f32 %v400_v20, %v2100_v60  ;;  %v411_v42 = vadd.f32 0.001143296, %v410_v21  ;;  %vm387_vm6 = vmor %vm385_vm0, %vm386_vm4 }
  0xc5   :  { %v702_v28 = vsub.f32 1.0, %v701_v32  ;;  %vm706_vm5 = vweird.f32 %v1869_v16  ;;  %v1325_v46 = vmul.f32 %v1324_v23, %v2071_v5  ;;  %v717_v54 = vmul.f32 %v2148_v27, %v2148_v27 }
  0xc6   :  { %v383_v38 = vmul.f32 %v1867_v12, %v382_v25  ;;  %v1337_v47 = vadd.f32 0.4994258, %v1336_v37  ;;  %v402_v52 = vadd.f32 0.0036580483, %v401_v41  ;;  %v412_v35 = vmul.f32 %v411_v42, %v2100_v60  ;;  %vm707_vm8 = vmor %vm705_vm1, %vm706_vm5 }
  0xc7   :  { %v703_v44 = vmul.f32 %v1869_v16, %v702_v28  ;;  %v1029_v56 = vand.u32 2147483647, %v2138_v19  ;;  %v2161_v59 = vadd.f32 %v2025_v26, %v278_v43  ;;  %v1031_v0 = vand.u32 2147483648, %v2138_v19 }
  0xc8   :  { %v384_v48 = vadd.f32 %v1867_v12, %v383_v38  ;;  %v1338_v58 = vmul.f32 %v1337_v47, %v2071_v5  ;;  %v1871_v29 = vpop.eup %1870  ;;  %v403_v50 = vmul.f32 %v402_v52, %v2100_v60  ;;  %v413_v4 = vadd.f32 0.014752088, %v412_v35 }
  0xc9   :  { %v704_v55 = vadd.f32 %v1869_v16, %v703_v44  ;;  %v1021_v8 = vmul.f32 %v1871_v29, %v2138_v19  ;;  %v1326_v40 = vadd.f32 0.18741608, %v1325_v46  ;;  %v2175_v53 = vmin.f32 %v717_v54, 16.0 }
  0xca   :  { %v388_v63 = vsel %vm387_vm6, %v1867_v12, %v384_v48  ;;  %v2173_v10 = vadd.f32 1.0, %v1338_v58  ;;  %v404_v31 = vadd.f32 0.05243302, %v403_v50  ;;  %v414_v14 = vmul.f32 %v413_v4, %v2100_v60 }
  0xcb   :  { %v393_v6 = vsel %vm2134_vm2, %v392_v22, %v388_v63  ;;  %v708_v30 = vsel %vm707_vm8, %v1869_v16, %v704_v55  ;;  %v1022_v12 = vsub.f32 1.0, %v1021_v8  ;;  %v1009_v18 = vmul.f32 %v1008_v34, %v2054_v45 }
  0xcc   :  { %v394_v9 = vmul.f32 %v393_v6, %v369_v39  ;;  %v713_v1 = vsel %vm2142_vm3, %v712_v33, %v708_v30  ;;  %vm1025_vm9 = vweird.f32 %v2138_v19  ;;  %1872 = vrcp.f32 %v2173_v10 }
  0xcd   :  { %v714_v11 = vmul.f32 %v713_v1, %v689_v13  ;;  %v1023_v16 = vmul.f32 %v1871_v29, %v1022_v12  ;;  %vm1026_vm10 = vweird.f32 %v1871_v29  ;;  %v1327_v20 = vmul.f32 %v1326_v40, %v2071_v5 }
  0xce   :  { %v1787_v17 = vclamps-f32 %v394_v9, 1.0  ;;  %vm2182_vm11 = vcmp.eq.f32.partialorder %v1029_v56, 8.507059e+37  ;;  %v415_v13 = vadd.f32 0.112945676, %v414_v14  ;;  %v719_v32 = vmul.f32 2.1237322e-06, %v2175_v53  ;;  %vm1027_vm12 = vmor %vm1025_vm9, %vm1026_vm10  ;;  %v221_v9 = vpop.f32.mrf.mxu0 }
  0xcf   :  { %v1795_v39 = vclamps-f32 %v714_v11, 1.0  ;;  %v1024_v24 = vadd.f32 %v1871_v29, %v1023_v16  ;;  %v1032_v45 = vor.u32 1.1754944e-38, %v1031_v0  ;;  %v405_v25 = vmul.f32 %v404_v31, %v2100_v60 }
  0xd0   :  { %v1597_v21 = vadd.f32 1.0, %v1787_v17  ;;  %v416_v5 = vmul.f32 %v415_v13, %v2100_v60  ;;  %v720_v28 = vadd.f32 0.00028619796, %v719_v32  ;;  %v730_v33 = vmul.f32 3.8918573e-05, %v2175_v53 }
  0xd1   :  { %v1605_v23 = vadd.f32 1.0, %v1795_v39  ;;  %v1028_v37 = vsel %vm1027_vm12, %v1871_v29, %v1024_v24  ;;  %v1328_v38 = vadd.f32 1.1283791, %v1327_v20  ;;  %v2195_v41 = vmul.f32 0.70710677, %v2119_v7 }
  0xd2   :  { %v1628_v57 = vmul.f32 %v1597_v21, %v2089_v49  ;;  %v1873_v42 = vpop.eup %1872  ;;  %v1033_v49 = vsel %vm2182_vm11, %v1032_v45, %v1028_v37  ;;  %v417_v19 = vadd.f32 0.4994258, %v416_v5  ;;  %v721_v43 = vmul.f32 %v720_v28, %v2175_v53 }
  0xd3   :  { %v1636_v34 = vmul.f32 %v1605_v23, %v2103_v61  ;;  %v731_v44 = vadd.f32 0.001143296, %v730_v33  ;;  %v1034_v61 = vmul.f32 %v1033_v49, %v1009_v18  ;;  %v1341_v46 = vmul.f32 %v1873_v42, %v2173_v10 }
  0xd4   :  { %1660 = vst.msk [vmem:[%s3256_s3] sm:$0xff] %vm1659_vm7, %v1628_v57  ;;  %v1349_v47 = vand.u32 2147483647, %v2173_v10  ;;  %v406_v48 = vadd.f32 0.18741608, %v405_v25  ;;  %v418_v52 = vmul.f32 %v417_v19, %v2100_v60  ;;  %v1037_v55 = vmul.f32 %v2195_v41, %v2195_v41 }
  0xd5   :  { %1668 = vst.msk [vmem:[%s3256_s3 + $0x40] sm:$0xff] %vm1659_vm7, %v1636_v34  ;;  %v722_v35 = vadd.f32 0.0036580483, %v721_v43  ;;  %v732_v54 = vmul.f32 %v731_v44, %v2175_v53  ;;  %v1803_v56 = vclamps-f32 %v1034_v61, 1.0  ;;  %v1329_v58 = vmul.f32 %v1328_v38, %v2059_v51 }
  0xd6   :  { %v1342_v29 = vsub.f32 1.0, %v1341_v46  ;;  %v1351_v63 = vand.u32 2147483648, %v2173_v10  ;;  %v2216_v0 = vadd.f32 1.0, %v418_v52  ;;  %v2219_v6 = vmin.f32 %v1037_v55, 16.0 }
  0xd7   :  { %v723_v50 = vmul.f32 %v722_v35, %v2175_v53  ;;  %v733_v4 = vadd.f32 0.014752088, %v732_v54  ;;  %v1613_v30 = vadd.f32 1.0, %v1803_v56  ;;  %vm1346_vm13 = vweird.f32 %v1873_v42 }
  0xd8   :  { %v1343_v8 = vmul.f32 %v1873_v42, %v1342_v29  ;;  %v2222_v40 = vmul.f32 0.70710677, %v2161_v59  ;;  %vm1345_vm14 = vweird.f32 %v2173_v10  ;;  %vm2225_vm15 = vcmp.eq.f32.partialorder %v1349_v47, 8.507059e+37 }
  0xd9   :  { %v407_v1 = vmul.f32 %v406_v48, %v2100_v60  ;;  %1874 = vrcp.f32 %v2216_v0  ;;  %v1644_v11 = vmul.f32 %v1613_v30, %v2107_v36  ;;  %v724_v31 = vadd.f32 0.05243302, %v723_v50  ;;  %vm1347_vm0 = vmor %vm1345_vm14, %vm1346_vm13 }
  0xda   :  { %v1344_v12 = vadd.f32 %v1873_v42, %v1343_v8  ;;  %v734_v14 = vmul.f32 %v733_v4, %v2175_v53  ;;  %v1352_v17 = vor.u32 1.1754944e-38, %v1351_v63  ;;  %v1039_v18 = vmul.f32 2.1237322e-06, %v2219_v6 }
  0xdb   :  { %v1050_v10 = vmul.f32 3.8918573e-05, %v2219_v6  ;;  %v2236_v39 = vadd.f32 %v2025_v26, %v221_v9  ;;  %1676 = vst.msk [vmem:[%s3256_s3 + $0x80] sm:$0xff] %vm1659_vm7, %v1644_v11  ;;  %v725_v36 = vmul.f32 %v724_v31, %v2175_v53  ;;  %v1357_v20 = vmul.f32 %v2222_v40, %v2222_v40  ;;  %v241_v31 = vpop.f32.mrf.mxu1 }
  0xdc   :  { %v1348_v60 = vsel %vm1347_vm0, %v1873_v42, %v1344_v12  ;;  %v735_v16 = vadd.f32 0.112945676, %v734_v14  ;;  %v408_v22 = vadd.f32 1.1283791, %v407_v1  ;;  %v1040_v13 = vadd.f32 0.00028619796, %v1039_v18 }
  0xdd   :  { %v1353_v21 = vsel %vm2225_vm15, %v1352_v17, %v1348_v60  ;;  %v1051_v32 = vadd.f32 0.001143296, %v1050_v10  ;;  %v2248_v24 = vmul.f32 0.5, %v2115_v3  ;;  %v2251_v25 = vmin.f32 %v1357_v20, 16.0 }
  0xde   :  { %v1354_v23 = vmul.f32 %v1353_v21, %v1329_v58  ;;  %v736_v45 = vmul.f32 %v735_v16, %v2175_v53  ;;  %v429_v5 = vand.u32 2147483647, %v2216_v0  ;;  %v1041_v28 = vmul.f32 %v1040_v13, %v2219_v6 }
  0xdf   :  { %v1875_v57 = vpop.eup %1874  ;;  %v1052_v33 = vmul.f32 %v1051_v32, %v2219_v6  ;;  %v2257_v34 = vmul.f32 0.70710677, %v2236_v39  ;;  %v431_v3 = vand.u32 2147483648, %v2216_v0  ;;  %v726_v42 = vadd.f32 0.18741608, %v725_v36 }
  0xe0   :  { %v1811_v37 = vclamps-f32 %v1354_v23, 1.0  ;;  %v421_v38 = vmul.f32 %v1875_v57, %v2216_v0  ;;  %v409_v49 = vmul.f32 %v408_v22, %v2076_v15  ;;  %v737_v19 = vadd.f32 0.4994258, %v736_v45 }
  0xe1   :  { %v1042_v43 = vadd.f32 0.0036580483, %v1041_v28  ;;  %v1053_v44 = vadd.f32 0.014752088, %v1052_v33  ;;  %v1359_v47 = vmul.f32 2.1237322e-06, %v2251_v25  ;;  %v437_v48 = vmul.f32 %v2257_v34, %v2257_v34 }
  0xe2   :  { %v1621_v61 = vadd.f32 1.0, %v1811_v37  ;;  %v422_v46 = vsub.f32 1.0, %v421_v38  ;;  %v738_v52 = vmul.f32 %v737_v19, %v2175_v53  ;;  %v1370_v55 = vmul.f32 3.8918573e-05, %v2251_v25  ;;  %v261_v19 = vpop.f32.mrf.mxu2 }
  0xe3   :  { %v1043_v35 = vmul.f32 %v1042_v43, %v2219_v6  ;;  %v1054_v54 = vmul.f32 %v1053_v44, %v2219_v6  ;;  %vm426_vm1 = vweird.f32 %v1875_v57  ;;  %v1360_v58 = vadd.f32 0.00028619796, %v1359_v47 }
  0xe4   :  { %v1652_v15 = vmul.f32 %v1621_v61, %v2110_v62  ;;  %v423_v56 = vmul.f32 %v1875_v57, %v422_v46  ;;  %v727_v29 = vmul.f32 %v726_v42, %v2175_v53  ;;  %v2271_v63 = vadd.f32 1.0, %v738_v52 }
  0xe5   :  { %v1044_v50 = vadd.f32 0.05243302, %v1043_v35  ;;  %v1055_v4 = vadd.f32 0.112945676, %v1054_v54  ;;  %vm425_vm2 = vweird.f32 %v2216_v0  ;;  %v1361_v8 = vmul.f32 %v1360_v58, %v2251_v25 }
  0xe6   :  { %1684 = vst.msk [vmem:[%s3256_s3 + $0xc0] sm:$0xff] %vm1659_vm7, %v1652_v15  ;;  %v424_v30 = vadd.f32 %v1875_v57, %v423_v56  ;;  %v1371_v62 = vadd.f32 0.001143296, %v1370_v55  ;;  %vm427_vm3 = vmor %vm425_vm2, %vm426_vm1  ;;  %vm430_vm4 = vcmp.eq.f32.partialorder %v429_v5, 8.507059e+37  ;;  %v432_v9 = vor.u32 1.1754944e-38, %v431_v3 }
  0xe7   :  { %1876 = vrcp.f32 %v2271_v63  ;;  %v2280_v53 = vmin.f32 %v437_v48, 16.0  ;;  %v1045_v1 = vmul.f32 %v1044_v50, %v2219_v6  ;;  %v1056_v11 = vmul.f32 %v1055_v4, %v2219_v6 }
  0xe8   :  { %v428_v51 = vsel %vm427_vm3, %v1875_v57, %v424_v30  ;;  %v1362_v12 = vadd.f32 0.0036580483, %v1361_v8  ;;  %v728_v17 = vadd.f32 1.1283791, %v727_v29  ;;  %v2285_v0 = vmul.f32 0.5, %v2119_v7 }
  0xe9   :  { %v433_v14 = vsel %vm430_vm4, %v432_v9, %v428_v51  ;;  %v1372_v18 = vmul.f32 %v1371_v62, %v2251_v25  ;;  %v1046_v60 = vadd.f32 0.18741608, %v1045_v1  ;;  %v1057_v36 = vadd.f32 0.4994258, %v1056_v11 }
  0xea   :  { %v434_v10 = vmul.f32 %v433_v14, %v409_v49  ;;  %v1363_v16 = vmul.f32 %v1362_v12, %v2251_v25  ;;  %v439_v21 = vmul.f32 2.1237322e-06, %v2280_v53  ;;  %v450_v22 = vmul.f32 3.8918573e-05, %v2280_v53 }
  0xeb   :  { %v1373_v20 = vadd.f32 0.014752088, %v1372_v18  ;;  %v2292_v13 = vadd.f32 %v2025_v26, %v241_v31  ;;  %v1058_v23 = vmul.f32 %v1057_v36, %v2219_v6  ;;  %v2296_v7 = vmul.f32 0.5, %v2161_v59 }
  0xec   :  { %v1788_v32 = vclamps-f32 %v434_v10, 1.0  ;;  %v1364_v45 = vadd.f32 0.05243302, %v1363_v16  ;;  %v2300_v28 = vmul.f32 0.5, %v2236_v39  ;;  %v440_v33 = vadd.f32 0.00028619796, %v439_v21 }
  0xed   :  { %v1877_v57 = vpop.eup %1876  ;;  %v1374_v5 = vmul.f32 %v1373_v20, %v2251_v25  ;;  %v451_v37 = vadd.f32 0.001143296, %v450_v22  ;;  %v729_v3 = vmul.f32 %v728_v17, %v2148_v27  ;;  %v1047_v49 = vmul.f32 %v1046_v60, %v2219_v6 }
  0xee   :  { %v1598_v38 = vadd.f32 1.0, %v1788_v32  ;;  %v741_v42 = vmul.f32 %v1877_v57, %v2271_v63  ;;  %v2305_v43 = vadd.f32 1.0, %v1058_v23  ;;  %v441_v44 = vmul.f32 %v440_v33, %v2280_v53 }
  0xef   :  { %v1375_v59 = vadd.f32 0.112945676, %v1374_v5  ;;  %v2309_v61 = vmul.f32 0.70710677, %v2292_v13  ;;  %v1365_v47 = vmul.f32 %v1364_v45, %v2251_v25  ;;  %v452_v27 = vmul.f32 %v451_v37, %v2280_v53 }
  0xf0   :  { %v1629_v39 = vmul.f32 %v1598_v38, %v2112_v2  ;;  %v742_v46 = vsub.f32 1.0, %v741_v42  ;;  %v749_v48 = vand.u32 2147483647, %v2271_v63  ;;  %v751_v6 = vand.u32 2147483648, %v2271_v63 }
  0xf1   :  { %1878 = vrcp.f32 %v2305_v43  ;;  %v2318_v52 = vadd.f32 %v2025_v26, %v261_v19  ;;  %vm746_vm5 = vweird.f32 %v1877_v57  ;;  %v1376_v35 = vmul.f32 %v1375_v59, %v2251_v25 }
  0xf2   :  { %1661 = vst.msk [vmem:[%s3256_s3 + $0x8] sm:$0xff] %vm1659_vm7, %v1629_v39  ;;  %v743_v2 = vmul.f32 %v1877_v57, %v742_v46  ;;  %v442_v54 = vadd.f32 0.0036580483, %v441_v44  ;;  %vm745_vm6 = vweird.f32 %v2271_v63  ;;  %v1048_v55 = vadd.f32 1.1283791, %v1047_v49 }
  0xf3   :  { %v453_v15 = vadd.f32 0.014752088, %v452_v27  ;;  %v757_v56 = vmul.f32 %v2309_v61, %v2309_v61  ;;  %v1366_v29 = vadd.f32 0.18741608, %v1365_v47  ;;  %v1377_v50 = vadd.f32 0.4994258, %v1376_v35  ;;  %vm747_vm8 = vmor %vm745_vm6, %vm746_vm5 }
  0xf4   :  { %v744_v58 = vadd.f32 %v1877_v57, %v743_v2  ;;  %v443_v4 = vmul.f32 %v442_v54, %v2280_v53  ;;  %vm750_vm9 = vcmp.eq.f32.partialorder %v749_v48, 8.507059e+37  ;;  %v752_v30 = vor.u32 1.1754944e-38, %v751_v6  ;;  %v281_v2 = vpop.f32.mrf.mxu3 }
  0xf5   :  { %v454_v8 = vmul.f32 %v453_v15, %v2280_v53  ;;  %v2330_v62 = vmin.f32 %v757_v56, 16.0  ;;  %v1378_v63 = vmul.f32 %v1377_v50, %v2251_v25  ;;  %v2334_v1 = vmul.f32 0.70710677, %v2318_v52 }
  0xf6   :  { %v748_v9 = vsel %vm747_vm8, %v1877_v57, %v744_v58  ;;  %v444_v51 = vadd.f32 0.05243302, %v443_v4  ;;  %v1049_v10 = vmul.f32 %v1048_v55, %v2195_v41  ;;  %v1367_v36 = vmul.f32 %v1366_v29, %v2251_v25 }
  0xf7   :  { %v1879_v11 = vpop.eup %1878  ;;  %v753_v12 = vsel %vm750_vm9, %v752_v30, %v748_v9  ;;  %v455_v31 = vadd.f32 0.112945676, %v454_v8  ;;  %v759_v14 = vmul.f32 2.1237322e-06, %v2330_v62  ;;  %v770_v17 = vmul.f32 3.8918573e-05, %v2330_v62 }
  0xf8   :  { %v754_v18 = vmul.f32 %v753_v12, %v729_v3  ;;  %v1061_v60 = vmul.f32 %v1879_v11, %v2305_v43  ;;  %v2341_v16 = vadd.f32 1.0, %v1378_v63  ;;  %v445_v20 = vmul.f32 %v444_v51, %v2280_v53 }
  0xf9   :  { %v456_v21 = vmul.f32 %v455_v31, %v2280_v53  ;;  %v760_v22 = vadd.f32 0.00028619796, %v759_v14  ;;  %v1069_v45 = vand.u32 2147483647, %v2305_v43  ;;  %v771_v57 = vadd.f32 0.001143296, %v770_v17 }
  0xfa   :  { %v1796_v32 = vclamps-f32 %v754_v18, 1.0  ;;  %v1062_v23 = vsub.f32 1.0, %v1061_v60  ;;  %vm1066_vm10 = vweird.f32 %v1879_v11  ;;  %v1071_v5 = vand.u32 2147483648, %v2305_v43 }
  0xfb   :  { %1880 = vrcp.f32 %v2341_v16  ;;  %v1077_v41 = vmul.f32 %v2334_v1, %v2334_v1  ;;  %v446_v37 = vadd.f32 0.18741608, %v445_v20  ;;  %v457_v38 = vadd.f32 0.4994258, %v456_v21 }
  0xfc   :  { %v1606_v25 = vadd.f32 1.0, %v1796_v32  ;;  %v1063_v33 = vmul.f32 %v1879_v11, %v1062_v23  ;;  %vm1065_vm11 = vweird.f32 %v2305_v43  ;;  %v1368_v3 = vadd.f32 1.1283791, %v1367_v36 }
  0xfd   :  { %v761_v42 = vmul.f32 %v760_v22, %v2330_v62  ;;  %v772_v49 = vmul.f32 %v771_v57, %v2330_v62  ;;  %v1389_v44 = vand.u32 2147483647, %v2341_v16  ;;  %v458_v39 = vmul.f32 %v457_v38, %v2280_v53  ;;  %vm1067_vm12 = vmor %vm1065_vm11, %vm1066_vm10 }
  0xfe   :  { %v1637_v19 = vmul.f32 %v1606_v25, %v2248_v24  ;;  %v1064_v59 = vadd.f32 %v1879_v11, %v1063_v33  ;;  %v1072_v46 = vor.u32 1.1754944e-38, %v1071_v5  ;;  %v2357_v48 = vmin.f32 %v1077_v41, 16.0 }
  0xff   :  { %v762_v47 = vadd.f32 0.0036580483, %v761_v42  ;;  %v773_v27 = vadd.f32 0.014752088, %v772_v49  ;;  %vm1070_vm13 = vcmp.eq.f32.partialorder %v1069_v45, 8.507059e+37  ;;  %v447_v24 = vmul.f32 %v446_v37, %v2280_v53 }
 0x100   :  { %1669 = vst.msk [vmem:[%s3256_s3 + $0x48] sm:$0xff] %vm1659_vm7, %v1637_v19  ;;  %v1068_v43 = vsel %vm1067_vm12, %v1879_v11, %v1064_v59  ;;  %v2364_v6 = vadd.f32 1.0, %v458_v39  ;;  %v1079_v56 = vmul.f32 2.1237322e-06, %v2357_v48  ;;  %v1369_v29 = vmul.f32 %v1368_v3, %v2222_v40 }
 0x101   :  { %v1881_v35 = vpop.eup %1880  ;;  %v1073_v54 = vsel %vm1070_vm13, %v1072_v46, %v1068_v43  ;;  %v763_v55 = vmul.f32 %v762_v47, %v2330_v62  ;;  %v774_v15 = vmul.f32 %v773_v27, %v2330_v62  ;;  %vm1385_vm14 = vweird.f32 %v2341_v16 }
 0x102   :  { %v1074_v58 = vmul.f32 %v1073_v54, %v1049_v10  ;;  %v1381_v50 = vmul.f32 %v1881_v35, %v2341_v16  ;;  %vm2372_vm15 = vcmp.eq.f32.partialorder %v1389_v44, 8.507059e+37  ;;  %v1391_v4 = vand.u32 2147483648, %v2341_v16  ;;  %v223_v10 = vpop.f32.mrf.mxu0 }
 0x103   :  { %1882 = vrcp.f32 %v2364_v6  ;;  %v2379_v30 = vadd.f32 %v2025_v26, %v281_v2  ;;  %v764_v63 = vadd.f32 0.05243302, %v763_v55  ;;  %v775_v51 = vadd.f32 0.112945676, %v774_v15 }
 0x104   :  { %v1804_v8 = vclamps-f32 %v1074_v58, 1.0  ;;  %v1382_v9 = vsub.f32 1.0, %v1381_v50  ;;  %vm1386_vm0 = vweird.f32 %v1881_v35  ;;  %v448_v40 = vadd.f32 1.1283791, %v447_v24 }
 0x105   :  { %v1080_v11 = vadd.f32 0.00028619796, %v1079_v56  ;;  %v1090_v12 = vmul.f32 3.8918573e-05, %v2357_v48  ;;  %v765_v17 = vmul.f32 %v764_v63, %v2330_v62  ;;  %v776_v18 = vmul.f32 %v775_v51, %v2330_v62  ;;  %vm1387_vm1 = vmor %vm1385_vm14, %vm1386_vm0 }
 0x106   :  { %v1614_v31 = vadd.f32 1.0, %v1804_v8  ;;  %v1383_v14 = vmul.f32 %v1881_v35, %v1382_v9  ;;  %v1392_v60 = vor.u32 1.1754944e-38, %v1391_v4  ;;  %v2386_v21 = vmul.f32 0.70710677, %v2379_v30 }
 0x107   :  { %v1081_v36 = vmul.f32 %v1080_v11, %v2357_v48  ;;  %v1091_v20 = vadd.f32 0.001143296, %v1090_v12  ;;  %v766_v23 = vadd.f32 0.18741608, %v765_v17  ;;  %v777_v45 = vadd.f32 0.4994258, %v776_v18 }
 0x108   :  { %v1645_v22 = vmul.f32 %v1614_v31, %v2285_v0  ;;  %v1384_v32 = vadd.f32 %v1881_v35, %v1383_v14  ;;  %v1397_v25 = vmul.f32 %v2386_v21, %v2386_v21  ;;  %v2396_v33 = vadd.f32 %v2025_v26, %v223_v10 }
 0x109   :  { %v1883_v57 = vpop.eup %1882  ;;  %v1082_v5 = vadd.f32 0.0036580483, %v1081_v36  ;;  %v1092_v41 = vmul.f32 %v1091_v20, %v2357_v48  ;;  %v449_v37 = vmul.f32 %v448_v40, %v2257_v34  ;;  %v767_v38 = vmul.f32 %v766_v23, %v2330_v62  ;;  %v243_v20 = vpop.f32.mrf.mxu1 }
 0x10a   :  { %1677 = vst.msk [vmem:[%s3256_s3 + $0x88] sm:$0xff] %vm1659_vm7, %v1645_v22  ;;  %v1388_v0 = vsel %vm1387_vm1, %v1881_v35, %v1384_v32  ;;  %v461_v16 = vmul.f32 %v1883_v57, %v2364_v6  ;;  %v778_v42 = vmul.f32 %v777_v45, %v2330_v62  ;;  %v469_v39 = vand.u32 2147483647, %v2364_v6 }
 0x10b   :  { %v1393_v3 = vsel %vm2372_vm15, %v1392_v60, %v1388_v0  ;;  %v1083_v49 = vmul.f32 %v1082_v5, %v2357_v48  ;;  %v1093_v19 = vadd.f32 0.014752088, %v1092_v41  ;;  %v2410_v46 = vmin.f32 %v1397_v25, 16.0 }
 0x10c   :  { %v1394_v59 = vmul.f32 %v1393_v3, %v1369_v29  ;;  %v462_v44 = vsub.f32 1.0, %v461_v16  ;;  %v471_v34 = vand.u32 2147483648, %v2364_v6  ;;  %v2413_v47 = vadd.f32 1.0, %v778_v42 }
 0x10d   :  { %v1084_v27 = vadd.f32 0.05243302, %v1083_v49  ;;  %v1094_v43 = vmul.f32 %v1093_v19, %v2357_v48  ;;  %vm466_vm2 = vweird.f32 %v1883_v57  ;;  %v1399_v62 = vmul.f32 2.1237322e-06, %v2410_v46 }
 0x10e   :  { %v1812_v24 = vclamps-f32 %v1394_v59, 1.0  ;;  %v463_v2 = vmul.f32 %v1883_v57, %v462_v44  ;;  %vm465_vm3 = vweird.f32 %v2364_v6  ;;  %v768_v35 = vadd.f32 1.1283791, %v767_v38  ;;  %v263_v59 = vpop.f32.mrf.mxu2 }
 0x10f   :  { %1884 = vrcp.f32 %v2413_v47  ;;  %v2420_v54 = vmul.f32 0.70710677, %v2396_v33  ;;  %v1085_v56 = vmul.f32 %v1084_v27, %v2357_v48  ;;  %v1095_v58 = vadd.f32 0.112945676, %v1094_v43  ;;  %vm467_vm4 = vmor %vm465_vm3, %vm466_vm2 }
 0x110   :  { %v1622_v55 = vadd.f32 1.0, %v1812_v24  ;;  %v464_v15 = vadd.f32 %v1883_v57, %v463_v2  ;;  %vm470_vm5 = vcmp.eq.f32.partialorder %v469_v39, 8.507059e+37  ;;  %v472_v29 = vor.u32 1.1754944e-38, %v471_v34  ;;  %v2474_v2 = vld [vmem:[%s3254_s2] ss:$0 sm:$0xff] }
 0x111   :  { %v1400_v50 = vadd.f32 0.00028619796, %v1399_v62  ;;  %v1410_v53 = vmul.f32 3.8918573e-05, %v2410_v46  ;;  %v1086_v8 = vadd.f32 0.18741608, %v1085_v56  ;;  %v1096_v9 = vmul.f32 %v1095_v58, %v2357_v48 }
 0x112   :  { %v1653_v4 = vmul.f32 %v1622_v55, %v2296_v7  ;;  %v468_v6 = vsel %vm467_vm4, %v1883_v57, %v464_v15  ;;  %v477_v11 = vmul.f32 %v2420_v54, %v2420_v54  ;;  %v2434_v31 = vmul.f32 0.5, %v2292_v13 }
 0x113   :  { %v473_v63 = vsel %vm470_vm5, %v472_v29, %v468_v6  ;;  %v1401_v51 = vmul.f32 %v1400_v50, %v2410_v46  ;;  %v1411_v40 = vadd.f32 0.001143296, %v1410_v53  ;;  %v769_v7 = vmul.f32 %v768_v35, %v2309_v61 }
 0x114   :  { %1685 = vst.msk [vmem:[%s3256_s3 + $0xc8] sm:$0xff] %vm1659_vm7, %v1653_v4  ;;  %v474_v12 = vmul.f32 %v473_v63, %v449_v37  ;;  %v1097_v14 = vadd.f32 0.4994258, %v1096_v9  ;;  %v789_v18 = vand.u32 2147483647, %v2413_v47  ;;  %v2439_v36 = vmin.f32 %v477_v11, 16.0 }
 0x115   :  { %v1885_v17 = vpop.eup %1884  ;;  %v1402_v10 = vadd.f32 0.0036580483, %v1401_v51  ;;  %v1412_v60 = vmul.f32 %v1411_v40, %v2410_v46  ;;  %v791_v23 = vand.u32 2147483648, %v2413_v47  ;;  %v1087_v13 = vmul.f32 %v1086_v8, %v2357_v48 }
 0x116   :  { %v1789_v22 = vclamps-f32 %v474_v12, 1.0  ;;  %v781_v32 = vmul.f32 %v1885_v17, %v2413_v47  ;;  %v1098_v45 = vmul.f32 %v1097_v14, %v2357_v48  ;;  %v479_v5 = vmul.f32 2.1237322e-06, %v2439_v36 }
 0x117   :  { %v1403_v61 = vmul.f32 %v1402_v10, %v2410_v46  ;;  %v1413_v57 = vadd.f32 0.014752088, %v1412_v60  ;;  %v490_v0 = vmul.f32 3.8918573e-05, %v2439_v36  ;;  %v2449_v37 = vadd.f32 %v2025_v26, %v243_v20 }
 0x118   :  { %v1599_v41 = vadd.f32 1.0, %v1789_v22  ;;  %v782_v25 = vsub.f32 1.0, %v781_v32  ;;  %v2451_v16 = vadd.f32 1.0, %v1098_v45  ;;  %v480_v42 = vadd.f32 0.00028619796, %v479_v5 }
 0x119   :  { %v1404_v38 = vadd.f32 0.05243302, %v1403_v61  ;;  %v1414_v3 = vmul.f32 %v1413_v57, %v2410_v46  ;;  %vm786_vm6 = vweird.f32 %v1885_v17  ;;  %v491_v19 = vadd.f32 0.001143296, %v490_v0 }
 0x11a   :  { %v1630_v48 = vmul.f32 %v1599_v41, %v2300_v28  ;;  %v783_v49 = vmul.f32 %v1885_v17, %v782_v25  ;;  %vm785_vm8 = vweird.f32 %v2413_v47  ;;  %vm2456_vm9 = vcmp.eq.f32.partialorder %v789_v18, 8.507059e+37 }
 0x11b   :  { %v1088_v26 = vadd.f32 1.1283791, %v1087_v13  ;;  %1886 = vrcp.f32 %v2451_v16  ;;  %v1405_v28 = vmul.f32 %v1404_v38, %v2410_v46  ;;  %v1415_v34 = vadd.f32 0.112945676, %v1414_v3  ;;  %vm787_vm10 = vmor %vm785_vm8, %vm786_vm6 }
 0x11c   :  { %1662 = vst.msk [vmem:[%s3256_s3 + $0x10] sm:$0xff] %vm1659_vm7, %v1630_v48  ;;  %v784_v39 = vadd.f32 %v1885_v17, %v783_v49  ;;  %v481_v27 = vmul.f32 %v480_v42, %v2439_v36  ;;  %v792_v47 = vor.u32 1.1754944e-38, %v791_v23  ;;  %v492_v43 = vmul.f32 %v491_v19, %v2439_v36 }
 0x11d   :  { %v2469_v24 = vmul.f32 0.70710677, %v2449_v37  ;;  %v2477_v62 = vadd.f32 %v2474_v2, %v263_v59  ;;  %v1406_v55 = vadd.f32 0.18741608, %v1405_v28  ;;  %v1416_v15 = vmul.f32 %v1415_v34, %v2410_v46 }
 0x11e   :  { %v788_v35 = vsel %vm787_vm10, %v1885_v17, %v784_v39  ;;  %v482_v56 = vadd.f32 0.0036580483, %v481_v27  ;;  %v1089_v29 = vmul.f32 %v1088_v26, %v2334_v1  ;;  %v493_v50 = vadd.f32 0.014752088, %v492_v43 }
 0x11f   :  { %v793_v58 = vsel %vm2456_vm9, %v792_v47, %v788_v35  ;;  %v797_v53 = vmul.f32 %v2469_v24, %v2469_v24  ;;  %vm1105_vm11 = vweird.f32 %v2451_v16  ;;  %v1417_v6 = vadd.f32 0.4994258, %v1416_v15  ;;  %v283_v35 = vpop.f32.mrf.mxu3 }
 0x120   :  { %v794_v4 = vmul.f32 %v793_v58, %v769_v7  ;;  %v483_v8 = vmul.f32 %v482_v56, %v2439_v36  ;;  %v1109_v63 = vand.u32 2147483647, %v2451_v16  ;;  %v1111_v51 = vand.u32 2147483648, %v2451_v16 }
 0x121   :  { %v1887_v9 = vpop.eup %1886  ;;  %v494_v40 = vmul.f32 %v493_v50, %v2439_v36  ;;  %v2490_v11 = vmin.f32 %v797_v53, 16.0  ;;  %v1407_v14 = vmul.f32 %v1406_v55, %v2410_v46  ;;  %v2495_v7 = vmul.f32 0.70710677, %v2477_v62 }
 0x122   :  { %v1797_v1 = vclamps-f32 %v794_v4, 1.0  ;;  %v1101_v12 = vmul.f32 %v1887_v9, %v2451_v16  ;;  %v1418_v17 = vmul.f32 %v1417_v6, %v2410_v46  ;;  %v484_v18 = vadd.f32 0.05243302, %v483_v8 }
 0x123   :  { %v495_v10 = vadd.f32 0.112945676, %v494_v40  ;;  %v799_v60 = vmul.f32 2.1237322e-06, %v2490_v11  ;;  %vm1106_vm12 = vweird.f32 %v1887_v9  ;;  %v810_v32 = vmul.f32 3.8918573e-05, %v2490_v11 }
 0x124   :  { %v1607_v20 = vadd.f32 1.0, %v1797_v1  ;;  %v1102_v22 = vsub.f32 1.0, %v1101_v12  ;;  %v2500_v23 = vadd.f32 1.0, %v1418_v17  ;;  %v485_v13 = vmul.f32 %v484_v18, %v2439_v36  ;;  %vm1107_vm14 = vmor %vm1105_vm11, %vm1106_vm12 }
 0x125   :  { %v496_v45 = vmul.f32 %v495_v10, %v2439_v36  ;;  %v800_v61 = vadd.f32 0.00028619796, %v799_v60  ;;  %v811_v46 = vadd.f32 0.001143296, %v810_v32  ;;  %v1117_v41 = vmul.f32 %v2495_v7, %v2495_v7 }
 0x126   :  { %v1638_v57 = vmul.f32 %v1607_v20, %v2434_v31  ;;  %v1103_v5 = vmul.f32 %v1887_v9, %v1102_v22  ;;  %vm2507_vm13 = vcmp.eq.f32.partialorder %v1109_v63, 8.507059e+37  ;;  %v1112_v0 = vor.u32 1.1754944e-38, %v1111_v51 }
 0x127   :  { %v1408_v38 = vadd.f32 1.1283791, %v1407_v14  ;;  %1888 = vrcp.f32 %v2500_v23  ;;  %v486_v31 = vadd.f32 0.18741608, %v485_v13  ;;  %v497_v42 = vadd.f32 0.4994258, %v496_v45 }
 0x128   :  { %1670 = vst.msk [vmem:[%s3256_s3 + $0x50] sm:$0xff] %vm1659_vm7, %v1638_v57  ;;  %v1104_v3 = vadd.f32 %v1887_v9, %v1103_v5  ;;  %v801_v48 = vmul.f32 %v800_v61, %v2490_v11  ;;  %v1429_v49 = vand.u32 2147483647, %v2500_v23  ;;  %v1431_v19 = vand.u32 2147483648, %v2500_v23  ;;  %v226_v61 = vpop.f32.mrf.mxu0 }
 0x129   :  { %v812_v59 = vmul.f32 %v811_v46, %v2490_v11  ;;  %v2523_v44 = vmin.f32 %v1117_v41, 16.0  ;;  %v487_v39 = vmul.f32 %v486_v31, %v2439_v36  ;;  %v498_v28 = vmul.f32 %v497_v42, %v2439_v36 }
 0x12a   :  { %v1108_v26 = vsel %vm1107_vm14, %v1887_v9, %v1104_v3  ;;  %v802_v34 = vadd.f32 0.0036580483, %v801_v48  ;;  %v313_v55 = vmul.f32 0.5, %v2318_v52  ;;  %v2536_v36 = vmul.f32 0.5, %v2379_v30 }
 0x12b   :  { %v1113_v27 = vsel %vm2507_vm13, %v1112_v0, %v1108_v26  ;;  %v813_v47 = vadd.f32 0.014752088, %v812_v59  ;;  %v1119_v16 = vmul.f32 2.1237322e-06, %v2523_v44  ;;  %v1130_v43 = vmul.f32 3.8918573e-05, %v2523_v44 }
 0x12c   :  { %v1114_v15 = vmul.f32 %v1113_v27, %v1089_v29  ;;  %v2532_v56 = vadd.f32 1.0, %v498_v28  ;;  %v803_v58 = vmul.f32 %v802_v34, %v2490_v11  ;;  %v1409_v9 = vmul.f32 %v1408_v38, %v2386_v21  ;;  %v266_v27 = vpop.f32.mrf.mxu2 }
 0x12d   :  { %v1889_v50 = vpop.eup %1888  ;;  %v814_v53 = vmul.f32 %v813_v47, %v2490_v11  ;;  %v1120_v4 = vadd.f32 0.00028619796, %v1119_v16  ;;  %v1131_v6 = vadd.f32 0.001143296, %v1130_v43  ;;  %v2542_v52 = vadd.f32 %v2474_v2, %v283_v35 }
 0x12e   :  { %v1805_v8 = vclamps-f32 %v1114_v15, 1.0  ;;  %v1421_v63 = vmul.f32 %v1889_v50, %v2500_v23  ;;  %vm2544_vm15 = vcmp.eq.f32.partialorder %v1429_v49, 8.507059e+37  ;;  %v1432_v51 = vor.u32 1.1754944e-38, %v1431_v19  ;;  %v246_v15 = vpop.f32.mrf.mxu1 }
 0x12f   :  { %v488_v40 = vadd.f32 1.1283791, %v487_v39  ;;  %1890 = vrcp.f32 %v2532_v56  ;;  %v804_v12 = vadd.f32 0.05243302, %v803_v58  ;;  %v815_v14 = vadd.f32 0.112945676, %v814_v53 }
 0x130   :  { %v1615_v30 = vadd.f32 1.0, %v1805_v8  ;;  %v1422_v1 = vsub.f32 1.0, %v1421_v63  ;;  %vm1426_vm0 = vweird.f32 %v1889_v50  ;;  %v509_v21 = vand.u32 2147483647, %v2532_v56 }
 0x131   :  { %v1121_v17 = vmul.f32 %v1120_v4, %v2523_v44  ;;  %v1132_v18 = vmul.f32 %v1131_v6, %v2523_v44  ;;  %v805_v20 = vmul.f32 %v804_v12, %v2490_v11  ;;  %v816_v22 = vmul.f32 %v815_v14, %v2490_v11 }
 0x132   :  { %v1646_v10 = vmul.f32 %v1615_v30, %v313_v55  ;;  %v1423_v60 = vmul.f32 %v1889_v50, %v1422_v1  ;;  %vm1425_vm1 = vweird.f32 %v2500_v23  ;;  %v2556_v45 = vmul.f32 0.70710677, %v2542_v52 }
 0x133   :  { %v1122_v32 = vadd.f32 0.0036580483, %v1121_v17  ;;  %v1133_v13 = vadd.f32 0.014752088, %v1132_v18  ;;  %v489_v5 = vmul.f32 %v488_v40, %v2420_v54  ;;  %v806_v46 = vadd.f32 0.18741608, %v805_v20  ;;  %vm1427_vm2 = vmor %vm1425_vm1, %vm1426_vm0 }
 0x134   :  { %1678 = vst.msk [vmem:[%s3256_s3 + $0x90] sm:$0xff] %vm1659_vm7, %v1646_v10  ;;  %v1424_v57 = vadd.f32 %v1889_v50, %v1423_v60  ;;  %v817_v41 = vadd.f32 0.4994258, %v816_v22  ;;  %v511_v23 = vand.u32 2147483648, %v2532_v56  ;;  %v1437_v3 = vmul.f32 %v2556_v45, %v2556_v45 }
 0x135   :  { %v1891_v25 = vpop.eup %1890  ;;  %v1123_v0 = vmul.f32 %v1122_v32, %v2523_v44  ;;  %v1134_v38 = vmul.f32 %v1133_v13, %v2523_v44  ;;  %v807_v48 = vmul.f32 %v806_v46, %v2490_v11  ;;  %v2572_v54 = vadd.f32 %v2474_v2, %v226_v61 }
 0x136   :  { %v1428_v31 = vsel %vm1427_vm2, %v1889_v50, %v1424_v57  ;;  %v501_v42 = vmul.f32 %v1891_v25, %v2532_v56  ;;  %v818_v19 = vmul.f32 %v817_v41, %v2490_v11  ;;  %vm505_vm3 = vweird.f32 %v2532_v56 }
 0x137   :  { %v1433_v49 = vsel %vm2544_vm15, %v1432_v51, %v1428_v31  ;;  %v1124_v59 = vadd.f32 0.05243302, %v1123_v0  ;;  %v1135_v26 = vadd.f32 0.112945676, %v1134_v38  ;;  %v2578_v34 = vmin.f32 %v1437_v3, 16.0 }
 0x138   :  { %v1434_v39 = vmul.f32 %v1433_v49, %v1409_v9  ;;  %v502_v28 = vsub.f32 1.0, %v501_v42  ;;  %vm2580_vm4 = vcmp.eq.f32.partialorder %v509_v21, 8.507059e+37  ;;  %v2584_v47 = vadd.f32 1.0, %v818_v19 }
 0x139   :  { %v1125_v16 = vmul.f32 %v1124_v59, %v2523_v44  ;;  %v1136_v43 = vmul.f32 %v1135_v26, %v2523_v44  ;;  %vm506_vm5 = vweird.f32 %v1891_v25  ;;  %v1439_v55 = vmul.f32 2.1237322e-06, %v2578_v34 }
 0x13a   :  { %v1813_v35 = vclamps-f32 %v1434_v39, 1.0  ;;  %v503_v11 = vmul.f32 %v1891_v25, %v502_v28  ;;  %v512_v58 = vor.u32 1.1754944e-38, %v511_v23  ;;  %v808_v50 = vadd.f32 1.1283791, %v807_v48  ;;  %vm507_vm6 = vmor %vm505_vm3, %vm506_vm5 }
 0x13b   :  { %1892 = vrcp.f32 %v2584_v47  ;;  %v2591_v53 = vmul.f32 0.70710677, %v2572_v54  ;;  %v1126_v8 = vadd.f32 0.18741608, %v1125_v16  ;;  %v1137_v9 = vadd.f32 0.4994258, %v1136_v43 }
 0x13c   :  { %v1623_v4 = vadd.f32 1.0, %v1813_v35  ;;  %v504_v6 = vadd.f32 %v1891_v25, %v503_v11  ;;  %v829_v63 = vand.u32 2147483647, %v2584_v47  ;;  %v1440_v29 = vadd.f32 0.00028619796, %v1439_v55 }
 0x13d   :  { %v1450_v51 = vmul.f32 3.8918573e-05, %v2578_v34  ;;  %v2598_v40 = vadd.f32 %v2474_v2, %v246_v15  ;;  %v1127_v12 = vmul.f32 %v1126_v8, %v2523_v44  ;;  %v1138_v14 = vmul.f32 %v1137_v9, %v2523_v44 }
 0x13e   :  { %v1654_v30 = vmul.f32 %v1623_v4, %v2536_v36  ;;  %v508_v1 = vsel %vm507_vm6, %v1891_v25, %v504_v6  ;;  %v1441_v56 = vmul.f32 %v1440_v29, %v2578_v34  ;;  %v517_v18 = vmul.f32 %v2591_v53, %v2591_v53 }
 0x13f   :  { %v513_v21 = vsel %vm2580_vm4, %v512_v58, %v508_v1  ;;  %v1451_v17 = vadd.f32 0.001143296, %v1450_v51  ;;  %v298_v36 = vmul.f32 0.5, %v2396_v33  ;;  %v2614_v60 = vmul.f32 0.5, %v2449_v37 }
 0x140   :  { %1686 = vst.msk [vmem:[%s3256_s3 + $0xd0] sm:$0xff] %vm1659_vm7, %v1654_v30  ;;  %v514_v10 = vmul.f32 %v513_v21, %v489_v5  ;;  %v2616_v44 = vadd.f32 1.0, %v1138_v14  ;;  %v809_v22 = vmul.f32 %v808_v50, %v2469_v24  ;;  %v1442_v32 = vadd.f32 0.0036580483, %v1441_v56 }
 0x141   :  { %v1893_v20 = vpop.eup %1892  ;;  %v1452_v13 = vmul.f32 %v1451_v17, %v2578_v34  ;;  %v2620_v61 = vmin.f32 %v517_v18, 16.0  ;;  %vm825_vm8 = vweird.f32 %v2584_v47  ;;  %v831_v33 = vand.u32 2147483648, %v2584_v47 }
 0x142   :  { %v1790_v57 = vclamps-f32 %v514_v10, 1.0  ;;  %v821_v46 = vmul.f32 %v1893_v20, %v2584_v47  ;;  %vm2625_vm9 = vcmp.eq.f32.partialorder %v829_v63, 8.507059e+37  ;;  %v1128_v5 = vadd.f32 1.1283791, %v1127_v12 }
 0x143   :  { %1894 = vrcp.f32 %v2616_v44  ;;  %v2631_v24 = vmul.f32 0.70710677, %v2598_v40  ;;  %v1443_v23 = vmul.f32 %v1442_v32, %v2578_v34  ;;  %v1453_v0 = vadd.f32 0.014752088, %v1452_v13 }
 0x144   :  { %v1600_v41 = vadd.f32 1.0, %v1790_v57  ;;  %v822_v25 = vsub.f32 1.0, %v821_v46  ;;  %vm826_vm10 = vweird.f32 %v1893_v20  ;;  %v1149_v38 = vand.u32 2147483647, %v2616_v44 }
 0x145   :  { %v519_v3 = vmul.f32 2.1237322e-06, %v2620_v61  ;;  %v530_v31 = vmul.f32 3.8918573e-05, %v2620_v61  ;;  %v1444_v49 = vadd.f32 0.05243302, %v1443_v23  ;;  %v1454_v19 = vmul.f32 %v1453_v0, %v2578_v34  ;;  %vm827_vm12 = vmor %vm825_vm8, %vm826_vm10 }
 0x146   :  { %v1631_v42 = vmul.f32 %v1600_v41, %v298_v36  ;;  %v823_v48 = vmul.f32 %v1893_v20, %v822_v25  ;;  %v832_v59 = vor.u32 1.1754944e-38, %v831_v33  ;;  %v837_v28 = vmul.f32 %v2631_v24, %v2631_v24 }
 0x147   :  { %v520_v26 = vadd.f32 0.00028619796, %v519_v3  ;;  %v531_v39 = vadd.f32 0.001143296, %v530_v31  ;;  %v1129_v43 = vmul.f32 %v1128_v5, %v2495_v7  ;;  %vm1145_vm11 = vweird.f32 %v2616_v44 }
 0x148   :  { %1663 = vst.msk [vmem:[%s3256_s3 + $0x18] sm:$0xff] %vm1659_vm7, %v1631_v42  ;;  %v824_v16 = vadd.f32 %v1893_v20, %v823_v48  ;;  %v1455_v35 = vadd.f32 0.112945676, %v1454_v19  ;;  %v1151_v55 = vand.u32 2147483648, %v2616_v44  ;;  %v2652_v50 = vmin.f32 %v837_v28, 16.0 }
 0x149   :  { %v1895_v11 = vpop.eup %1894  ;;  %v521_v15 = vmul.f32 %v520_v26, %v2620_v61  ;;  %v532_v58 = vmul.f32 %v531_v39, %v2620_v61  ;;  %vm2655_vm13 = vcmp.eq.f32.partialorder %v1149_v38, 8.507059e+37  ;;  %v1445_v8 = vmul.f32 %v1444_v49, %v2578_v34  ;;  %v286_v38 = vpop.f32.mrf.mxu3 }
 0x14a   :  { %v828_v4 = vsel %vm827_vm12, %v1893_v20, %v824_v16  ;;  %v1141_v6 = vmul.f32 %v1895_v11, %v2616_v44  ;;  %v2661_v47 = vadd.f32 %v2474_v2, %v266_v27  ;;  %v1456_v63 = vmul.f32 %v1455_v35, %v2578_v34 }
 0x14b   :  { %v833_v9 = vsel %vm2625_vm9, %v832_v59, %v828_v4  ;;  %v522_v29 = vadd.f32 0.0036580483, %v521_v15  ;;  %v533_v51 = vadd.f32 0.014752088, %v532_v58  ;;  %vm1146_vm14 = vweird.f32 %v1895_v11 }
 0x14c   :  { %v834_v30 = vmul.f32 %v833_v9, %v809_v22  ;;  %v1142_v1 = vsub.f32 1.0, %v1141_v6  ;;  %v839_v12 = vmul.f32 2.1237322e-06, %v2652_v50  ;;  %v1457_v14 = vadd.f32 0.4994258, %v1456_v63  ;;  %vm1147_vm15 = vmor %vm1145_vm11, %vm1146_vm14 }
 0x14d   :  { %v523_v21 = vmul.f32 %v522_v29, %v2620_v61  ;;  %v534_v56 = vmul.f32 %v533_v51, %v2620_v61  ;;  %v850_v17 = vmul.f32 3.8918573e-05, %v2652_v50  ;;  %v1446_v10 = vadd.f32 0.18741608, %v1445_v8 }
 0x14e   :  { %v1798_v18 = vclamps-f32 %v834_v30, 1.0  ;;  %v1143_v36 = vmul.f32 %v1895_v11, %v1142_v1  ;;  %v840_v20 = vadd.f32 0.00028619796, %v839_v12  ;;  %v1458_v32 = vmul.f32 %v1457_v14, %v2578_v34 }
 0x14f   :  { %v524_v13 = vadd.f32 0.05243302, %v523_v21  ;;  %v535_v57 = vadd.f32 0.112945676, %v534_v56  ;;  %v851_v22 = vadd.f32 0.001143296, %v850_v17  ;;  %v1447_v49 = vmul.f32 %v1446_v10, %v2578_v34 }
 0x150   :  { %v1608_v46 = vadd.f32 1.0, %v1798_v18  ;;  %v1144_v33 = vadd.f32 %v1895_v11, %v1143_v36  ;;  %v1152_v37 = vor.u32 1.1754944e-38, %v1151_v55  ;;  %v841_v5 = vmul.f32 %v840_v20, %v2652_v50 }
 0x151   :  { %v2675_v41 = vadd.f32 1.0, %v1458_v32  ;;  %v525_v25 = vmul.f32 %v524_v13, %v2620_v61  ;;  %v536_v23 = vmul.f32 %v535_v57, %v2620_v61  ;;  %v852_v0 = vmul.f32 %v851_v22, %v2652_v50 }
 0x152   :  { %v1639_v3 = vmul.f32 %v1608_v46, %v2614_v60  ;;  %v1148_v31 = vsel %vm1147_vm15, %v1895_v11, %v1144_v33  ;;  %v842_v42 = vadd.f32 0.0036580483, %v841_v5  ;;  %v2682_v48 = vmul.f32 0.70710677, %v2661_v47 }
 0x153   :  { %v1153_v44 = vsel %vm2655_vm13, %v1152_v37, %v1148_v31  ;;  %1896 = vrcp.f32 %v2675_v41  ;;  %v537_v59 = vadd.f32 0.4994258, %v536_v23  ;;  %v2693_v60 = vadd.f32 %v2474_v2, %v286_v38 }
 0x154   :  { %1671 = vst.msk [vmem:[%s3256_s3 + $0x58] sm:$0xff] %vm1659_vm7, %v1639_v3  ;;  %v1154_v19 = vmul.f32 %v1153_v44, %v1129_v43  ;;  %v526_v26 = vadd.f32 0.18741608, %v525_v25  ;;  %v843_v39 = vmul.f32 %v842_v42, %v2652_v50  ;;  %v853_v28 = vadd.f32 0.014752088, %v852_v0 }
 0x155   :  { %v1157_v27 = vmul.f32 %v2682_v48, %v2682_v48  ;;  %v314_v34 = vmul.f32 0.5, %v2477_v62  ;;  %v2700_v35 = vmul.f32 0.5, %v2542_v52  ;;  %v538_v11 = vmul.f32 %v537_v59, %v2620_v61 }
 0x156   :  { %v1806_v16 = vclamps-f32 %v1154_v19, 1.0  ;;  %v1448_v43 = vadd.f32 1.1283791, %v1447_v49  ;;  %v1469_v55 = vand.u32 2147483647, %v2675_v41  ;;  %v854_v15 = vmul.f32 %v853_v28, %v2652_v50 }
 0x157   :  { %v2705_v58 = vmin.f32 %v1157_v27, 16.0  ;;  %v2707_v6 = vadd.f32 1.0, %v538_v11  ;;  %v844_v7 = vadd.f32 0.05243302, %v843_v39  ;;  %v2710_v8 = vmul.f32 0.70710677, %v2693_v60 }
 0x158   :  { %v1616_v4 = vadd.f32 1.0, %v1806_v16  ;;  %v527_v52 = vmul.f32 %v526_v26, %v2620_v61  ;;  %v855_v9 = vadd.f32 0.112945676, %v854_v15  ;;  %v2717_v1 = vmul.f32 0.5, %v2572_v54 }
 0x159   :  { %v1897_v62 = vpop.eup %1896  ;;  %v1159_v63 = vmul.f32 2.1237322e-06, %v2705_v58  ;;  %v1170_v29 = vmul.f32 3.8918573e-05, %v2705_v58  ;;  %v2720_v12 = vmul.f32 0.5, %v2598_v40  ;;  %v1449_v14 = vmul.f32 %v1448_v43, %v2556_v45 }
 0x15a   :  { %v1647_v51 = vmul.f32 %v1616_v4, %v314_v34  ;;  %v1461_v30 = vmul.f32 %v1897_v62, %v2675_v41  ;;  %vm1465_vm0 = vweird.f32 %v2675_v41  ;;  %v1471_v61 = vand.u32 2147483648, %v2675_v41  ;;  %v228_v34 = vpop.f32.mrf.mxu0 }
 0x15b   :  { %1898 = vrcp.f32 %v2707_v6  ;;  %v845_v54 = vmul.f32 %v844_v7, %v2652_v50  ;;  %v856_v56 = vmul.f32 %v855_v9, %v2652_v50  ;;  %v1160_v40 = vadd.f32 0.00028619796, %v1159_v63  ;;  %v248_v7 = vpop.f32.mrf.mxu1 }
 0x15c   :  { %1679 = vst.msk [vmem:[%s3256_s3 + $0x98] sm:$0xff] %vm1659_vm7, %v1647_v51  ;;  %v1462_v21 = vsub.f32 1.0, %v1461_v30  ;;  %vm2732_vm1 = vcmp.eq.f32.partialorder %v1469_v55, 8.507059e+37  ;;  %v528_v45 = vadd.f32 1.1283791, %v527_v52  ;;  %v1477_v36 = vmul.f32 %v2710_v8, %v2710_v8 }
 0x15d   :  { %v1171_v18 = vadd.f32 0.001143296, %v1170_v29  ;;  %vm1466_vm2 = vweird.f32 %v1897_v62  ;;  %v857_v20 = vadd.f32 0.4994258, %v856_v56  ;;  %v1161_v32 = vmul.f32 %v1160_v40, %v2705_v58 }
 0x15e   :  { %v1463_v10 = vmul.f32 %v1897_v62, %v1462_v21  ;;  %v1472_v13 = vor.u32 1.1754944e-38, %v1471_v61  ;;  %v549_v57 = vand.u32 2147483647, %v2707_v6  ;;  %v2741_v46 = vmin.f32 %v1477_v36, 16.0  ;;  %vm1467_vm3 = vmor %vm1465_vm0, %vm1466_vm2 }
 0x15f   :  { %v1172_v22 = vmul.f32 %v1171_v18, %v2705_v58  ;;  %v846_v37 = vadd.f32 0.18741608, %v845_v54  ;;  %v858_v5 = vmul.f32 %v857_v20, %v2652_v50  ;;  %v1162_v25 = vadd.f32 0.0036580483, %v1161_v32 }
 0x160   :  { %v1464_v33 = vadd.f32 %v1897_v62, %v1463_v10  ;;  %v529_v0 = vmul.f32 %v528_v45, %v2591_v53  ;;  %v1479_v3 = vmul.f32 2.1237322e-06, %v2741_v46  ;;  %v1490_v31 = vmul.f32 3.8918573e-05, %v2741_v46 }
 0x161   :  { %v1899_v23 = vpop.eup %1898  ;;  %v1173_v38 = vadd.f32 0.014752088, %v1172_v22  ;;  %vm545_vm4 = vweird.f32 %v2707_v6  ;;  %v551_v49 = vand.u32 2147483648, %v2707_v6  ;;  %v2754_v59 = vadd.f32 1.0, %v858_v5 }
 0x162   :  { %v1468_v42 = vsel %vm1467_vm3, %v1897_v62, %v1464_v33  ;;  %v541_v44 = vmul.f32 %v1899_v23, %v2707_v6  ;;  %v1163_v41 = vmul.f32 %v1162_v25, %v2705_v58  ;;  %v1480_v28 = vadd.f32 0.00028619796, %v1479_v3 }
 0x163   :  { %v1473_v19 = vsel %vm2732_vm1, %v1472_v13, %v1468_v42  ;;  %v1174_v53 = vmul.f32 %v1173_v38, %v2705_v58  ;;  %v1491_v27 = vadd.f32 0.001143296, %v1490_v31  ;;  %vm546_vm5 = vweird.f32 %v1899_v23 }
 0x164   :  { %v1474_v26 = vmul.f32 %v1473_v19, %v1449_v14  ;;  %v542_v39 = vsub.f32 1.0, %v541_v44  ;;  %vm2758_vm6 = vcmp.eq.f32.partialorder %v549_v57, 8.507059e+37  ;;  %v847_v11 = vmul.f32 %v846_v37, %v2652_v50  ;;  %vm547_vm8 = vmor %vm545_vm4, %vm546_vm5 }
 0x165   :  { %1900 = vrcp.f32 %v2754_v59  ;;  %v1164_v15 = vadd.f32 0.05243302, %v1163_v41  ;;  %v1175_v4 = vadd.f32 0.112945676, %v1174_v53  ;;  %v552_v62 = vor.u32 1.1754944e-38, %v551_v49 }
 0x166   :  { %v1814_v43 = vclamps-f32 %v1474_v26, 1.0  ;;  %v543_v55 = vmul.f32 %v1899_v23, %v542_v39  ;;  %v1481_v52 = vmul.f32 %v1480_v28, %v2741_v46  ;;  %v1492_v9 = vmul.f32 %v1491_v27, %v2741_v46 }
 0x167   :  { %v2767_v63 = vadd.f32 %v2474_v2, %v228_v34  ;;  %v1165_v30 = vmul.f32 %v1164_v15, %v2705_v58  ;;  %v1176_v50 = vmul.f32 %v1175_v4, %v2705_v58  ;;  %v848_v14 = vadd.f32 1.1283791, %v847_v11 }
 0x168   :  { %v1624_v29 = vadd.f32 1.0, %v1814_v43  ;;  %v544_v51 = vadd.f32 %v1899_v23, %v543_v55  ;;  %v1482_v61 = vadd.f32 0.0036580483, %v1481_v52  ;;  %v1493_v21 = vadd.f32 0.014752088, %v1492_v9 }
 0x169   :  { %v2775_v54 = vadd.f32 %v2474_v2, %v248_v7  ;;  %v1166_v17 = vadd.f32 0.18741608, %v1165_v30  ;;  %v1177_v45 = vadd.f32 0.4994258, %v1176_v50  ;;  %v2783_v20 = vmul.f32 0.70710677, %v2767_v63 }
 0x16a   :  { %v1655_v56 = vmul.f32 %v1624_v29, %v2700_v35  ;;  %v548_v40 = vsel %vm547_vm8, %v1899_v23, %v544_v51  ;;  %v1483_v10 = vmul.f32 %v1482_v61, %v2741_v46  ;;  %v1494_v6 = vmul.f32 %v1493_v21, %v2741_v46 }
 0x16b   :  { %v1901_v18 = vpop.eup %1900  ;;  %v553_v36 = vsel %vm2758_vm6, %v552_v62, %v548_v40  ;;  %v869_v13 = vand.u32 2147483647, %v2754_v59  ;;  %v1167_v57 = vmul.f32 %v1166_v17, %v2705_v58  ;;  %v1178_v22 = vmul.f32 %v1177_v45, %v2705_v58 }
 0x16c   :  { %1687 = vst.msk [vmem:[%s3256_s3 + $0xd8] sm:$0xff] %vm1659_vm7, %v1655_v56  ;;  %v554_v35 = vmul.f32 %v553_v36, %v529_v0  ;;  %v861_v32 = vmul.f32 %v1901_v18, %v2754_v59  ;;  %v1484_v33 = vadd.f32 0.05243302, %v1483_v10  ;;  %v1495_v37 = vadd.f32 0.112945676, %v1494_v6  ;;  %v268_v0 = vpop.f32.mrf.mxu2 }
 0x16d   :  { %v557_v5 = vmul.f32 %v2783_v20, %v2783_v20  ;;  %v871_v38 = vand.u32 2147483648, %v2754_v59  ;;  %v2797_v3 = vmul.f32 0.70710677, %v2775_v54  ;;  %v2799_v31 = vadd.f32 1.0, %v1178_v22 }
 0x16e   :  { %v1791_v25 = vclamps-f32 %v554_v35, 1.0  ;;  %v862_v23 = vsub.f32 1.0, %v861_v32  ;;  %v1485_v42 = vmul.f32 %v1484_v33, %v2741_v46  ;;  %v1496_v44 = vmul.f32 %v1495_v37, %v2741_v46 }
 0x16f   :  { %v2803_v58 = vmin.f32 %v557_v5, 16.0  ;;  %vm866_vm9 = vweird.f32 %v1901_v18  ;;  %v877_v41 = vmul.f32 %v2797_v3, %v2797_v3  ;;  %vm865_vm10 = vweird.f32 %v2754_v59 }
 0x170   :  { %v1601_v49 = vadd.f32 1.0, %v1791_v25  ;;  %v863_v19 = vmul.f32 %v1901_v18, %v862_v23  ;;  %v1168_v53 = vadd.f32 1.1283791, %v1167_v57  ;;  %1902 = vrcp.f32 %v2799_v31  ;;  %vm867_vm11 = vmor %vm865_vm10, %vm866_vm9 }
 0x171   :  { %v2810_v26 = vadd.f32 %v2474_v2, %v268_v0  ;;  %v1486_v27 = vadd.f32 0.18741608, %v1485_v42  ;;  %v1497_v34 = vadd.f32 0.4994258, %v1496_v44  ;;  %v849_v16 = vmul.f32 %v848_v14, %v2631_v24  ;;  %v288_v42 = vpop.f32.mrf.mxu3 }
 0x172   :  { %v1632_v39 = vmul.f32 %v1601_v49, %v2717_v1  ;;  %v864_v28 = vadd.f32 %v1901_v18, %v863_v19  ;;  %v872_v11 = vor.u32 1.1754944e-38, %v871_v38  ;;  %v559_v43 = vmul.f32 2.1237322e-06, %v2803_v58 }
 0x173   :  { %v570_v55 = vmul.f32 3.8918573e-05, %v2803_v58  ;;  %vm870_vm12 = vcmp.eq.f32.partialorder %v869_v13, 8.507059e+37  ;;  %v1498_v1 = vmul.f32 %v1497_v34, %v2741_v46  ;;  %v2821_v15 = vmin.f32 %v877_v41, 16.0 }
 0x174   :  { %1664 = vst.msk [vmem:[%s3256_s3 + $0x20] sm:$0xff] %vm1659_vm7, %v1632_v39  ;;  %v868_v59 = vsel %vm867_vm11, %v1901_v18, %v864_v28  ;;  %v1487_v24 = vmul.f32 %v1486_v27, %v2741_v46  ;;  %v560_v7 = vadd.f32 0.00028619796, %v559_v43  ;;  %v2825_v9 = vmul.f32 0.5, %v2661_v47 }
 0x175   :  { %v873_v4 = vsel %vm870_vm12, %v872_v11, %v868_v59  ;;  %v571_v62 = vadd.f32 0.001143296, %v570_v55  ;;  %v1169_v29 = vmul.f32 %v1168_v53, %v2682_v48  ;;  %v2828_v51 = vadd.f32 1.0, %v1498_v1 }
 0x176   :  { %v874_v52 = vmul.f32 %v873_v4, %v849_v16  ;;  %v1903_v30 = vpop.eup %1902  ;;  %v561_v50 = vmul.f32 %v560_v7, %v2803_v58  ;;  %v879_v61 = vmul.f32 2.1237322e-06, %v2821_v15  ;;  %v890_v21 = vmul.f32 3.8918573e-05, %v2821_v15 }
 0x177   :  { %v572_v14 = vmul.f32 %v571_v62, %v2803_v58  ;;  %v1181_v56 = vmul.f32 %v1903_v30, %v2799_v31  ;;  %vm1185_vm13 = vweird.f32 %v2799_v31  ;;  %v1189_v47 = vand.u32 2147483647, %v2799_v31 }
 0x178   :  { %v1799_v46 = vclamps-f32 %v874_v52, 1.0  ;;  %v1191_v48 = vand.u32 2147483648, %v2799_v31  ;;  %v2838_v40 = vadd.f32 1.1283791, %v1487_v24  ;;  %1904 = vrcp.f32 %v2828_v51 }
 0x179   :  { %v2842_v17 = vmul.f32 0.70710677, %v2810_v26  ;;  %v1182_v18 = vsub.f32 1.0, %v1181_v56  ;;  %v562_v36 = vadd.f32 0.0036580483, %v561_v50  ;;  %vm1186_vm14 = vweird.f32 %v1903_v30 }
 0x17a   :  { %v1609_v45 = vadd.f32 1.0, %v1799_v46  ;;  %v573_v10 = vadd.f32 0.014752088, %v572_v14  ;;  %v1511_v6 = vand.u32 2147483648, %v2828_v51  ;;  %v880_v35 = vadd.f32 0.00028619796, %v879_v61  ;;  %vm1187_vm0 = vmor %vm1185_vm13, %vm1186_vm14 }
 0x17b   :  { %v891_v32 = vadd.f32 0.001143296, %v890_v21  ;;  %v1183_v57 = vmul.f32 %v1903_v30, %v1182_v18  ;;  %v563_v22 = vmul.f32 %v562_v36, %v2803_v58  ;;  %v1509_v37 = vand.u32 2147483647, %v2828_v51 }
 0x17c   :  { %v1640_v13 = vmul.f32 %v1609_v45, %v2720_v12  ;;  %v574_v33 = vmul.f32 %v573_v10, %v2803_v58  ;;  %v881_v5 = vmul.f32 %v880_v35, %v2821_v15  ;;  %v1197_v23 = vmul.f32 %v2842_v17, %v2842_v17 }
 0x17d   :  { %v892_v25 = vmul.f32 %v891_v32, %v2821_v15  ;;  %v1184_v12 = vadd.f32 %v1903_v30, %v1183_v57  ;;  %vm1190_vm15 = vcmp.eq.f32.partialorder %v1189_v47, 8.507059e+37  ;;  %v564_v38 = vadd.f32 0.05243302, %v563_v22  ;;  %v2885_v57 = vpop.f32.mrf.mxu3 }
 0x17e   :  { %1672 = vst.msk [vmem:[%s3256_s3 + $0x60] sm:$0xff] %vm1659_vm7, %v1640_v13  ;;  %v575_v0 = vadd.f32 0.112945676, %v574_v33  ;;  %v1905_v44 = vpop.eup %1904  ;;  %v1192_v49 = vor.u32 1.1754944e-38, %v1191_v48  ;;  %v882_v19 = vadd.f32 0.0036580483, %v881_v5  ;;  %vm1505_vm1 = vweird.f32 %v2828_v51 }
 0x17f   :  { %v893_v41 = vadd.f32 0.014752088, %v892_v25  ;;  %v2860_v53 = vmin.f32 %v1197_v23, 16.0  ;;  %v1188_v39 = vsel %vm1187_vm0, %v1903_v30, %v1184_v12  ;;  %v1501_v28 = vmul.f32 %v1905_v44, %v2828_v51 }
 0x180   :  { %v1512_v27 = vor.u32 1.1754944e-38, %v1511_v6  ;;  %v565_v34 = vmul.f32 %v564_v38, %v2803_v58  ;;  %v1193_v16 = vsel %vm1190_vm15, %v1192_v49, %v1188_v39  ;;  %v576_v11 = vmul.f32 %v575_v0, %v2803_v58  ;;  %v231_v6 = vpop.f32.mrf.mxu0  ;;  %v251_v0 = vpop.f32.mrf.mxu1 }
 0x181   :  { %v883_v43 = vmul.f32 %v882_v19, %v2821_v15  ;;  %v894_v55 = vmul.f32 %v893_v41, %v2821_v15  ;;  %v1194_v31 = vmul.f32 %v1193_v16, %v1169_v29  ;;  %v1502_v59 = vsub.f32 1.0, %v1501_v28 }
 0x182   :  { %v566_v1 = vadd.f32 0.18741608, %v565_v34  ;;  %v1199_v4 = vmul.f32 2.1237322e-06, %v2860_v53  ;;  %v577_v24 = vadd.f32 0.4994258, %v576_v11  ;;  %vm1506_vm2 = vweird.f32 %v1905_v44 }
 0x183   :  { %v884_v7 = vadd.f32 0.05243302, %v883_v43  ;;  %v895_v62 = vadd.f32 0.112945676, %v894_v55  ;;  %v1807_v52 = vclamps-f32 %v1194_v31, 1.0  ;;  %v1503_v30 = vmul.f32 %v1905_v44, %v1502_v59  ;;  %vm1507_vm3 = vmor %vm1505_vm1, %vm1506_vm2 }
 0x184   :  { %v1200_v50 = vadd.f32 0.00028619796, %v1199_v4  ;;  %v578_v14 = vmul.f32 %v577_v24, %v2803_v58  ;;  %v2873_v29 = vadd.f32 %v2474_v2, %v288_v42  ;;  %v1210_v48 = vmul.f32 3.8918573e-05, %v2860_v53 }
 0x185   :  { %v885_v61 = vmul.f32 %v884_v7, %v2821_v15  ;;  %v896_v21 = vmul.f32 %v895_v62, %v2821_v15  ;;  %v1617_v46 = vadd.f32 1.0, %v1807_v52  ;;  %v1504_v56 = vadd.f32 %v1905_v44, %v1503_v30  ;;  %v293_v31 = vpop.f32.mrf.mxu3 }
 0x186   :  { %v1201_v47 = vmul.f32 %v1200_v50, %v2860_v53  ;;  %v567_v45 = vmul.f32 %v566_v1, %v2803_v58  ;;  %v2880_v18 = vadd.f32 1.0, %v578_v14  ;;  %v1489_v32 = vmul.f32 %v2838_v40, %v2710_v8 }
 0x187   :  { %v886_v36 = vadd.f32 0.18741608, %v885_v61  ;;  %v897_v10 = vadd.f32 0.4994258, %v896_v21  ;;  %v1648_v35 = vmul.f32 %v1617_v46, %v2825_v9  ;;  %v1508_v13 = vsel %vm1507_vm3, %v1905_v44, %v1504_v56 }
 0x188   :  { %vm1510_vm4 = vcmp.eq.f32.partialorder %v1509_v37, 8.507059e+37  ;;  %v323_v22 = vmul.f32 0.5, %v2693_v60  ;;  %1906 = vrcp.f32 %v2880_v18  ;;  %v1202_v58 = vadd.f32 0.0036580483, %v1201_v47 }
 0x189   :  { %v1513_v51 = vsel %vm1510_vm4, %v1512_v27, %v1508_v13  ;;  %1680 = vst.msk [vmem:[%s3256_s3 + $0xa0] sm:$0xff] %vm1659_vm7, %v1648_v35  ;;  %v887_v9 = vmul.f32 %v886_v36, %v2821_v15  ;;  %v898_v8 = vmul.f32 %v897_v10, %v2821_v15  ;;  %v2896_v40 = vadd.f32 %v2474_v2, %v231_v6 }
 0x18a   :  { %v1514_v33 = vmul.f32 %v1513_v51, %v1489_v32  ;;  %v568_v37 = vadd.f32 1.1283791, %v567_v45  ;;  %v1211_v5 = vadd.f32 0.001143296, %v1210_v48  ;;  %v2899_v60 = vmul.f32 0.70710677, %v2873_v29 }
 0x18b   :  { %v589_v23 = vand.u32 2147483647, %v2880_v18  ;;  %v591_v12 = vand.u32 2147483648, %v2880_v18  ;;  %v2903_v38 = vadd.f32 1.0, %v898_v8  ;;  %v888_v42 = vadd.f32 1.1283791, %v887_v9 }
 0x18c   :  { %v1815_v25 = vclamps-f32 %v1514_v33, 1.0  ;;  %v1203_v44 = vmul.f32 %v1202_v58, %v2860_v53  ;;  %v1212_v15 = vmul.f32 %v1211_v5, %v2860_v53  ;;  %v1517_v49 = vmul.f32 %v2899_v60, %v2899_v60 }
 0x18d   :  { %v2910_v41 = vmul.f32 0.5, %v2767_v63  ;;  %1908 = vrcp.f32 %v2903_v38  ;;  %v2914_v39 = vmul.f32 0.70710677, %v2896_v40  ;;  %v569_v27 = vmul.f32 %v568_v37, %v2783_v20  ;;  %v271_v63 = vpop.f32.mrf.mxu2 }
 0x18e   :  { %v1625_v19 = vadd.f32 1.0, %v1815_v25  ;;  %v1907_v28 = vpop.eup %1906  ;;  %vm585_vm5 = vweird.f32 %v2880_v18  ;;  %v1213_v34 = vadd.f32 0.014752088, %v1212_v15  ;;  %v2919_v16 = vadd.f32 %v2474_v2, %v251_v0 }
 0x18f   :  { %v581_v43 = vmul.f32 %v1907_v28, %v2880_v18  ;;  %vm2922_vm6 = vcmp.eq.f32.partialorder %v589_v23, 8.507059e+37  ;;  %v2926_v55 = vmin.f32 %v1517_v49, 16.0  ;;  %v592_v59 = vor.u32 1.1754944e-38, %v591_v12 }
 0x190   :  { %v1656_v11 = vmul.f32 %v1625_v19, %v323_v22  ;;  %v889_v1 = vmul.f32 %v888_v42, %v2797_v3  ;;  %v1204_v20 = vadd.f32 0.05243302, %v1203_v44  ;;  %v1214_v4 = vmul.f32 %v1213_v34, %v2860_v53 }
 0x191   :  { %v582_v2 = vsub.f32 1.0, %v581_v43  ;;  %v1519_v24 = vmul.f32 2.1237322e-06, %v2926_v55  ;;  %v1530_v7 = vmul.f32 3.8918573e-05, %v2926_v55  ;;  %v597_v62 = vmul.f32 %v2914_v39, %v2914_v39 }
 0x192   :  { %1688 = vst.msk [vmem:[%s3256_s3 + $0xe0] sm:$0xff] %vm1659_vm7, %v1656_v11  ;;  %vm586_vm8 = vweird.f32 %v1907_v28  ;;  %vm905_vm9 = vweird.f32 %v2903_v38  ;;  %v909_v3 = vand.u32 2147483647, %v2903_v38  ;;  %v911_v52 = vand.u32 2147483648, %v2903_v38 }
 0x193   :  { %v1215_v30 = vadd.f32 0.112945676, %v1214_v4  ;;  %v1909_v50 = vpop.eup %1908  ;;  %v583_v14 = vmul.f32 %v1907_v28, %v582_v2  ;;  %v1520_v61 = vadd.f32 0.00028619796, %v1519_v24  ;;  %v1531_v21 = vadd.f32 0.001143296, %v1530_v7  ;;  %vm587_vm10 = vmor %vm585_vm5, %vm586_vm8 }
 0x194   :  { %v2941_v46 = vmin.f32 %v597_v62, 16.0  ;;  %v901_v56 = vmul.f32 %v1909_v50, %v2903_v38  ;;  %v1205_v47 = vmul.f32 %v1204_v20, %v2860_v53  ;;  %v2947_v45 = vmul.f32 0.70710677, %v2919_v16 }
 0x195   :  { %v1216_v48 = vmul.f32 %v1215_v30, %v2860_v53  ;;  %v584_v36 = vadd.f32 %v1907_v28, %v583_v14  ;;  %v1521_v10 = vmul.f32 %v1520_v61, %v2926_v55  ;;  %v1532_v6 = vmul.f32 %v1531_v21, %v2926_v55  ;;  %v2982_v30 = vld [vmem:[%s3254_s2] ss:$0 sm:$0xff] }
 0x196   :  { %v599_v35 = vmul.f32 2.1237322e-06, %v2941_v46  ;;  %v902_v32 = vsub.f32 1.0, %v901_v56  ;;  %vm906_vm11 = vweird.f32 %v1909_v50  ;;  %v610_v22 = vmul.f32 3.8918573e-05, %v2941_v46 }
 0x197   :  { %v1217_v13 = vadd.f32 0.4994258, %v1216_v48  ;;  %v588_v51 = vsel %vm587_vm10, %v1907_v28, %v584_v36  ;;  %v1522_v58 = vadd.f32 0.0036580483, %v1521_v10  ;;  %v1533_v33 = vadd.f32 0.014752088, %v1532_v6  ;;  %vm907_vm12 = vmor %vm905_vm9, %vm906_vm11 }
 0x198   :  { %v600_v9 = vadd.f32 0.00028619796, %v599_v35  ;;  %v593_v8 = vsel %vm2922_vm6, %v592_v59, %v588_v51  ;;  %v903_v37 = vmul.f32 %v1909_v50, %v902_v32  ;;  %v611_v25 = vadd.f32 0.001143296, %v610_v22 }
 0x199   :  { %v1218_v5 = vmul.f32 %v1217_v13, %v2860_v53  ;;  %v594_v23 = vmul.f32 %v593_v8, %v569_v27  ;;  %v1206_v12 = vadd.f32 0.18741608, %v1205_v47  ;;  %v1523_v18 = vmul.f32 %v1522_v58, %v2926_v55 }
 0x19a   :  { %v1534_v0 = vmul.f32 %v1533_v33, %v2926_v55  ;;  %v904_v42 = vadd.f32 %v1909_v50, %v903_v37  ;;  %v912_v44 = vor.u32 1.1754944e-38, %v911_v52  ;;  %v601_v49 = vmul.f32 %v600_v9, %v2941_v46 }
 0x19b   :  { %v2961_v15 = vadd.f32 1.0, %v1218_v5  ;;  %v1792_v19 = vclamps-f32 %v594_v23, 1.0  ;;  %v1524_v28 = vadd.f32 0.05243302, %v1523_v18  ;;  %v612_v27 = vmul.f32 %v611_v25, %v2941_v46 }
 0x19c   :  { %v1535_v34 = vadd.f32 0.112945676, %v1534_v0  ;;  %v908_v11 = vsel %vm907_vm12, %v1909_v50, %v904_v42  ;;  %vm910_vm13 = vcmp.eq.f32.partialorder %v909_v3, 8.507059e+37  ;;  %v917_v43 = vmul.f32 %v2947_v45, %v2947_v45 }
 0x19d   :  { %1910 = vrcp.f32 %v2961_v15  ;;  %v1602_v31 = vadd.f32 1.0, %v1792_v19  ;;  %v913_v59 = vsel %vm910_vm13, %v912_v44, %v908_v11  ;;  %v1207_v20 = vmul.f32 %v1206_v12, %v2860_v53 }
 0x19e   :  { %v1525_v4 = vmul.f32 %v1524_v28, %v2926_v55  ;;  %v308_v38 = vmul.f32 0.5, %v2775_v54  ;;  %v914_v2 = vmul.f32 %v913_v59, %v889_v1  ;;  %v1536_v24 = vmul.f32 %v1535_v34, %v2926_v55 }
 0x19f   :  { %v602_v7 = vadd.f32 0.0036580483, %v601_v49  ;;  %v1633_v62 = vmul.f32 %v1602_v31, %v2910_v41  ;;  %v2977_v3 = vmul.f32 0.5, %v2810_v26  ;;  %v613_v52 = vadd.f32 0.014752088, %v612_v27 }
 0x1a0   :  { %v2985_v53 = vadd.f32 %v2982_v30, %v271_v63  ;;  %v1800_v50 = vclamps-f32 %v914_v2, 1.0  ;;  %v1537_v54 = vadd.f32 0.4994258, %v1536_v24  ;;  %v2988_v14 = vmin.f32 %v917_v43, 16.0 }
 0x1a1   :  { %v603_v1 = vmul.f32 %v602_v7, %v2941_v46  ;;  %1665 = vst.msk [vmem:[%s3256_s3 + $0x28] sm:$0xff] %vm1659_vm7, %v1633_v62  ;;  %v1208_v26 = vadd.f32 1.1283791, %v1207_v20  ;;  %v2995_v41 = vmul.f32 0.5, %v2873_v29  ;;  %v1526_v61 = vadd.f32 0.18741608, %v1525_v4 }
 0x1a2   :  { %v614_v21 = vmul.f32 %v613_v52, %v2941_v46  ;;  %v1610_v47 = vadd.f32 1.0, %v1800_v50  ;;  %v1538_v48 = vmul.f32 %v1537_v54, %v2926_v55  ;;  %v919_v10 = vmul.f32 2.1237322e-06, %v2988_v14 }
 0x1a3   :  { %v1911_v56 = vpop.eup %1910  ;;  %v604_v36 = vadd.f32 0.05243302, %v603_v1  ;;  %v1229_v35 = vand.u32 2147483647, %v2961_v15  ;;  %v1231_v32 = vand.u32 2147483648, %v2961_v15  ;;  %v1527_v9 = vmul.f32 %v1526_v61, %v2926_v55 }
 0x1a4   :  { %v1221_v6 = vmul.f32 %v1911_v56, %v2961_v15  ;;  %v615_v13 = vadd.f32 0.112945676, %v614_v21  ;;  %v1641_v22 = vmul.f32 %v1610_v47, %v308_v38  ;;  %v3003_v29 = vadd.f32 1.0, %v1538_v48 }
 0x1a5   :  { %v920_v51 = vadd.f32 0.00028619796, %v919_v10  ;;  %v3006_v58 = vmul.f32 0.70710677, %v2985_v53  ;;  %v930_v37 = vmul.f32 3.8918573e-05, %v2988_v14  ;;  %v1209_v5 = vmul.f32 %v1208_v26, %v2842_v17 }
 0x1a6   :  { %v1222_v33 = vsub.f32 1.0, %v1221_v6  ;;  %v616_v8 = vmul.f32 %v615_v13, %v2941_v46  ;;  %1673 = vst.msk [vmem:[%s3256_s3 + $0x68] sm:$0xff] %vm1659_vm7, %v1641_v22  ;;  %vm1225_vm14 = vweird.f32 %v2961_v15  ;;  %1912 = vrcp.f32 %v3003_v29 }
 0x1a7   :  { %v605_v25 = vmul.f32 %v604_v36, %v2941_v46  ;;  %vm1226_vm15 = vweird.f32 %v1911_v56  ;;  %v921_v12 = vmul.f32 %v920_v51, %v2988_v14  ;;  %vm3020_vm0 = vcmp.eq.f32.partialorder %v1229_v35, 8.507059e+37 }
 0x1a8   :  { %v1223_v23 = vmul.f32 %v1911_v56, %v1222_v33  ;;  %v617_v55 = vadd.f32 0.4994258, %v616_v8  ;;  %v1232_v0 = vor.u32 1.1754944e-38, %v1231_v32  ;;  %v931_v42 = vadd.f32 0.001143296, %v930_v37  ;;  %vm1227_vm1 = vmor %vm1225_vm14, %vm1226_vm15 }
 0x1a9   :  { %v1237_v17 = vmul.f32 %v3006_v58, %v3006_v58  ;;  %v1528_v49 = vadd.f32 1.1283791, %v1527_v9  ;;  %v922_v28 = vadd.f32 0.0036580483, %v921_v12  ;;  %v1549_v34 = vand.u32 2147483647, %v3003_v29 }
 0x1aa   :  { %v1224_v44 = vadd.f32 %v1911_v56, %v1223_v23  ;;  %v618_v19 = vmul.f32 %v617_v55, %v2941_v46  ;;  %v606_v27 = vadd.f32 0.18741608, %v605_v25  ;;  %v932_v11 = vmul.f32 %v931_v42, %v2988_v14 }
 0x1ab   :  { %v3031_v43 = vmin.f32 %v1237_v17, 16.0  ;;  %v1551_v31 = vand.u32 2147483648, %v3003_v29  ;;  %v923_v20 = vmul.f32 %v922_v28, %v2988_v14  ;;  %v1529_v62 = vmul.f32 %v1528_v49, %v2899_v60 }
 0x1ac   :  { %v1228_v63 = vsel %vm1227_vm1, %v1911_v56, %v1224_v44  ;;  %v3034_v59 = vadd.f32 1.0, %v618_v19  ;;  %v1913_v4 = vpop.eup %1912  ;;  %v933_v15 = vadd.f32 0.014752088, %v932_v11  ;;  %vm1545_vm2 = vweird.f32 %v3003_v29  ;;  %v233_v56 = vpop.f32.mrf.mxu0 }
 0x1ad   :  { %v1233_v38 = vsel %vm3020_vm0, %v1232_v0, %v1228_v63  ;;  %v1239_v2 = vmul.f32 2.1237322e-06, %v3031_v43  ;;  %v1250_v24 = vmul.f32 3.8918573e-05, %v3031_v43  ;;  %v1541_v52 = vmul.f32 %v1913_v4, %v3003_v29 }
 0x1ae   :  { %v1234_v7 = vmul.f32 %v1233_v38, %v1209_v5  ;;  %vm3044_vm3 = vcmp.eq.f32.partialorder %v1549_v34, 8.507059e+37  ;;  %v607_v54 = vmul.f32 %v606_v27, %v2941_v46  ;;  %1914 = vrcp.f32 %v3034_v59 }
 0x1af   :  { %v3052_v1 = vadd.f32 %v2982_v30, %v2885_v57  ;;  %v1542_v61 = vsub.f32 1.0, %v1541_v52  ;;  %v924_v21 = vadd.f32 0.05243302, %v923_v20  ;;  %v934_v60 = vmul.f32 %v933_v15, %v2988_v14 }
 0x1b0   :  { %v1808_v26 = vclamps-f32 %v1234_v7, 1.0  ;;  %vm1546_vm4 = vweird.f32 %v1913_v4  ;;  %v1552_v47 = vor.u32 1.1754944e-38, %v1551_v31  ;;  %v1240_v48 = vadd.f32 0.00028619796, %v1239_v2 }
 0x1b1   :  { %v1251_v36 = vadd.f32 0.001143296, %v1250_v24  ;;  %v1543_v6 = vmul.f32 %v1913_v4, %v1542_v61  ;;  %v925_v46 = vmul.f32 %v924_v21, %v2988_v14  ;;  %v935_v35 = vadd.f32 0.112945676, %v934_v60  ;;  %vm1547_vm5 = vmor %vm1545_vm2, %vm1546_vm4 }
 0x1b2   :  { %v1618_v10 = vadd.f32 1.0, %v1808_v26  ;;  %v1241_v32 = vmul.f32 %v1240_v48, %v3031_v43  ;;  %v3059_v13 = vmul.f32 0.70710677, %v3052_v1  ;;  %v3062_v22 = vadd.f32 %v2982_v30, %v233_v56 }
 0x1b3   :  { %v1252_v57 = vmul.f32 %v1251_v36, %v3031_v43  ;;  %v1544_v33 = vadd.f32 %v1913_v4, %v1543_v6  ;;  %v608_v9 = vadd.f32 1.1283791, %v607_v54  ;;  %v936_v8 = vmul.f32 %v935_v35, %v2988_v14 }
 0x1b4   :  { %v1649_v51 = vmul.f32 %v1618_v10, %v2977_v3  ;;  %v1915_v37 = vpop.eup %1914  ;;  %vm625_vm6 = vweird.f32 %v3034_v59  ;;  %v1242_v5 = vadd.f32 0.0036580483, %v1241_v32  ;;  %v1557_v23 = vmul.f32 %v3059_v13, %v3059_v13 }
 0x1b5   :  { %v1253_v25 = vadd.f32 0.014752088, %v1252_v57  ;;  %v1548_v3 = vsel %vm1547_vm5, %v1913_v4, %v1544_v33  ;;  %v621_v55 = vmul.f32 %v1915_v37, %v3034_v59  ;;  %v629_v12 = vand.u32 2147483647, %v3034_v59 }
 0x1b6   :  { %1681 = vst.msk [vmem:[%s3256_s3 + $0xa8] sm:$0xff] %vm1659_vm7, %v1649_v51  ;;  %v926_v18 = vadd.f32 0.18741608, %v925_v46  ;;  %v1553_v29 = vsel %vm3044_vm3, %v1552_v47, %v1548_v3  ;;  %v937_v0 = vadd.f32 0.4994258, %v936_v8  ;;  %v1243_v42 = vmul.f32 %v1242_v5, %v3031_v43  ;;  %v253_v46 = vpop.f32.mrf.mxu1 }
 0x1b7   :  { %v1254_v17 = vmul.f32 %v1253_v25, %v3031_v43  ;;  %v1554_v44 = vmul.f32 %v1553_v29, %v1529_v62  ;;  %v622_v49 = vsub.f32 1.0, %v621_v55  ;;  %v631_v19 = vand.u32 2147483648, %v3034_v59  ;;  %v273_v55 = vpop.f32.mrf.mxu2 }
 0x1b8   :  { %v3083_v28 = vmin.f32 %v1557_v23, 16.0  ;;  %v938_v34 = vmul.f32 %v937_v0, %v2988_v14  ;;  %v1244_v27 = vadd.f32 0.05243302, %v1243_v42  ;;  %v3087_v63 = vmul.f32 0.70710677, %v3062_v22 }
 0x1b9   :  { %v1255_v11 = vadd.f32 0.112945676, %v1254_v17  ;;  %v1816_v31 = vclamps-f32 %v1554_v44, 1.0  ;;  %v623_v20 = vmul.f32 %v1915_v37, %v622_v49  ;;  %vm626_vm8 = vweird.f32 %v1915_v37 }
 0x1ba   :  { %v1559_v4 = vmul.f32 2.1237322e-06, %v3083_v28  ;;  %v927_v38 = vmul.f32 %v926_v18, %v2988_v14  ;;  %v3091_v15 = vadd.f32 1.0, %v938_v34  ;;  %v1245_v2 = vmul.f32 %v1244_v27, %v3031_v43  ;;  %vm627_vm9 = vmor %vm625_vm6, %vm626_vm8 }
 0x1bb   :  { %v1256_v24 = vmul.f32 %v1255_v11, %v3031_v43  ;;  %v1626_v7 = vadd.f32 1.0, %v1816_v31  ;;  %v624_v62 = vadd.f32 %v1915_v37, %v623_v20  ;;  %v1570_v50 = vmul.f32 3.8918573e-05, %v3083_v28 }
 0x1bc   :  { %v1560_v52 = vadd.f32 0.00028619796, %v1559_v4  ;;  %v609_v54 = vmul.f32 %v608_v9, %v2914_v39  ;;  %v632_v26 = vor.u32 1.1754944e-38, %v631_v19  ;;  %1916 = vrcp.f32 %v3091_v15 }
 0x1bd   :  { %v637_v14 = vmul.f32 %v3087_v63, %v3087_v63  ;;  %v1657_v61 = vmul.f32 %v1626_v7, %v2995_v41  ;;  %v628_v21 = vsel %vm627_vm9, %v1915_v37, %v624_v62  ;;  %vm630_vm10 = vcmp.eq.f32.partialorder %v629_v12, 8.507059e+37 }
 0x1be   :  { %v1257_v60 = vadd.f32 0.4994258, %v1256_v24  ;;  %v633_v56 = vsel %vm630_vm10, %v632_v26, %v628_v21  ;;  %v1246_v47 = vadd.f32 0.18741608, %v1245_v2  ;;  %v1561_v48 = vmul.f32 %v1560_v52, %v3083_v28 }
 0x1bf   :  { %1689 = vst.msk [vmem:[%s3256_s3 + $0xe8] sm:$0xff] %vm1659_vm7, %v1657_v61  ;;  %v634_v39 = vmul.f32 %v633_v56, %v609_v54  ;;  %v928_v59 = vadd.f32 1.1283791, %v927_v38  ;;  %v1571_v10 = vadd.f32 0.001143296, %v1570_v50  ;;  %v301_v6 = vmul.f32 0.5, %v2896_v40 }
 0x1c0   :  { %v1258_v36 = vmul.f32 %v1257_v60, %v3031_v43  ;;  %v3110_v41 = vmin.f32 %v637_v14, 16.0  ;;  %v1562_v57 = vadd.f32 0.0036580483, %v1561_v48  ;;  %v3116_v9 = vmul.f32 0.5, %v2919_v16 }
 0x1c1   :  { %v1793_v35 = vclamps-f32 %v634_v39, 1.0  ;;  %v1572_v51 = vmul.f32 %v1571_v10, %v3083_v28  ;;  %v1247_v8 = vmul.f32 %v1246_v47, %v3031_v43  ;;  %v929_v25 = vmul.f32 %v928_v59, %v2947_v45 }
 0x1c2   :  { %v3112_v32 = vadd.f32 1.0, %v1258_v36  ;;  %v1917_v33 = vpop.eup %1916  ;;  %v639_v37 = vmul.f32 2.1237322e-06, %v3110_v41  ;;  %v650_v5 = vmul.f32 3.8918573e-05, %v3110_v41  ;;  %v3124_v3 = vadd.f32 %v2982_v30, %v253_v46 }
 0x1c3   :  { %v1603_v40 = vadd.f32 1.0, %v1793_v35  ;;  %v941_v23 = vmul.f32 %v1917_v33, %v3091_v15  ;;  %vm945_vm11 = vweird.f32 %v3091_v15  ;;  %v949_v16 = vand.u32 2147483647, %v3091_v15 }
 0x1c4   :  { %v951_v12 = vand.u32 2147483648, %v3091_v15  ;;  %1918 = vrcp.f32 %v3112_v32  ;;  %v1563_v29 = vmul.f32 %v1562_v57, %v3083_v28  ;;  %v1573_v0 = vadd.f32 0.014752088, %v1572_v51 }
 0x1c5   :  { %v1634_v43 = vmul.f32 %v1603_v40, %v301_v6  ;;  %v942_v18 = vsub.f32 1.0, %v941_v23  ;;  %v1248_v45 = vadd.f32 1.1283791, %v1247_v8  ;;  %v640_v42 = vadd.f32 0.00028619796, %v639_v37 }
 0x1c6   :  { %v651_v17 = vadd.f32 0.001143296, %v650_v5  ;;  %v3132_v44 = vadd.f32 %v2982_v30, %v273_v55  ;;  %vm946_vm12 = vweird.f32 %v1917_v33  ;;  %v1574_v19 = vmul.f32 %v1573_v0, %v3083_v28 }
 0x1c7   :  { %1666 = vst.msk [vmem:[%s3256_s3 + $0x30] sm:$0xff] %vm1659_vm7, %v1634_v43  ;;  %v943_v49 = vmul.f32 %v1917_v33, %v942_v18  ;;  %v3140_v34 = vmul.f32 0.70710677, %v3124_v3  ;;  %vm3142_vm13 = vcmp.eq.f32.partialorder %v949_v16, 8.507059e+37  ;;  %v952_v11 = vor.u32 1.1754944e-38, %v951_v12  ;;  %vm947_vm14 = vmor %vm945_vm11, %vm946_vm12 }
 0x1c8   :  { %v641_v30 = vmul.f32 %v640_v42, %v3110_v41  ;;  %v652_v31 = vmul.f32 %v651_v17, %v3110_v41  ;;  %v1564_v4 = vadd.f32 0.05243302, %v1563_v29  ;;  %v1575_v38 = vadd.f32 0.112945676, %v1574_v19 }
 0x1c9   :  { %v944_v20 = vadd.f32 %v1917_v33, %v943_v49  ;;  %v957_v2 = vmul.f32 %v3140_v34, %v3140_v34  ;;  %v1249_v7 = vmul.f32 %v1248_v45, %v3006_v58  ;;  %v3154_v50 = vmul.f32 0.70710677, %v3132_v44 }
 0x1ca   :  { %v1919_v24 = vpop.eup %1918  ;;  %v642_v62 = vadd.f32 0.0036580483, %v641_v30  ;;  %v653_v52 = vadd.f32 0.014752088, %v652_v31  ;;  %vm1265_vm15 = vweird.f32 %v3112_v32  ;;  %v1269_v14 = vand.u32 2147483647, %v3112_v32 }
 0x1cb   :  { %v948_v54 = vsel %vm947_vm14, %v1917_v33, %v944_v20  ;;  %v1261_v26 = vmul.f32 %v1919_v24, %v3112_v32  ;;  %v1271_v15 = vand.u32 2147483648, %v3112_v32  ;;  %v1576_v21 = vmul.f32 %v1575_v38, %v3083_v28 }
 0x1cc   :  { %v953_v61 = vsel %vm3142_vm13, %v952_v11, %v948_v54  ;;  %v654_v58 = vmul.f32 %v653_v52, %v3110_v41  ;;  %v1565_v47 = vmul.f32 %v1564_v4, %v3083_v28  ;;  %v3165_v48 = vmin.f32 %v957_v2, 16.0 }
 0x1cd   :  { %v954_v60 = vmul.f32 %v953_v61, %v929_v25  ;;  %v1262_v56 = vsub.f32 1.0, %v1261_v26  ;;  %v1577_v39 = vadd.f32 0.4994258, %v1576_v21  ;;  %v643_v59 = vmul.f32 %v642_v62, %v3110_v41 }
 0x1ce   :  { %v655_v36 = vadd.f32 0.112945676, %v654_v58  ;;  %v1277_v10 = vmul.f32 %v3154_v50, %v3154_v50  ;;  %vm1266_vm0 = vweird.f32 %v1919_v24  ;;  %v959_v35 = vmul.f32 2.1237322e-06, %v3165_v48 }
 0x1cf   :  { %v1801_v6 = vclamps-f32 %v954_v60, 1.0  ;;  %v1263_v46 = vmul.f32 %v1919_v24, %v1262_v56  ;;  %vm3171_vm1 = vcmp.eq.f32.partialorder %v1269_v14, 8.507059e+37  ;;  %v1578_v51 = vmul.f32 %v1577_v39, %v3083_v28  ;;  %vm1267_vm2 = vmor %vm1265_vm15, %vm1266_vm0 }
 0x1d0   :  { %v656_v33 = vmul.f32 %v655_v36, %v3110_v41  ;;  %v970_v8 = vmul.f32 3.8918573e-05, %v3165_v48  ;;  %v1272_v40 = vor.u32 1.1754944e-38, %v1271_v15  ;;  %v960_v25 = vadd.f32 0.00028619796, %v959_v35 }
 0x1d1   :  { %v1611_v37 = vadd.f32 1.0, %v1801_v6  ;;  %v1264_v5 = vadd.f32 %v1919_v24, %v1263_v46  ;;  %v1579_v23 = vadd.f32 1.0, %v1578_v51  ;;  %v644_v55 = vadd.f32 0.05243302, %v643_v59 }
 0x1d2   :  { %v657_v16 = vadd.f32 0.4994258, %v656_v33  ;;  %v3180_v12 = vmin.f32 %v1277_v10, 16.0  ;;  %v1566_v29 = vadd.f32 0.18741608, %v1565_v47  ;;  %v961_v17 = vmul.f32 %v960_v25, %v3165_v48 }
 0x1d3   :  { %v1642_v43 = vmul.f32 %v1611_v37, %v3116_v9  ;;  %v1268_v18 = vsel %vm1267_vm2, %v1919_v24, %v1264_v5  ;;  %v971_v0 = vadd.f32 0.001143296, %v970_v8  ;;  %1920 = vrcp.f32 %v1579_v23 }
 0x1d4   :  { %v1273_v45 = vsel %vm3171_vm1, %v1272_v40, %v1268_v18  ;;  %v658_v42 = vmul.f32 %v657_v16, %v3110_v41  ;;  %v645_v49 = vmul.f32 %v644_v55, %v3110_v41  ;;  %v1279_v19 = vmul.f32 2.1237322e-06, %v3180_v12 }
 0x1d5   :  { %1674 = vst.msk [vmem:[%s3256_s3 + $0x70] sm:$0xff] %vm1659_vm7, %v1642_v43  ;;  %v1274_v32 = vmul.f32 %v1273_v45, %v1249_v7  ;;  %v972_v9 = vmul.f32 %v971_v0, %v3165_v48  ;;  %v1567_v11 = vmul.f32 %v1566_v29, %v3083_v28  ;;  %v317_v31 = vmul.f32 0.5, %v2985_v53 }
 0x1d6   :  { %v3195_v30 = vadd.f32 1.0, %v658_v42  ;;  %v962_v38 = vadd.f32 0.0036580483, %v961_v17  ;;  %v1290_v2 = vmul.f32 3.8918573e-05, %v3180_v12  ;;  %v1591_v15 = vand.u32 2147483648, %v1579_v23 }
 0x1d7   :  { %v1809_v27 = vclamps-f32 %v1274_v32, 1.0  ;;  %v973_v20 = vadd.f32 0.014752088, %v972_v9  ;;  %v646_v7 = vadd.f32 0.18741608, %v645_v49  ;;  %vm1585_vm4 = vweird.f32 %v1579_v23 }
 0x1d8   :  { %1922 = vrcp.f32 %v3195_v30  ;;  %v1280_v52 = vadd.f32 0.00028619796, %v1279_v19  ;;  %v1568_v26 = vadd.f32 1.1283791, %v1567_v11  ;;  %v1589_v28 = vand.u32 2147483647, %v1579_v23 }
 0x1d9   :  { %v1619_v4 = vadd.f32 1.0, %v1809_v27  ;;  %v1921_v24 = vpop.eup %1920  ;;  %v974_v62 = vmul.f32 %v973_v20, %v3165_v48  ;;  %v963_v21 = vmul.f32 %v962_v38, %v3165_v48  ;;  %v1291_v58 = vadd.f32 0.001143296, %v1290_v2 }
 0x1da   :  { %v1581_v14 = vmul.f32 %v1921_v24, %v1579_v23  ;;  %v647_v60 = vmul.f32 %v646_v7, %v3110_v41  ;;  %v1281_v47 = vmul.f32 %v1280_v52, %v3180_v12  ;;  %v1569_v59 = vmul.f32 %v1568_v26, %v3059_v13 }
 0x1db   :  { %v1650_v54 = vmul.f32 %v1619_v4, %v317_v31  ;;  %v975_v61 = vadd.f32 0.112945676, %v974_v62  ;;  %vm1586_vm3 = vweird.f32 %v1921_v24  ;;  %v1292_v10 = vmul.f32 %v1291_v58, %v3180_v12 }
 0x1dc   :  { %v1582_v53 = vsub.f32 1.0, %v1581_v14  ;;  %vm3211_vm5 = vcmp.eq.f32.partialorder %v1589_v28, 8.507059e+37  ;;  %v1592_v57 = vor.u32 1.1754944e-38, %v1591_v15  ;;  %v964_v51 = vadd.f32 0.05243302, %v963_v21  ;;  %vm1587_vm6 = vmor %vm1585_vm4, %vm1586_vm3 }
 0x1dd   :  { %1682 = vst.msk [vmem:[%s3256_s3 + $0xb0] sm:$0xff] %vm1659_vm7, %v1650_v54  ;;  %v976_v56 = vmul.f32 %v975_v61, %v3165_v48  ;;  %v1293_v33 = vadd.f32 0.014752088, %v1292_v10  ;;  %v648_v8 = vadd.f32 1.1283791, %v647_v60  ;;  %v671_v23 = vand.u32 2147483648, %v3195_v30 }
 0x1de   :  { %v1923_v39 = vpop.eup %1922  ;;  %v1583_v36 = vmul.f32 %v1921_v24, %v1582_v53  ;;  %v1282_v5 = vadd.f32 0.0036580483, %v1281_v47  ;;  %v669_v25 = vand.u32 2147483647, %v3195_v30  ;;  %v965_v0 = vmul.f32 %v964_v51, %v3165_v48 }
 0x1df   :  { %v661_v46 = vmul.f32 %v1923_v39, %v3195_v30  ;;  %v977_v35 = vadd.f32 0.4994258, %v976_v56  ;;  %v1294_v55 = vmul.f32 %v1293_v33, %v3180_v12  ;;  %vm666_vm8 = vweird.f32 %v1923_v39 }
 0x1e0   :  { %v1584_v41 = vadd.f32 %v1921_v24, %v1583_v36  ;;  %vm665_vm9 = vweird.f32 %v3195_v30  ;;  %v1283_v42 = vmul.f32 %v1282_v5, %v3180_v12  ;;  %v672_v49 = vor.u32 1.1754944e-38, %v671_v23 }
 0x1e1   :  { %v662_v37 = vsub.f32 1.0, %v661_v46  ;;  %v978_v13 = vmul.f32 %v977_v35, %v3165_v48  ;;  %v1295_v45 = vadd.f32 0.112945676, %v1294_v55  ;;  %vm667_vm10 = vmor %vm665_vm9, %vm666_vm8  ;;  %v649_v19 = vmul.f32 %v648_v8, %v3087_v63 }
 0x1e2   :  { %v1588_v40 = vsel %vm1587_vm6, %v1921_v24, %v1584_v41  ;;  %vm670_vm11 = vcmp.eq.f32.partialorder %v669_v25, 8.507059e+37  ;;  %v325_v11 = vmul.f32 0.5, %v3052_v1  ;;  %v966_v4 = vadd.f32 0.18741608, %v965_v0 }
 0x1e3   :  { %v1593_v16 = vsel %vm3211_vm5, %v1592_v57, %v1588_v40  ;;  %v663_v43 = vmul.f32 %v1923_v39, %v662_v37  ;;  %v979_v18 = vadd.f32 1.0, %v978_v13  ;;  %v1296_v9 = vmul.f32 %v1295_v45, %v3180_v12 }
 0x1e4   :  { %v1594_v29 = vmul.f32 %v1593_v16, %v1569_v59  ;;  %v1284_v2 = vadd.f32 0.05243302, %v1283_v42  ;;  %v967_v63 = vmul.f32 %v966_v4, %v3165_v48  ;;  %v302_v1 = vmul.f32 0.5, %v3062_v22 }
 0x1e5   :  { %v664_v32 = vadd.f32 %v1923_v39, %v663_v43  ;;  %1924 = vrcp.f32 %v979_v18  ;;  %v1297_v30 = vadd.f32 0.4994258, %v1296_v9  ;;  %v991_v15 = vand.u32 2147483648, %v979_v18 }
 0x1e6   :  { %v1817_v17 = vclamps-f32 %v1594_v29, 1.0  ;;  %v1285_v14 = vmul.f32 %v1284_v2, %v3180_v12  ;;  %v968_v21 = vadd.f32 1.1283791, %v967_v63  ;;  %v989_v60 = vand.u32 2147483647, %v979_v18 }
 0x1e7   :  { %v668_v27 = vsel %vm667_vm10, %v1923_v39, %v664_v32  ;;  %v1298_v52 = vmul.f32 %v1297_v30, %v3180_v12  ;;  %vm985_vm13 = vweird.f32 %v979_v18  ;;  %v992_v22 = vor.u32 1.1754944e-38, %v991_v15 }
 0x1e8   :  { %v1627_v31 = vadd.f32 1.0, %v1817_v17  ;;  %v673_v20 = vsel %vm670_vm11, %v672_v49, %v668_v27  ;;  %v1286_v48 = vadd.f32 0.18741608, %v1285_v14  ;;  %v969_v47 = vmul.f32 %v968_v21, %v3140_v34 }
 0x1e9   :  { %v674_v38 = vmul.f32 %v673_v20, %v649_v19  ;;  %v1299_v28 = vadd.f32 1.0, %v1298_v52  ;;  %vm990_vm15 = vcmp.eq.f32.partialorder %v989_v60, 8.507059e+37  ;;  %v310_v57 = vmul.f32 0.5, %v3124_v3 }
 0x1ea   :  { %v1658_v24 = vmul.f32 %v1627_v31, %v325_v11  ;;  %v1287_v10 = vmul.f32 %v1286_v48, %v3180_v12  ;;  %v318_v16 = vmul.f32 0.5, %v3132_v44 }
 0x1eb   :  { %v1925_v7 = vpop.eup %1924  ;;  %v1794_v62 = vclamps-f32 %v674_v38, 1.0  ;;  %1926 = vrcp.f32 %v1299_v28  ;;  %v1311_v33 = vand.u32 2147483648, %v1299_v28  ;;  %v1309_v13 = vand.u32 2147483647, %v1299_v28 }
 0x1ec   :  { %1690 = vst.msk [vmem:[%s3256_s3 + $0xf0] sm:$0xff] %vm1659_vm7, %v1658_v24  ;;  %v981_v54 = vmul.f32 %v1925_v7, %v979_v18  ;;  %vm986_vm12 = vweird.f32 %v1925_v7  ;;  %v1288_v51 = vadd.f32 1.1283791, %v1287_v10  ;;  %vm1305_vm1 = vweird.f32 %v1299_v28 }
 0x1ed   :  { %v1604_v26 = vadd.f32 1.0, %v1794_v62  ;;  %vm987_vm14 = vmor %vm985_vm13, %vm986_vm12  ;;  %v1312_v40 = vor.u32 1.1754944e-38, %v1311_v33  ;;  %vm1310_vm3 = vcmp.eq.f32.partialorder %v1309_v13, 8.507059e+37 }
 0x1ee   :  { %v982_v61 = vsub.f32 1.0, %v981_v54  ;;  %v1289_v12 = vmul.f32 %v1288_v51, %v3154_v50 }
 0x1ef   :  { %v1635_v53 = vmul.f32 %v1604_v26, %v302_v1 }
 0x1f0   :  { %v983_v58 = vmul.f32 %v1925_v7, %v982_v61 }
 0x1f1   :  { %1667 = vst.msk [vmem:[%s3256_s3 + $0x38] sm:$0xff] %vm1659_vm7, %v1635_v53  ;;  %v1927_v59 = vpop.eup %1926 }
 0x1f2   :  { %v984_v56 = vadd.f32 %v1925_v7, %v983_v58  ;;  %v1301_v46 = vmul.f32 %v1927_v59, %v1299_v28  ;;  %vm1306_vm0 = vweird.f32 %v1927_v59 }
 0x1f3   :  { %vm1307_vm2 = vmor %vm1305_vm1, %vm1306_vm0 }
 0x1f4   :  { %v988_v39 = vsel %vm987_vm14, %v1925_v7, %v984_v56  ;;  %v1302_v41 = vsub.f32 1.0, %v1301_v46 }
 0x1f5   :  { %v993_v36 = vsel %vm990_vm15, %v992_v22, %v988_v39 }
 0x1f6   :  { %v994_v6 = vmul.f32 %v993_v36, %v969_v47  ;;  %v1303_v37 = vmul.f32 %v1927_v59, %v1302_v41 }
 0x1f8   :  { %v1802_v35 = vclamps-f32 %v994_v6, 1.0  ;;  %v1304_v34 = vadd.f32 %v1927_v59, %v1303_v37 }
 0x1fa   :  { %v1612_v8 = vadd.f32 1.0, %v1802_v35  ;;  %v1308_v25 = vsel %vm1307_vm2, %v1927_v59, %v1304_v34 }
 0x1fb   :  { %v1313_v3 = vsel %vm1310_vm3, %v1312_v40, %v1308_v25 }
 0x1fc   :  { %v1643_v5 = vmul.f32 %v1612_v8, %v310_v57  ;;  %v1314_v23 = vmul.f32 %v1313_v3, %v1289_v12 }
 0x1fe   :  { %1675 = vst.msk [vmem:[%s3256_s3 + $0x78] sm:$0xff] %vm1659_vm7, %v1643_v5  ;;  %v1810_v55 = vclamps-f32 %v1314_v23, 1.0 }
 0x200   :  { %v1620_v43 = vadd.f32 1.0, %v1810_v55 }
 0x202   :  { %v1651_v18 = vmul.f32 %v1620_v43, %v318_v16 }
 0x204   :  { %1683 = vst.msk [vmem:[%s3256_s3 + $0xb8] sm:$0xff] %vm1659_vm7, %v1651_v18 }

// kernel: mft_forward.12
= control target key start
LH: loop header
LB: loop body
LE: loop exit
PB: predicated region body
PF: predicated region fallthrough
CT: control target
= control target key end

     0   :  { %s511_s12 = smov 0   ;;  %s624_s0 = inlined_call_operand.vmem [shape: f32[2,121,64], index: 0, kind: input, shape index: {}]   ;;  %s625_s1 = inlined_call_operand.vmem [shape: f32[1,64], index: 1, kind: input, shape index: {}]   ;;  %s626_s2 = inlined_call_operand.vmem [shape: f32[64,64], index: 2, kind: input, shape index: {}]   ;;  %s627_s3 = inlined_call_operand.vmem [shape: f32[2,1,64], index: 3, kind: output, shape index: {}]  }
   0x1 LB: > { %s418_s13 = sadd.s32 4294967295, %s489_s12   ;;  %p422_p0 = scmp.ge.s32.totalorder %s489_s12, 1  ;;  %s489_s12 = sphi %s511_s12, %s13_s12  }
   0x2   : > { %p137_p1 = scmp.lt.s32.totalorder %s489_s12, 3 }
   0x4   : > { %p138_p2 = pnand %p422_p0, %p137_p1 }
   0x5   : > { %p159_p3 = scmp.lt.s32.totalorder (!%p138_p2), %s418_s13, 1 }
   0x6   : > { %141 = sbr.rel (%p138_p2) target bundleno = 591 (0x24f), region = 32 }
   0xb   : > { %s629_s13 = smov (!%p159_p3, %s418_s13), 1  ;;  %vm184_vm0 = vcmask 523264   ;;  %v275_v9 = vld [vmem:[%s626_s2 + $0x38] sm:$0xff]  ;;  %v274_v10 = vld [vmem:[%s626_s2 + $0x30] sm:$0xff]  ;;  %v273_v12 = vld [vmem:[%s626_s2 + $0x28] sm:$0xff]  ;;  %vm256_vm1 = vcmask 983040  }
   0xc   : > { %s462_s14 = sshll.u32 %s629_s13, 7  ;;  %463 = vmatpush.msra.mxu3 %v275_v9  ;;  %284 = vmatpush.msra.mxu1 %v275_v9  ;;  %v272_v13 = vld [vmem:[%s626_s2 + $0x20] sm:$0xff]  ;;  %v271_v15 = vld [vmem:[%s626_s2 + $0x18] sm:$0xff]  ;;  %v270_v16 = vld [vmem:[%s626_s2 + $0x10] sm:$0xff]  ;;  %vm345_vm2 = vcmask 1040384   ;;  %vm341_vm3 = vcmask 990208   ;;  %s166_s11 = scalar_lea.vmem %s627_s3, %s629_s13 }
   0xd   : > { %s525_s17 = scalar_lea.vmem %s624_s0, %s462_s14  ;;  %v269_v18 = vld [vmem:[%s626_s2 + $0x8] sm:$0xff]  ;;  %v268_v19 = vld [vmem:[%s626_s2] sm:$0xff]  ;;  %vm369_vm4 = vcmask 516096  }
   0xe   : > { %v528_v0 = vld [vmem:[%s525_s17 + $0x78] sm:$0x1]  ;;  %v533_v1 = vld [vmem:[%s525_s17 + $0x70] sm:$0xff]  ;;  %v538_v2 = vld [vmem:[%s525_s17 + $0x68] sm:$0xff]  ;;  %464 = vmatpush.msra.mxu3 %v274_v10  ;;  %285 = vmatpush.msra.mxu1 %v274_v10 }
   0xf   : > { %425 = vmatpush.xpose.msk.msra.mxu0 %vm184_vm0, %v528_v0  ;;  %v179_v3 = vld [vmem:[%s525_s17 + $0x60] sm:$0xff]  ;;  %v178_v4 = vld [vmem:[%s525_s17 + $0x58] sm:$0xff]  ;;  %v177_v5 = vld [vmem:[%s525_s17 + $0x50] sm:$0xff] }
  0x10   : > { %v176_v6 = vld [vmem:[%s525_s17 + $0x48] sm:$0xff]  ;;  %v175_v7 = vld [vmem:[%s525_s17 + $0x40] sm:$0xff]  ;;  %v174_v8 = vld [vmem:[%s525_s17 + $0x38] sm:$0xff]  ;;  %465 = vmatpush.msra.mxu3 %v273_v12  ;;  %286 = vmatpush.msra.mxu1 %v273_v12 }
  0x11   : > { %v173_v11 = vld [vmem:[%s525_s17 + $0x30] sm:$0xff]  ;;  %v172_v14 = vld [vmem:[%s525_s17 + $0x28] sm:$0xff]  ;;  %v171_v17 = vld [vmem:[%s525_s17 + $0x20] sm:$0xff] }
  0x12   : > { %466 = vmatpush.msra.mxu3 %v272_v13  ;;  %287 = vmatpush.msra.mxu1 %v272_v13  ;;  %v170_v20 = vld [vmem:[%s525_s17 + $0x18] sm:$0xff]  ;;  %v167_v21 = vld [vmem:[%s525_s17] sm:$0xff]  ;;  %v169_v22 = vld [vmem:[%s525_s17 + $0x10] sm:$0xff] }
  0x13   : > { %426 = vmatpush.xpose.msk.msra.mxu0 %vm184_vm0, %v533_v1  ;;  %v168_v23 = vld [vmem:[%s525_s17 + $0x8] sm:$0xff]  ;;  %v183_v24 = vld [vmem:[%s625_s1] sm:$0x1] }
  0x14   : > { %467 = vmatpush.msra.mxu3 %v271_v15  ;;  %288 = vmatpush.msra.mxu1 %v271_v15 }
  0x16   : > { %468 = vmatpush.msra.mxu3 %v270_v16  ;;  %289 = vmatpush.msra.mxu1 %v270_v16 }
  0x17   : > { %427 = vmatpush.xpose.msk.msra.mxu0 %vm184_vm0, %v538_v2 }
  0x18   : > { %469 = vmatpush.msra.mxu3 %v269_v18  ;;  %290 = vmatpush.msra.mxu1 %v269_v18 }
  0x1a   : > { %470 = vmatpush.msra.mxu3 %v268_v19  ;;  %291 = vmatpush.msra.mxu1 %v268_v19 }
  0x1b   : > { %428 = vmatpush.xpose.msk.msra.mxu0 %vm184_vm0, %v179_v3  ;;  %449 = vmatmul.msk.f32.vlgmr.msra.gmra.mxu3 %vm184_vm0, %v174_v8 }
  0x1c   : > { %442 = vmatmul.msk.f32.vlgmr.msra.gmra.mxu1 %vm184_vm0, %v167_v21 }
  0x1f   : > { %429 = vmatpush.xpose.msk.msra.mxu0 %vm184_vm0, %v178_v4 }
  0x23   : > { %430 = vmatpush.xpose.msk.msra.mxu0 %vm184_vm0, %v177_v5  ;;  %450 = vmatmul.msk.f32.gmra.mxu3 %vm184_vm0, %v175_v7 }
  0x24   : > { %443 = vmatmul.msk.f32.gmra.mxu1 %vm184_vm0, %v168_v23 }
  0x27   : > { %431 = vmatpush.xpose.msk.msra.mxu0 %vm184_vm0, %v176_v6 }
  0x2b   : > { %432 = vmatpush.xpose.msk.msra.mxu0 %vm184_vm0, %v175_v7  ;;  %451 = vmatmul.msk.f32.gmra.mxu3 %vm184_vm0, %v176_v6 }
  0x2c   : > { %444 = vmatmul.msk.f32.gmra.mxu1 %vm184_vm0, %v169_v22 }
  0x2f   : > { %433 = vmatpush.xpose.msk.msra.mxu0 %vm184_vm0, %v174_v8 }
  0x33   : > { %434 = vmatpush.xpose.msk.msra.mxu0 %vm184_vm0, %v173_v11  ;;  %452 = vmatmul.msk.f32.gmra.mxu3 %vm184_vm0, %v177_v5 }
  0x34   : > { %445 = vmatmul.msk.f32.gmra.mxu1 %vm184_vm0, %v170_v20 }
  0x37   : > { %435 = vmatpush.xpose.msk.msra.mxu0 %vm184_vm0, %v172_v14 }
  0x3b   : > { %436 = vmatpush.xpose.msk.msra.mxu0 %vm184_vm0, %v171_v17  ;;  %453 = vmatmul.msk.f32.gmra.mxu3 %vm184_vm0, %v178_v4 }
  0x3c   : > { %446 = vmatmul.msk.f32.gmra.mxu1 %vm184_vm0, %v171_v17 }
  0x3f   : > { %437 = vmatpush.xpose.msk.msra.mxu0 %vm184_vm0, %v170_v20 }
  0x43   : > { %438 = vmatpush.xpose.msk.msra.mxu0 %vm184_vm0, %v169_v22  ;;  %454 = vmatmul.msk.f32.gmra.mxu3 %vm184_vm0, %v179_v3 }
  0x44   : > { %447 = vmatmul.msk.f32.gmra.mxu1 %vm184_vm0, %v172_v14 }
  0x47   : > { %439 = vmatpush.xpose.msk.msra.mxu0 %vm184_vm0, %v168_v23 }
  0x4b   : > { %440 = vmatpush.xpose.msk.msra.mxu0 %vm184_vm0, %v167_v21  ;;  %455 = vmatmul.msk.f32.gmra.mxu3 %vm184_vm0, %v538_v2 }
  0x4c   : > { %448 = vmatmul.msk.f32.gmra.mxu1 %vm184_vm0, %v173_v11 }
  0x4e   : > { %441 = vmatmul.msk.f32.vlgmr.msra.gmra.mxu0 %vm184_vm0, %v183_v24 }
  0x53   : > { %456 = vmatmul.msk.f32.gmra.mxu3 %vm184_vm0, %v533_v1 }
  0x5b   : > { %457 = vmatmul.msk.f32.gmra.mxu3 %vm184_vm0, %v528_v0 }
  0x99   : > { %v293_v34 = vpop.f32.mrf.mxu1 }
  0x9e   : > { %v314_v27 = vpop.f32.mrf.mxu3 }
  0xa1   : > { %v296_v36 = vpop.f32.mrf.mxu1 }
  0xa6   : > { %v317_v28 = vpop.f32.mrf.mxu3 }
  0xa9   : > { %v299_v38 = vpop.f32.mrf.mxu1 }
  0xae   : > { %v320_v29 = vpop.f32.mrf.mxu3 }
  0xb1   : > { %v302_v42 = vpop.f32.mrf.mxu1 }
  0xb6   : > { %v323_v30 = vpop.f32.mrf.mxu3 }
  0xb9   : > { %v305_v45 = vpop.f32.mrf.mxu1 }
  0xbe   : > { %v326_v31 = vpop.f32.mrf.mxu3 }
  0xc1   : > { %v308_v46 = vpop.f32.mrf.mxu1 }
  0xc6   : > { %v329_v32 = vpop.f32.mrf.mxu3 }
  0xc9   : > { %v311_v47 = vpop.f32.mrf.mxu1 }
  0xcb   : > { %v253_v25 = vpop.f32.mrf.mxu0 }
  0xcc   : > { %v257_v26 = vsel %vm256_vm1, %v253_v25, -inf }
  0xcd   : > { %258 = vmax.xlane.f32.xlu0 %v257_v26 }
  0xce   : > { %v332_v33 = vpop.f32.mrf.mxu3 }
  0xd6   : > { %v335_v35 = vpop.f32.mrf.mxu3 }
  0xde   : > { %v338_v37 = vpop.f32.mrf.mxu3 }
  0xdf   : > { %458 = vmatpush.msk.msra.mxu2 %vm345_vm2, %v338_v37 }
  0xe1   : > { %350 = vmatpush.msra.mxu2 %v335_v35 }
  0xe3   : > { %351 = vmatpush.msra.mxu2 %v332_v33 }
  0xe5   : > { %352 = vmatpush.msra.mxu2 %v329_v32 }
  0xe7   : > { %353 = vmatpush.msra.mxu2 %v326_v31 }
  0xe9   : > { %354 = vmatpush.msra.mxu2 %v323_v30 }
  0xeb   : > { %355 = vmatpush.msra.mxu2 %v320_v29 }
  0xed   : > { %356 = vmatpush.msra.mxu2 %v317_v28 }
  0xef   : > { %357 = vmatpush.msra.mxu2 %v314_v27 }
  0xf1   : > { %358 = vmatpush.msra.mxu2 %v311_v47 }
  0xf3   : > { %359 = vmatpush.msra.mxu2 %v308_v46 }
  0xf5   : > { %360 = vmatpush.msra.mxu2 %v305_v45 }
  0xf7   : > { %361 = vmatpush.msra.mxu2 %v302_v42 }
  0xf9   : > { %362 = vmatpush.msra.mxu2 %v299_v38 }
  0xfb   : > { %363 = vmatpush.msra.mxu2 %v296_v36 }
  0xfd   : > { %364 = vmatpush.msra.mxu2 %v293_v34 }
 0x140   : > { %v259_v39 = vpop.xlane.xlu0 %258 }
 0x141   : > { %v260_v40 = vsub.f32 %v253_v25, %v259_v39 }
 0x143   : > { %v261_v41 = vmul.f32 1.442695, %v260_v40 }
 0x145   : > { %479 = vpow2.f32 %v261_v41 }
 0x14b   : > { %v480_v43 = vpop.eup %479 }
 0x14c   : > { %v263_v44 = vsel %vm256_vm1, %v480_v43, 0.0 }
 0x14d   : > { %264 = vadd.xlane.f32.xlu0 %v263_v44 }
 0x1c0   : > { %v265_v48 = vpop.xlane.xlu0 %264 }
 0x1c1   : > { %481 = vrcp.f32 %v265_v48 }
 0x1c7   : > { %v482_v49 = vpop.eup %481 }
 0x1c8   : > { %v267_v50 = vmul.f32 %v482_v49, %v480_v43 }
 0x1ca   : > { %459 = vmatmul.msk.f32.vlgmr.msra.gmra.mxu2 %vm341_vm3, %v267_v50 }
 0x24d   : > { %v366_v51 = vpop.f32.mrf.mxu2 }
 0x24e   : > { %370 = vst.msk [vmem:[%s166_s11] sm:$0x1] %vm369_vm4, %v366_v51 }
 0x24f PF: > { %s13_s12 = sadd.s32 1, %s489_s12  }
 0x250   : > { %p10_p4 = scmp.ge.s32.totalorder %s13_s12, 4  }
 0x252   :  { %12 = sbr.rel (!%p10_p4) target bundleno = 1 (0x1), region = 62 }

// kernel: mft_forward.15
= control target key start
LH: loop header
LB: loop body
LE: loop exit
PB: predicated region body
PF: predicated region fallthrough
CT: control target
= control target key end

     0   :  { %vm28_vm0 = vcmask 1041409   ;;  %vm31_vm1 = vcmask 517120   ;;  %s259_s0 = inlined_call_operand.vmem [shape: f32[2,5,64], index: 0, kind: input, shape index: {}]   ;;  %s260_s1 = inlined_call_operand.vmem [shape: f32[1,64], index: 1, kind: input, shape index: {}]   ;;  %s261_s2 = inlined_call_operand.vmem [shape: f32[1,64], index: 2, kind: input, shape index: {}]   ;;  %s262_s3 = inlined_call_operand.vmem [shape: f32[64,8], index: 3, kind: input, shape index: {}]   ;;  %s263_s4 = inlined_call_operand.vmem [shape: f32[1,8], index: 4, kind: input, shape index: {}]   ;;  %s264_s5 = inlined_call_operand.hbm [shape: f32[2,8], index: 5, kind: output, shape index: {}]  }
   0x1   :  { %v21_v0 = vld [vmem:[%s259_s0] sm:$0x1f]  ;;  %v22_v1 = vld [vmem:[%s259_s0 + $0x8] sm:$0x1f] }
   0x2   :  { %v27_v2 = vrot.slane %v22_v1, 7 }
   0x3   :  { %10 = vsyncpa [#allocation3], 0  ;;  %v180_v5 = vmov 64.0   ;;  %v94_v22 = vld [vmem:[%s262_s3 + $0x38] sm:$0xff]  ;;  %v93_v23 = vld [vmem:[%s262_s3 + $0x30] sm:$0xff]  ;;  %vm103_vm6 = vcmask 523264  }
   0x4   :  { %v29_v3 = vsel %vm28_vm0, %v27_v2, %v21_v0  ;;  %150 = vrcp.f32 %v180_v5  ;;  %114 = vmatpush.msra.mxu0 %v94_v22  ;;  %v92_v24 = vld [vmem:[%s262_s3 + $0x28] sm:$0xff]  ;;  %v91_v25 = vld [vmem:[%s262_s3 + $0x20] sm:$0xff]  ;;  %v90_v26 = vld [vmem:[%s262_s3 + $0x18] sm:$0xff]  ;;  %s181_s17 = smov [#allocation2]   ;;  %s135_s20 = sshll.u32 %s264_s5, 4  ;;  %vm126_vm7 = vcmask 58368   ;;  %s136_s20 = int_to_ptr.hbm [resolvable:$true] %s135_s20 }
   0x5   :  { %v32_v4 = vsel %vm31_vm1, %v29_v3, 0.0  ;;  %v89_v27 = vld [vmem:[%s262_s3 + $0x10] sm:$0xff]  ;;  %v88_v28 = vld [vmem:[%s262_s3 + $0x8] sm:$0xff]  ;;  %v87_v29 = vld [vmem:[%s262_s3] sm:$0xff] }
   0x6   :  { %33 = vadd.xlane.f32.xlu0 %v32_v4  ;;  %115 = vmatpush.msra.mxu0 %v93_v23  ;;  %v147_v42 = vld [vmem:[%s260_s1] ss:$0 sm:$0xff]  ;;  %s133_s1 = sshll.u32 %s181_s17, 4  ;;  %s134_s1 = int_to_ptr.vmem [resolvable:$true] %s133_s1 }
   0x7   :  { %v148_v46 = vld [vmem:[%s261_s2] ss:$0 sm:$0xff] }
   0x8   :  { %116 = vmatpush.msra.mxu0 %v92_v24  ;;  %v149_v51 = vld [vmem:[%s263_s4] ss:$0 sm:$0xff] }
   0xa   :  { %v151_v6 = vpop.eup %150  ;;  %117 = vmatpush.msra.mxu0 %v91_v25 }
   0xb   :  { %v36_v7 = vmul.f32 64.0, %v151_v6  ;;  %vm40_vm2 = vweird.f32 %v151_v6 }
   0xc   :  { %118 = vmatpush.msra.mxu0 %v90_v26 }
   0xd   :  { %v37_v8 = vsub.f32 1.0, %v36_v7 }
   0xe   :  { %119 = vmatpush.msra.mxu0 %v89_v27 }
   0xf   :  { %v38_v9 = vmul.f32 %v151_v6, %v37_v8 }
  0x10   :  { %120 = vmatpush.msra.mxu0 %v88_v28 }
  0x11   :  { %v39_v10 = vadd.f32 %v151_v6, %v38_v9 }
  0x12   :  { %121 = vmatpush.msra.mxu0 %v87_v29 }
  0x13   :  { %v41_v11 = vsel %vm40_vm2, %v151_v6, %v39_v10 }
  0x79   :  { %v34_v12 = vpop.xlane.xlu0 %33 }
  0x7a   :  { %v42_v13 = vmul.f32 %v41_v11, %v34_v12 }
  0x7c   :  { %v44_v14 = vrot.slane %v42_v13, 1  ;;  %v47_v15 = vsub.f32 %v21_v0, %v42_v13 }
  0x7e   :  { %v48_v16 = vsub.f32 %v22_v1, %v44_v14  ;;  %v49_v18 = vmul.f32 %v47_v15, %v47_v15 }
  0x80   :  { %v50_v17 = vmul.f32 %v48_v16, %v48_v16 }
  0x82   :  { %v53_v19 = vrot.slane %v50_v17, 7 }
  0x84   :  { %v54_v20 = vsel %vm28_vm0, %v53_v19, %v49_v18 }
  0x85   :  { %v56_v21 = vsel %vm31_vm1, %v54_v20, 0.0 }
  0x86   :  { %57 = vadd.xlane.f32.xlu0 %v56_v21 }
  0xf9   :  { %v58_v30 = vpop.xlane.xlu0 %57 }
  0xfa   :  { %v59_v31 = vmul.f32 %v58_v30, %v41_v11 }
  0xfc   :  { %v60_v32 = vadd.f32 1e-06, %v59_v31 }
  0xfe   :  { %152 = vrsqrt.f32 %v60_v32  ;;  %vm67_vm4 = vweird.f32 %v60_v32 }
 0x104   :  { %v153_v33 = vpop.eup %152 }
 0x105   :  { %v62_v34 = vmul.f32 %v153_v33, %v60_v32  ;;  %vm68_vm3 = vweird.f32 %v153_v33 }
 0x106   :  { %vm69_vm5 = vmor %vm67_vm4, %vm68_vm3 }
 0x107   :  { %v63_v35 = vmul.f32 %v153_v33, %v62_v34 }
 0x109   :  { %v64_v36 = vmul.f32 0.5, %v63_v35 }
 0x10b   :  { %v65_v37 = vsub.f32 1.5, %v64_v36 }
 0x10d   :  { %v66_v38 = vmul.f32 %v153_v33, %v65_v37 }
 0x10f   :  { %v70_v39 = vsel %vm69_vm5, %v153_v33, %v66_v38 }
 0x110   :  { %v72_v40 = vrot.slane %v70_v39, 1  ;;  %v75_v41 = vmul.f32 %v70_v39, %v47_v15 }
 0x112   :  { %v76_v43 = vmul.f32 %v72_v40, %v48_v16  ;;  %v80_v44 = vmul.f32 %v147_v42, %v75_v41 }
 0x114   :  { %v81_v45 = vmul.f32 %v147_v42, %v76_v43  ;;  %v85_v48 = vadd.f32 %v148_v46, %v80_v44 }
 0x116   :  { %v86_v47 = vadd.f32 %v148_v46, %v81_v45 }
 0x118   :  { %v101_v49 = vrot.slane %v86_v47, 7 }
 0x11a   :  { %v102_v50 = vsel %vm28_vm0, %v101_v49, %v85_v48 }
 0x11b   :  { %144 = vmatmul.msk.f32.vlgmr.msra.gmra.mxu0 %vm103_vm6, %v102_v50 }
 0x198   :  { %v123_v52 = vpop.f32.mrf.mxu0 }
 0x199   :  { %v124_v53 = vadd.f32 %v149_v51, %v123_v52 }
 0x19b   :  { %127 = vst.msk [vmem:[#allocation2] sm:$0x3] %vm126_vm7, %v124_v53 }
 0x19c   :  { %138 = dma.vmem_to_hbm [thread:$0]  %s134_s1, 32, %s136_s20, [#allocation3]  }
 0x19d   :  { %178 = dma.done.wait [#allocation3], 32  }
 0x19e   :  { %179 = vsyncadd [#allocation3], 4294967264 }
 0x19f   :  { %143 = vsyncpa [#allocation3], 1 }

// kernel: mft_forward.13
= control target key start
LH: loop header
LB: loop body
LE: loop exit
PB: predicated region body
PF: predicated region fallthrough
CT: control target
= control target key end

     0   :  { %s2004_s25 = smov 0   ;;  %s2721_s0 = inlined_call_operand.vmem [shape: f32[2,5,64], index: 0, kind: input, shape index: {}]   ;;  %s2722_s1 = inlined_call_operand.vmem [shape: f32[1,64], index: 1, kind: input, shape index: {}]   ;;  %s2723_s2 = inlined_call_operand.vmem [shape: f32[1,64], index: 2, kind: input, shape index: {}]   ;;  %s2724_s3 = inlined_call_operand.vmem [shape: f32[64,512], index: 3, kind: input, shape index: {}]   ;;  %s2725_s4 = inlined_call_operand.vmem [shape: f32[64,1024], index: 4, kind: input, shape index: {}]   ;;  %s2726_s5 = inlined_call_operand.vmem [shape: f32[512,64], index: 5, kind: input, shape index: {}]   ;;  %s2727_s6 = inlined_call_operand.vmem [shape: f32[1,64], index: 6, kind: input, shape index: {}]   ;;  %s2728_s7 = inlined_call_operand.vmem [shape: f32[1,64], index: 7, kind: input, shape index: {}]   ;;  %s2729_s8 = inlined_call_operand.vmem [shape: f32[1,64], index: 8, kind: input, shape index: {}]   ;;  %s2730_s9 = inlined_call_operand.vmem [shape: f32[64,32], index: 9, kind: input, shape index: {}]   ;;  %s2731_s10 = inlined_call_operand.vmem [shape: f32[1,32], index: 10, kind: input, shape index: {}]   ;;  %s2732_s11 = inlined_call_operand.vmem [shape: f32[32,64], index: 11, kind: input, shape index: {}]   ;;  %s2733_s12 = inlined_call_operand.vmem [shape: f32[1,64], index: 12, kind: input, shape index: {}]   ;;  %s2734_s13 = inlined_call_operand.vmem [shape: f32[2,5,64], index: 13, kind: output, shape index: {}]  }
   0x1 LB: > { %s1803_s26 = sadd.s32 4294967295, %s1930_s25   ;;  %p1807_p0 = scmp.ge.s32.totalorder %s1930_s25, 1  ;;  %s1930_s25 = sphi %s2004_s25, %s23_s25  }
   0x2   : > { %p386_p1 = scmp.lt.s32.totalorder %s1930_s25, 3 }
   0x4   : > { %p387_p2 = pnand %p1807_p0, %p386_p1 }
   0x5   : > { %p428_p3 = scmp.lt.s32.totalorder (!%p387_p2), %s1803_s26, 1  ;;  %s1933_s15 = smov (!%p387_p2), 64  }
   0x6   : > { %390 = sbr.rel (%p387_p2) target bundleno = 1850 (0x73a), region = 72 }
   0xb   : > { %s2736_s26 = smov (!%p428_p3, %s1803_s26), 1  ;;  %vm439_vm0 = vcmask 520192   ;;  %v1932_v2 = vmov 64.0   ;;  %v505_v3 = vld [vmem:[%s2724_s3 + $0xe0] sm:$0xff]  ;;  %v506_v4 = vld [vmem:[%s2724_s3 + $0xe8] sm:$0xff]  ;;  %v507_v5 = vld [vmem:[%s2724_s3 + $0xf0] sm:$0xff] }
   0xc   : > { %s1808_s27 = sshll.u32 %s2736_s26, 3  ;;  %1883 = vrcp.f32 %v1932_v2  ;;  %521 = vmatpush.msra.mxu0 %v505_v3  ;;  %541 = vmatpush.msra.mxu1 %v506_v4  ;;  %v508_v6 = vld [vmem:[%s2724_s3 + $0xf8] sm:$0xff]  ;;  %v501_v18 = vld [vmem:[%s2724_s3 + $0xc0] sm:$0xff]  ;;  %v502_v19 = vld [vmem:[%s2724_s3 + $0xc8] sm:$0xff]  ;;  %vm509_vm5 = vcmask 523264   ;;  %vm925_vm6 = vcmask 1044480  }
   0xd   : > { %s2020_s30 = scalar_lea.vmem %s2721_s0, %s1808_s27  ;;  %561 = vmatpush.msra.mxu2 %v507_v5  ;;  %581 = vmatpush.msra.mxu3 %v508_v6  ;;  %v503_v20 = vld [vmem:[%s2724_s3 + $0xd0] sm:$0xff]  ;;  %v504_v21 = vld [vmem:[%s2724_s3 + $0xd8] sm:$0xff]  ;;  %v497_v22 = vld [vmem:[%s2724_s3 + $0xa0] sm:$0xff]  ;;  %vm909_vm7 = vcmask 32768   ;;  %vm921_vm8 = vcmask 39936   ;;  %s435_s21 = scalar_lea.vmem %s2734_s13, %s1808_s27 }
   0xe   : > { %v436_v0 = vld [vmem:[%s2020_s30] sm:$0x1f]  ;;  %522 = vmatpush.msra.mxu0 %v501_v18  ;;  %542 = vmatpush.msra.mxu1 %v502_v19  ;;  %v498_v23 = vld [vmem:[%s2724_s3 + $0xa8] sm:$0xff]  ;;  %v499_v24 = vld [vmem:[%s2724_s3 + $0xb0] sm:$0xff] }
   0xf   : > { %v440_v1 = vsel %vm439_vm0, %v436_v0, 0.0  ;;  %562 = vmatpush.msra.mxu2 %v503_v20  ;;  %582 = vmatpush.msra.mxu3 %v504_v21  ;;  %v500_v25 = vld [vmem:[%s2724_s3 + $0xb8] sm:$0xff]  ;;  %v493_v26 = vld [vmem:[%s2724_s3 + $0x80] sm:$0xff]  ;;  %v494_v27 = vld [vmem:[%s2724_s3 + $0x88] sm:$0xff] }
  0x10   : > { %441 = vadd.xlane.f32.xlu0 %v440_v1  ;;  %523 = vmatpush.msra.mxu0 %v497_v22  ;;  %v495_v28 = vld [vmem:[%s2724_s3 + $0x90] sm:$0xff]  ;;  %v496_v29 = vld [vmem:[%s2724_s3 + $0x98] sm:$0xff]  ;;  %v489_v30 = vld [vmem:[%s2724_s3 + $0x60] sm:$0xff] }
  0x11   : > { %543 = vmatpush.msra.mxu1 %v498_v23  ;;  %563 = vmatpush.msra.mxu2 %v499_v24  ;;  %v490_v31 = vld [vmem:[%s2724_s3 + $0x68] sm:$0xff]  ;;  %v491_v32 = vld [vmem:[%s2724_s3 + $0x70] sm:$0xff]  ;;  %v492_v33 = vld [vmem:[%s2724_s3 + $0x78] sm:$0xff] }
  0x12   : > { %v1884_v7 = vpop.eup %1883  ;;  %583 = vmatpush.msra.mxu3 %v500_v25  ;;  %524 = vmatpush.msra.mxu0 %v493_v26  ;;  %v485_v34 = vld [vmem:[%s2724_s3 + $0x40] sm:$0xff]  ;;  %v486_v35 = vld [vmem:[%s2724_s3 + $0x48] sm:$0xff]  ;;  %v487_v36 = vld [vmem:[%s2724_s3 + $0x50] sm:$0xff] }
  0x13   : > { %v444_v8 = vmul.f32 64.0, %v1884_v7  ;;  %vm448_vm1 = vweird.f32 %v1884_v7  ;;  %544 = vmatpush.msra.mxu1 %v494_v27  ;;  %564 = vmatpush.msra.mxu2 %v495_v28  ;;  %v488_v37 = vld [vmem:[%s2724_s3 + $0x58] sm:$0xff]  ;;  %v481_v38 = vld [vmem:[%s2724_s3 + $0x20] sm:$0xff]  ;;  %v482_v39 = vld [vmem:[%s2724_s3 + $0x28] sm:$0xff] }
  0x14   : > { %584 = vmatpush.msra.mxu3 %v496_v29  ;;  %525 = vmatpush.msra.mxu0 %v489_v30  ;;  %v483_v40 = vld [vmem:[%s2724_s3 + $0x30] sm:$0xff]  ;;  %v484_v41 = vld [vmem:[%s2724_s3 + $0x38] sm:$0xff]  ;;  %v477_v42 = vld [vmem:[%s2724_s3] sm:$0xff] }
  0x15   : > { %v445_v9 = vsub.f32 1.0, %v444_v8  ;;  %545 = vmatpush.msra.mxu1 %v490_v31  ;;  %565 = vmatpush.msra.mxu2 %v491_v32  ;;  %v478_v43 = vld [vmem:[%s2724_s3 + $0x8] sm:$0xff]  ;;  %v479_v44 = vld [vmem:[%s2724_s3 + $0x10] sm:$0xff]  ;;  %v480_v45 = vld [vmem:[%s2724_s3 + $0x18] sm:$0xff] }
  0x16   : > { %585 = vmatpush.msra.mxu3 %v492_v33  ;;  %526 = vmatpush.msra.mxu0 %v485_v34  ;;  %v649_v46 = vld [vmem:[%s2725_s4 + $0x1c0] sm:$0xff]  ;;  %v650_v47 = vld [vmem:[%s2725_s4 + $0x1c8] sm:$0xff]  ;;  %v651_v48 = vld [vmem:[%s2725_s4 + $0x1d0] sm:$0xff] }
  0x17   : > { %v446_v10 = vmul.f32 %v1884_v7, %v445_v9  ;;  %546 = vmatpush.msra.mxu1 %v486_v35  ;;  %566 = vmatpush.msra.mxu2 %v487_v36  ;;  %v652_v49 = vld [vmem:[%s2725_s4 + $0x1d8] sm:$0xff]  ;;  %v641_v50 = vld [vmem:[%s2725_s4 + $0x180] sm:$0xff]  ;;  %v642_v51 = vld [vmem:[%s2725_s4 + $0x188] sm:$0xff] }
  0x18   : > { %586 = vmatpush.msra.mxu3 %v488_v37  ;;  %527 = vmatpush.msra.mxu0 %v481_v38  ;;  %v643_v52 = vld [vmem:[%s2725_s4 + $0x190] sm:$0xff]  ;;  %v644_v53 = vld [vmem:[%s2725_s4 + $0x198] sm:$0xff]  ;;  %v633_v54 = vld [vmem:[%s2725_s4 + $0x140] sm:$0xff] }
  0x19   : > { %v447_v11 = vadd.f32 %v1884_v7, %v446_v10  ;;  %547 = vmatpush.msra.mxu1 %v482_v39  ;;  %567 = vmatpush.msra.mxu2 %v483_v40  ;;  %v634_v55 = vld [vmem:[%s2725_s4 + $0x148] sm:$0xff]  ;;  %v635_v56 = vld [vmem:[%s2725_s4 + $0x150] sm:$0xff]  ;;  %v636_v57 = vld [vmem:[%s2725_s4 + $0x158] sm:$0xff] }
  0x1a   : > { %587 = vmatpush.msra.mxu3 %v484_v41  ;;  %528 = vmatpush.msra.mxu0 %v477_v42  ;;  %v625_v58 = vld [vmem:[%s2725_s4 + $0x100] sm:$0xff]  ;;  %v626_v59 = vld [vmem:[%s2725_s4 + $0x108] sm:$0xff]  ;;  %v627_v60 = vld [vmem:[%s2725_s4 + $0x110] sm:$0xff] }
  0x1b   : > { %v2036_v12 = vsel %vm448_vm1, %v1884_v7, %v447_v11  ;;  %548 = vmatpush.msra.mxu1 %v478_v43  ;;  %568 = vmatpush.msra.mxu2 %v479_v44  ;;  %v628_v61 = vld [vmem:[%s2725_s4 + $0x118] sm:$0xff]  ;;  %v617_v62 = vld [vmem:[%s2725_s4 + $0xc0] sm:$0xff]  ;;  %v618_v63 = vld [vmem:[%s2725_s4 + $0xc8] sm:$0xff]  ;;  %vm1724_vm1 = vcmask 261120  }
  0x1c   : > { %588 = vmatpush.msra.mxu3 %v480_v45  ;;  %665 = vmatpush.msrb.mxu0 %v649_v46  ;;  %v620_v1 = vld [vmem:[%s2725_s4 + $0xd8] sm:$0xff]  ;;  %v609_v2 = vld [vmem:[%s2725_s4 + $0x80] sm:$0xff]  ;;  %v610_v3 = vld [vmem:[%s2725_s4 + $0x88] sm:$0xff] }
  0x1d   : > { %685 = vmatpush.msrb.mxu1 %v650_v47  ;;  %705 = vmatpush.msrb.mxu2 %v651_v48  ;;  %v611_v4 = vld [vmem:[%s2725_s4 + $0x90] sm:$0xff]  ;;  %v612_v5 = vld [vmem:[%s2725_s4 + $0x98] sm:$0xff]  ;;  %v601_v6 = vld [vmem:[%s2725_s4 + $0x40] sm:$0xff] }
  0x1e   : > { %725 = vmatpush.msrb.mxu3 %v652_v49  ;;  %666 = vmatpush.msrb.mxu0 %v641_v50  ;;  %v602_v7 = vld [vmem:[%s2725_s4 + $0x48] sm:$0xff]  ;;  %v603_v8 = vld [vmem:[%s2725_s4 + $0x50] sm:$0xff]  ;;  %v604_v9 = vld [vmem:[%s2725_s4 + $0x58] sm:$0xff] }
  0x1f   : > { %686 = vmatpush.msrb.mxu1 %v642_v51  ;;  %706 = vmatpush.msrb.mxu2 %v643_v52  ;;  %v593_v10 = vld [vmem:[%s2725_s4] sm:$0xff]  ;;  %v594_v11 = vld [vmem:[%s2725_s4 + $0x8] sm:$0xff]  ;;  %v656_v33 = vld [vmem:[%s2725_s4 + $0x1f8] sm:$0xff] }
  0x20   : > { %726 = vmatpush.msrb.mxu3 %v644_v53  ;;  %667 = vmatpush.msrb.mxu0 %v633_v54  ;;  %v1877_v25 = vld [vmem:[%s2722_s1] ss:$0 sm:$0xff]  ;;  %v654_v32 = vld [vmem:[%s2725_s4 + $0x1e8] sm:$0xff]  ;;  %v647_v36 = vld [vmem:[%s2725_s4 + $0x1b0] sm:$0xff] }
  0x21   : > { %687 = vmatpush.msrb.mxu1 %v634_v55  ;;  %707 = vmatpush.msrb.mxu2 %v635_v56  ;;  %v1878_v27 = vld [vmem:[%s2723_s2] ss:$0 sm:$0xff]  ;;  %v646_v35 = vld [vmem:[%s2725_s4 + $0x1a8] sm:$0xff]  ;;  %v648_v37 = vld [vmem:[%s2725_s4 + $0x1b8] sm:$0xff] }
  0x22   : > { %727 = vmatpush.msrb.mxu3 %v636_v57  ;;  %668 = vmatpush.msrb.mxu0 %v625_v58  ;;  %v653_v31 = vld [vmem:[%s2725_s4 + $0x1e0] sm:$0xff]  ;;  %v638_v39 = vld [vmem:[%s2725_s4 + $0x168] sm:$0xff]  ;;  %v639_v40 = vld [vmem:[%s2725_s4 + $0x170] sm:$0xff] }
  0x23   : > { %688 = vmatpush.msrb.mxu1 %v626_v59  ;;  %708 = vmatpush.msrb.mxu2 %v627_v60  ;;  %v645_v34 = vld [vmem:[%s2725_s4 + $0x1a0] sm:$0xff]  ;;  %v640_v41 = vld [vmem:[%s2725_s4 + $0x178] sm:$0xff]  ;;  %v630_v43 = vld [vmem:[%s2725_s4 + $0x128] sm:$0xff] }
  0x24   : > { %728 = vmatpush.msrb.mxu3 %v628_v61  ;;  %669 = vmatpush.msrb.mxu0 %v617_v62  ;;  %v637_v38 = vld [vmem:[%s2725_s4 + $0x160] sm:$0xff]  ;;  %v631_v44 = vld [vmem:[%s2725_s4 + $0x130] sm:$0xff]  ;;  %v632_v45 = vld [vmem:[%s2725_s4 + $0x138] sm:$0xff] }
  0x25   : > { %689 = vmatpush.msrb.mxu1 %v618_v63  ;;  %v629_v42 = vld [vmem:[%s2725_s4 + $0x120] sm:$0xff]  ;;  %v622_v47 = vld [vmem:[%s2725_s4 + $0xe8] sm:$0xff]  ;;  %v623_v48 = vld [vmem:[%s2725_s4 + $0xf0] sm:$0xff] }
  0x26   : > { %729 = vmatpush.msrb.mxu3 %v620_v1  ;;  %670 = vmatpush.msrb.mxu0 %v609_v2  ;;  %v621_v46 = vld [vmem:[%s2725_s4 + $0xe0] sm:$0xff]  ;;  %v624_v49 = vld [vmem:[%s2725_s4 + $0xf8] sm:$0xff]  ;;  %v614_v51 = vld [vmem:[%s2725_s4 + $0xa8] sm:$0xff] }
  0x27   : > { %690 = vmatpush.msrb.mxu1 %v610_v3  ;;  %v613_v50 = vld [vmem:[%s2725_s4 + $0xa0] sm:$0xff]  ;;  %v615_v52 = vld [vmem:[%s2725_s4 + $0xb0] sm:$0xff]  ;;  %v616_v53 = vld [vmem:[%s2725_s4 + $0xb8] sm:$0xff] }
  0x28   : > { %730 = vmatpush.msrb.mxu3 %v612_v5  ;;  %671 = vmatpush.msrb.mxu0 %v601_v6  ;;  %v605_v54 = vld [vmem:[%s2725_s4 + $0x60] sm:$0xff]  ;;  %v606_v55 = vld [vmem:[%s2725_s4 + $0x68] sm:$0xff]  ;;  %v607_v56 = vld [vmem:[%s2725_s4 + $0x70] sm:$0xff] }
  0x29   : > { %691 = vmatpush.msrb.mxu1 %v602_v7  ;;  %v608_v57 = vld [vmem:[%s2725_s4 + $0x78] sm:$0xff]  ;;  %v597_v58 = vld [vmem:[%s2725_s4 + $0x20] sm:$0xff]  ;;  %v598_v59 = vld [vmem:[%s2725_s4 + $0x28] sm:$0xff] }
  0x2a   : > { %731 = vmatpush.msrb.mxu3 %v604_v9  ;;  %672 = vmatpush.msrb.mxu0 %v593_v10  ;;  %v599_v60 = vld [vmem:[%s2725_s4 + $0x30] sm:$0xff]  ;;  %v600_v61 = vld [vmem:[%s2725_s4 + $0x38] sm:$0xff] }
  0x2b   : > { %692 = vmatpush.msrb.mxu1 %v594_v11 }
  0x83   : > { %v442_v13 = vpop.xlane.xlu0 %441 }
  0x84   : > { %v450_v14 = vmul.f32 %v2036_v12, %v442_v13  ;;  %v595_v13 = vld [vmem:[%s2725_s4 + $0x10] sm:$0xff] }
  0x86   : > { %v2039_v15 = vsub.f32 %v436_v0, %v450_v14  ;;  %v619_v0 = vld [vmem:[%s2725_s4 + $0xd0] sm:$0xff]  ;;  %v596_v14 = vld [vmem:[%s2725_s4 + $0x18] sm:$0xff] }
  0x87   : > { %709 = vmatpush.msrb.mxu2 %v619_v0  ;;  %732 = vmatpush.msrb.mxu3 %v596_v14 }
  0x88   : > { %v452_v16 = vmul.f32 %v2039_v15, %v2039_v15 }
  0x89   : > { %710 = vmatpush.msrb.mxu2 %v611_v4 }
  0x8a   : > { %v453_v17 = vsel %vm439_vm0, %v452_v16, 0.0 }
  0x8b   : > { %454 = vadd.xlane.f32.xlu0 %v453_v17  ;;  %711 = vmatpush.msrb.mxu2 %v603_v8 }
  0x8d   : > { %712 = vmatpush.msrb.mxu2 %v595_v13 }
  0xfe   : > { %v455_v16 = vpop.xlane.xlu0 %454 }
  0xff   : > { %v456_v17 = vmul.f32 %v455_v16, %v2036_v12 }
 0x101   : > { %v457_v18 = vadd.f32 1e-06, %v456_v17 }
 0x103   : > { %1885 = vrsqrt.f32 %v457_v18  ;;  %vm464_vm3 = vweird.f32 %v457_v18 }
 0x109   : > { %v1886_v19 = vpop.eup %1885 }
 0x10a   : > { %v459_v20 = vmul.f32 %v1886_v19, %v457_v18  ;;  %vm465_vm2 = vweird.f32 %v1886_v19 }
 0x10b   : > { %vm466_vm4 = vmor %vm464_vm3, %vm465_vm2 }
 0x10c   : > { %v460_v21 = vmul.f32 %v1886_v19, %v459_v20 }
 0x10e   : > { %v461_v22 = vmul.f32 0.5, %v460_v21 }
 0x110   : > { %v462_v23 = vsub.f32 1.5, %v461_v22 }
 0x112   : > { %v463_v24 = vmul.f32 %v1886_v19, %v462_v23 }
 0x114   : > { %v467_v26 = vsel %vm466_vm4, %v1886_v19, %v463_v24 }
 0x115   : > { %v468_v28 = vmul.f32 %v467_v26, %v2039_v15  ;;  %v655_v15 = vld [vmem:[%s2725_s4 + $0x1f0] sm:$0xff] }
 0x117   : > { %v472_v29 = vmul.f32 %v1877_v25, %v468_v28 }
 0x119   : > { %v2232_v30 = vadd.f32 %v1878_v27, %v472_v29 }
 0x11b   : > { %1810 = vmatmul.msk.f32.vlgmr.msra.gmra.mxu0 %vm509_vm5, %v2232_v30  ;;  %1811 = vmatmul.msk.f32.vlgmr.msra.gmra.mxu1 %vm509_vm5, %v2232_v30 }
 0x11c   : > { %1812 = vmatmul.msk.f32.vlgmr.msra.gmra.mxu2 %vm509_vm5, %v2232_v30  ;;  %1813 = vmatmul.msk.f32.vlgmr.msra.gmra.mxu3 %vm509_vm5, %v2232_v30 }
 0x11d   : > { %745 = vmatpush.msra.mxu0 %v653_v31  ;;  %765 = vmatpush.msra.mxu1 %v654_v32 }
 0x11e   : > { %785 = vmatpush.msra.mxu2 %v655_v15  ;;  %805 = vmatpush.msra.mxu3 %v656_v33 }
 0x11f   : > { %746 = vmatpush.msra.mxu0 %v645_v34  ;;  %766 = vmatpush.msra.mxu1 %v646_v35 }
 0x120   : > { %786 = vmatpush.msra.mxu2 %v647_v36  ;;  %806 = vmatpush.msra.mxu3 %v648_v37 }
 0x121   : > { %747 = vmatpush.msra.mxu0 %v637_v38  ;;  %767 = vmatpush.msra.mxu1 %v638_v39 }
 0x122   : > { %787 = vmatpush.msra.mxu2 %v639_v40  ;;  %807 = vmatpush.msra.mxu3 %v640_v41 }
 0x123   : > { %748 = vmatpush.msra.mxu0 %v629_v42  ;;  %768 = vmatpush.msra.mxu1 %v630_v43 }
 0x124   : > { %788 = vmatpush.msra.mxu2 %v631_v44  ;;  %808 = vmatpush.msra.mxu3 %v632_v45 }
 0x125   : > { %1814 = vmatmul.msk.f32.vlgmr.msrb.gmra.mxu0 %vm509_vm5, %v2232_v30  ;;  %1815 = vmatmul.msk.f32.vlgmr.msrb.gmra.mxu1 %vm509_vm5, %v2232_v30 }
 0x126   : > { %1816 = vmatmul.msk.f32.vlgmr.msrb.gmra.mxu2 %vm509_vm5, %v2232_v30  ;;  %1817 = vmatmul.msk.f32.vlgmr.msrb.gmra.mxu3 %vm509_vm5, %v2232_v30 }
 0x127   : > { %749 = vmatpush.msra.mxu0 %v621_v46  ;;  %769 = vmatpush.msra.mxu1 %v622_v47 }
 0x128   : > { %789 = vmatpush.msra.mxu2 %v623_v48  ;;  %809 = vmatpush.msra.mxu3 %v624_v49 }
 0x129   : > { %750 = vmatpush.msra.mxu0 %v613_v50  ;;  %770 = vmatpush.msra.mxu1 %v614_v51 }
 0x12a   : > { %790 = vmatpush.msra.mxu2 %v615_v52  ;;  %810 = vmatpush.msra.mxu3 %v616_v53 }
 0x12b   : > { %751 = vmatpush.msra.mxu0 %v605_v54  ;;  %771 = vmatpush.msra.mxu1 %v606_v55 }
 0x12c   : > { %791 = vmatpush.msra.mxu2 %v607_v56  ;;  %811 = vmatpush.msra.mxu3 %v608_v57 }
 0x12d   : > { %752 = vmatpush.msra.mxu0 %v597_v58  ;;  %772 = vmatpush.msra.mxu1 %v598_v59 }
 0x12e   : > { %792 = vmatpush.msra.mxu2 %v599_v60  ;;  %812 = vmatpush.msra.mxu3 %v600_v61 }
 0x12f   : > { %1818 = vmatmul.msk.f32.vlgmr.msra.gmra.mxu0 %vm509_vm5, %v2232_v30  ;;  %1819 = vmatmul.msk.f32.vlgmr.msra.gmra.mxu1 %vm509_vm5, %v2232_v30 }
 0x130   : > { %1820 = vmatmul.msk.f32.vlgmr.msra.gmra.mxu2 %vm509_vm5, %v2232_v30  ;;  %1821 = vmatmul.msk.f32.vlgmr.msra.gmra.mxu3 %vm509_vm5, %v2232_v30 }
 0x198   : > { %v530_v62 = vpop.f32.mrf.mxu0  ;;  %v550_v63 = vpop.f32.mrf.mxu1 }
 0x19f   : > { %v570_v0 = vpop.f32.mrf.mxu2  ;;  %v590_v3 = vpop.f32.mrf.mxu3 }
 0x1a2   : > { %v674_v1 = vpop.f32.mrf.mxu0  ;;  %v694_v2 = vpop.f32.mrf.mxu1 }
 0x1a3   : > { %1154 = vrot.lane.b32.xlu2 %v694_v2, %s1933_s15  ;;  %975 = vrot.lane.b32.xlu1 %v674_v1, %s1933_s15 }
 0x1a4   : > { %1822 = vmatpush.xpose.msk.msrb.mxu0 %vm509_vm5, %v674_v1 }
 0x1a7   : > { %1823 = vmatmul.msk.f32.vlgmr.msrb.gmra.mxu0 %vm509_vm5, %v530_v62 }
 0x1a9   : > { %v714_v4 = vpop.f32.mrf.mxu2  ;;  %v734_v6 = vpop.f32.mrf.mxu3 }
 0x1aa   : > { %1333 = vrot.lane.b32.xlu0 %v714_v4, %s1933_s15 }
 0x1ab   : > { %1152 = vrot.lane.b32.xlu2 %v550_v63, %s1933_s15  ;;  %973 = vrot.lane.b32.xlu1 %v530_v62, %s1933_s15 }
 0x1ac   : > { %v2361_v5 = vpop.f32.mrf.mxu0 }
 0x1ad   : > { %1824 = vmatpush.msk.msrb.mxu1 %vm925_vm6, %v2361_v5 }
 0x1b3   : > { %1512 = vrot.lane.b32.xlu2 %v734_v6, %s1933_s15  ;;  %1331 = vrot.lane.b32.xlu1 %v570_v0, %s1933_s15  ;;  %v2383_v20 = vpop.f32.mrf.mxu3 }
 0x1bb   : > { %1510 = vrot.lane.b32.xlu1 %v590_v3, %s1933_s15 }
 0x1fd   : > { %v1155_v9 = vpop.permute.xlu2 %1154 }
 0x205   : > { %v1153_v14 = vpop.permute.xlu2 %1152 }
 0x20d   : > { %v1513_v18 = vpop.permute.xlu2 %1512 }
 0x215   : > { %v976_v7 = vpop.permute.xlu1 %975 }
 0x216   : > { %1827 = vmatpush.xpose.msk.msrb.mxu3 %vm509_vm5, %v976_v7 }
 0x21a   : > { %1832 = vmatpush.xpose.msk.msra.mxu3 %vm509_vm5, %v694_v2 }
 0x21c   : > { %v1334_v16 = vpop.permute.xlu0 %1333 }
 0x21d   : > { %v974_v8 = vpop.permute.xlu1 %973 }
 0x21e   : > { %1828 = vmatmul.msk.f32.vlgmr.msrb.gmra.mxu3 %vm509_vm5, %v974_v8 }
 0x21f   : > { %1837 = vmatpush.xpose.msk.msrb.mxu3 %vm509_vm5, %v1155_v9 }
 0x224   : > { %v905_v10 = vpop.f32.mrf.mxu0 }
 0x225   : > { %v908_v11 = vmul.f32 0.35355338, %v905_v10  ;;  %v1332_v17 = vpop.permute.xlu1 %1331 }
 0x226   : > { %1833 = vmatmul.msk.f32.vlgmr.msra.gmra.mxu3 %vm509_vm5, %v550_v63 }
 0x227   : > { %1842 = vmatpush.xpose.msk.msra.mxu3 %vm509_vm5, %v714_v4  ;;  %v910_v13 = vsel %vm909_vm7, %v908_v11, -inf }
 0x228   : > { %911 = vmax.xlane.f32.xlu0 %v910_v13  ;;  %v774_v13 = vpop.f32.mrf.mxu1 }
 0x22d   : > { %v1511_v19 = vpop.permute.xlu1 %1510 }
 0x22e   : > { %1838 = vmatmul.msk.f32.vlgmr.msrb.gmra.mxu3 %vm509_vm5, %v1153_v14 }
 0x22f   : > { %1847 = vmatpush.xpose.msk.msrb.mxu3 %vm509_vm5, %v1334_v16 }
 0x236   : > { %1843 = vmatmul.msk.f32.vlgmr.msra.gmra.mxu3 %vm509_vm5, %v570_v0 }
 0x237   : > { %1852 = vmatpush.xpose.msk.msra.mxu3 %vm509_vm5, %v734_v6 }
 0x23e   : > { %1848 = vmatmul.msk.f32.vlgmr.msrb.gmra.mxu3 %vm509_vm5, %v1332_v17 }
 0x23f   : > { %1857 = vmatpush.xpose.msk.msrb.mxu3 %vm509_vm5, %v1513_v18 }
 0x246   : > { %1853 = vmatmul.msk.f32.vlgmr.msra.gmra.mxu3 %vm509_vm5, %v590_v3 }
 0x24e   : > { %1858 = vmatmul.msk.f32.vlgmr.msrb.gmra.mxu3 %vm509_vm5, %v1511_v19 }
 0x29b   : > { %v912_v30 = vpop.xlane.xlu0 %911 }
 0x29c   : > { %v913_v15 = vsub.f32 %v908_v11, %v912_v30  ;;  %v822_v30 = vld [vmem:[%s2726_s5 + $0x28] sm:$0xff] }
 0x29e   : > { %v914_v34 = vmul.f32 1.442695, %v913_v15  ;;  %v821_v15 = vld [vmem:[%s2726_s5 + $0x20] sm:$0xff] }
 0x2a0   : > { %1887 = vpow2.f32 %v914_v34  ;;  %v819_v34 = vld [vmem:[%s2726_s5 + $0x10] sm:$0xff] }
 0x2a1   : > { %v998_v21 = vpop.f32.mrf.mxu3 }
 0x2a2   : > { %v1001_v22 = vmul.f32 0.35355338, %v998_v21  ;;  %v794_v21 = vpop.f32.mrf.mxu2 }
 0x2a4   : > { %v1002_v23 = vsel %vm909_vm7, %v1001_v22, -inf }
 0x2a5   : > { %1003 = vmax.xlane.f32.xlu2 %v1002_v23 }
 0x2a6   : > { %v1888_v38 = vpop.eup %1887 }
 0x2a7   : > { %v916_v42 = vsel %vm909_vm7, %v1888_v38, 0.0 }
 0x2a9   : > { %v1087_v24 = vpop.f32.mrf.mxu3 }
 0x2aa   : > { %v1090_v25 = vmul.f32 0.35355338, %v1087_v24 }
 0x2ac   : > { %v1091_v26 = vsel %vm909_vm7, %v1090_v25, -inf }
 0x2ad   : > { %1092 = vmax.xlane.f32.xlu1 %v1091_v26 }
 0x2b1   : > { %v1177_v27 = vpop.f32.mrf.mxu3 }
 0x2b2   : > { %v1180_v28 = vmul.f32 0.35355338, %v1177_v27  ;;  %v824_v27 = vld [vmem:[%s2726_s5 + $0x38] sm:$0xff] }
 0x2b3   : > { %960 = vmatpush.msrb.mxu2 %v824_v27  ;;  %v864_v27 = vld [vmem:[%s2726_s5 + $0x178] sm:$0xff] }
 0x2b4   : > { %v1181_v29 = vsel %vm909_vm7, %v1180_v28, -inf }
 0x2b5   : > { %1182 = vmax.xlane.f32.xlu2 %v1181_v29 }
 0x2b9   : > { %v1266_v31 = vpop.f32.mrf.mxu3 }
 0x2ba   : > { %v1269_v32 = vmul.f32 0.35355338, %v1266_v31 }
 0x2bc   : > { %v1270_v33 = vsel %vm909_vm7, %v1269_v32, -inf }
 0x2bd   : > { %1271 = vmax.xlane.f32.xlu2 %v1270_v33  ;;  %v820_v33 = vld [vmem:[%s2726_s5 + $0x18] sm:$0xff] }
 0x2c1   : > { %v1356_v35 = vpop.f32.mrf.mxu3 }
 0x2c2   : > { %v1359_v36 = vmul.f32 0.35355338, %v1356_v35 }
 0x2c4   : > { %v1360_v37 = vsel %vm909_vm7, %v1359_v36, -inf }
 0x2c5   : > { %1361 = vmax.xlane.f32.xlu1 %v1360_v37 }
 0x2c9   : > { %v1445_v39 = vpop.f32.mrf.mxu3 }
 0x2ca   : > { %v1448_v40 = vmul.f32 0.35355338, %v1445_v39 }
 0x2cc   : > { %v1449_v41 = vsel %vm909_vm7, %v1448_v40, -inf }
 0x2cd   : > { %1450 = vmax.xlane.f32.xlu0 %v1449_v41  ;;  %917 = vadd.xlane.f32.xlu1 %v916_v42 }
 0x2d1   : > { %v1535_v43 = vpop.f32.mrf.mxu3 }
 0x2d2   : > { %v1538_v44 = vmul.f32 0.35355338, %v1535_v43 }
 0x2d4   : > { %v1539_v45 = vsel %vm909_vm7, %v1538_v44, -inf }
 0x2d5   : > { %1540 = vmax.xlane.f32.xlu2 %v1539_v45 }
 0x2ed   : > { %1013 = vrot.lane.b32.xlu2 %v2361_v5, %s1933_s15 }
 0x318   : > { %v1004_v46 = vpop.xlane.xlu2 %1003 }
 0x319   : > { %v1005_v47 = vsub.f32 %v1001_v22, %v1004_v46 }
 0x31b   : > { %v1006_v48 = vmul.f32 1.442695, %v1005_v47 }
 0x31d   : > { %1889 = vpow2.f32 %v1006_v48 }
 0x320   : > { %v1093_v49 = vpop.xlane.xlu1 %1092 }
 0x321   : > { %v1094_v50 = vsub.f32 %v1090_v25, %v1093_v49 }
 0x323   : > { %v2395_v51 = vpop.eup %1889  ;;  %v1095_v52 = vmul.f32 1.442695, %v1094_v50 }
 0x324   : > { %v1008_v53 = vsel %vm909_vm7, %v2395_v51, 0.0 }
 0x325   : > { %1891 = vpow2.f32 %v1095_v52  ;;  %1009 = vadd.xlane.f32.xlu1 %v1008_v53  ;;  %v832_v52 = vld [vmem:[%s2726_s5 + $0x78] sm:$0xff]  ;;  %v831_v53 = vld [vmem:[%s2726_s5 + $0x70] sm:$0xff] }
 0x326   : > { %1051 = vmatpush.msra.mxu1 %v832_v52  ;;  %v875_v52 = vld [vmem:[%s2726_s5 + $0x1d0] sm:$0xff] }
 0x328   : > { %v1183_v54 = vpop.xlane.xlu2 %1182  ;;  %1052 = vmatpush.msra.mxu1 %v831_v53  ;;  %v874_v53 = vld [vmem:[%s2726_s5 + $0x1c8] sm:$0xff] }
 0x329   : > { %v1184_v55 = vsub.f32 %v1180_v28, %v1183_v54  ;;  %v823_v28 = vld [vmem:[%s2726_s5 + $0x30] sm:$0xff]  ;;  %v840_v54 = vld [vmem:[%s2726_s5 + $0xb8] sm:$0xff] }
 0x32a   : > { %961 = vmatpush.msrb.mxu2 %v823_v28 }
 0x32b   : > { %v2399_v56 = vpop.eup %1891  ;;  %v1185_v57 = vmul.f32 1.442695, %v1184_v55  ;;  %v830_v55 = vld [vmem:[%s2726_s5 + $0x68] sm:$0xff] }
 0x32c   : > { %v1097_v58 = vsel %vm909_vm7, %v2399_v56, 0.0  ;;  %962 = vmatpush.msrb.mxu2 %v822_v30  ;;  %1053 = vmatpush.msra.mxu1 %v830_v55  ;;  %v863_v30 = vld [vmem:[%s2726_s5 + $0x170] sm:$0xff] }
 0x32d   : > { %1893 = vpow2.f32 %v1185_v57  ;;  %1098 = vadd.xlane.f32.xlu0 %v1097_v58  ;;  %v838_v57 = vld [vmem:[%s2726_s5 + $0xa8] sm:$0xff]  ;;  %v829_v58 = vld [vmem:[%s2726_s5 + $0x60] sm:$0xff] }
 0x32e   : > { %963 = vmatpush.msrb.mxu2 %v821_v15  ;;  %1054 = vmatpush.msra.mxu1 %v829_v58  ;;  %v872_v15 = vld [vmem:[%s2726_s5 + $0x1b8] sm:$0xff] }
 0x330   : > { %v1272_v59 = vpop.xlane.xlu2 %1271  ;;  %964 = vmatpush.msrb.mxu2 %v820_v33 }
 0x331   : > { %v1273_v60 = vsub.f32 %v1269_v32, %v1272_v59 }
 0x332   : > { %965 = vmatpush.msrb.mxu2 %v819_v34  ;;  %v860_v34 = vld [vmem:[%s2726_s5 + $0x158] sm:$0xff] }
 0x333   : > { %v2403_v61 = vpop.eup %1893  ;;  %v1274_v62 = vmul.f32 1.442695, %v1273_v60  ;;  %v828_v60 = vld [vmem:[%s2726_s5 + $0x58] sm:$0xff] }
 0x334   : > { %v1187_v63 = vsel %vm909_vm7, %v2403_v61, 0.0  ;;  %1055 = vmatpush.msra.mxu1 %v828_v60 }
 0x335   : > { %1895 = vpow2.f32 %v1274_v62  ;;  %1188 = vadd.xlane.f32.xlu0 %v1187_v63  ;;  %v827_v62 = vld [vmem:[%s2726_s5 + $0x50] sm:$0xff]  ;;  %v826_v63 = vld [vmem:[%s2726_s5 + $0x48] sm:$0xff] }
 0x336   : > { %1056 = vmatpush.msra.mxu1 %v827_v62 }
 0x338   : > { %v1362_v0 = vpop.xlane.xlu1 %1361  ;;  %1057 = vmatpush.msra.mxu1 %v826_v63 }
 0x339   : > { %v1363_v1 = vsub.f32 %v1359_v36, %v1362_v0  ;;  %v818_v36 = vld [vmem:[%s2726_s5 + $0x8] sm:$0xff] }
 0x33a   : > { %966 = vmatpush.msrb.mxu2 %v818_v36  ;;  %v871_v36 = vld [vmem:[%s2726_s5 + $0x1b0] sm:$0xff] }
 0x33b   : > { %v2407_v2 = vpop.eup %1895  ;;  %v1364_v3 = vmul.f32 1.442695, %v1363_v1 }
 0x33c   : > { %v1276_v4 = vsel %vm909_vm7, %v2407_v2, 0.0 }
 0x33d   : > { %1897 = vpow2.f32 %v1364_v3  ;;  %1277 = vadd.xlane.f32.xlu1 %v1276_v4  ;;  %v825_v3 = vld [vmem:[%s2726_s5 + $0x40] sm:$0xff] }
 0x33e   : > { %v837_v4 = vld [vmem:[%s2726_s5 + $0xa0] sm:$0xff]  ;;  %1058 = vmatpush.msra.mxu1 %v825_v3 }
 0x340   : > { %v918_v5 = vpop.xlane.xlu1 %917  ;;  %v1451_v6 = vpop.xlane.xlu0 %1450 }
 0x341   : > { %1899 = vrcp.f32 %v918_v5  ;;  %v1452_v7 = vsub.f32 %v1448_v40, %v1451_v6  ;;  %v836_v5 = vld [vmem:[%s2726_s5 + $0x98] sm:$0xff]  ;;  %v835_v6 = vld [vmem:[%s2726_s5 + $0x90] sm:$0xff] }
 0x343   : > { %v2411_v8 = vpop.eup %1897  ;;  %v1453_v9 = vmul.f32 1.442695, %v1452_v7  ;;  %v834_v7 = vld [vmem:[%s2726_s5 + $0x88] sm:$0xff] }
 0x344   : > { %v1366_v10 = vsel %vm909_vm7, %v2411_v8, 0.0 }
 0x345   : > { %1901 = vpow2.f32 %v1453_v9  ;;  %1367 = vadd.xlane.f32.xlu1 %v1366_v10  ;;  %v848_v9 = vld [vmem:[%s2726_s5 + $0xf8] sm:$0xff]  ;;  %v847_v10 = vld [vmem:[%s2726_s5 + $0xf0] sm:$0xff] }
 0x347   : > { %v1900_v11 = vpop.eup %1899 }
 0x348   : > { %v920_v14 = vmul.f32 %v1900_v11, %v1888_v38  ;;  %v1541_v16 = vpop.xlane.xlu2 %1540  ;;  %v817_v38 = vld [vmem:[%s2726_s5] sm:$0xff]  ;;  %v856_v11 = vld [vmem:[%s2726_s5 + $0x138] sm:$0xff] }
 0x349   : > { %1192 = vrot.lane.b32.xlu0 %v774_v13, %s1933_s15  ;;  %v1542_v22 = vsub.f32 %v1538_v44, %v1541_v16  ;;  %967 = vmatpush.msrb.mxu2 %v817_v38  ;;  %v854_v16 = vld [vmem:[%s2726_s5 + $0x128] sm:$0xff] }
 0x34a   : > { %1825 = vmatmul.msk.f32.vlgmr.msrb.gmra.mxu1 %vm921_vm8, %v920_v14  ;;  %v855_v14 = vld [vmem:[%s2726_s5 + $0x130] sm:$0xff]  ;;  %v870_v38 = vld [vmem:[%s2726_s5 + $0x1a8] sm:$0xff] }
 0x34b   : > { %v2417_v17 = vpop.eup %1901  ;;  %v1543_v23 = vmul.f32 1.442695, %v1542_v22  ;;  %1139 = vmatpush.msra.mxu2 %v840_v54  ;;  %1230 = vmatpush.msrb.mxu1 %v848_v9  ;;  %v841_v22 = vld [vmem:[%s2726_s5 + $0xc0] sm:$0xff] }
 0x34c   : > { %v1455_v18 = vsel %vm909_vm7, %v2417_v17, 0.0  ;;  %v873_v54 = vld [vmem:[%s2726_s5 + $0x1c0] sm:$0xff] }
 0x34d   : > { %1456 = vadd.xlane.f32.xlu2 %v1455_v18  ;;  %1903 = vpow2.f32 %v1543_v23  ;;  %1231 = vmatpush.msrb.mxu1 %v847_v10  ;;  %v844_v18 = vld [vmem:[%s2726_s5 + $0xd8] sm:$0xff]  ;;  %v853_v23 = vld [vmem:[%s2726_s5 + $0x120] sm:$0xff] }
 0x350   : > { %v1014_v19 = vpop.permute.xlu2 %1013 }
 0x351   : > { %1829 = vmatpush.msk.msra.mxu0 %vm925_vm6, %v1014_v19  ;;  %v843_v19 = vld [vmem:[%s2726_s5 + $0xd0] sm:$0xff] }
 0x353   : > { %1834 = vmatpush.msk.msrb.mxu0 %vm925_vm6, %v774_v13  ;;  %v2426_v24 = vpop.eup %1903  ;;  %v846_v13 = vld [vmem:[%s2726_s5 + $0xe8] sm:$0xff] }
 0x354   : > { %v1545_v25 = vsel %vm909_vm7, %v2426_v24, 0.0  ;;  %1232 = vmatpush.msrb.mxu1 %v846_v13 }
 0x35e   : > { %1371 = vrot.lane.b32.xlu1 %v794_v21, %s1933_s15 }
 0x366   : > { %1550 = vrot.lane.b32.xlu1 %v2383_v20, %s1933_s15 }
 0x373   : > { %1546 = vadd.xlane.f32.xlu0 %v1545_v25  ;;  %v851_v25 = vld [vmem:[%s2726_s5 + $0x110] sm:$0xff] }
 0x398   : > { %v1010_v26 = vpop.xlane.xlu1 %1009 }
 0x399   : > { %1905 = vrcp.f32 %v1010_v26  ;;  %v850_v26 = vld [vmem:[%s2726_s5 + $0x108] sm:$0xff] }
 0x39f   : > { %v1906_v29 = vpop.eup %1905 }
 0x3a0   : > { %v1012_v31 = vmul.f32 %v1906_v29, %v2395_v51  ;;  %v1099_v32 = vpop.xlane.xlu0 %1098  ;;  %v849_v29 = vld [vmem:[%s2726_s5 + $0x100] sm:$0xff] }
 0x3a1   : > { %1907 = vrcp.f32 %v1099_v32  ;;  %v861_v32 = vld [vmem:[%s2726_s5 + $0x160] sm:$0xff] }
 0x3a2   : > { %1830 = vmatmul.msk.f32.vlgmr.msra.gmra.mxu0 %vm921_vm8, %v1012_v31  ;;  %v862_v31 = vld [vmem:[%s2726_s5 + $0x168] sm:$0xff] }
 0x3a7   : > { %v1908_v35 = vpop.eup %1907 }
 0x3a8   : > { %v1101_v37 = vmul.f32 %v1908_v35, %v2399_v56  ;;  %v1189_v39 = vpop.xlane.xlu0 %1188  ;;  %v839_v56 = vld [vmem:[%s2726_s5 + $0xb0] sm:$0xff] }
 0x3a9   : > { %1909 = vrcp.f32 %v1189_v39  ;;  %1140 = vmatpush.msra.mxu2 %v839_v56  ;;  %v859_v35 = vld [vmem:[%s2726_s5 + $0x150] sm:$0xff]  ;;  %v857_v39 = vld [vmem:[%s2726_s5 + $0x140] sm:$0xff] }
 0x3aa   : > { %1835 = vmatmul.msk.f32.vlgmr.msrb.gmra.mxu0 %vm921_vm8, %v1101_v37  ;;  %v858_v37 = vld [vmem:[%s2726_s5 + $0x148] sm:$0xff] }
 0x3ab   : > { %1141 = vmatpush.msra.mxu2 %v838_v57 }
 0x3ad   : > { %1142 = vmatpush.msra.mxu2 %v837_v4 }
 0x3af   : > { %v1910_v41 = vpop.eup %1909  ;;  %1143 = vmatpush.msra.mxu2 %v836_v5 }
 0x3b0   : > { %v1278_v40 = vpop.xlane.xlu1 %1277  ;;  %v1191_v42 = vmul.f32 %v1910_v41, %v2403_v61  ;;  %v868_v41 = vld [vmem:[%s2726_s5 + $0x198] sm:$0xff] }
 0x3b1   : > { %1911 = vrcp.f32 %v1278_v40  ;;  %1144 = vmatpush.msra.mxu2 %v835_v6  ;;  %v869_v40 = vld [vmem:[%s2726_s5 + $0x1a0] sm:$0xff] }
 0x3b3   : > { %1145 = vmatpush.msra.mxu2 %v834_v7 }
 0x3b7   : > { %v1912_v44 = vpop.eup %1911 }
 0x3b8   : > { %v1280_v45 = vmul.f32 %v1912_v44, %v2407_v2  ;;  %v1368_v46 = vpop.xlane.xlu1 %1367  ;;  %v865_v44 = vld [vmem:[%s2726_s5 + $0x180] sm:$0xff] }
 0x3b9   : > { %1913 = vrcp.f32 %v1368_v46 }
 0x3bb   : > { %v1193_v43 = vpop.permute.xlu0 %1192 }
 0x3bc   : > { %1839 = vmatpush.msk.msra.mxu0 %vm925_vm6, %v1193_v43  ;;  %v866_v43 = vld [vmem:[%s2726_s5 + $0x188] sm:$0xff] }
 0x3bd   : > { %1840 = vmatmul.msk.f32.vlgmr.msra.gmra.mxu0 %vm921_vm8, %v1191_v42  ;;  %v867_v42 = vld [vmem:[%s2726_s5 + $0x190] sm:$0xff] }
 0x3be   : > { %1844 = vmatpush.msk.msrb.mxu0 %vm925_vm6, %v794_v21  ;;  %v842_v21 = vld [vmem:[%s2726_s5 + $0xc8] sm:$0xff] }
 0x3bf   : > { %v1914_v49 = vpop.eup %1913 }
 0x3c0   : > { %v1457_v48 = vpop.xlane.xlu2 %1456  ;;  %v1370_v50 = vmul.f32 %v1914_v49, %v2411_v8  ;;  %v833_v8 = vld [vmem:[%s2726_s5 + $0x80] sm:$0xff] }
 0x3c1   : > { %1915 = vrcp.f32 %v1457_v48  ;;  %1146 = vmatpush.msra.mxu2 %v833_v8  ;;  %v878_v48 = vld [vmem:[%s2726_s5 + $0x1e8] sm:$0xff]  ;;  %v877_v49 = vld [vmem:[%s2726_s5 + $0x1e0] sm:$0xff] }
 0x3c5   : > { %1845 = vmatmul.msk.f32.vlgmr.msrb.gmra.mxu0 %vm921_vm8, %v1280_v45  ;;  %v880_v45 = vld [vmem:[%s2726_s5 + $0x1f8] sm:$0xff] }
 0x3c7   : > { %v946_v47 = vpop.f32.mrf.mxu1  ;;  %v1916_v59 = vpop.eup %1915 }
 0x3c8   : > { %1826 = vmatmul.msk.f32.vlgmr.msrb.gmra.mxu2 %vm509_vm5, %v946_v47  ;;  %v879_v47 = vld [vmem:[%s2726_s5 + $0x1f0] sm:$0xff] }
 0x3c9   : > { %1318 = vmatpush.msrb.mxu2 %v856_v11  ;;  %v1923_v11 = vld [vmem:[%s2020_s30] sm:$0x1f] }
 0x3cb   : > { %1319 = vmatpush.msrb.mxu2 %v855_v14 }
 0x3cd   : > { %1320 = vmatpush.msrb.mxu2 %v854_v16 }
 0x3cf   : > { %1321 = vmatpush.msrb.mxu2 %v853_v23  ;;  %v1643_v23 = vld [vmem:[%s2730_s9 + $0x30] sm:$0xff] }
 0x3d0   : > { %v1372_v51 = vpop.permute.xlu1 %1371 }
 0x3d1   : > { %1849 = vmatpush.msk.msra.mxu0 %vm925_vm6, %v1372_v51 }
 0x3d2   : > { %1850 = vmatmul.msk.f32.vlgmr.msra.gmra.mxu0 %vm921_vm8, %v1370_v50  ;;  %v876_v50 = vld [vmem:[%s2726_s5 + $0x1d8] sm:$0xff] }
 0x3d3   : > { %1854 = vmatpush.msk.msrb.mxu0 %vm925_vm6, %v2383_v20  ;;  %v1459_v20 = vmul.f32 %v1916_v59, %v2417_v17  ;;  %v845_v17 = vld [vmem:[%s2726_s5 + $0xe0] sm:$0xff] }
 0x3d4   : > { %1233 = vmatpush.msrb.mxu1 %v845_v17 }
 0x3d6   : > { %1234 = vmatpush.msrb.mxu1 %v844_v18 }
 0x3d8   : > { %v1551_v61 = vpop.permute.xlu1 %1550  ;;  %1235 = vmatpush.msrb.mxu1 %v843_v19 }
 0x3d9   : > { %1859 = vmatpush.msk.msra.mxu0 %vm925_vm6, %v1551_v61 }
 0x3da   : > { %1855 = vmatmul.msk.f32.vlgmr.msrb.gmra.mxu0 %vm921_vm8, %v1459_v20  ;;  %1236 = vmatpush.msrb.mxu1 %v842_v21  ;;  %v881_v20 = vld [vmem:[%s2727_s6] sm:$0x1] }
 0x3dc   : > { %1237 = vmatpush.msrb.mxu1 %v841_v22  ;;  %v1644_v22 = vld [vmem:[%s2730_s9 + $0x38] sm:$0xff] }
 0x3dd   : > { %1660 = vmatpush.msra.mxu3 %v1644_v22 }
 0x3df   : > { %1661 = vmatpush.msra.mxu3 %v1643_v23 }
 0x3e6   : > { %v1547_v0 = vpop.xlane.xlu0 %1546 }
 0x3e7   : > { %1917 = vrcp.f32 %v1547_v0 }
 0x3ed   : > { %v1918_v1 = vpop.eup %1917 }
 0x3ee   : > { %v1549_v2 = vmul.f32 %v1918_v1, %v2426_v24  ;;  %v852_v24 = vld [vmem:[%s2726_s5 + $0x118] sm:$0xff] }
 0x3ef   : > { %1322 = vmatpush.msrb.mxu2 %v852_v24  ;;  %v1642_v24 = vld [vmem:[%s2730_s9 + $0x28] sm:$0xff] }
 0x3f0   : > { %1860 = vmatmul.msk.f32.vlgmr.msra.gmra.mxu0 %vm921_vm8, %v1549_v2  ;;  %1662 = vmatpush.msra.mxu3 %v1642_v24 }
 0x3f1   : > { %1323 = vmatpush.msrb.mxu2 %v851_v25  ;;  %v1641_v25 = vld [vmem:[%s2730_s9 + $0x20] sm:$0xff] }
 0x3f2   : > { %1663 = vmatpush.msra.mxu3 %v1641_v25 }
 0x3f3   : > { %1324 = vmatpush.msrb.mxu2 %v850_v26  ;;  %v1640_v26 = vld [vmem:[%s2730_s9 + $0x18] sm:$0xff] }
 0x3f4   : > { %1664 = vmatpush.msra.mxu3 %v1640_v26 }
 0x3f5   : > { %1325 = vmatpush.msrb.mxu2 %v849_v29  ;;  %v1637_v29 = vld [vmem:[%s2730_s9] sm:$0xff] }
 0x41f   : > { %v1037_v28 = vpop.f32.mrf.mxu0 }
 0x420   : > { %1831 = vmatmul.msk.f32.vlgmr.msra.gmra.mxu1 %vm509_vm5, %v1037_v28  ;;  %v1638_v28 = vld [vmem:[%s2730_s9 + $0x8] sm:$0xff] }
 0x421   : > { %1409 = vmatpush.msra.mxu1 %v864_v27  ;;  %v1639_v27 = vld [vmem:[%s2730_s9 + $0x10] sm:$0xff] }
 0x422   : > { %1665 = vmatpush.msra.mxu3 %v1639_v27 }
 0x423   : > { %1410 = vmatpush.msra.mxu1 %v863_v30 }
 0x424   : > { %1666 = vmatpush.msra.mxu3 %v1638_v28  ;;  %v1882_v28 = vld [vmem:[%s2733_s12] ss:$0 sm:$0xff] }
 0x425   : > { %1411 = vmatpush.msra.mxu1 %v862_v31 }
 0x426   : > { %1667 = vmatpush.msra.mxu3 %v1637_v29 }
 0x427   : > { %v1125_v33 = vpop.f32.mrf.mxu0  ;;  %1412 = vmatpush.msra.mxu1 %v861_v32 }
 0x428   : > { %1836 = vmatmul.msk.f32.vlgmr.msra.gmra.mxu2 %vm509_vm5, %v1125_v33 }
 0x429   : > { %1497 = vmatpush.msra.mxu2 %v872_v15  ;;  %1413 = vmatpush.msra.mxu1 %v860_v34 }
 0x42b   : > { %1414 = vmatpush.msra.mxu1 %v859_v35  ;;  %1498 = vmatpush.msra.mxu2 %v871_v36 }
 0x42d   : > { %1415 = vmatpush.msra.mxu1 %v858_v37  ;;  %1499 = vmatpush.msra.mxu2 %v870_v38  ;;  %v1879_v38 = vld [vmem:[%s2728_s7] ss:$0 sm:$0xff] }
 0x42f   : > { %1416 = vmatpush.msra.mxu1 %v857_v39  ;;  %1500 = vmatpush.msra.mxu2 %v869_v40 }
 0x431   : > { %1501 = vmatpush.msra.mxu2 %v868_v41 }
 0x433   : > { %1502 = vmatpush.msra.mxu2 %v867_v42 }
 0x435   : > { %1503 = vmatpush.msra.mxu2 %v866_v43  ;;  %v1881_v43 = vld [vmem:[%s2731_s10] ss:$0 sm:$0xff] }
 0x437   : > { %1504 = vmatpush.msra.mxu2 %v865_v44 }
 0x43a   : > { %v1216_v46 = vpop.f32.mrf.mxu0 }
 0x43b   : > { %1841 = vmatmul.msk.f32.vlgmr.msrb.gmra.mxu1 %vm509_vm5, %v1216_v46 }
 0x43c   : > { %1588 = vmatpush.msrb.mxu1 %v880_v45 }
 0x43e   : > { %1589 = vmatpush.msrb.mxu1 %v879_v47 }
 0x440   : > { %1590 = vmatpush.msrb.mxu1 %v878_v48 }
 0x442   : > { %v1304_v51 = vpop.f32.mrf.mxu0  ;;  %1591 = vmatpush.msrb.mxu1 %v877_v49 }
 0x443   : > { %1846 = vmatmul.msk.f32.vlgmr.msrb.gmra.mxu2 %vm509_vm5, %v1304_v51 }
 0x444   : > { %1592 = vmatpush.msrb.mxu1 %v876_v50 }
 0x446   : > { %1593 = vmatpush.msrb.mxu1 %v875_v52 }
 0x448   : > { %1594 = vmatpush.msrb.mxu1 %v874_v53 }
 0x44a   : > { %1595 = vmatpush.msrb.mxu1 %v873_v54 }
 0x44b   : > { %v969_v58 = vpop.f32.mrf.mxu2 }
 0x44c   : > { %v972_v62 = vadd.f32 %v969_v58, %v881_v20  ;;  %v1719_v58 = vld [vmem:[%s2732_s11 + $0x18] sm:$0xff] }
 0x44d   : > { %1740 = vmatpush.msrb.mxu0 %v1719_v58 }
 0x44f   : > { %v1395_v55 = vpop.f32.mrf.mxu0 }
 0x450   : > { %1851 = vmatmul.msk.f32.vlgmr.msra.gmra.mxu1 %vm509_vm5, %v1395_v55 }
 0x457   : > { %v1483_v56 = vpop.f32.mrf.mxu0 }
 0x458   : > { %1856 = vmatmul.msk.f32.vlgmr.msra.gmra.mxu2 %vm509_vm5, %v1483_v56 }
 0x46d   : > { %v1574_v57 = vpop.f32.mrf.mxu0 }
 0x46e   : > { %1861 = vmatmul.msk.f32.vlgmr.msrb.gmra.mxu1 %vm509_vm5, %v1574_v57 }
 0x49d   : > { %v1060_v59 = vpop.f32.mrf.mxu1 }
 0x49e   : > { %v1063_v0 = vadd.f32 %v1060_v59, %v972_v62 }
 0x4ab   : > { %v1148_v60 = vpop.f32.mrf.mxu2 }
 0x4ac   : > { %v1151_v1 = vadd.f32 %v1148_v60, %v1063_v0  ;;  %v1718_v60 = vld [vmem:[%s2732_s11 + $0x10] sm:$0xff] }
 0x4ad   : > { %1741 = vmatpush.msrb.mxu0 %v1718_v60 }
 0x4b8   : > { %v1239_v61 = vpop.f32.mrf.mxu1 }
 0x4b9   : > { %v1242_v3 = vadd.f32 %v1239_v61, %v1151_v1  ;;  %v1717_v61 = vld [vmem:[%s2732_s11 + $0x8] sm:$0xff] }
 0x4ba   : > { %1742 = vmatpush.msrb.mxu0 %v1717_v61 }
 0x4c6   : > { %v1327_v63 = vpop.f32.mrf.mxu2 }
 0x4c7   : > { %v1330_v4 = vadd.f32 %v1327_v63, %v1242_v3  ;;  %v1716_v63 = vld [vmem:[%s2732_s11] sm:$0xff] }
 0x4c8   : > { %1743 = vmatpush.msrb.mxu0 %v1716_v63 }
 0x4cd   : > { %v1418_v2 = vpop.f32.mrf.mxu1 }
 0x4ce   : > { %v1421_v6 = vadd.f32 %v1418_v2, %v1330_v4 }
 0x4db   : > { %v1506_v5 = vpop.f32.mrf.mxu2 }
 0x4dc   : > { %v1509_v7 = vadd.f32 %v1506_v5, %v1421_v6 }
 0x4eb   : > { %v1597_v8 = vpop.f32.mrf.mxu1 }
 0x4ec   : > { %v1600_v9 = vadd.f32 %v1597_v8, %v1509_v7 }
 0x4ee   : > { %v1602_v10 = vperm.slane %v1600_v9, 0 }
 0x4f0   : > { %v2654_v13 = vadd.f32 %v1923_v11, %v1602_v10 }
 0x4f2   : > { %v1607_v14 = vsel %vm439_vm0, %v2654_v13, 0.0 }
 0x4f3   : > { %1608 = vadd.xlane.f32.xlu1 %v1607_v14 }
 0x566   : > { %v1609_v16 = vpop.xlane.xlu1 %1608 }
 0x567   : > { %v1610_v17 = vmul.f32 %v1609_v16, %v2036_v12 }
 0x569   : > { %v1611_v18 = vsub.f32 %v2654_v13, %v1610_v17 }
 0x56b   : > { %v1612_v19 = vmul.f32 %v1611_v18, %v1611_v18 }
 0x56d   : > { %v1613_v21 = vsel %vm439_vm0, %v1612_v19, 0.0 }
 0x56e   : > { %1614 = vadd.xlane.f32.xlu2 %v1613_v21 }
 0x5e1   : > { %v1615_v30 = vpop.xlane.xlu2 %1614 }
 0x5e2   : > { %v1616_v31 = vmul.f32 %v1615_v30, %v2036_v12  ;;  %v1880_v12 = vld [vmem:[%s2729_s8] ss:$0 sm:$0xff] }
 0x5e4   : > { %v1617_v32 = vadd.f32 1e-06, %v1616_v31 }
 0x5e6   : > { %1919 = vrsqrt.f32 %v1617_v32  ;;  %vm1624_vm10 = vweird.f32 %v1617_v32 }
 0x5ec   : > { %v1920_v15 = vpop.eup %1919 }
 0x5ed   : > { %v1619_v33 = vmul.f32 %v1920_v15, %v1617_v32  ;;  %vm1625_vm9 = vweird.f32 %v1920_v15 }
 0x5ee   : > { %vm1626_vm11 = vmor %vm1624_vm10, %vm1625_vm9 }
 0x5ef   : > { %v1620_v34 = vmul.f32 %v1920_v15, %v1619_v33 }
 0x5f1   : > { %v1621_v35 = vmul.f32 0.5, %v1620_v34 }
 0x5f3   : > { %v1622_v36 = vsub.f32 1.5, %v1621_v35 }
 0x5f5   : > { %v1623_v37 = vmul.f32 %v1920_v15, %v1622_v36 }
 0x5f7   : > { %v1627_v39 = vsel %vm1626_vm11, %v1920_v15, %v1623_v37 }
 0x5f8   : > { %v1628_v40 = vmul.f32 %v1627_v39, %v1611_v18 }
 0x5fa   : > { %v1632_v41 = vmul.f32 %v1879_v38, %v1628_v40 }
 0x5fc   : > { %v1636_v42 = vadd.f32 %v1880_v12, %v1632_v41 }
 0x5fe   : > { %1862 = vmatmul.msk.f32.vlgmr.msra.gmra.mxu3 %vm509_vm5, %v1636_v42 }
 0x681   : > { %v1669_v44 = vpop.f32.mrf.mxu3 }
 0x682   : > { %v1670_v45 = vadd.f32 %v1881_v43, %v1669_v44 }
 0x684   : > { %v1673_v46 = vmul.f32 0.70710677, %v1670_v45  ;;  %v1672_v25 = vmul.f32 0.5, %v1670_v45 }
 0x686   : > { %v1674_v47 = vmul.f32 %v1673_v46, %v1673_v46 }
 0x688   : > { %v1675_v48 = vmin.f32 %v1674_v47, 16.0 }
 0x68a   : > { %v1676_v49 = vmul.f32 2.1237322e-06, %v1675_v48  ;;  %v1687_v50 = vmul.f32 3.8918573e-05, %v1675_v48 }
 0x68c   : > { %v1677_v51 = vadd.f32 0.00028619796, %v1676_v49  ;;  %v1688_v52 = vadd.f32 0.001143296, %v1687_v50 }
 0x68e   : > { %v1678_v53 = vmul.f32 %v1677_v51, %v1675_v48  ;;  %v1689_v54 = vmul.f32 %v1688_v52, %v1675_v48 }
 0x690   : > { %v1690_v55 = vadd.f32 0.014752088, %v1689_v54  ;;  %v1679_v56 = vadd.f32 0.0036580483, %v1678_v53 }
 0x692   : > { %v1691_v57 = vmul.f32 %v1690_v55, %v1675_v48  ;;  %v1680_v20 = vmul.f32 %v1679_v56, %v1675_v48 }
 0x694   : > { %v1692_v59 = vadd.f32 0.112945676, %v1691_v57  ;;  %v1681_v1 = vadd.f32 0.05243302, %v1680_v20 }
 0x696   : > { %v1693_v62 = vmul.f32 %v1692_v59, %v1675_v48  ;;  %v1682_v4 = vmul.f32 %v1681_v1, %v1675_v48 }
 0x698   : > { %v1694_v0 = vadd.f32 0.4994258, %v1693_v62  ;;  %v1683_v5 = vadd.f32 0.18741608, %v1682_v4 }
 0x69a   : > { %v1695_v2 = vmul.f32 %v1694_v0, %v1675_v48  ;;  %v1684_v7 = vmul.f32 %v1683_v5, %v1675_v48 }
 0x69c   : > { %v1696_v3 = vadd.f32 1.0, %v1695_v2  ;;  %v1685_v11 = vadd.f32 1.1283791, %v1684_v7 }
 0x69e   : > { %1921 = vrcp.f32 %v1696_v3  ;;  %v1708_v10 = vand.u32 2147483648, %v1696_v3  ;;  %v1706_v16 = vand.u32 2147483647, %v1696_v3  ;;  %vm1702_vm13 = vweird.f32 %v1696_v3 }
 0x69f   : > { %v1686_v19 = vmul.f32 %v1685_v11, %v1673_v46 }
 0x6a0   : > { %v1709_v18 = vor.u32 1.1754944e-38, %v1708_v10  ;;  %vm1707_vm15 = vcmp.eq.f32.partialorder %v1706_v16, 8.507059e+37 }
 0x6a4   : > { %v1922_v6 = vpop.eup %1921 }
 0x6a5   : > { %v1698_v8 = vmul.f32 %v1922_v6, %v1696_v3  ;;  %vm1703_vm12 = vweird.f32 %v1922_v6 }
 0x6a6   : > { %vm1704_vm14 = vmor %vm1702_vm13, %vm1703_vm12 }
 0x6a7   : > { %v1699_v9 = vsub.f32 1.0, %v1698_v8 }
 0x6a9   : > { %v1700_v14 = vmul.f32 %v1922_v6, %v1699_v9 }
 0x6ab   : > { %v1701_v17 = vadd.f32 %v1922_v6, %v1700_v14 }
 0x6ad   : > { %v1705_v21 = vsel %vm1704_vm14, %v1922_v6, %v1701_v17 }
 0x6ae   : > { %v1710_v22 = vsel %vm1707_vm15, %v1709_v18, %v1705_v21 }
 0x6af   : > { %v1711_v23 = vmul.f32 %v1710_v22, %v1686_v19 }
 0x6b1   : > { %v1863_v24 = vclamps-f32 %v1711_v23, 1.0 }
 0x6b3   : > { %v1714_v26 = vadd.f32 1.0, %v1863_v24 }
 0x6b5   : > { %v1715_v27 = vmul.f32 %v1714_v26, %v1672_v25 }
 0x6b7   : > { %1864 = vmatmul.msk.f32.vlgmr.msrb.gmra.mxu0 %vm1724_vm1, %v1715_v27 }
 0x734   : > { %v1745_v29 = vpop.f32.mrf.mxu0 }
 0x735   : > { %v1746_v30 = vadd.f32 %v1882_v28, %v1745_v29 }
 0x737   : > { %v1748_v31 = vadd.f32 %v1746_v30, %v2654_v13 }
 0x739   : > { %1749 = vst.msk [vmem:[%s435_s21] sm:$0x1f] %vm439_vm0, %v1748_v31 }
 0x73a PF: > { %s23_s25 = sadd.s32 1, %s1930_s25  }
 0x73b   : > { %p20_p4 = scmp.ge.s32.totalorder %s23_s25, 4  }
 0x73d   :  { %22 = sbr.rel (!%p20_p4) target bundleno = 1 (0x1), region = 102 }

</bundles_post_ra>
